<compile_context>
chip_gen: v5e
topology: v5e:2x2
jax: 0.10.0
libtpu: 0.0.40
codegen_flags: <defaults>
</compile_context>

<pallas_src>
import jax
import jax.numpy as jnp
import numpy as np
from jax.experimental import pallas as pl
from jax.experimental.pallas import tpu as pltpu

EPS = 1e-5  # nn.InstanceNorm2d default eps (affine=False, biased variance)


# --------------------------------------------------------------- kernel utils
def _reflect_pad1(h, H, W):
    """h: (H, W, C) -> (H+2, W+2, C), ReflectionPad2d(1) semantics (H, W >= 2)."""
    hp = jnp.concatenate([h[1:2], h, h[H - 2:H - 1]], axis=0)
    hp = jnp.concatenate([hp[:, 1:2], hp, hp[:, W - 2:W - 1]], axis=1)
    return hp


def _conv3x3(h, w_ref, H, W, C):
    """3x3 'same' conv with reflection padding, 3-row im2col decomposition.

    h:     (H, W, C) activations (any float dtype)
    w_ref: (3, 3*C, C) Ref, HWIO weights flattened per kh as (kw, cin) x cout,
           already in the matmul dtype (f32 or bf16)
    returns (H*W, C) f32
    """
    # Cast BEFORE building pad / im2col so all the copy traffic is in the
    # (possibly packed) matmul dtype, not f32.
    hm = h.astype(w_ref.dtype)
    hp = _reflect_pad1(hm, H, W)                       # (H+2, W+2, C)

    acc = None
    for kh in range(3):                                # static unrolled loop
        rows = hp[kh:kh + H]                           # (H, W+2, C)
        row_im2col = jnp.concatenate(
            [rows[:, kw:kw + W, :] for kw in range(3)], axis=-1
        ).reshape(H * W, 3 * C)                        # (H*W, 3C), matmul dtype
        part = jnp.dot(row_im2col, w_ref[kh],
                       preferred_element_type=jnp.float32)
        acc = part if acc is None else acc + part
    return acc                                         # (H*W, C) f32
    # NOTE: with K=3C and N=C, C=128 fills v5e's 128-wide MXU exactly; on
    # v6e/v7x the 256-wide MXU is half-filled on N — inherent to C=128, and
    # the binding slot here is stores/DMA, not the MXU.


def _instance_norm(y, n):
    """One-pass InstanceNorm over the spatial axis (biased variance), f32.

    y: (H*W, C) f32; n = H*W (static python int).
    """
    s = jnp.sum(y, axis=0, keepdims=True)
    ss = jnp.sum(y * y, axis=0, keepdims=True)
    mean = s * (1.0 / n)
    var = jnp.maximum(ss * (1.0 / n) - mean * mean, 0.0)
    return (y - mean) * jax.lax.rsqrt(var + EPS)       # rsqrt -> EUP slot


# ---------------------------------------------------------------- kernel body
def residual_block_kernel(x_ref, w1_ref, w2_ref, o_ref):
    _, H, W, C = x_ref.shape
    n = H * W
    x = x_ref[0]                                       # (H, W, C), input dtype

    # conv1 -> InstanceNorm -> ReLU   (bias dropped: cancelled by IN mean-sub)
    y = _conv3x3(x, w1_ref, H, W, C)                   # (H*W, C) f32
    y = jnp.maximum(_instance_norm(y, n), 0.0)

    # conv2 -> InstanceNorm
    z = _conv3x3(y.reshape(H, W, C), w2_ref, H, W, C)
    z = _instance_norm(z, n)

    # residual add (f32), store in the I/O dtype
    out = z + x.reshape(n, C).astype(jnp.float32)
    o_ref[0] = out.reshape(H, W, C).astype(o_ref.dtype)


# ---------------------------------------------------------------- wrapper
def _vmem_limit_bytes(H, W, C, matmul_bytes, io_bytes):
    """Per-grid-step VMEM estimate (lane-padded) with a generation-aware cap."""
    lane = 128
    cpad = max(C, lane)
    io_slab = H * W * cpad * io_bytes                      # one I/O slab
    act_f32 = H * W * cpad * 4                             # f32 intermediate
    act_mm = (H + 2) * (W + 2) * cpad * matmul_bytes       # padded slab
    im2col = H * W * max(3 * C, lane) * matmul_bytes       # one row-im2col
    wts = 2 * 9 * C * cpad * matmul_bytes
    est = (4 * io_slab + 4 * act_f32 + 2 * act_mm + 2 * im2col + 2 * wts
           + (4 << 20))
    try:
        cap = pltpu.get_tpu_info().vmem_capacity_bytes - (12 << 20)
    except Exception:
        cap = 56 << 20  # conservative default that also fits v7x's 64 MiB
    return int(min(cap, max(32 << 20, est)))


def residual_block_nhwc(x, w1, w2, *, matmul_dtype=jnp.bfloat16):
    """NHWC entry point (no layout transposes).

    x:  (N, H, W, C) activations; output dtype == x.dtype (pass bf16 x to halve
        I/O HBM traffic when the surrounding network runs bf16).
    w*: (3, 3, Cin, Cout) HWIO conv weights. Conv biases are intentionally not
        taken: InstanceNorm(affine=False) cancels them exactly.
    matmul_dtype: MXU dtype. bf16 is the right default on v5e/v6e/v7x; all
        statistics / residual math stays f32.
    """
    N, H, W, C = x.shape
    assert H >= 2 and W >= 2, "ReflectionPad2d(1) requires H >= 2 and W >= 2"

    # (3, 3, Cin, Cout) -> (3 [kh], 3*C [(kw, cin)], C [cout])
    w1f = jnp.asarray(w1).reshape(3, 3 * C, C).astype(matmul_dtype)
    w2f = jnp.asarray(w2).reshape(3, 3 * C, C).astype(matmul_dtype)

    vmem_bytes = _vmem_limit_bytes(
        H, W, C,
        matmul_bytes=jnp.dtype(matmul_dtype).itemsize,
        io_bytes=jnp.dtype(x.dtype).itemsize)

    def _call(single_buffer_weights):
        def w_spec():
            if single_buffer_weights:
                # Grid-invariant block: one buffer is enough -> saves the
                # second pipeline buffer's VMEM (helps the v7x budget).
                return pl.BlockSpec((3, 3 * C, C), lambda n: (0, 0, 0),
                                    pipeline_mode=pl.Buffered(1))
            return pl.BlockSpec((3, 3 * C, C), lambda n: (0, 0, 0))

        return pl.pallas_call(
            residual_block_kernel,
            out_shape=jax.ShapeDtypeStruct((N, H, W, C), x.dtype),
            grid_spec=pltpu.PrefetchScalarGridSpec(
                num_scalar_prefetch=0,
                grid=(N,),
                in_specs=[
                    pl.BlockSpec((1, H, W, C), lambda n: (n, 0, 0, 0)),
                    w_spec(),
                    w_spec(),
                ],
                out_specs=pl.BlockSpec((1, H, W, C), lambda n: (n, 0, 0, 0)),
            ),
            compiler_params=pltpu.CompilerParams(
                dimension_semantics=("parallel",),
                vmem_limit_bytes=vmem_bytes,
            ),
        )(x, w1f, w2f)

    try:
        return _call(True)
    except Exception:
        # TODO(synk): drop this fallback once pl.Buffered(1) single-buffering
        #             of grid-invariant blocks is available on all jax versions.
        return _call(False)


def residual_block(x_nchw, w1, b1, w2, b2, *, matmul_dtype=jnp.bfloat16):
    """NCHW wrapper matching the PyTorch module's layout.

    b1/b2 are accepted for API parity with nn.Conv2d but are ignored: with
    InstanceNorm2d(affine=False) immediately after each conv, a per-channel
    bias is exactly cancelled by the mean subtraction (dead compute).

    NOTE: the two transposes below are a full HBM round trip each; call
    residual_block_nhwc directly if the surrounding model keeps NHWC.
    """
    del b1, b2
    x = jnp.transpose(x_nchw, (0, 2, 3, 1))                    # (N, H, W, C)
    out = residual_block_nhwc(x, w1, w2, matmul_dtype=matmul_dtype)
    return jnp.transpose(out, (0, 3, 1, 2))                    # back to NCHW


# ---------------------------------------------------------------- pure-JAX ref
def residual_block_ref(x, w1, b1, w2, b2):
    def conv(x, w, b):
        xp = jnp.pad(x, ((0, 0), (0, 0), (1, 1), (1, 1)), mode="reflect")
        y = jax.lax.conv_general_dilated(
            xp, w, (1, 1), "VALID",
            dimension_numbers=("NCHW", "HWIO", "NCHW"))
        return y + b.reshape(1, -1, 1, 1)

    def inorm(y):
        m = jnp.mean(y, axis=(2, 3), keepdims=True)
        v = jnp.mean((y - m) ** 2, axis=(2, 3), keepdims=True)
        return (y - m) * jax.lax.rsqrt(v + EPS)

    h = jax.nn.relu(inorm(conv(x, w1, b1)))
    h = inorm(conv(h, w2, b2))
    return x + h


# ---------------------------------------------------------------- main
if __name__ == "__main__":
    key = jax.random.PRNGKey(0)
    N, C, H, W = 2, 4, 16, 16

    k_x, k_w1, k_b1, k_w2, k_b2 = jax.random.split(key, 5)
    x = jax.random.normal(k_x, (N, C, H, W), jnp.float32)
    fan_in = C * 3 * 3
    w1 = jax.random.normal(k_w1, (3, 3, C, C), jnp.float32) / np.sqrt(fan_in)
    b1 = jax.random.normal(k_b1, (C,), jnp.float32) * 0.1
    w2 = jax.random.normal(k_w2, (3, 3, C, C), jnp.float32) / np.sqrt(fan_in)
    b2 = jax.random.normal(k_b2, (C,), jnp.float32) * 0.1

    # Reference USES the conv biases; the kernel drops them -> matching results
    # also prove the bias/InstanceNorm cancellation.
    ref = jax.block_until_ready(residual_block_ref(x, w1, b1, w2, b2))

    # f32 MXU path: tight match against the pure-JAX reference.
    out_f32 = jax.block_until_ready(
        residual_block(x, w1, b1, w2, b2, matmul_dtype=jnp.float32))
    np.testing.assert_allclose(np.asarray(out_f32), np.asarray(ref),
                               rtol=1e-3, atol=1e-3)

    # bf16 MXU path (the default): looser tolerance since activations/weights
    # are rounded to bf16 before each matmul.
    out_bf16 = jax.block_until_ready(residual_block(x, w1, b1, w2, b2))
    np.testing.assert_allclose(np.asarray(out_bf16), np.asarray(ref),
                               rtol=1e-1, atol=1e-1)

    print("KERNEL_OK")
</pallas_src>

<mosaic_0001>
module attributes {stable_mosaic.version = 11 : i64} {
  func.func @residual_block_kernel(%arg0: i32, %arg1: memref<1x16x16x4xf32, #tpu.memory_space<vmem>>, %arg2: memref<3x12x4xf32, #tpu.memory_space<vmem>>, %arg3: memref<3x12x4xf32, #tpu.memory_space<vmem>>, %arg4: memref<1x16x16x4xf32, #tpu.memory_space<vmem>>) attributes {dimension_semantics = [#tpu.dimension_semantics<parallel>], iteration_bounds = array<i64: 2>, scalar_prefetch = 0 : i64, scratch_operands = 0 : i64, tpu.core_type = #tpu.core_type<tc>, window_params = [{transform_indices = @transform_0, window_bounds = array<i64: 1, 16, 16, 4>}, {pipeline_mode = #tpu.pipeline_mode<synchronous>, transform_indices = @transform_1, window_bounds = array<i64: 3, 12, 4>}, {pipeline_mode = #tpu.pipeline_mode<synchronous>, transform_indices = @transform_2, window_bounds = array<i64: 3, 12, 4>}, {transform_indices = @transform_3, window_bounds = array<i64: 1, 16, 16, 4>}]} {
    %c0 = arith.constant 0 : index
    %c0_0 = arith.constant 0 : index
    %c0_1 = arith.constant 0 : index
    %c0_2 = arith.constant 0 : index
    %0 = vector.load %arg1[%c0, %c0_0, %c0_1, %c0_2] : memref<1x16x16x4xf32, #tpu.memory_space<vmem>>, vector<1x16x16x4xf32>
    %1 = vector.shape_cast %0 : vector<1x16x16x4xf32> to vector<16x16x4xf32>
    %2 = vector.extract_strided_slice %1 {offsets = [1, 0, 0], sizes = [1, 16, 4], strides = [1, 1, 1]} : vector<16x16x4xf32> to vector<1x16x4xf32>
    %3 = vector.extract_strided_slice %1 {offsets = [14, 0, 0], sizes = [1, 16, 4], strides = [1, 1, 1]} : vector<16x16x4xf32> to vector<1x16x4xf32>
    %4 = tpu.concatenate %2, %1, %3 in 0 : vector<1x16x4xf32>, vector<16x16x4xf32>, vector<1x16x4xf32> -> vector<18x16x4xf32>
    %5 = vector.extract_strided_slice %4 {offsets = [0, 1, 0], sizes = [18, 1, 4], strides = [1, 1, 1]} : vector<18x16x4xf32> to vector<18x1x4xf32>
    %6 = vector.extract_strided_slice %4 {offsets = [0, 14, 0], sizes = [18, 1, 4], strides = [1, 1, 1]} : vector<18x16x4xf32> to vector<18x1x4xf32>
    %7 = tpu.concatenate %5, %4, %6 in 1 : vector<18x1x4xf32>, vector<18x16x4xf32>, vector<18x1x4xf32> -> vector<18x18x4xf32>
    %8 = vector.extract_strided_slice %7 {offsets = [0, 0, 0], sizes = [16, 18, 4], strides = [1, 1, 1]} : vector<18x18x4xf32> to vector<16x18x4xf32>
    %9 = vector.extract_strided_slice %8 {offsets = [0, 0, 0], sizes = [16, 16, 4], strides = [1, 1, 1]} : vector<16x18x4xf32> to vector<16x16x4xf32>
    %10 = vector.extract_strided_slice %8 {offsets = [0, 1, 0], sizes = [16, 16, 4], strides = [1, 1, 1]} : vector<16x18x4xf32> to vector<16x16x4xf32>
    %11 = vector.extract_strided_slice %8 {offsets = [0, 2, 0], sizes = [16, 16, 4], strides = [1, 1, 1]} : vector<16x18x4xf32> to vector<16x16x4xf32>
    %12 = tpu.concatenate %9, %10, %11 in 2 : vector<16x16x4xf32>, vector<16x16x4xf32>, vector<16x16x4xf32> -> vector<16x16x12xf32>
    %13 = vector.shape_cast %12 : vector<16x16x12xf32> to vector<256x12xf32>
    %c0_3 = arith.constant 0 : index
    %c0_4 = arith.constant 0 : index
    %c0_5 = arith.constant 0 : index
    %14 = vector.load %arg2[%c0_3, %c0_4, %c0_5] : memref<3x12x4xf32, #tpu.memory_space<vmem>>, vector<1x12x4xf32>
    %15 = vector.shape_cast %14 : vector<1x12x4xf32> to vector<12x4xf32>
    %cst = arith.constant dense<0.000000e+00> : vector<256x4xf32>
    %16 = tpu.matmul %13, %15, %cst {dimension_numbers = #tpu.dot_dimension_numbers<[1], [0], [0], [1], [0, 0, 1, 1], [], []>} : vector<256x12xf32>, vector<12x4xf32>, vector<256x4xf32> -> vector<256x4xf32>
    %17 = vector.extract_strided_slice %7 {offsets = [1, 0, 0], sizes = [16, 18, 4], strides = [1, 1, 1]} : vector<18x18x4xf32> to vector<16x18x4xf32>
    %18 = vector.extract_strided_slice %17 {offsets = [0, 0, 0], sizes = [16, 16, 4], strides = [1, 1, 1]} : vector<16x18x4xf32> to vector<16x16x4xf32>
    %19 = vector.extract_strided_slice %17 {offsets = [0, 1, 0], sizes = [16, 16, 4], strides = [1, 1, 1]} : vector<16x18x4xf32> to vector<16x16x4xf32>
    %20 = vector.extract_strided_slice %17 {offsets = [0, 2, 0], sizes = [16, 16, 4], strides = [1, 1, 1]} : vector<16x18x4xf32> to vector<16x16x4xf32>
    %21 = tpu.concatenate %18, %19, %20 in 2 : vector<16x16x4xf32>, vector<16x16x4xf32>, vector<16x16x4xf32> -> vector<16x16x12xf32>
    %22 = vector.shape_cast %21 : vector<16x16x12xf32> to vector<256x12xf32>
    %c1 = arith.constant 1 : index
    %c0_6 = arith.constant 0 : index
    %c0_7 = arith.constant 0 : index
    %23 = vector.load %arg2[%c1, %c0_6, %c0_7] : memref<3x12x4xf32, #tpu.memory_space<vmem>>, vector<1x12x4xf32>
    %24 = vector.shape_cast %23 : vector<1x12x4xf32> to vector<12x4xf32>
    %cst_8 = arith.constant dense<0.000000e+00> : vector<256x4xf32>
    %25 = tpu.matmul %22, %24, %cst_8 {dimension_numbers = #tpu.dot_dimension_numbers<[1], [0], [0], [1], [0, 0, 1, 1], [], []>} : vector<256x12xf32>, vector<12x4xf32>, vector<256x4xf32> -> vector<256x4xf32>
    %26 = arith.addf %16, %25 : vector<256x4xf32>
    %27 = vector.extract_strided_slice %7 {offsets = [2, 0, 0], sizes = [16, 18, 4], strides = [1, 1, 1]} : vector<18x18x4xf32> to vector<16x18x4xf32>
    %28 = vector.extract_strided_slice %27 {offsets = [0, 0, 0], sizes = [16, 16, 4], strides = [1, 1, 1]} : vector<16x18x4xf32> to vector<16x16x4xf32>
    %29 = vector.extract_strided_slice %27 {offsets = [0, 1, 0], sizes = [16, 16, 4], strides = [1, 1, 1]} : vector<16x18x4xf32> to vector<16x16x4xf32>
    %30 = vector.extract_strided_slice %27 {offsets = [0, 2, 0], sizes = [16, 16, 4], strides = [1, 1, 1]} : vector<16x18x4xf32> to vector<16x16x4xf32>
    %31 = tpu.concatenate %28, %29, %30 in 2 : vector<16x16x4xf32>, vector<16x16x4xf32>, vector<16x16x4xf32> -> vector<16x16x12xf32>
    %32 = vector.shape_cast %31 : vector<16x16x12xf32> to vector<256x12xf32>
    %c2 = arith.constant 2 : index
    %c0_9 = arith.constant 0 : index
    %c0_10 = arith.constant 0 : index
    %33 = vector.load %arg2[%c2, %c0_9, %c0_10] : memref<3x12x4xf32, #tpu.memory_space<vmem>>, vector<1x12x4xf32>
    %34 = vector.shape_cast %33 : vector<1x12x4xf32> to vector<12x4xf32>
    %cst_11 = arith.constant dense<0.000000e+00> : vector<256x4xf32>
    %35 = tpu.matmul %32, %34, %cst_11 {dimension_numbers = #tpu.dot_dimension_numbers<[1], [0], [0], [1], [0, 0, 1, 1], [], []>} : vector<256x12xf32>, vector<12x4xf32>, vector<256x4xf32> -> vector<256x4xf32>
    %36 = arith.addf %26, %35 : vector<256x4xf32>
    %cst_12 = arith.constant dense<0.000000e+00> : vector<4xf32>
    %37 = vector.multi_reduction <add>, %36, %cst_12 [0] : vector<256x4xf32> to vector<4xf32>
    %38 = vector.shape_cast %37 : vector<4xf32> to vector<1x4xf32>
    %39 = arith.mulf %36, %36 : vector<256x4xf32>
    %cst_13 = arith.constant dense<0.000000e+00> : vector<4xf32>
    %40 = vector.multi_reduction <add>, %39, %cst_13 [0] : vector<256x4xf32> to vector<4xf32>
    %41 = vector.shape_cast %40 : vector<4xf32> to vector<1x4xf32>
    %cst_14 = arith.constant 3.906250e-03 : f32
    %42 = vector.broadcast %cst_14 : f32 to vector<1x4xf32>
    %43 = arith.mulf %38, %42 : vector<1x4xf32>
    %cst_15 = arith.constant 3.906250e-03 : f32
    %44 = vector.broadcast %cst_15 : f32 to vector<1x4xf32>
    %45 = arith.mulf %41, %44 : vector<1x4xf32>
    %46 = arith.mulf %43, %43 : vector<1x4xf32>
    %47 = arith.subf %45, %46 : vector<1x4xf32>
    %cst_16 = arith.constant 0.000000e+00 : f32
    %48 = vector.broadcast %cst_16 : f32 to vector<1x4xf32>
    %49 = arith.maximumf %47, %48 : vector<1x4xf32>
    %50 = vector.broadcast %43 : vector<1x4xf32> to vector<256x4xf32>
    %51 = arith.subf %36, %50 : vector<256x4xf32>
    %cst_17 = arith.constant 9.99999974E-6 : f32
    %52 = vector.broadcast %cst_17 : f32 to vector<1x4xf32>
    %53 = arith.addf %49, %52 : vector<1x4xf32>
    %54 = math.rsqrt %53 : vector<1x4xf32>
    %55 = vector.broadcast %54 : vector<1x4xf32> to vector<256x4xf32>
    %56 = arith.mulf %51, %55 : vector<256x4xf32>
    %cst_18 = arith.constant 0.000000e+00 : f32
    %57 = vector.broadcast %cst_18 : f32 to vector<256x4xf32>
    %58 = arith.maximumf %56, %57 : vector<256x4xf32>
    %59 = vector.shape_cast %58 : vector<256x4xf32> to vector<16x16x4xf32>
    %60 = vector.extract_strided_slice %59 {offsets = [1, 0, 0], sizes = [1, 16, 4], strides = [1, 1, 1]} : vector<16x16x4xf32> to vector<1x16x4xf32>
    %61 = vector.extract_strided_slice %59 {offsets = [14, 0, 0], sizes = [1, 16, 4], strides = [1, 1, 1]} : vector<16x16x4xf32> to vector<1x16x4xf32>
    %62 = tpu.concatenate %60, %59, %61 in 0 : vector<1x16x4xf32>, vector<16x16x4xf32>, vector<1x16x4xf32> -> vector<18x16x4xf32>
    %63 = vector.extract_strided_slice %62 {offsets = [0, 1, 0], sizes = [18, 1, 4], strides = [1, 1, 1]} : vector<18x16x4xf32> to vector<18x1x4xf32>
    %64 = vector.extract_strided_slice %62 {offsets = [0, 14, 0], sizes = [18, 1, 4], strides = [1, 1, 1]} : vector<18x16x4xf32> to vector<18x1x4xf32>
    %65 = tpu.concatenate %63, %62, %64 in 1 : vector<18x1x4xf32>, vector<18x16x4xf32>, vector<18x1x4xf32> -> vector<18x18x4xf32>
    %66 = vector.extract_strided_slice %65 {offsets = [0, 0, 0], sizes = [16, 18, 4], strides = [1, 1, 1]} : vector<18x18x4xf32> to vector<16x18x4xf32>
    %67 = vector.extract_strided_slice %66 {offsets = [0, 0, 0], sizes = [16, 16, 4], strides = [1, 1, 1]} : vector<16x18x4xf32> to vector<16x16x4xf32>
    %68 = vector.extract_strided_slice %66 {offsets = [0, 1, 0], sizes = [16, 16, 4], strides = [1, 1, 1]} : vector<16x18x4xf32> to vector<16x16x4xf32>
    %69 = vector.extract_strided_slice %66 {offsets = [0, 2, 0], sizes = [16, 16, 4], strides = [1, 1, 1]} : vector<16x18x4xf32> to vector<16x16x4xf32>
    %70 = tpu.concatenate %67, %68, %69 in 2 : vector<16x16x4xf32>, vector<16x16x4xf32>, vector<16x16x4xf32> -> vector<16x16x12xf32>
    %71 = vector.shape_cast %70 : vector<16x16x12xf32> to vector<256x12xf32>
    %c0_19 = arith.constant 0 : index
    %c0_20 = arith.constant 0 : index
    %c0_21 = arith.constant 0 : index
    %72 = vector.load %arg3[%c0_19, %c0_20, %c0_21] : memref<3x12x4xf32, #tpu.memory_space<vmem>>, vector<1x12x4xf32>
    %73 = vector.shape_cast %72 : vector<1x12x4xf32> to vector<12x4xf32>
    %cst_22 = arith.constant dense<0.000000e+00> : vector<256x4xf32>
    %74 = tpu.matmul %71, %73, %cst_22 {dimension_numbers = #tpu.dot_dimension_numbers<[1], [0], [0], [1], [0, 0, 1, 1], [], []>} : vector<256x12xf32>, vector<12x4xf32>, vector<256x4xf32> -> vector<256x4xf32>
    %75 = vector.extract_strided_slice %65 {offsets = [1, 0, 0], sizes = [16, 18, 4], strides = [1, 1, 1]} : vector<18x18x4xf32> to vector<16x18x4xf32>
    %76 = vector.extract_strided_slice %75 {offsets = [0, 0, 0], sizes = [16, 16, 4], strides = [1, 1, 1]} : vector<16x18x4xf32> to vector<16x16x4xf32>
    %77 = vector.extract_strided_slice %75 {offsets = [0, 1, 0], sizes = [16, 16, 4], strides = [1, 1, 1]} : vector<16x18x4xf32> to vector<16x16x4xf32>
    %78 = vector.extract_strided_slice %75 {offsets = [0, 2, 0], sizes = [16, 16, 4], strides = [1, 1, 1]} : vector<16x18x4xf32> to vector<16x16x4xf32>
    %79 = tpu.concatenate %76, %77, %78 in 2 : vector<16x16x4xf32>, vector<16x16x4xf32>, vector<16x16x4xf32> -> vector<16x16x12xf32>
    %80 = vector.shape_cast %79 : vector<16x16x12xf32> to vector<256x12xf32>
    %c1_23 = arith.constant 1 : index
    %c0_24 = arith.constant 0 : index
    %c0_25 = arith.constant 0 : index
    %81 = vector.load %arg3[%c1_23, %c0_24, %c0_25] : memref<3x12x4xf32, #tpu.memory_space<vmem>>, vector<1x12x4xf32>
    %82 = vector.shape_cast %81 : vector<1x12x4xf32> to vector<12x4xf32>
    %cst_26 = arith.constant dense<0.000000e+00> : vector<256x4xf32>
    %83 = tpu.matmul %80, %82, %cst_26 {dimension_numbers = #tpu.dot_dimension_numbers<[1], [0], [0], [1], [0, 0, 1, 1], [], []>} : vector<256x12xf32>, vector<12x4xf32>, vector<256x4xf32> -> vector<256x4xf32>
    %84 = arith.addf %74, %83 : vector<256x4xf32>
    %85 = vector.extract_strided_slice %65 {offsets = [2, 0, 0], sizes = [16, 18, 4], strides = [1, 1, 1]} : vector<18x18x4xf32> to vector<16x18x4xf32>
    %86 = vector.extract_strided_slice %85 {offsets = [0, 0, 0], sizes = [16, 16, 4], strides = [1, 1, 1]} : vector<16x18x4xf32> to vector<16x16x4xf32>
    %87 = vector.extract_strided_slice %85 {offsets = [0, 1, 0], sizes = [16, 16, 4], strides = [1, 1, 1]} : vector<16x18x4xf32> to vector<16x16x4xf32>
    %88 = vector.extract_strided_slice %85 {offsets = [0, 2, 0], sizes = [16, 16, 4], strides = [1, 1, 1]} : vector<16x18x4xf32> to vector<16x16x4xf32>
    %89 = tpu.concatenate %86, %87, %88 in 2 : vector<16x16x4xf32>, vector<16x16x4xf32>, vector<16x16x4xf32> -> vector<16x16x12xf32>
    %90 = vector.shape_cast %89 : vector<16x16x12xf32> to vector<256x12xf32>
    %c2_27 = arith.constant 2 : index
    %c0_28 = arith.constant 0 : index
    %c0_29 = arith.constant 0 : index
    %91 = vector.load %arg3[%c2_27, %c0_28, %c0_29] : memref<3x12x4xf32, #tpu.memory_space<vmem>>, vector<1x12x4xf32>
    %92 = vector.shape_cast %91 : vector<1x12x4xf32> to vector<12x4xf32>
    %cst_30 = arith.constant dense<0.000000e+00> : vector<256x4xf32>
    %93 = tpu.matmul %90, %92, %cst_30 {dimension_numbers = #tpu.dot_dimension_numbers<[1], [0], [0], [1], [0, 0, 1, 1], [], []>} : vector<256x12xf32>, vector<12x4xf32>, vector<256x4xf32> -> vector<256x4xf32>
    %94 = arith.addf %84, %93 : vector<256x4xf32>
    %cst_31 = arith.constant dense<0.000000e+00> : vector<4xf32>
    %95 = vector.multi_reduction <add>, %94, %cst_31 [0] : vector<256x4xf32> to vector<4xf32>
    %96 = vector.shape_cast %95 : vector<4xf32> to vector<1x4xf32>
    %97 = arith.mulf %94, %94 : vector<256x4xf32>
    %cst_32 = arith.constant dense<0.000000e+00> : vector<4xf32>
    %98 = vector.multi_reduction <add>, %97, %cst_32 [0] : vector<256x4xf32> to vector<4xf32>
    %99 = vector.shape_cast %98 : vector<4xf32> to vector<1x4xf32>
    %cst_33 = arith.constant 3.906250e-03 : f32
    %100 = vector.broadcast %cst_33 : f32 to vector<1x4xf32>
    %101 = arith.mulf %96, %100 : vector<1x4xf32>
    %cst_34 = arith.constant 3.906250e-03 : f32
    %102 = vector.broadcast %cst_34 : f32 to vector<1x4xf32>
    %103 = arith.mulf %99, %102 : vector<1x4xf32>
    %104 = arith.mulf %101, %101 : vector<1x4xf32>
    %105 = arith.subf %103, %104 : vector<1x4xf32>
    %cst_35 = arith.constant 0.000000e+00 : f32
    %106 = vector.broadcast %cst_35 : f32 to vector<1x4xf32>
    %107 = arith.maximumf %105, %106 : vector<1x4xf32>
    %108 = vector.broadcast %101 : vector<1x4xf32> to vector<256x4xf32>
    %109 = arith.subf %94, %108 : vector<256x4xf32>
    %cst_36 = arith.constant 9.99999974E-6 : f32
    %110 = vector.broadcast %cst_36 : f32 to vector<1x4xf32>
    %111 = arith.addf %107, %110 : vector<1x4xf32>
    %112 = math.rsqrt %111 : vector<1x4xf32>
    %113 = vector.broadcast %112 : vector<1x4xf32> to vector<256x4xf32>
    %114 = arith.mulf %109, %113 : vector<256x4xf32>
    %115 = vector.shape_cast %1 : vector<16x16x4xf32> to vector<256x4xf32>
    %116 = arith.addf %114, %115 : vector<256x4xf32>
    %117 = vector.shape_cast %116 : vector<256x4xf32> to vector<16x16x4xf32>
    %c0_37 = arith.constant 0 : index
    %c0_38 = arith.constant 0 : index
    %c0_39 = arith.constant 0 : index
    %c0_40 = arith.constant 0 : index
    %118 = vector.load %arg4[%c0_37, %c0_38, %c0_39, %c0_40] : memref<1x16x16x4xf32, #tpu.memory_space<vmem>>, vector<1x16x16x4xf32>
    %119 = vector.shape_cast %118 : vector<1x16x16x4xf32> to vector<16x16x4xf32>
    %120 = vector.shape_cast %117 : vector<16x16x4xf32> to vector<1x16x16x4xf32>
    tpu.vector_store %arg4[%c0_37, %c0_38, %c0_39, %c0_40], %120 {strides = array<i32>} : memref<1x16x16x4xf32, #tpu.memory_space<vmem>>, vector<1x16x16x4xf32>,
    return
  }
  func.func @transform_0(%arg0: i32) -> (i32, i32, i32, i32) {
    %c0_i32 = arith.constant 0 : i32
    %c0_i32_0 = arith.constant 0 : i32
    %c0_i32_1 = arith.constant 0 : i32
    %c0_i32_2 = arith.constant 0 : i32
    return %arg0, %c0_i32, %c0_i32_0, %c0_i32_1 : i32, i32, i32, i32
  }
  func.func @transform_1(%arg0: i32) -> (i32, i32, i32) {
    %c0_i32 = arith.constant 0 : i32
    %c0_i32_0 = arith.constant 0 : i32
    %c0_i32_1 = arith.constant 0 : i32
    %c0_i32_2 = arith.constant 0 : i32
    return %c0_i32, %c0_i32_0, %c0_i32_1 : i32, i32, i32
  }
  func.func @transform_2(%arg0: i32) -> (i32, i32, i32) {
    %c0_i32 = arith.constant 0 : i32
    %c0_i32_0 = arith.constant 0 : i32
    %c0_i32_1 = arith.constant 0 : i32
    %c0_i32_2 = arith.constant 0 : i32
    return %c0_i32, %c0_i32_0, %c0_i32_1 : i32, i32, i32
  }
  func.func @transform_3(%arg0: i32) -> (i32, i32, i32, i32) {
    %c0_i32 = arith.constant 0 : i32
    %c0_i32_0 = arith.constant 0 : i32
    %c0_i32_1 = arith.constant 0 : i32
    %c0_i32_2 = arith.constant 0 : i32
    return %arg0, %c0_i32, %c0_i32_0, %c0_i32_1 : i32, i32, i32, i32
  }
}

module attributes {stable_mosaic.version = 11 : i64} {
  func.func @residual_block_kernel(%arg0: i32, %arg1: memref<1x16x16x4xf32, #tpu.memory_space<vmem>>, %arg2: memref<3x12x4xf32, #tpu.memory_space<vmem>>, %arg3: memref<3x12x4xf32, #tpu.memory_space<vmem>>, %arg4: memref<1x16x16x4xf32, #tpu.memory_space<vmem>>) attributes {dimension_semantics = [#tpu.dimension_semantics<parallel>], iteration_bounds = array<i64: 2>, scalar_prefetch = 0 : i64, scratch_operands = 0 : i64, tpu.core_type = #tpu.core_type<tc>, window_params = [{transform_indices = @transform_0, window_bounds = array<i64: 1, 16, 16, 4>}, {pipeline_mode = #tpu.pipeline_mode<synchronous>, transform_indices = @transform_1, window_bounds = array<i64: 3, 12, 4>}, {pipeline_mode = #tpu.pipeline_mode<synchronous>, transform_indices = @transform_2, window_bounds = array<i64: 3, 12, 4>}, {transform_indices = @transform_3, window_bounds = array<i64: 1, 16, 16, 4>}]} {
    %c0 = arith.constant 0 : index
    %c0_0 = arith.constant 0 : index
    %c0_1 = arith.constant 0 : index
    %c0_2 = arith.constant 0 : index
    %0 = vector.load %arg1[%c0, %c0_0, %c0_1, %c0_2] : memref<1x16x16x4xf32, #tpu.memory_space<vmem>>, vector<1x16x16x4xf32>
    %1 = vector.shape_cast %0 : vector<1x16x16x4xf32> to vector<16x16x4xf32>
    %2 = vector.extract_strided_slice %1 {offsets = [1, 0, 0], sizes = [1, 16, 4], strides = [1, 1, 1]} : vector<16x16x4xf32> to vector<1x16x4xf32>
    %3 = vector.extract_strided_slice %1 {offsets = [14, 0, 0], sizes = [1, 16, 4], strides = [1, 1, 1]} : vector<16x16x4xf32> to vector<1x16x4xf32>
    %4 = tpu.concatenate %2, %1, %3 in 0 : vector<1x16x4xf32>, vector<16x16x4xf32>, vector<1x16x4xf32> -> vector<18x16x4xf32>
    %5 = vector.extract_strided_slice %4 {offsets = [0, 1, 0], sizes = [18, 1, 4], strides = [1, 1, 1]} : vector<18x16x4xf32> to vector<18x1x4xf32>
    %6 = vector.extract_strided_slice %4 {offsets = [0, 14, 0], sizes = [18, 1, 4], strides = [1, 1, 1]} : vector<18x16x4xf32> to vector<18x1x4xf32>
    %7 = tpu.concatenate %5, %4, %6 in 1 : vector<18x1x4xf32>, vector<18x16x4xf32>, vector<18x1x4xf32> -> vector<18x18x4xf32>
    %8 = vector.extract_strided_slice %7 {offsets = [0, 0, 0], sizes = [16, 18, 4], strides = [1, 1, 1]} : vector<18x18x4xf32> to vector<16x18x4xf32>
    %9 = vector.extract_strided_slice %8 {offsets = [0, 0, 0], sizes = [16, 16, 4], strides = [1, 1, 1]} : vector<16x18x4xf32> to vector<16x16x4xf32>
    %10 = vector.extract_strided_slice %8 {offsets = [0, 1, 0], sizes = [16, 16, 4], strides = [1, 1, 1]} : vector<16x18x4xf32> to vector<16x16x4xf32>
    %11 = vector.extract_strided_slice %8 {offsets = [0, 2, 0], sizes = [16, 16, 4], strides = [1, 1, 1]} : vector<16x18x4xf32> to vector<16x16x4xf32>
    %12 = tpu.concatenate %9, %10, %11 in 2 : vector<16x16x4xf32>, vector<16x16x4xf32>, vector<16x16x4xf32> -> vector<16x16x12xf32>
    %13 = vector.shape_cast %12 : vector<16x16x12xf32> to vector<256x12xf32>
    %c0_3 = arith.constant 0 : index
    %c0_4 = arith.constant 0 : index
    %c0_5 = arith.constant 0 : index
    %14 = vector.load %arg2[%c0_3, %c0_4, %c0_5] : memref<3x12x4xf32, #tpu.memory_space<vmem>>, vector<1x12x4xf32>
    %15 = vector.shape_cast %14 : vector<1x12x4xf32> to vector<12x4xf32>
    %cst = arith.constant dense<0.000000e+00> : vector<256x4xf32>
    %16 = tpu.matmul %13, %15, %cst {dimension_numbers = #tpu.dot_dimension_numbers<[1], [0], [0], [1], [0, 0, 1, 1], [], []>} : vector<256x12xf32>, vector<12x4xf32>, vector<256x4xf32> -> vector<256x4xf32>
    %17 = vector.extract_strided_slice %7 {offsets = [1, 0, 0], sizes = [16, 18, 4], strides = [1, 1, 1]} : vector<18x18x4xf32> to vector<16x18x4xf32>
    %18 = vector.extract_strided_slice %17 {offsets = [0, 0, 0], sizes = [16, 16, 4], strides = [1, 1, 1]} : vector<16x18x4xf32> to vector<16x16x4xf32>
    %19 = vector.extract_strided_slice %17 {offsets = [0, 1, 0], sizes = [16, 16, 4], strides = [1, 1, 1]} : vector<16x18x4xf32> to vector<16x16x4xf32>
    %20 = vector.extract_strided_slice %17 {offsets = [0, 2, 0], sizes = [16, 16, 4], strides = [1, 1, 1]} : vector<16x18x4xf32> to vector<16x16x4xf32>
    %21 = tpu.concatenate %18, %19, %20 in 2 : vector<16x16x4xf32>, vector<16x16x4xf32>, vector<16x16x4xf32> -> vector<16x16x12xf32>
    %22 = vector.shape_cast %21 : vector<16x16x12xf32> to vector<256x12xf32>
    %c1 = arith.constant 1 : index
    %c0_6 = arith.constant 0 : index
    %c0_7 = arith.constant 0 : index
    %23 = vector.load %arg2[%c1, %c0_6, %c0_7] : memref<3x12x4xf32, #tpu.memory_space<vmem>>, vector<1x12x4xf32>
    %24 = vector.shape_cast %23 : vector<1x12x4xf32> to vector<12x4xf32>
    %cst_8 = arith.constant dense<0.000000e+00> : vector<256x4xf32>
    %25 = tpu.matmul %22, %24, %cst_8 {dimension_numbers = #tpu.dot_dimension_numbers<[1], [0], [0], [1], [0, 0, 1, 1], [], []>} : vector<256x12xf32>, vector<12x4xf32>, vector<256x4xf32> -> vector<256x4xf32>
    %26 = arith.addf %16, %25 : vector<256x4xf32>
    %27 = vector.extract_strided_slice %7 {offsets = [2, 0, 0], sizes = [16, 18, 4], strides = [1, 1, 1]} : vector<18x18x4xf32> to vector<16x18x4xf32>
    %28 = vector.extract_strided_slice %27 {offsets = [0, 0, 0], sizes = [16, 16, 4], strides = [1, 1, 1]} : vector<16x18x4xf32> to vector<16x16x4xf32>
    %29 = vector.extract_strided_slice %27 {offsets = [0, 1, 0], sizes = [16, 16, 4], strides = [1, 1, 1]} : vector<16x18x4xf32> to vector<16x16x4xf32>
    %30 = vector.extract_strided_slice %27 {offsets = [0, 2, 0], sizes = [16, 16, 4], strides = [1, 1, 1]} : vector<16x18x4xf32> to vector<16x16x4xf32>
    %31 = tpu.concatenate %28, %29, %30 in 2 : vector<16x16x4xf32>, vector<16x16x4xf32>, vector<16x16x4xf32> -> vector<16x16x12xf32>
    %32 = vector.shape_cast %31 : vector<16x16x12xf32> to vector<256x12xf32>
    %c2 = arith.constant 2 : index
    %c0_9 = arith.constant 0 : index
    %c0_10 = arith.constant 0 : index
    %33 = vector.load %arg2[%c2, %c0_9, %c0_10] : memref<3x12x4xf32, #tpu.memory_space<vmem>>, vector<1x12x4xf32>
    %34 = vector.shape_cast %33 : vector<1x12x4xf32> to vector<12x4xf32>
    %cst_11 = arith.constant dense<0.000000e+00> : vector<256x4xf32>
    %35 = tpu.matmul %32, %34, %cst_11 {dimension_numbers = #tpu.dot_dimension_numbers<[1], [0], [0], [1], [0, 0, 1, 1], [], []>} : vector<256x12xf32>, vector<12x4xf32>, vector<256x4xf32> -> vector<256x4xf32>
    %36 = arith.addf %26, %35 : vector<256x4xf32>
    %cst_12 = arith.constant dense<0.000000e+00> : vector<4xf32>
    %37 = vector.multi_reduction <add>, %36, %cst_12 [0] : vector<256x4xf32> to vector<4xf32>
    %38 = vector.shape_cast %37 : vector<4xf32> to vector<1x4xf32>
    %39 = arith.mulf %36, %36 : vector<256x4xf32>
    %cst_13 = arith.constant dense<0.000000e+00> : vector<4xf32>
    %40 = vector.multi_reduction <add>, %39, %cst_13 [0] : vector<256x4xf32> to vector<4xf32>
    %41 = vector.shape_cast %40 : vector<4xf32> to vector<1x4xf32>
    %cst_14 = arith.constant 3.906250e-03 : f32
    %42 = vector.broadcast %cst_14 : f32 to vector<1x4xf32>
    %43 = arith.mulf %38, %42 : vector<1x4xf32>
    %cst_15 = arith.constant 3.906250e-03 : f32
    %44 = vector.broadcast %cst_15 : f32 to vector<1x4xf32>
    %45 = arith.mulf %41, %44 : vector<1x4xf32>
    %46 = arith.mulf %43, %43 : vector<1x4xf32>
    %47 = arith.subf %45, %46 : vector<1x4xf32>
    %cst_16 = arith.constant 0.000000e+00 : f32
    %48 = vector.broadcast %cst_16 : f32 to vector<1x4xf32>
    %49 = arith.maximumf %47, %48 : vector<1x4xf32>
    %50 = vector.broadcast %43 : vector<1x4xf32> to vector<256x4xf32>
    %51 = arith.subf %36, %50 : vector<256x4xf32>
    %cst_17 = arith.constant 9.99999974E-6 : f32
    %52 = vector.broadcast %cst_17 : f32 to vector<1x4xf32>
    %53 = arith.addf %49, %52 : vector<1x4xf32>
    %54 = math.rsqrt %53 : vector<1x4xf32>
    %55 = vector.broadcast %54 : vector<1x4xf32> to vector<256x4xf32>
    %56 = arith.mulf %51, %55 : vector<256x4xf32>
    %cst_18 = arith.constant 0.000000e+00 : f32
    %57 = vector.broadcast %cst_18 : f32 to vector<256x4xf32>
    %58 = arith.maximumf %56, %57 : vector<256x4xf32>
    %59 = vector.shape_cast %58 : vector<256x4xf32> to vector<16x16x4xf32>
    %60 = vector.extract_strided_slice %59 {offsets = [1, 0, 0], sizes = [1, 16, 4], strides = [1, 1, 1]} : vector<16x16x4xf32> to vector<1x16x4xf32>
    %61 = vector.extract_strided_slice %59 {offsets = [14, 0, 0], sizes = [1, 16, 4], strides = [1, 1, 1]} : vector<16x16x4xf32> to vector<1x16x4xf32>
    %62 = tpu.concatenate %60, %59, %61 in 0 : vector<1x16x4xf32>, vector<16x16x4xf32>, vector<1x16x4xf32> -> vector<18x16x4xf32>
    %63 = vector.extract_strided_slice %62 {offsets = [0, 1, 0], sizes = [18, 1, 4], strides = [1, 1, 1]} : vector<18x16x4xf32> to vector<18x1x4xf32>
    %64 = vector.extract_strided_slice %62 {offsets = [0, 14, 0], sizes = [18, 1, 4], strides = [1, 1, 1]} : vector<18x16x4xf32> to vector<18x1x4xf32>
    %65 = tpu.concatenate %63, %62, %64 in 1 : vector<18x1x4xf32>, vector<18x16x4xf32>, vector<18x1x4xf32> -> vector<18x18x4xf32>
    %66 = vector.extract_strided_slice %65 {offsets = [0, 0, 0], sizes = [16, 18, 4], strides = [1, 1, 1]} : vector<18x18x4xf32> to vector<16x18x4xf32>
    %67 = vector.extract_strided_slice %66 {offsets = [0, 0, 0], sizes = [16, 16, 4], strides = [1, 1, 1]} : vector<16x18x4xf32> to vector<16x16x4xf32>
    %68 = vector.extract_strided_slice %66 {offsets = [0, 1, 0], sizes = [16, 16, 4], strides = [1, 1, 1]} : vector<16x18x4xf32> to vector<16x16x4xf32>
    %69 = vector.extract_strided_slice %66 {offsets = [0, 2, 0], sizes = [16, 16, 4], strides = [1, 1, 1]} : vector<16x18x4xf32> to vector<16x16x4xf32>
    %70 = tpu.concatenate %67, %68, %69 in 2 : vector<16x16x4xf32>, vector<16x16x4xf32>, vector<16x16x4xf32> -> vector<16x16x12xf32>
    %71 = vector.shape_cast %70 : vector<16x16x12xf32> to vector<256x12xf32>
    %c0_19 = arith.constant 0 : index
    %c0_20 = arith.constant 0 : index
    %c0_21 = arith.constant 0 : index
    %72 = vector.load %arg3[%c0_19, %c0_20, %c0_21] : memref<3x12x4xf32, #tpu.memory_space<vmem>>, vector<1x12x4xf32>
    %73 = vector.shape_cast %72 : vector<1x12x4xf32> to vector<12x4xf32>
    %cst_22 = arith.constant dense<0.000000e+00> : vector<256x4xf32>
    %74 = tpu.matmul %71, %73, %cst_22 {dimension_numbers = #tpu.dot_dimension_numbers<[1], [0], [0], [1], [0, 0, 1, 1], [], []>} : vector<256x12xf32>, vector<12x4xf32>, vector<256x4xf32> -> vector<256x4xf32>
    %75 = vector.extract_strided_slice %65 {offsets = [1, 0, 0], sizes = [16, 18, 4], strides = [1, 1, 1]} : vector<18x18x4xf32> to vector<16x18x4xf32>
    %76 = vector.extract_strided_slice %75 {offsets = [0, 0, 0], sizes = [16, 16, 4], strides = [1, 1, 1]} : vector<16x18x4xf32> to vector<16x16x4xf32>
    %77 = vector.extract_strided_slice %75 {offsets = [0, 1, 0], sizes = [16, 16, 4], strides = [1, 1, 1]} : vector<16x18x4xf32> to vector<16x16x4xf32>
    %78 = vector.extract_strided_slice %75 {offsets = [0, 2, 0], sizes = [16, 16, 4], strides = [1, 1, 1]} : vector<16x18x4xf32> to vector<16x16x4xf32>
    %79 = tpu.concatenate %76, %77, %78 in 2 : vector<16x16x4xf32>, vector<16x16x4xf32>, vector<16x16x4xf32> -> vector<16x16x12xf32>
    %80 = vector.shape_cast %79 : vector<16x16x12xf32> to vector<256x12xf32>
    %c1_23 = arith.constant 1 : index
    %c0_24 = arith.constant 0 : index
    %c0_25 = arith.constant 0 : index
    %81 = vector.load %arg3[%c1_23, %c0_24, %c0_25] : memref<3x12x4xf32, #tpu.memory_space<vmem>>, vector<1x12x4xf32>
    %82 = vector.shape_cast %81 : vector<1x12x4xf32> to vector<12x4xf32>
    %cst_26 = arith.constant dense<0.000000e+00> : vector<256x4xf32>
    %83 = tpu.matmul %80, %82, %cst_26 {dimension_numbers = #tpu.dot_dimension_numbers<[1], [0], [0], [1], [0, 0, 1, 1], [], []>} : vector<256x12xf32>, vector<12x4xf32>, vector<256x4xf32> -> vector<256x4xf32>
    %84 = arith.addf %74, %83 : vector<256x4xf32>
    %85 = vector.extract_strided_slice %65 {offsets = [2, 0, 0], sizes = [16, 18, 4], strides = [1, 1, 1]} : vector<18x18x4xf32> to vector<16x18x4xf32>
    %86 = vector.extract_strided_slice %85 {offsets = [0, 0, 0], sizes = [16, 16, 4], strides = [1, 1, 1]} : vector<16x18x4xf32> to vector<16x16x4xf32>
    %87 = vector.extract_strided_slice %85 {offsets = [0, 1, 0], sizes = [16, 16, 4], strides = [1, 1, 1]} : vector<16x18x4xf32> to vector<16x16x4xf32>
    %88 = vector.extract_strided_slice %85 {offsets = [0, 2, 0], sizes = [16, 16, 4], strides = [1, 1, 1]} : vector<16x18x4xf32> to vector<16x16x4xf32>
    %89 = tpu.concatenate %86, %87, %88 in 2 : vector<16x16x4xf32>, vector<16x16x4xf32>, vector<16x16x4xf32> -> vector<16x16x12xf32>
    %90 = vector.shape_cast %89 : vector<16x16x12xf32> to vector<256x12xf32>
    %c2_27 = arith.constant 2 : index
    %c0_28 = arith.constant 0 : index
    %c0_29 = arith.constant 0 : index
    %91 = vector.load %arg3[%c2_27, %c0_28, %c0_29] : memref<3x12x4xf32, #tpu.memory_space<vmem>>, vector<1x12x4xf32>
    %92 = vector.shape_cast %91 : vector<1x12x4xf32> to vector<12x4xf32>
    %cst_30 = arith.constant dense<0.000000e+00> : vector<256x4xf32>
    %93 = tpu.matmul %90, %92, %cst_30 {dimension_numbers = #tpu.dot_dimension_numbers<[1], [0], [0], [1], [0, 0, 1, 1], [], []>} : vector<256x12xf32>, vector<12x4xf32>, vector<256x4xf32> -> vector<256x4xf32>
    %94 = arith.addf %84, %93 : vector<256x4xf32>
    %cst_31 = arith.constant dense<0.000000e+00> : vector<4xf32>
    %95 = vector.multi_reduction <add>, %94, %cst_31 [0] : vector<256x4xf32> to vector<4xf32>
    %96 = vector.shape_cast %95 : vector<4xf32> to vector<1x4xf32>
    %97 = arith.mulf %94, %94 : vector<256x4xf32>
    %cst_32 = arith.constant dense<0.000000e+00> : vector<4xf32>
    %98 = vector.multi_reduction <add>, %97, %cst_32 [0] : vector<256x4xf32> to vector<4xf32>
    %99 = vector.shape_cast %98 : vector<4xf32> to vector<1x4xf32>
    %cst_33 = arith.constant 3.906250e-03 : f32
    %100 = vector.broadcast %cst_33 : f32 to vector<1x4xf32>
    %101 = arith.mulf %96, %100 : vector<1x4xf32>
    %cst_34 = arith.constant 3.906250e-03 : f32
    %102 = vector.broadcast %cst_34 : f32 to vector<1x4xf32>
    %103 = arith.mulf %99, %102 : vector<1x4xf32>
    %104 = arith.mulf %101, %101 : vector<1x4xf32>
    %105 = arith.subf %103, %104 : vector<1x4xf32>
    %cst_35 = arith.constant 0.000000e+00 : f32
    %106 = vector.broadcast %cst_35 : f32 to vector<1x4xf32>
    %107 = arith.maximumf %105, %106 : vector<1x4xf32>
    %108 = vector.broadcast %101 : vector<1x4xf32> to vector<256x4xf32>
    %109 = arith.subf %94, %108 : vector<256x4xf32>
    %cst_36 = arith.constant 9.99999974E-6 : f32
    %110 = vector.broadcast %cst_36 : f32 to vector<1x4xf32>
    %111 = arith.addf %107, %110 : vector<1x4xf32>
    %112 = math.rsqrt %111 : vector<1x4xf32>
    %113 = vector.broadcast %112 : vector<1x4xf32> to vector<256x4xf32>
    %114 = arith.mulf %109, %113 : vector<256x4xf32>
    %115 = vector.shape_cast %1 : vector<16x16x4xf32> to vector<256x4xf32>
    %116 = arith.addf %114, %115 : vector<256x4xf32>
    %117 = vector.shape_cast %116 : vector<256x4xf32> to vector<16x16x4xf32>
    %c0_37 = arith.constant 0 : index
    %c0_38 = arith.constant 0 : index
    %c0_39 = arith.constant 0 : index
    %c0_40 = arith.constant 0 : index
    %118 = vector.load %arg4[%c0_37, %c0_38, %c0_39, %c0_40] : memref<1x16x16x4xf32, #tpu.memory_space<vmem>>, vector<1x16x16x4xf32>
    %119 = vector.shape_cast %118 : vector<1x16x16x4xf32> to vector<16x16x4xf32>
    %120 = vector.shape_cast %117 : vector<16x16x4xf32> to vector<1x16x16x4xf32>
    tpu.vector_store %arg4[%c0_37, %c0_38, %c0_39, %c0_40], %120 {strides = array<i32>} : memref<1x16x16x4xf32, #tpu.memory_space<vmem>>, vector<1x16x16x4xf32>,
    return
  }
  func.func @transform_0(%arg0: i32) -> (i32, i32, i32, i32) {
    %c0_i32 = arith.constant 0 : i32
    %c0_i32_0 = arith.constant 0 : i32
    %c0_i32_1 = arith.constant 0 : i32
    %c0_i32_2 = arith.constant 0 : i32
    return %arg0, %c0_i32, %c0_i32_0, %c0_i32_1 : i32, i32, i32, i32
  }
  func.func @transform_1(%arg0: i32) -> (i32, i32, i32) {
    %c0_i32 = arith.constant 0 : i32
    %c0_i32_0 = arith.constant 0 : i32
    %c0_i32_1 = arith.constant 0 : i32
    %c0_i32_2 = arith.constant 0 : i32
    return %c0_i32, %c0_i32_0, %c0_i32_1 : i32, i32, i32
  }
  func.func @transform_2(%arg0: i32) -> (i32, i32, i32) {
    %c0_i32 = arith.constant 0 : i32
    %c0_i32_0 = arith.constant 0 : i32
    %c0_i32_1 = arith.constant 0 : i32
    %c0_i32_2 = arith.constant 0 : i32
    return %c0_i32, %c0_i32_0, %c0_i32_1 : i32, i32, i32
  }
  func.func @transform_3(%arg0: i32) -> (i32, i32, i32, i32) {
    %c0_i32 = arith.constant 0 : i32
    %c0_i32_0 = arith.constant 0 : i32
    %c0_i32_1 = arith.constant 0 : i32
    %c0_i32_2 = arith.constant 0 : i32
    return %arg0, %c0_i32, %c0_i32_0, %c0_i32_1 : i32, i32, i32, i32
  }
}

</mosaic_0001>

<bundles_post_ra>
// kernel: tpu_custom_call.1
= control target key start
LH: loop header
LB: loop body
LE: loop exit
PB: predicated region body
PF: predicated region fallthrough
CT: control target
= control target key end

     0   :  { %s3472_s12 = smov 0   ;;  %s6047_s0 = inlined_call_operand.vmem [shape: f32[2,16,16,4], index: 0, kind: input, shape index: {}]   ;;  %s6048_s1 = inlined_call_operand.vmem [shape: f32[3,12,4], index: 1, kind: input, shape index: {}]   ;;  %s6049_s2 = inlined_call_operand.vmem [shape: f32[3,12,4], index: 2, kind: input, shape index: {}]   ;;  %s6050_s3 = inlined_call_operand.vmem [shape: f32[2,16,16,4], index: 3, kind: output, shape index: {}]  }
   0x1 LB: > { %s3173_s13 = sadd.s32 4294967295, %s3448_s12   ;;  %p3177_p0 = scmp.ge.s32.totalorder %s3448_s12, 1  ;;  %s3448_s12 = sphi %s3472_s12, %s13_s12  }
   0x2   : > { %p137_p1 = scmp.lt.s32.totalorder %s3448_s12, 3 }
   0x4   : > { %p138_p2 = pnand %p3177_p0, %p137_p1 }
   0x6   : > { %141 = sbr.rel (%p138_p2) target bundleno = 1300 (0x514), region = 32 }
   0xb   : > { %p161_p3 = scmp.lt.s32.totalorder %s3173_s13, 1  ;;  %vm267_vm0 = vcmask 1040384   ;;  %vm458_vm1 = vcmask 1046528   ;;  %s3450_s18 = smov 4   ;;  %vm624_vm2 = vcmask 1045504   ;;  %vm982_vm3 = vcmask 1043456  }
   0xc   : > { %s3451_s19 = smov 8   ;;  %vm790_vm4 = vcmask 31744   ;;  %vm821_vm5 = vcmask 64512   ;;  %vm885_vm6 = vcmask 97280  }
   0xd   : > { %s6180_s13 = smov (!%p161_p3, %s3173_s13), 1 }
   0xe   : > { %s3390_s14 = sshll.u32 %s6180_s13, 8 }
   0xf   : > { %s3488_s17 = scalar_lea.vmem %s6047_s0, %s3390_s14  ;;  %s5869_s23 = scalar_lea.vmem %s6050_s3, %s3390_s14 }
  0x10   : > { %v187_v0 = vld [vmem:[%s3488_s17 + $0x80] sm:$0xff]  ;;  %v188_v1 = vld [vmem:[%s3488_s17 + $0x88] sm:$0xff]  ;;  %v189_v6 = vld [vmem:[%s3488_s17 + $0x90] sm:$0xff] }
  0x11   : > { %v292_v2 = vrot.slane %v187_v0, 7  ;;  %v293_v3 = vrot.slane %v188_v1, 7  ;;  %v372_v4 = vrot.slane %v188_v1, 5  ;;  %v227_v5 = vrot.slane %v187_v0, 1  ;;  %v190_v7 = vld [vmem:[%s3488_s17 + $0x98] sm:$0xff]  ;;  %v191_v30 = vld [vmem:[%s3488_s17 + $0xa0] sm:$0xff] }
  0x12   : > { %v295_v14 = vrot.slane %v189_v6, 7  ;;  %v296_v15 = vrot.slane %v190_v7, 7  ;;  %v373_v22 = vrot.slane %v190_v7, 5  ;;  %v228_v23 = vrot.slane %v189_v6, 1  ;;  %v192_v31 = vld [vmem:[%s3488_s17 + $0xa8] sm:$0xff]  ;;  %v193_v47 = vld [vmem:[%s3488_s17 + $0xb0] sm:$0xff] }
  0x13   : > { %v3495_v8 = vsel %vm267_vm0, %v292_v2, %v293_v3  ;;  %v420_v9 = vsel %vm267_vm0, %v293_v3, %v372_v4  ;;  %v3499_v10 = vsel %vm267_vm0, %v227_v5, %v292_v2  ;;  %v298_v36 = vrot.slane %v191_v30, 7  ;;  %v194_v48 = vld [vmem:[%s3488_s17 + $0xb8] sm:$0xff]  ;;  %v195_v59 = vld [vmem:[%s3488_s17 + $0xc0] sm:$0xff]  ;;  %v196_v63 = vld [vmem:[%s3488_s17 + $0xc8] sm:$0xff] }
  0x14   : > { %v500_v11 = vrot.slane %v3495_v8, 1  ;;  %v502_v12 = vrot.slane %v420_v9, 1  ;;  %v499_v13 = vrot.slane %v3499_v10, 1  ;;  %v666_v18 = vrot.slane %v3495_v8, 2 }
  0x15   : > { %v668_v19 = vrot.slane %v420_v9, 2  ;;  %v665_v20 = vrot.slane %v3499_v10, 2  ;;  %v3510_v21 = vsel %vm267_vm0, %v295_v14, %v296_v15  ;;  %v3513_v24 = vsel %vm267_vm0, %v228_v23, %v295_v14 }
  0x16   : > { %v503_v16 = vsel %vm458_vm1, %v500_v11, %v502_v12  ;;  %v501_v17 = vsel %vm458_vm1, %v499_v13, %v500_v11  ;;  %v505_v27 = vrot.slane %v3510_v21, 1  ;;  %v504_v28 = vrot.slane %v3513_v24, 1 }
  0x17   : > { %568 = vrot.lane.b32.xlu1 %v503_v16, %s3450_s18  ;;  %566 = vrot.lane.b32.xlu0 %v501_v17, %s3450_s18  ;;  %v669_v25 = vsel %vm624_vm2, %v666_v18, %v668_v19  ;;  %v667_v26 = vsel %vm624_vm2, %v665_v20, %v666_v18  ;;  %v421_v29 = vsel %vm267_vm0, %v296_v15, %v373_v22  ;;  %v671_v33 = vrot.slane %v3510_v21, 2 }
  0x18   : > { %v506_v32 = vsel %vm458_vm1, %v504_v28, %v505_v27  ;;  %v673_v34 = vrot.slane %v421_v29, 2  ;;  %v507_v35 = vrot.slane %v421_v29, 1  ;;  %v299_v37 = vrot.slane %v192_v31, 7  ;;  %v198_v28 = vld [vmem:[%s3488_s17 + $0xd8] sm:$0xff] }
  0x19   : > { %570 = vrot.lane.b32.xlu2 %v506_v32, %s3450_s18  ;;  %v374_v38 = vrot.slane %v192_v31, 5  ;;  %v229_v39 = vrot.slane %v191_v30, 1  ;;  %v670_v40 = vrot.slane %v3513_v24, 2  ;;  %v230_v53 = vrot.slane %v193_v47, 1 }
  0x1a   : > { %v674_v41 = vsel %vm624_vm2, %v671_v33, %v673_v34  ;;  %v508_v42 = vsel %vm458_vm1, %v505_v27, %v507_v35  ;;  %v3531_v43 = vsel %vm267_vm0, %v298_v36, %v299_v37  ;;  %v301_v54 = vrot.slane %v193_v47, 7  ;;  %v197_v27 = vld [vmem:[%s3488_s17 + $0xd0] sm:$0xff]  ;;  %v200_v47 = vld [vmem:[%s3488_s17 + $0xe8] sm:$0xff] }
  0x1b   : > { %v422_v44 = vsel %vm267_vm0, %v299_v37, %v374_v38  ;;  %v3535_v45 = vsel %vm267_vm0, %v229_v39, %v298_v36  ;;  %v672_v46 = vsel %vm624_vm2, %v670_v40, %v671_v33  ;;  %v510_v49 = vrot.slane %v3531_v43, 1 }
  0x1c   : > { %v512_v50 = vrot.slane %v422_v44, 1  ;;  %v675_v51 = vrot.slane %v3535_v45, 2  ;;  %v676_v52 = vrot.slane %v3531_v43, 2  ;;  %v302_v55 = vrot.slane %v194_v48, 7 }
  0x1d   : > { %v509_v56 = vrot.slane %v3535_v45, 1  ;;  %v3554_v61 = vsel %vm267_vm0, %v230_v53, %v301_v54  ;;  %v231_v0 = vrot.slane %v195_v59, 1  ;;  %v304_v5 = vrot.slane %v195_v59, 7 }
  0x1e   : > { %v513_v57 = vsel %vm458_vm1, %v510_v49, %v512_v50  ;;  %v677_v58 = vsel %vm624_vm2, %v675_v51, %v676_v52  ;;  %v3551_v60 = vsel %vm267_vm0, %v301_v54, %v302_v55  ;;  %v680_v1 = vrot.slane %v3554_v61, 2 }
  0x1f   : > { %734 = vrot.lane.b32.xlu1 %v669_v25, %s3451_s19  ;;  %732 = vrot.lane.b32.xlu0 %v667_v26, %s3451_s19  ;;  %v511_v62 = vsel %vm458_vm1, %v509_v56, %v510_v49  ;;  %v681_v2 = vrot.slane %v3551_v60, 2  ;;  %v514_v3 = vrot.slane %v3554_v61, 1  ;;  %v515_v4 = vrot.slane %v3551_v60, 1 }
  0x20   : > { %v305_v6 = vrot.slane %v196_v63, 7  ;;  %v375_v7 = vrot.slane %v194_v48, 5  ;;  %v678_v9 = vrot.slane %v422_v44, 2  ;;  %v3571_v14 = vsel %vm267_vm0, %v231_v0, %v304_v5  ;;  %v199_v44 = vld [vmem:[%s3488_s17 + $0xe0] sm:$0xff]  ;;  %v202_v0 = vld [vmem:[%s3488_s17 + $0xf8] sm:$0xff] }
  0x21   : > { %736 = vrot.lane.b32.xlu2 %v672_v46, %s3451_s19  ;;  %v682_v11 = vsel %vm624_vm2, %v680_v1, %v681_v2  ;;  %v516_v12 = vsel %vm458_vm1, %v514_v3, %v515_v4  ;;  %v519_v17 = vrot.slane %v3571_v14, 1  ;;  %v376_v20 = vrot.slane %v196_v63, 5 }
  0x22   : > { %v3568_v13 = vsel %vm267_vm0, %v304_v5, %v305_v6  ;;  %v423_v15 = vsel %vm267_vm0, %v302_v55, %v375_v7  ;;  %v679_v16 = vsel %vm624_vm2, %v676_v52, %v678_v9  ;;  %v307_v33 = vrot.slane %v197_v27, 7 }
  0x23   : > { %v520_v18 = vrot.slane %v3568_v13, 1  ;;  %v683_v19 = vrot.slane %v423_v15, 2  ;;  %v517_v22 = vrot.slane %v423_v15, 1  ;;  %v424_v26 = vsel %vm267_vm0, %v305_v6, %v376_v20 }
  0x24   : > { %v686_v30 = vrot.slane %v3568_v13, 2  ;;  %v688_v31 = vrot.slane %v424_v26, 2  ;;  %v522_v32 = vrot.slane %v424_v26, 1  ;;  %v308_v34 = vrot.slane %v198_v28, 7 }
  0x25   : > { %v521_v23 = vsel %vm458_vm1, %v519_v17, %v520_v18  ;;  %v684_v25 = vsel %vm624_vm2, %v681_v2, %v683_v19  ;;  %v518_v29 = vsel %vm458_vm1, %v515_v4, %v517_v22  ;;  %v377_v35 = vrot.slane %v198_v28, 5 }
  0x26   : > { %v232_v36 = vrot.slane %v197_v27, 1  ;;  %v685_v37 = vrot.slane %v3571_v14, 2  ;;  %v689_v38 = vsel %vm624_vm2, %v686_v30, %v688_v31  ;;  %v523_v39 = vsel %vm458_vm1, %v520_v18, %v522_v32  ;;  %v174_v31 = vld [vmem:[%s3488_s17 + $0x18] sm:$0xff] }
  0x27   : > { %738 = vrot.lane.b32.xlu1 %v674_v41, %s3451_s19  ;;  %572 = vrot.lane.b32.xlu0 %v508_v42, %s3450_s18  ;;  %v3594_v40 = vsel %vm267_vm0, %v307_v33, %v308_v34  ;;  %v425_v41 = vsel %vm267_vm0, %v308_v34, %v377_v35  ;;  %v233_v52 = vrot.slane %v199_v44, 1  ;;  %v310_v53 = vrot.slane %v199_v44, 7 }
  0x28   : > { %v3598_v42 = vsel %vm267_vm0, %v232_v36, %v307_v33  ;;  %v687_v46 = vsel %vm624_vm2, %v685_v37, %v686_v30  ;;  %v525_v48 = vrot.slane %v3594_v40, 1  ;;  %v527_v49 = vrot.slane %v425_v41, 1  ;;  %v173_v30 = vld [vmem:[%s3488_s17 + $0x10] sm:$0xff] }
  0x29   : > { %574 = vrot.lane.b32.xlu2 %v511_v62, %s3450_s18  ;;  %v690_v50 = vrot.slane %v3598_v42, 2  ;;  %v691_v51 = vrot.slane %v3594_v40, 2  ;;  %v311_v54 = vrot.slane %v200_v47, 7  ;;  %v524_v55 = vrot.slane %v3598_v42, 1  ;;  %v201_v62 = vld [vmem:[%s3488_s17 + $0xf0] sm:$0xff] }
  0x2a   : > { %v528_v56 = vsel %vm458_vm1, %v525_v48, %v527_v49  ;;  %v234_v5 = vrot.slane %v201_v62, 1  ;;  %v313_v6 = vrot.slane %v201_v62, 7  ;;  %v314_v7 = vrot.slane %v202_v0, 7 }
  0x2b   : > { %v3616_v59 = vsel %vm267_vm0, %v310_v53, %v311_v54  ;;  %v526_v63 = vsel %vm458_vm1, %v524_v55, %v525_v48  ;;  %v378_v9 = vrot.slane %v200_v47, 5  ;;  %v268_v36 = vrot.slane %v173_v30, 7 }
  0x2c   : > { %v696_v2 = vrot.slane %v3616_v59, 2  ;;  %v530_v4 = vrot.slane %v3616_v59, 1  ;;  %v3634_v17 = vsel %vm267_vm0, %v234_v5, %v313_v6  ;;  %v269_v37 = vrot.slane %v174_v31, 7  ;;  %v177_v5 = vld [vmem:[%s3488_s17 + $0x30] sm:$0xff] }
  0x2d   : > { %v426_v18 = vsel %vm267_vm0, %v311_v54, %v378_v9  ;;  %v856_v20 = vrot.slane %v3634_v17, 1 }
  0x2e   : > { %v532_v26 = vrot.slane %v426_v18, 1  ;;  %v3657_v47 = vsel %vm267_vm0, %v268_v36, %v269_v37 }
  0x2f   : > { %576 = vrot.lane.b32.xlu1 %v513_v57, %s3450_s18  ;;  %740 = vrot.lane.b32.xlu0 %v677_v58, %s3451_s19  ;;  %v692_v57 = vsel %vm624_vm2, %v690_v50, %v691_v51  ;;  %v3613_v58 = vsel %vm267_vm0, %v233_v52, %v310_v53  ;;  %v175_v50 = vld [vmem:[%s3488_s17 + $0x20] sm:$0xff]  ;;  %v176_v52 = vld [vmem:[%s3488_s17 + $0x28] sm:$0xff]  ;;  %v460_v53 = vrot.slane %v3657_v47, 1 }
  0x30   : > { %v695_v1 = vrot.slane %v3613_v58, 2  ;;  %v529_v3 = vrot.slane %v3613_v58, 1  ;;  %v533_v32 = vsel %vm458_vm1, %v530_v4, %v532_v26  ;;  %v274_v62 = vrot.slane %v175_v50, 7  ;;  %v3182_v26 = vld [vmem:[%s6048_s1 + $0x10] sm:$0xff] }
  0x31   : > { %742 = vrot.lane.b32.xlu2 %v679_v16, %s3451_s19  ;;  %v3631_v16 = vsel %vm267_vm0, %v313_v6, %v314_v7 }
  0x32   : > { %v531_v15 = vsel %vm458_vm1, %v529_v3, %v530_v4  ;;  %v857_v22 = vrot.slane %v3631_v16, 1  ;;  %v868_v33 = vrot.slane %v3631_v16, 2 }
  0x34   : > { %v858_v27 = vsel %vm458_vm1, %v856_v20, %v857_v22  ;;  %v277_v20 = vrot.slane %v177_v5, 7 }
  0x37   : > { %744 = vrot.lane.b32.xlu1 %v682_v11, %s3451_s19  ;;  %578 = vrot.lane.b32.xlu0 %v516_v12, %s3450_s18  ;;  %v693_v11 = vrot.slane %v425_v41, 2  ;;  %v697_v12 = vsel %vm624_vm2, %v695_v1, %v696_v2  ;;  %v867_v41 = vrot.slane %v3634_v17, 2 }
  0x39   : > { %580 = vrot.lane.b32.xlu2 %v518_v29, %s3450_s18  ;;  %v694_v19 = vsel %vm624_vm2, %v691_v51, %v693_v11  ;;  %v869_v51 = vsel %vm624_vm2, %v867_v41, %v868_v33  ;;  %v3183_v11 = vld [vmem:[%s6048_s1 + $0x18] sm:$0xf] }
  0x3a   : > { %3392 = vmatpush.msk.msra.mxu2 %vm982_vm3, %v3183_v11  ;;  %3184 = vmatpush.msk.msra.mxu0 %vm982_vm3, %v3183_v11  ;;  %v182_v11 = vld [vmem:[%s3488_s17 + $0x58] sm:$0xff] }
  0x3c   : > { %3393 = vmatpush.msra.mxu2 %v3182_v26  ;;  %1001 = vmatpush.msra.mxu0 %v3182_v26 }
  0x3f   : > { %582 = vrot.lane.b32.xlu1 %v521_v23, %s3450_s18  ;;  %746 = vrot.lane.b32.xlu0 %v684_v25, %s3451_s19  ;;  %v698_v23 = vrot.slane %v426_v18, 2  ;;  %v379_v25 = vrot.slane %v202_v0, 5 }
  0x41   : > { %748 = vrot.lane.b32.xlu2 %v687_v46, %s3451_s19  ;;  %v699_v28 = vsel %vm624_vm2, %v696_v2, %v698_v23  ;;  %v427_v29 = vsel %vm267_vm0, %v314_v7, %v379_v25  ;;  %v178_v7 = vld [vmem:[%s3488_s17 + $0x38] sm:$0xff]  ;;  %v366_v23 = vrot.slane %v176_v52, 5 }
  0x42   : > { %v870_v34 = vrot.slane %v427_v29, 2  ;;  %v859_v35 = vrot.slane %v427_v29, 1 }
  0x44   : > { %v871_v44 = vsel %vm624_vm2, %v868_v33, %v870_v34  ;;  %v860_v46 = vsel %vm458_vm1, %v857_v22, %v859_v35  ;;  %v278_v22 = vrot.slane %v178_v7, 7 }
  0x47   : > { %750 = vrot.lane.b32.xlu1 %v689_v38, %s3451_s19  ;;  %584 = vrot.lane.b32.xlu0 %v523_v39, %s3450_s18  ;;  %v364_v38 = vrot.slane %v174_v31, 5  ;;  %v219_v39 = vrot.slane %v173_v30, 1  ;;  %v3706_v30 = vsel %vm267_vm0, %v277_v20, %v278_v22 }
  0x48   : > { %v475_v35 = vrot.slane %v3706_v30, 1 }
  0x49   : > { %586 = vrot.lane.b32.xlu2 %v526_v63, %s3450_s18  ;;  %v412_v48 = vsel %vm267_vm0, %v269_v37, %v364_v38  ;;  %v3661_v49 = vsel %vm267_vm0, %v219_v39, %v268_v36  ;;  %v275_v63 = vrot.slane %v176_v52, 7  ;;  %v367_v37 = vrot.slane %v178_v7, 5 }
  0x4a   : > { %v462_v54 = vrot.slane %v412_v48, 1  ;;  %v625_v55 = vrot.slane %v3661_v49, 2  ;;  %v459_v0 = vrot.slane %v3661_v49, 1  ;;  %v628_v25 = vrot.slane %v412_v48, 2  ;;  %v179_v48 = vld [vmem:[%s3488_s17 + $0x40] sm:$0xff] }
  0x4b   : > { %v3679_v4 = vsel %vm267_vm0, %v274_v62, %v275_v63  ;;  %v641_v52 = vrot.slane %v3706_v30, 2 }
  0x4c   : > { %v463_v1 = vsel %vm458_vm1, %v460_v53, %v462_v54  ;;  %v461_v6 = vsel %vm458_vm1, %v459_v0, %v460_v53  ;;  %v470_v18 = vrot.slane %v3679_v4, 1 }
  0x4f   : > { %588 = vrot.lane.b32.xlu1 %v528_v56, %s3450_s18  ;;  %752 = vrot.lane.b32.xlu0 %v692_v57, %s3451_s19  ;;  %v626_v56 = vrot.slane %v3657_v47, 2  ;;  %v221_v57 = vrot.slane %v175_v50, 1  ;;  %v180_v50 = vld [vmem:[%s3488_s17 + $0x48] sm:$0xff] }
  0x51   : > { %754 = vrot.lane.b32.xlu2 %v694_v19, %s3451_s19  ;;  %v627_v2 = vsel %vm624_vm2, %v625_v55, %v626_v56  ;;  %v3676_v3 = vsel %vm267_vm0, %v221_v57, %v274_v62  ;;  %v222_v19 = vrot.slane %v177_v5, 1  ;;  %v629_v33 = vsel %vm624_vm2, %v626_v56, %v628_v25 }
  0x52   : > { %v635_v9 = vrot.slane %v3676_v3, 2  ;;  %v280_v55 = vrot.slane %v179_v48, 7  ;;  %v281_v56 = vrot.slane %v180_v50, 7  ;;  %v368_v57 = vrot.slane %v180_v50, 5 }
  0x53   : > { %v3709_v31 = vsel %vm267_vm0, %v222_v19, %v277_v20  ;;  %v223_v62 = vrot.slane %v179_v48, 1  ;;  %v284_v25 = vrot.slane %v182_v11, 7 }
  0x54   : > { %v474_v34 = vrot.slane %v3709_v31, 1  ;;  %v3736_v5 = vsel %vm267_vm0, %v280_v55, %v281_v56 }
  0x55   : > { %v3740_v7 = vsel %vm267_vm0, %v223_v62, %v280_v55  ;;  %v646_v20 = vrot.slane %v3736_v5, 2 }
  0x56   : > { %v476_v41 = vsel %vm458_vm1, %v474_v34, %v475_v35  ;;  %v645_v19 = vrot.slane %v3740_v7, 2 }
  0x57   : > { %756 = vrot.lane.b32.xlu1 %v697_v12, %s3451_s19  ;;  %590 = vrot.lane.b32.xlu0 %v531_v15, %s3450_s18  ;;  %v636_v12 = vrot.slane %v3679_v4, 2  ;;  %v469_v15 = vrot.slane %v3676_v3, 1 }
  0x59   : > { %592 = vrot.lane.b32.xlu2 %v533_v32, %s3450_s18  ;;  %v471_v29 = vsel %vm458_vm1, %v469_v15, %v470_v18  ;;  %v414_v32 = vsel %vm267_vm0, %v275_v63, %v366_v23  ;;  %v640_v63 = vrot.slane %v3709_v31, 2  ;;  %v480_v15 = vrot.slane %v3736_v5, 1 }
  0x5a   : > { %v638_v36 = vrot.slane %v414_v32, 2  ;;  %v472_v38 = vrot.slane %v414_v32, 1 }
  0x5f   : > { %861 = vrot.lane.b32.xlu1 %v858_v27, %s3450_s18  ;;  %758 = vrot.lane.b32.xlu0 %v699_v28, %s3451_s19  ;;  %v3251_v27 = vld [vmem:[%s6048_s1 + $0x28] sm:$0xf]  ;;  %v637_v28 = vsel %vm624_vm2, %v635_v9, %v636_v12  ;;  %v181_v9 = vld [vmem:[%s3488_s17 + $0x50] sm:$0xff] }
  0x60   : > { %3252 = vmatpush.msk.msrb.mxu2 %vm982_vm3, %v3251_v27  ;;  %v283_v23 = vrot.slane %v181_v9, 7 }
  0x61   : > { %872 = vrot.lane.b32.xlu2 %v869_v51, %s3451_s19  ;;  %v473_v51 = vsel %vm458_vm1, %v470_v18, %v472_v38  ;;  %v184_v38 = vld [vmem:[%s3488_s17 + $0x68] sm:$0xff] }
  0x62   : > { %v3757_v34 = vsel %vm267_vm0, %v283_v23, %v284_v25  ;;  %v287_v55 = vrot.slane %v184_v38, 7 }
  0x63   : > { %v485_v48 = vrot.slane %v3757_v34, 1 }
  0x67   : > { %874 = vrot.lane.b32.xlu1 %v871_v44, %s3451_s19  ;;  %863 = vrot.lane.b32.xlu0 %v860_v46, %s3450_s18  ;;  %v639_v44 = vsel %vm624_vm2, %v636_v12, %v638_v36  ;;  %v415_v46 = vsel %vm267_vm0, %v278_v22, %v367_v37  ;;  %v642_v12 = vsel %vm624_vm2, %v640_v63, %v641_v52  ;;  %v224_v22 = vrot.slane %v181_v9, 1  ;;  %v183_v36 = vld [vmem:[%s3488_s17 + $0x60] sm:$0xff] }
  0x68   : > { %v643_v53 = vrot.slane %v415_v46, 2  ;;  %v477_v54 = vrot.slane %v415_v46, 1  ;;  %v225_v50 = vrot.slane %v183_v36, 1 }
  0x69   : > { %534 = vrot.lane.b32.xlu2 %v461_v6, %s3450_s18  ;;  %v416_v6 = vsel %vm267_vm0, %v281_v56, %v368_v57  ;;  %v369_v56 = vrot.slane %v182_v11, 5 }
  0x6a   : > { %v482_v18 = vrot.slane %v416_v6, 1  ;;  %v648_v57 = vrot.slane %v416_v6, 2 }
  0x6b   : > { %v417_v6 = vsel %vm267_vm0, %v284_v25, %v369_v56 }
  0x6c   : > { %v483_v32 = vsel %vm458_vm1, %v480_v15, %v482_v18  ;;  %v649_v11 = vsel %vm624_vm2, %v646_v20, %v648_v57  ;;  %v487_v25 = vrot.slane %v417_v6, 1 }
  0x6f   : > { %536 = vrot.lane.b32.xlu1 %v463_v1, %s3450_s18  ;;  %700 = vrot.lane.b32.xlu0 %v627_v2, %s3451_s19  ;;  %v644_v1 = vsel %vm624_vm2, %v641_v52, %v643_v53  ;;  %v478_v2 = vsel %vm458_vm1, %v475_v35, %v477_v54  ;;  %v3760_v35 = vsel %vm267_vm0, %v224_v22, %v283_v23  ;;  %v370_v22 = vrot.slane %v184_v38, 5  ;;  %v171_v38 = vld [vmem:[%s3488_s17] sm:$0xff] }
  0x70   : > { %v484_v46 = vrot.slane %v3760_v35, 1  ;;  %v220_v56 = vrot.slane %v171_v38, 1  ;;  %v271_v57 = vrot.slane %v171_v38, 7 }
  0x71   : > { %702 = vrot.lane.b32.xlu2 %v629_v33, %s3451_s19  ;;  %v647_v33 = vsel %vm624_vm2, %v645_v19, %v646_v20  ;;  %v653_v19 = vrot.slane %v417_v6, 2 }
  0x73   : > { %v3718_v39 = vpop.permute.xlu2 %570 }
  0x77   : > { %708 = vrot.lane.b32.xlu1 %v637_v28, %s3451_s19  ;;  %542 = vrot.lane.b32.xlu0 %v471_v29, %s3450_s18  ;;  %v479_v28 = vrot.slane %v3740_v7, 1 }
  0x79   : > { %544 = vrot.lane.b32.xlu2 %v473_v51, %s3450_s18  ;;  %v481_v37 = vsel %vm458_vm1, %v479_v28, %v480_v15  ;;  %v286_v51 = vrot.slane %v183_v36, 7  ;;  %v186_v36 = vld [vmem:[%s3488_s17 + $0x78] sm:$0xff] }
  0x7b   : > { %v3731_v0 = vpop.permute.xlu2 %736  ;;  %v3784_v9 = vsel %vm267_vm0, %v286_v51, %v287_v55 }
  0x7c   : > { %v490_v18 = vrot.slane %v3784_v9, 1 }
  0x7f   : > { %546 = vrot.lane.b32.xlu1 %v476_v41, %s3450_s18  ;;  %710 = vrot.lane.b32.xlu0 %v639_v44, %s3451_s19  ;;  %v650_v41 = vrot.slane %v3760_v35, 2  ;;  %v651_v44 = vrot.slane %v3757_v34, 2 }
  0x81   : > { %712 = vrot.lane.b32.xlu2 %v642_v12, %s3451_s19  ;;  %v654_v28 = vsel %vm624_vm2, %v651_v44, %v653_v19 }
  0x83   : > { %v3752_v29 = vpop.permute.xlu2 %574 }
  0x87   : > { %714 = vrot.lane.b32.xlu1 %v644_v1, %s3451_s19  ;;  %548 = vrot.lane.b32.xlu0 %v478_v2, %s3450_s18  ;;  %v652_v1 = vsel %vm624_vm2, %v650_v41, %v651_v44  ;;  %v486_v2 = vsel %vm458_vm1, %v484_v46, %v485_v48  ;;  %v3813_v41 = vld [vmem:[%s3488_s17 + $0x8] sm:$0xff]  ;;  %v809_v46 = vsel %vm790_vm4, %v3513_v24, %v3718_v39 }
  0x88   : > { %v3826_v39 = vsel %vm821_vm5, %v809_v46, %v3731_v0 }
  0x89   : > { %v569_v26 = vpop.permute.xlu1 %568  ;;  %v567_v27 = vpop.permute.xlu0 %566  ;;  %550 = vrot.lane.b32.xlu2 %v481_v37, %s3450_s18  ;;  %v488_v37 = vsel %vm458_vm1, %v485_v48, %v487_v25 }
  0x8a   : > { %v807_v52 = vsel %vm790_vm4, %v3499_v10, %v567_v27  ;;  %v3787_v10 = vsel %vm267_vm0, %v225_v50, %v286_v51  ;;  %v808_v12 = vsel %vm790_vm4, %v3495_v8, %v569_v26  ;;  %v656_v50 = vrot.slane %v3784_v9, 2 }
  0x8b   : > { %v3777_v63 = vpop.permute.xlu2 %742  ;;  %v489_v15 = vrot.slane %v3787_v10, 1  ;;  %v655_v24 = vrot.slane %v3787_v10, 2 }
  0x8d   : > { %v491_v27 = vsel %vm458_vm1, %v489_v15, %v490_v18  ;;  %v657_v25 = vsel %vm624_vm2, %v655_v24, %v656_v50 }
  0x8f   : > { %552 = vrot.lane.b32.xlu1 %v483_v32, %s3450_s18  ;;  %716 = vrot.lane.b32.xlu0 %v647_v33, %s3451_s19  ;;  %v418_v32 = vsel %vm267_vm0, %v287_v55, %v370_v22  ;;  %v185_v33 = vld [vmem:[%s3488_s17 + $0x70] sm:$0xff]  ;;  %v3846_v22 = vsel %vm267_vm0, %v220_v56, %v271_v57 }
  0x90   : > { %v658_v44 = vrot.slane %v418_v32, 2  ;;  %v492_v51 = vrot.slane %v418_v32, 1 }
  0x91   : > { %v735_v53 = vpop.permute.xlu1 %734  ;;  %v733_v54 = vpop.permute.xlu0 %732  ;;  %718 = vrot.lane.b32.xlu2 %v649_v11, %s3451_s19 }
  0x92   : > { %v3775_v62 = vsel %vm821_vm5, %v807_v52, %v733_v54  ;;  %v3799_v8 = vsel %vm821_vm5, %v808_v12, %v735_v53  ;;  %v226_v52 = vrot.slane %v185_v33, 1  ;;  %v289_v53 = vrot.slane %v185_v33, 7 }
  0x93   : > { %3201 = vmatmul.msk.f32.vlgmr.msra.gmra.mxu2 %vm885_vm6, %v3775_v62  ;;  %v3801_v26 = vpop.permute.xlu2 %580  ;;  %v290_v54 = vrot.slane %v186_v36, 7  ;;  %v659_v6 = vsel %vm624_vm2, %v656_v50, %v658_v44  ;;  %v493_v11 = vsel %vm458_vm1, %v490_v18, %v492_v51  ;;  %v811_v51 = vsel %vm790_vm4, %v3535_v45, %v3752_v29 }
  0x94   : > { %v3838_v15 = vsel %vm267_vm0, %v226_v52, %v289_v53  ;;  %v630_v45 = vrot.slane %v3846_v22, 2 }
  0x95   : > { %v3835_v12 = vsel %vm267_vm0, %v289_v53, %v290_v54  ;;  %v660_v18 = vrot.slane %v3838_v15, 2  ;;  %v494_v38 = vrot.slane %v3838_v15, 1 }
  0x97   : > { %720 = vrot.lane.b32.xlu1 %v652_v1, %s3451_s19  ;;  %554 = vrot.lane.b32.xlu0 %v486_v2, %s3450_s18  ;;  %v272_v1 = vrot.slane %v3813_v41, 7 }
  0x99   : > { %v739_v20 = vpop.permute.xlu1 %738  ;;  %v573_v23 = vpop.permute.xlu0 %572  ;;  %556 = vrot.lane.b32.xlu2 %v488_v37, %s3450_s18  ;;  %v3843_v0 = vsel %vm267_vm0, %v271_v57, %v272_v1  ;;  %v371_v37 = vrot.slane %v186_v36, 5 }
  0x9a   : > { %v810_v19 = vsel %vm790_vm4, %v3510_v21, %v573_v23  ;;  %v464_v21 = vrot.slane %v3846_v22, 1  ;;  %v465_v23 = vrot.slane %v3843_v0, 1 }
  0x9b   : > { %3202 = vmatmul.msk.f32.gmra.mxu2 %vm885_vm6, %v3799_v8  ;;  %v3828_v2 = vpop.permute.xlu2 %748  ;;  %v419_v52 = vsel %vm267_vm0, %v290_v54, %v371_v37  ;;  %v631_v54 = vrot.slane %v3843_v0, 2 }
  0x9c   : > { %v466_v44 = vsel %vm458_vm1, %v464_v21, %v465_v23  ;;  %v497_v56 = vrot.slane %v419_v52, 1  ;;  %v663_v57 = vrot.slane %v419_v52, 2 }
  0x9d   : > { %v632_v21 = vsel %vm624_vm2, %v630_v45, %v631_v54 }
  0x9f   : > { %558 = vrot.lane.b32.xlu1 %v491_v27, %s3450_s18  ;;  %722 = vrot.lane.b32.xlu0 %v654_v28, %s3451_s19  ;;  %v3853_v27 = vsel %vm821_vm5, %v810_v19, %v739_v20  ;;  %v661_v28 = vrot.slane %v3835_v12, 2  ;;  %v495_v20 = vrot.slane %v3835_v12, 1 }
  0xa1   : > { %v577_v48 = vpop.permute.xlu1 %576  ;;  %v741_v55 = vpop.permute.xlu0 %740  ;;  %724 = vrot.lane.b32.xlu2 %v657_v25, %s3451_s19  ;;  %v662_v50 = vsel %vm624_vm2, %v660_v18, %v661_v28  ;;  %v496_v36 = vsel %vm458_vm1, %v494_v38, %v495_v20  ;;  %v498_v19 = vsel %vm458_vm1, %v495_v20, %v497_v56  ;;  %v664_v25 = vsel %vm624_vm2, %v661_v28, %v663_v57 }
  0xa2   : > { %v3875_v53 = vsel %vm821_vm5, %v811_v51, %v741_v55  ;;  %v3250_v55 = vld [vmem:[%s6048_s1 + $0x20] sm:$0xff]  ;;  %v814_v56 = vsel %vm790_vm4, %v3551_v60, %v3801_v26 }
  0xa3   : > { %3203 = vmatmul.msk.f32.gmra.mxu2 %vm885_vm6, %v3826_v39  ;;  %v3860_v46 = vpop.permute.xlu2 %586 }
  0xa4   : > { %1236 = vmatpush.msrb.mxu2 %v3250_v55 }
  0xa7   : > { %726 = vrot.lane.b32.xlu1 %v659_v6, %s3451_s19  ;;  %560 = vrot.lane.b32.xlu0 %v493_v11, %s3450_s18  ;;  %v365_v11 = vrot.slane %v3813_v41, 5  ;;  %v812_v41 = vsel %vm790_vm4, %v3531_v43, %v577_v48 }
  0xa8   : > { %v3896_v37 = vsel %vm821_vm5, %v812_v41, %v3777_v63 }
  0xa9   : > { %v745_v32 = vpop.permute.xlu1 %744  ;;  %v579_v33 = vpop.permute.xlu0 %578  ;;  %562 = vrot.lane.b32.xlu2 %v496_v36, %s3450_s18  ;;  %v413_v18 = vsel %vm267_vm0, %v272_v1, %v365_v11 }
  0xaa   : > { %v633_v38 = vrot.slane %v413_v18, 2  ;;  %v813_v48 = vsel %vm790_vm4, %v3554_v61, %v579_v33 }
  0xab   : > { %3204 = vmatmul.msk.f32.gmra.mxu2 %vm885_vm6, %v3853_v27  ;;  %v755_v29 = vpop.permute.xlu2 %754  ;;  %v3907_v63 = vsel %vm821_vm5, %v813_v48, %v745_v32 }
  0xac   : > { %v634_v43 = vsel %vm624_vm2, %v631_v54, %v633_v38 }
  0xaf   : > { %728 = vrot.lane.b32.xlu0 %v662_v50, %s3451_s19  ;;  %538 = vrot.lane.b32.xlu1 %v466_v44, %s3450_s18  ;;  %v467_v50 = vrot.slane %v413_v18, 1 }
  0xb1   : > { %v583_v24 = vpop.permute.xlu1 %582  ;;  %v747_v6 = vpop.permute.xlu0 %746  ;;  %704 = vrot.lane.b32.xlu2 %v632_v21, %s3451_s19  ;;  %v468_v1 = vsel %vm458_vm1, %v465_v23, %v467_v50 }
  0xb2   : > { %v3916_v61 = vsel %vm821_vm5, %v814_v56, %v747_v6  ;;  %v815_v32 = vsel %vm790_vm4, %v3571_v14, %v583_v24  ;;  %v817_v14 = vsel %vm790_vm4, %v3598_v42, %v3860_v46  ;;  %v853_v42 = vld [vmem:[%s6048_s1 + $0x8] sm:$0xf] }
  0xb3   : > { %3205 = vmatmul.msk.f32.gmra.mxu2 %vm885_vm6, %v3875_v53  ;;  %v593_v44 = vpop.permute.xlu2 %592  ;;  %v3924_v11 = vsel %vm821_vm5, %v815_v32, %v3828_v2  ;;  %3217 = vmatpush.msk.msra.mxu1 %vm982_vm3, %v853_v42 }
  0xb4   : > { %3394 = vmatpush.msk.msra.mxu3 %vm982_vm3, %v853_v42 }
  0xb7   : > { %564 = vrot.lane.b32.xlu0 %v498_v19, %s3450_s18  ;;  %730 = vrot.lane.b32.xlu1 %v664_v25, %s3451_s19 }
  0xb9   : > { %v751_v28 = vpop.permute.xlu1 %750  ;;  %v585_v20 = vpop.permute.xlu0 %584  ;;  %540 = vrot.lane.b32.xlu2 %v468_v1, %s3450_s18  ;;  %v852_v1 = vld [vmem:[%s6048_s1] sm:$0xff] }
  0xba   : > { %v816_v60 = vsel %vm790_vm4, %v3568_v13, %v585_v20  ;;  %1117 = vmatpush.msra.mxu1 %v852_v1  ;;  %3395 = vmatpush.msra.mxu3 %v852_v1 }
  0xbb   : > { %3206 = vmatmul.msk.f32.gmra.mxu2 %vm885_vm6, %v3896_v37  ;;  %v873_v36 = vpop.permute.xlu2 %872  ;;  %v3931_v26 = vsel %vm821_vm5, %v816_v60, %v751_v28 }
  0xbf   : > { %706 = vrot.lane.b32.xlu0 %v634_v43, %s3451_s19 }
  0xc1   : > { %v589_v51 = vpop.permute.xlu1 %588  ;;  %v753_v52 = vpop.permute.xlu0 %752 }
  0xc2   : > { %v3941_v2 = vsel %vm821_vm5, %v817_v14, %v753_v52  ;;  %v818_v18 = vsel %vm790_vm4, %v3594_v40, %v589_v51 }
  0xc3   : > { %3207 = vmatmul.msk.f32.gmra.mxu2 %vm885_vm6, %v3907_v63  ;;  %v535_v57 = vpop.permute.xlu2 %534  ;;  %v3948_v21 = vsel %vm821_vm5, %v818_v18, %v755_v29 }
  0xc4   : > { %v791_v40 = vsel %vm790_vm4, %v3661_v49, %v535_v57 }
  0xc9   : > { %v757_v23 = vpop.permute.xlu1 %756  ;;  %v591_v33 = vpop.permute.xlu0 %590 }
  0xca   : > { %v819_v46 = vsel %vm790_vm4, %v3613_v58, %v591_v33  ;;  %v820_v58 = vsel %vm790_vm4, %v3616_v59, %v593_v44 }
  0xcb   : > { %3208 = vmatmul.msk.f32.gmra.mxu2 %vm885_vm6, %v3916_v61  ;;  %v703_v55 = vpop.permute.xlu2 %702  ;;  %v3965_v50 = vsel %vm821_vm5, %v819_v46, %v757_v23 }
  0xd1   : > { %v862_v45 = vpop.permute.xlu1 %861  ;;  %v759_v54 = vpop.permute.xlu0 %758 }
  0xd2   : > { %v3981_v51 = vsel %vm821_vm5, %v820_v58, %v759_v54  ;;  %v878_v59 = vsel %vm790_vm4, %v3634_v17, %v862_v45 }
  0xd3   : > { %3209 = vmatmul.msk.f32.gmra.mxu2 %vm885_vm6, %v3924_v11  ;;  %v3933_v25 = vpop.permute.xlu2 %544 }
  0xd9   : > { %v875_v6 = vpop.permute.xlu1 %874  ;;  %v864_v19 = vpop.permute.xlu0 %863 }
  0xda   : > { %v879_v54 = vsel %vm790_vm4, %v3631_v16, %v864_v19 }
  0xdb   : > { %3210 = vmatmul.msk.f32.gmra.mxu2 %vm885_vm6, %v3931_v26  ;;  %v713_v13 = vpop.permute.xlu2 %712 }
  0xe1   : > { %v537_v24 = vpop.permute.xlu1 %536  ;;  %v701_v41 = vpop.permute.xlu0 %700 }
  0xe2   : > { %v3962_v20 = vsel %vm821_vm5, %v791_v40, %v701_v41  ;;  %v792_v49 = vsel %vm790_vm4, %v3657_v47, %v537_v24  ;;  %v3993_v47 = vsel %vm821_vm5, %v878_v59, %v873_v36 }
  0xe3   : > { %3211 = vmatmul.msk.f32.gmra.mxu2 %vm885_vm6, %v3941_v2  ;;  %v551_v29 = vpop.permute.xlu2 %550  ;;  %3218 = vmatmul.msk.f32.vlgmr.msra.gmra.mxu1 %vm885_vm6, %v3962_v20  ;;  %v3984_v52 = vsel %vm821_vm5, %v792_v49, %v703_v55  ;;  %v4000_v55 = vsel %vm821_vm5, %v879_v54, %v875_v6 }
  0xe4   : > { %v799_v58 = vsel %vm790_vm4, %v3740_v7, %v551_v29 }
  0xe9   : > { %v709_v38 = vpop.permute.xlu1 %708  ;;  %v543_v28 = vpop.permute.xlu0 %542 }
  0xea   : > { %v795_v40 = vsel %vm790_vm4, %v3676_v3, %v543_v28 }
  0xeb   : > { %3212 = vmatmul.msk.f32.gmra.mxu2 %vm885_vm6, %v3948_v21  ;;  %v719_v56 = vpop.permute.xlu2 %718  ;;  %3219 = vmatmul.msk.f32.gmra.mxu1 %vm885_vm6, %v3984_v52  ;;  %v826_v49 = vsel %vm821_vm5, %v795_v40, %v709_v38 }
  0xf1   : > { %v547_v43 = vpop.permute.xlu1 %546  ;;  %v3967_v48 = vpop.permute.xlu0 %710 }
  0xf2   : > { %v797_v36 = vsel %vm790_vm4, %v3709_v31, %v547_v43 }
  0xf3   : > { %3213 = vmatmul.msk.f32.gmra.mxu2 %vm885_vm6, %v3965_v50  ;;  %v557_v32 = vpop.permute.xlu2 %556  ;;  %v4014_v19 = vsel %vm821_vm5, %v797_v36, %v713_v13 }
  0xf4   : > { %v802_v45 = vsel %vm790_vm4, %v3757_v34, %v557_v32 }
  0xf9   : > { %v715_v23 = vpop.permute.xlu1 %714  ;;  %v549_v33 = vpop.permute.xlu0 %548 }
  0xfa   : > { %v798_v42 = vsel %vm790_vm4, %v3706_v30, %v549_v33 }
  0xfb   : > { %3214 = vmatmul.msk.f32.gmra.mxu2 %vm885_vm6, %v3981_v51  ;;  %v725_v17 = vpop.permute.xlu2 %724  ;;  %v4028_v13 = vsel %vm821_vm5, %v798_v42, %v715_v23 }
 0x101   : > { %v553_v44 = vpop.permute.xlu1 %552  ;;  %v717_v57 = vpop.permute.xlu0 %716 }
 0x102   : > { %v830_v7 = vsel %vm821_vm5, %v799_v58, %v717_v57  ;;  %v800_v38 = vsel %vm790_vm4, %v3736_v5, %v553_v44 }
 0x103   : > { %3215 = vmatmul.msk.f32.gmra.mxu2 %vm885_vm6, %v3993_v47  ;;  %v563_v34 = vpop.permute.xlu2 %562 }
 0x104   : > { %v805_v1 = vsel %vm790_vm4, %v3838_v15, %v563_v34  ;;  %v796_v15 = vsel %vm790_vm4, %v3679_v4, %v3933_v25  ;;  %v831_v4 = vsel %vm821_vm5, %v800_v38, %v719_v56 }
 0x105   : > { %v827_v28 = vsel %vm821_vm5, %v796_v15, %v3967_v48 }
 0x109   : > { %v721_v60 = vpop.permute.xlu1 %720  ;;  %v555_v14 = vpop.permute.xlu0 %554 }
 0x10a   : > { %v801_v44 = vsel %vm790_vm4, %v3760_v35, %v555_v14 }
 0x10b   : > { %3216 = vmatmul.msk.f32.gmra.mxu2 %vm885_vm6, %v4000_v55  ;;  %v705_v30 = vpop.permute.xlu2 %704  ;;  %v832_v56 = vsel %vm821_vm5, %v801_v44, %v721_v60 }
 0x111   : > { %v559_v24 = vpop.permute.xlu1 %558  ;;  %v723_v41 = vpop.permute.xlu0 %722 }
 0x112   : > { %v803_v16 = vsel %vm790_vm4, %v3787_v10, %v559_v24  ;;  %v4011_v6 = vsel %vm821_vm5, %v802_v45, %v723_v41 }
 0x113   : > { %v4017_v18 = vsel %vm821_vm5, %v803_v16, %v725_v17  ;;  %3253 = vmatmul.msk.f32.vlgmr.msrb.gmra.mxu2 %vm885_vm6, %v3962_v20  ;;  %v541_v25 = vpop.permute.xlu2 %540 }
 0x114   : > { %v794_v48 = vsel %vm790_vm4, %v3843_v0, %v541_v25 }
 0x116   : > { %v4021_v31 = vpop.f32.mrf.mxu2 }
 0x119   : > { %v727_v46 = vpop.permute.xlu1 %726  ;;  %v561_v10 = vpop.permute.xlu0 %560 }
 0x11a   : > { %v804_v0 = vsel %vm790_vm4, %v3784_v9, %v561_v10 }
 0x11b   : > { %3254 = vmatmul.msk.f32.gmra.mxu2 %vm885_vm6, %v3984_v52  ;;  %v835_v60 = vsel %vm821_vm5, %v804_v0, %v727_v46 }
 0x11e   : > { %v4032_v43 = vpop.f32.mrf.mxu2 }
 0x121   : > { %v729_v33 = vpop.permute.xlu0 %728  ;;  %v539_v59 = vpop.permute.xlu1 %538 }
 0x122   : > { %v793_v23 = vsel %vm790_vm4, %v3846_v22, %v539_v59  ;;  %v4042_v32 = vsel %vm821_vm5, %v805_v1, %v729_v33 }
 0x123   : > { %3234 = vmatmul.msk.f32.vlgmr.msra.gmra.mxu3 %vm885_vm6, %v4042_v32  ;;  %3255 = vmatmul.msk.f32.gmra.mxu2 %vm885_vm6, %v826_v49  ;;  %v824_v3 = vsel %vm821_vm5, %v793_v23, %v705_v30 }
 0x124   : > { %3185 = vmatmul.msk.f32.vlgmr.msra.gmra.mxu0 %vm885_vm6, %v824_v3  ;;  %3220 = vmatmul.msk.f32.gmra.mxu1 %vm885_vm6, %v824_v3 }
 0x126   : > { %v4054_v22 = vpop.f32.mrf.mxu2 }
 0x129   : > { %v565_v29 = vpop.permute.xlu0 %564  ;;  %v731_v54 = vpop.permute.xlu1 %730 }
 0x12a   : > { %v806_v57 = vsel %vm790_vm4, %v3835_v12, %v565_v29 }
 0x12b   : > { %3256 = vmatmul.msk.f32.gmra.mxu2 %vm885_vm6, %v827_v28  ;;  %v4064_v17 = vsel %vm821_vm5, %v806_v57, %v731_v54 }
 0x12c   : > { %3235 = vmatmul.msk.f32.gmra.mxu3 %vm885_vm6, %v4064_v17 }
 0x12e   : > { %v4069_v5 = vpop.f32.mrf.mxu2 }
 0x131   : > { %v707_v12 = vpop.permute.xlu0 %706 }
 0x132   : > { %v825_v36 = vsel %vm821_vm5, %v794_v48, %v707_v12 }
 0x133   : > { %3186 = vmatmul.msk.f32.gmra.mxu0 %vm885_vm6, %v825_v36  ;;  %3221 = vmatmul.msk.f32.gmra.mxu1 %vm885_vm6, %v825_v36 }
 0x134   : > { %3257 = vmatmul.msk.f32.gmra.mxu2 %vm885_vm6, %v4014_v19  ;;  %3236 = vmatmul.msk.f32.gmra.mxu3 %vm885_vm6, %v3775_v62 }
 0x136   : > { %v4083_v45 = vpop.f32.mrf.mxu2 }
 0x137   : > { %6083 = vst [vmem:[#allocation2_spill] sm:$0xff] %v4083_v45 }
 0x13b   : > { %3187 = vmatmul.msk.f32.gmra.mxu0 %vm885_vm6, %v3962_v20  ;;  %3222 = vmatmul.msk.f32.gmra.mxu1 %vm885_vm6, %v3962_v20 }
 0x13c   : > { %3258 = vmatmul.msk.f32.gmra.mxu2 %vm885_vm6, %v4028_v13  ;;  %3237 = vmatmul.msk.f32.gmra.mxu3 %vm885_vm6, %v3799_v8 }
 0x13e   : > { %v4093_v35 = vpop.f32.mrf.mxu2 }
 0x13f   : > { %6084 = vst [vmem:[#allocation3_spill] sm:$0xff] %v4093_v35 }
 0x143   : > { %3188 = vmatmul.msk.f32.gmra.mxu0 %vm885_vm6, %v3984_v52  ;;  %3223 = vmatmul.msk.f32.gmra.mxu1 %vm885_vm6, %v3984_v52 }
 0x144   : > { %3259 = vmatmul.msk.f32.gmra.mxu2 %vm885_vm6, %v830_v7  ;;  %3238 = vmatmul.msk.f32.gmra.mxu3 %vm885_vm6, %v3826_v39 }
 0x146   : > { %v4104_v20 = vpop.f32.mrf.mxu2 }
 0x147   : > { %6085 = vst [vmem:[#allocation4_spill] sm:$0xff] %v4104_v20 }
 0x14b   : > { %3189 = vmatmul.msk.f32.gmra.mxu0 %vm885_vm6, %v826_v49  ;;  %3224 = vmatmul.msk.f32.gmra.mxu1 %vm885_vm6, %v826_v49 }
 0x14c   : > { %3260 = vmatmul.msk.f32.gmra.mxu2 %vm885_vm6, %v831_v4  ;;  %3239 = vmatmul.msk.f32.gmra.mxu3 %vm885_vm6, %v3853_v27 }
 0x14e   : > { %v4112_v52 = vpop.f32.mrf.mxu2 }
 0x14f   : > { %6086 = vst [vmem:[#allocation5_spill] sm:$0xff] %v4112_v52 }
 0x153   : > { %3190 = vmatmul.msk.f32.gmra.mxu0 %vm885_vm6, %v827_v28  ;;  %3225 = vmatmul.msk.f32.gmra.mxu1 %vm885_vm6, %v827_v28 }
 0x154   : > { %3261 = vmatmul.msk.f32.gmra.mxu2 %vm885_vm6, %v832_v56  ;;  %3240 = vmatmul.msk.f32.gmra.mxu3 %vm885_vm6, %v3875_v53 }
 0x156   : > { %v4119_v9 = vpop.f32.mrf.mxu2 }
 0x157   : > { %6087 = vst [vmem:[#allocation6_spill] sm:$0xff] %v4119_v9 }
 0x15b   : > { %3191 = vmatmul.msk.f32.gmra.mxu0 %vm885_vm6, %v4014_v19  ;;  %3226 = vmatmul.msk.f32.gmra.mxu1 %vm885_vm6, %v4014_v19 }
 0x15c   : > { %3262 = vmatmul.msk.f32.gmra.mxu2 %vm885_vm6, %v4011_v6  ;;  %3241 = vmatmul.msk.f32.gmra.mxu3 %vm885_vm6, %v3896_v37 }
 0x15e   : > { %v4129_v14 = vpop.f32.mrf.mxu2 }
 0x15f   : > { %6088 = vst [vmem:[#allocation7_spill] sm:$0xff] %v4129_v14 }
 0x160   : > { %v1119_v10 = vpop.f32.mrf.mxu1 }
 0x163   : > { %3192 = vmatmul.msk.f32.gmra.mxu0 %vm885_vm6, %v4028_v13  ;;  %3227 = vmatmul.msk.f32.gmra.mxu1 %vm885_vm6, %v4028_v13 }
 0x164   : > { %3263 = vmatmul.msk.f32.gmra.mxu2 %vm885_vm6, %v4017_v18  ;;  %3242 = vmatmul.msk.f32.gmra.mxu3 %vm885_vm6, %v3907_v63 }
 0x166   : > { %v4139_v24 = vpop.f32.mrf.mxu2 }
 0x167   : > { %6089 = vst [vmem:[#allocation8_spill] sm:$0xff] %v4139_v24 }
 0x168   : > { %v1122_v13 = vpop.f32.mrf.mxu1 }
 0x16b   : > { %3193 = vmatmul.msk.f32.gmra.mxu0 %vm885_vm6, %v830_v7  ;;  %3228 = vmatmul.msk.f32.gmra.mxu1 %vm885_vm6, %v830_v7 }
 0x16c   : > { %3264 = vmatmul.msk.f32.gmra.mxu2 %vm885_vm6, %v835_v60  ;;  %3243 = vmatmul.msk.f32.gmra.mxu3 %vm885_vm6, %v3916_v61 }
 0x16e   : > { %v4146_v41 = vpop.f32.mrf.mxu2 }
 0x16f   : > { %6090 = vst [vmem:[#allocation9_spill] sm:$0xff] %v4146_v41 }
 0x173   : > { %3194 = vmatmul.msk.f32.gmra.mxu0 %vm885_vm6, %v831_v4  ;;  %3229 = vmatmul.msk.f32.gmra.mxu1 %vm885_vm6, %v831_v4 }
 0x174   : > { %3265 = vmatmul.msk.f32.gmra.mxu2 %vm885_vm6, %v4042_v32  ;;  %3244 = vmatmul.msk.f32.gmra.mxu3 %vm885_vm6, %v3924_v11 }
 0x176   : > { %v4154_v16 = vpop.f32.mrf.mxu2 }
 0x177   : > { %6091 = vst [vmem:[#allocation10_spill] sm:$0xff] %v4154_v16 }
 0x17b   : > { %3195 = vmatmul.msk.f32.gmra.mxu0 %vm885_vm6, %v832_v56  ;;  %3230 = vmatmul.msk.f32.gmra.mxu1 %vm885_vm6, %v832_v56 }
 0x17c   : > { %3266 = vmatmul.msk.f32.gmra.mxu2 %vm885_vm6, %v4064_v17  ;;  %3245 = vmatmul.msk.f32.gmra.mxu3 %vm885_vm6, %v3931_v26 }
 0x17e   : > { %v4162_v19 = vpop.f32.mrf.mxu2 }
 0x17f   : > { %6092 = vst [vmem:[#allocation11_spill] sm:$0xff] %v4162_v19 }
 0x183   : > { %3196 = vmatmul.msk.f32.gmra.mxu0 %vm885_vm6, %v4011_v6  ;;  %3231 = vmatmul.msk.f32.gmra.mxu1 %vm885_vm6, %v4011_v6 }
 0x184   : > { %3267 = vmatmul.msk.f32.gmra.mxu2 %vm885_vm6, %v3775_v62  ;;  %3246 = vmatmul.msk.f32.gmra.mxu3 %vm885_vm6, %v3941_v2 }
 0x186   : > { %v4172_v34 = vpop.f32.mrf.mxu2 }
 0x187   : > { %6093 = vst [vmem:[#allocation12_spill] sm:$0xff] %v4172_v34 }
 0x18b   : > { %3197 = vmatmul.msk.f32.gmra.mxu0 %vm885_vm6, %v4017_v18  ;;  %3232 = vmatmul.msk.f32.gmra.mxu1 %vm885_vm6, %v4017_v18 }
 0x18c   : > { %3268 = vmatmul.msk.f32.gmra.mxu2 %vm885_vm6, %v3799_v8  ;;  %3247 = vmatmul.msk.f32.gmra.mxu3 %vm885_vm6, %v3948_v21 }
 0x18e   : > { %v4182_v6 = vpop.f32.mrf.mxu2 }
 0x18f   : > { %6094 = vst [vmem:[#allocation13_spill] sm:$0xff] %v4182_v6 }
 0x193   : > { %3198 = vmatmul.msk.f32.gmra.mxu0 %vm885_vm6, %v835_v60  ;;  %3233 = vmatmul.msk.f32.gmra.mxu1 %vm885_vm6, %v835_v60 }
 0x194   : > { %3269 = vmatmul.msk.f32.gmra.mxu2 %vm885_vm6, %v3826_v39  ;;  %3248 = vmatmul.msk.f32.gmra.mxu3 %vm885_vm6, %v3965_v50 }
 0x196   : > { %v4190_v62 = vpop.f32.mrf.mxu2 }
 0x19b   : > { %3199 = vmatmul.msk.f32.gmra.mxu0 %vm885_vm6, %v4042_v32 }
 0x19c   : > { %3270 = vmatmul.msk.f32.gmra.mxu2 %vm885_vm6, %v3853_v27  ;;  %3249 = vmatmul.msk.f32.gmra.mxu3 %vm885_vm6, %v3981_v51 }
 0x19e   : > { %v4198_v8 = vpop.f32.mrf.mxu2 }
 0x1a1   : > { %v1003_v46 = vpop.f32.mrf.mxu0 }
 0x1a2   : > { %v1120_v20 = vadd.f32 %v1119_v10, %v1003_v46 }
 0x1a3   : > { %3200 = vmatmul.msk.f32.gmra.mxu0 %vm885_vm6, %v4064_v17 }
 0x1a4   : > { %3271 = vmatmul.msk.f32.gmra.mxu2 %vm885_vm6, %v3875_v53 }
 0x1a6   : > { %v4204_v39 = vpop.f32.mrf.mxu2 }
 0x1ac   : > { %3272 = vmatmul.msk.f32.gmra.mxu2 %vm885_vm6, %v3896_v37 }
 0x1ae   : > { %v4208_v18 = vpop.f32.mrf.mxu2 }
 0x1b4   : > { %3273 = vmatmul.msk.f32.gmra.mxu2 %vm885_vm6, %v3907_v63  ;;  %v1006_v63 = vpop.f32.mrf.mxu0 }
 0x1b5   : > { %v1123_v52 = vadd.f32 %v1122_v13, %v1006_v63 }
 0x1b7   : > { %v4212_v27 = vpop.f32.mrf.mxu2 }
 0x1bc   : > { %3274 = vmatmul.msk.f32.gmra.mxu2 %vm885_vm6, %v3916_v61  ;;  %v1009_v40 = vpop.f32.mrf.mxu0 }
 0x1bf   : > { %v4216_v42 = vpop.f32.mrf.mxu2 }
 0x1c4   : > { %3275 = vmatmul.msk.f32.gmra.mxu2 %vm885_vm6, %v3924_v11  ;;  %v1125_v11 = vpop.f32.mrf.mxu1 }
 0x1c5   : > { %v1126_v35 = vadd.f32 %v1125_v11, %v1009_v40 }
 0x1c7   : > { %v4220_v53 = vpop.f32.mrf.mxu2 }
 0x1cc   : > { %3276 = vmatmul.msk.f32.gmra.mxu2 %vm885_vm6, %v3931_v26  ;;  %v1012_v26 = vpop.f32.mrf.mxu0  ;;  %v1128_v58 = vpop.f32.mrf.mxu1 }
 0x1cf   : > { %v4224_v37 = vpop.f32.mrf.mxu2 }
 0x1d4   : > { %3277 = vmatmul.msk.f32.gmra.mxu2 %vm885_vm6, %v3941_v2  ;;  %v1015_v2 = vpop.f32.mrf.mxu0  ;;  %v1131_v33 = vpop.f32.mrf.mxu1 }
 0x1d5   : > { %v1132_v45 = vadd.f32 %v1131_v33, %v1015_v2 }
 0x1d7   : > { %v4228_v61 = vpop.f32.mrf.mxu2 }
 0x1dc   : > { %3278 = vmatmul.msk.f32.gmra.mxu2 %vm885_vm6, %v3948_v21  ;;  %v4244_v21 = vpop.f32.mrf.mxu3  ;;  %v1018_v23 = vpop.f32.mrf.mxu0 }
 0x1dd   : > { %v1134_v32 = vpop.f32.mrf.mxu1 }
 0x1df   : > { %v4232_v1 = vpop.f32.mrf.mxu2 }
 0x1e4   : > { %3279 = vmatmul.msk.f32.gmra.mxu2 %vm885_vm6, %v3965_v50  ;;  %v4250_v3 = vpop.f32.mrf.mxu3  ;;  %v1021_v15 = vpop.f32.mrf.mxu0 }
 0x1e5   : > { %v1137_v38 = vpop.f32.mrf.mxu1 }
 0x1e7   : > { %v4236_v30 = vpop.f32.mrf.mxu2 }
 0x1ec   : > { %3280 = vmatmul.msk.f32.gmra.mxu2 %vm885_vm6, %v3981_v51  ;;  %v1024_v29 = vpop.f32.mrf.mxu0 }
 0x1ed   : > { %v1140_v54 = vpop.f32.mrf.mxu1 }
 0x1ef   : > { %v4240_v49 = vpop.f32.mrf.mxu2 }
 0x1f4   : > { %3281 = vmatmul.msk.f32.gmra.mxu2 %vm885_vm6, %v3993_v47  ;;  %v4258_v47 = vpop.f32.mrf.mxu3  ;;  %v1027_v17 = vpop.f32.mrf.mxu0 }
 0x1f5   : > { %v1143_v25 = vpop.f32.mrf.mxu1 }
 0x1f7   : > { %v4246_v59 = vpop.f32.mrf.mxu2 }
 0x1fc   : > { %3282 = vmatmul.msk.f32.gmra.mxu2 %vm885_vm6, %v4000_v55  ;;  %v4264_v55 = vpop.f32.mrf.mxu3  ;;  %v1030_v44 = vpop.f32.mrf.mxu0 }
 0x1fd   : > { %v1146_v12 = vpop.f32.mrf.mxu1 }
 0x1ff   : > { %v4252_v7 = vpop.f32.mrf.mxu2 }
 0x204   : > { %3283 = vmatmul.msk.f32.gmra.mxu2 %vm885_vm6, %v3965_v50  ;;  %v4268_v48 = vpop.f32.mrf.mxu3 }
 0x205   : > { %6095 = vst [vmem:[#allocation14_spill] sm:$0xff] %v4268_v48  ;;  %v1149_v0 = vpop.f32.mrf.mxu1  ;;  %v1129_v48 = vadd.f32 %v1128_v58, %v1012_v26 }
 0x207   : > { %v4256_v28 = vpop.f32.mrf.mxu2  ;;  %v4312_v63 = vadd.f32 %v4208_v18, %v1129_v48 }
 0x209   : > { %v1438_v58 = vmul.f32 %v4312_v63, %v4312_v63 }
 0x20c   : > { %3284 = vmatmul.msk.f32.gmra.mxu2 %vm885_vm6, %v3981_v51  ;;  %v4272_v36 = vpop.f32.mrf.mxu3  ;;  %v1033_v51 = vpop.f32.mrf.mxu0 }
 0x20d   : > { %6096 = vst [vmem:[#allocation15_spill] sm:$0xff] %v4272_v36  ;;  %v4282_v19 = vpop.f32.mrf.mxu1 }
 0x20f   : > { %v4262_v57 = vpop.f32.mrf.mxu2 }
 0x214   : > { %v4278_v6 = vpop.f32.mrf.mxu3  ;;  %v4280_v34 = vpop.f32.mrf.mxu0 }
 0x215   : > { %6098 = vst [vmem:[#allocation17_spill] sm:$0xff] %v4278_v6  ;;  %v4292_v9 = vpop.f32.mrf.mxu1  ;;  %v4297_v6 = vadd.f32 %v4198_v8, %v1123_v52  ;;  %v1135_v52 = vadd.f32 %v1134_v32, %v1018_v23  ;;  %v1144_v23 = vadd.f32 %v1143_v25, %v1027_v17 }
 0x217   : > { %v4266_v4 = vpop.f32.mrf.mxu2  ;;  %6102 = vst [vmem:[#allocation21_spill] sm:$0xff] %v4297_v6  ;;  %v1436_v46 = vmul.f32 %v4297_v6, %v4297_v6  ;;  %v4335_v2 = vadd.f32 %v4216_v42, %v1135_v52  ;;  %v1147_v42 = vadd.f32 %v1146_v12, %v1030_v44 }
 0x219   : > { %v1468_v18 = vsel %vm790_vm4, %v1436_v46, 0.0  ;;  %v1440_v17 = vmul.f32 %v4335_v2, %v4335_v2  ;;  %v1375_v12 = vsel %vm790_vm4, %v4335_v2, 0.0 }
 0x21c   : > { %v4286_v41 = vpop.f32.mrf.mxu3  ;;  %v4288_v24 = vpop.f32.mrf.mxu0 }
 0x21d   : > { %6100 = vst [vmem:[#allocation19_spill] sm:$0xff] %v4286_v41  ;;  %v1158_v10 = vpop.f32.mrf.mxu1 }
 0x21f   : > { %v4270_v50 = vpop.f32.mrf.mxu2 }
 0x224   : > { %v4294_v36 = vpop.f32.mrf.mxu3  ;;  %v4304_v41 = vpop.f32.mrf.mxu0 }
 0x227   : > { %v4274_v56 = vpop.f32.mrf.mxu2 }
 0x22c   : > { %v4326_v40 = vpop.f32.mrf.mxu3  ;;  %v1045_v52 = vpop.f32.mrf.mxu0 }
 0x22f   : > { %v4276_v60 = vpop.f32.mrf.mxu2 }
 0x230   : > { %6097 = vst [vmem:[#allocation16_spill] sm:$0xff] %v4276_v60 }
 0x237   : > { %v4284_v16 = vpop.f32.mrf.mxu2 }
 0x238   : > { %6099 = vst [vmem:[#allocation18_spill] sm:$0xff] %v4284_v16  ;;  %v4302_v16 = vadd.f32 %v4190_v62, %v1120_v20  ;;  %v1367_v20 = vsel %vm790_vm4, %v4297_v6, 0.0 }
 0x23a   : > { %v1435_v8 = vmul.f32 %v4302_v16, %v4302_v16  ;;  %v1366_v13 = vsel %vm790_vm4, %v4302_v16, 0.0 }
 0x23b   : > { %v1368_v33 = vadd.f32 %v1367_v20, %v1366_v13  ;;  %v1150_v13 = vadd.f32 %v1149_v0, %v1033_v51 }
 0x23f   : > { %v4290_v14 = vpop.f32.mrf.mxu2 }
 0x240   : > { %6101 = vst [vmem:[#allocation20_spill] sm:$0xff] %v4290_v14  ;;  %v4307_v14 = vadd.f32 %v4204_v39, %v1126_v35  ;;  %v4321_v35 = vadd.f32 %v4212_v27, %v1132_v45  ;;  %v1138_v39 = vadd.f32 %v1137_v38, %v1021_v15  ;;  %v1141_v45 = vadd.f32 %v1140_v54, %v1024_v29 }
 0x241   : > { %v1467_v27 = vsel %vm790_vm4, %v1435_v8, 0.0  ;;  %v1371_v15 = vsel %vm790_vm4, %v4312_v63, 0.0  ;;  %v1472_v29 = vsel %vm790_vm4, %v1438_v58, 0.0 }
 0x242   : > { %v1437_v62 = vmul.f32 %v4307_v14, %v4307_v14  ;;  %v1369_v26 = vsel %vm790_vm4, %v4307_v14, 0.0  ;;  %v1439_v38 = vmul.f32 %v4321_v35, %v4321_v35  ;;  %v4344_v48 = vadd.f32 %v4220_v53, %v1138_v39 }
 0x243   : > { %v1469_v46 = vadd.f32 %v1468_v18, %v1467_v27  ;;  %v1370_v6 = vadd.f32 %v1369_v26, %v1368_v33  ;;  %v1373_v54 = vsel %vm790_vm4, %v4321_v35, 0.0  ;;  %v4352_v25 = vadd.f32 %v4224_v37, %v1141_v45 }
 0x244   : > { %v1470_v32 = vsel %vm790_vm4, %v1437_v62, 0.0  ;;  %v4355_v53 = vadd.f32 %v4228_v61, %v1144_v23  ;;  %v1161_v62 = vpop.f32.mrf.mxu1  ;;  %v1474_v44 = vsel %vm790_vm4, %v1439_v38, 0.0  ;;  %v1441_v39 = vmul.f32 %v4344_v48, %v4344_v48 }
 0x245   : > { %v1471_v8 = vadd.f32 %v1470_v32, %v1469_v46  ;;  %v1372_v20 = vadd.f32 %v1371_v15, %v1370_v6  ;;  %v4363_v37 = vadd.f32 %v4232_v1, %v1147_v42  ;;  %v1476_v6 = vsel %vm790_vm4, %v1440_v17, 0.0  ;;  %v4376_v1 = vpop.f32.mrf.mxu3 }
 0x246   : > { %v1377_v61 = vsel %vm790_vm4, %v4344_v48, 0.0  ;;  %v1442_v45 = vmul.f32 %v4352_v25, %v4352_v25  ;;  %v1153_v27 = vadd.f32 %v4282_v19, %v4280_v34  ;;  %v1443_v0 = vmul.f32 %v4355_v53, %v4355_v53 }
 0x247   : > { %v4299_v60 = vpop.f32.mrf.mxu2  ;;  %v1473_v18 = vadd.f32 %v1472_v29, %v1471_v8  ;;  %v1374_v26 = vadd.f32 %v1373_v54, %v1372_v20  ;;  %v1478_v23 = vsel %vm790_vm4, %v1441_v39, 0.0  ;;  %v1379_v32 = vsel %vm790_vm4, %v4352_v25, 0.0 }
 0x248   : > { %v4382_v15 = vadd.f32 %v4236_v30, %v1150_v13  ;;  %v1156_v38 = vadd.f32 %v4292_v9, %v4288_v24  ;;  %v1444_v34 = vmul.f32 %v4363_v37, %v4363_v37  ;;  %v1480_v42 = vsel %vm790_vm4, %v1442_v45, 0.0  ;;  %v1048_v9 = vpop.f32.mrf.mxu0 }
 0x249   : > { %v1475_v33 = vadd.f32 %v1474_v44, %v1473_v18  ;;  %v1376_v51 = vadd.f32 %v1375_v12, %v1374_v26  ;;  %v1381_v29 = vsel %vm790_vm4, %v4355_v53, 0.0  ;;  %v4392_v54 = vadd.f32 %v4240_v49, %v1153_v27 }
 0x24a   : > { %v1159_v17 = vadd.f32 %v1158_v10, %v4304_v41  ;;  %v1482_v20 = vsel %vm790_vm4, %v1443_v0, 0.0  ;;  %v1383_v24 = vsel %vm790_vm4, %v4363_v37, 0.0  ;;  %v1445_v44 = vmul.f32 %v4382_v15, %v4382_v15 }
 0x24b   : > { %v1477_v46 = vadd.f32 %v1476_v6, %v1475_v33  ;;  %v1378_v19 = vadd.f32 %v1377_v61, %v1376_v51  ;;  %v4401_v12 = vadd.f32 %v4246_v59, %v1156_v38  ;;  %v1162_v39 = vadd.f32 %v1161_v62, %v1045_v52 }
 0x24c   : > { %v1484_v18 = vsel %vm790_vm4, %v1444_v34, 0.0  ;;  %v1164_v41 = vpop.f32.mrf.mxu1  ;;  %v1385_v26 = vsel %vm790_vm4, %v4382_v15, 0.0  ;;  %v1446_v6 = vmul.f32 %v4392_v54, %v4392_v54  ;;  %v4411_v61 = vadd.f32 %v4252_v7, %v1159_v17 }
 0x24d   : > { %v1479_v30 = vadd.f32 %v1478_v23, %v1477_v46  ;;  %v1380_v8 = vadd.f32 %v1379_v32, %v1378_v19  ;;  %v1165_v45 = vadd.f32 %v1164_v41, %v1048_v9  ;;  %v1486_v52 = vsel %vm790_vm4, %v1445_v44, 0.0  ;;  %v4421_v32 = vpop.f32.mrf.mxu3 }
 0x24e   : > { %v1387_v62 = vsel %vm790_vm4, %v4392_v54, 0.0  ;;  %v1447_v33 = vmul.f32 %v4401_v12, %v4401_v12  ;;  %v4419_v51 = vadd.f32 %v4256_v28, %v1162_v39  ;;  %v1488_v7 = vsel %vm790_vm4, %v1446_v6, 0.0 }
 0x24f   : > { %v4328_v11 = vpop.f32.mrf.mxu2  ;;  %v1481_v13 = vadd.f32 %v1480_v42, %v1479_v30  ;;  %v1382_v49 = vadd.f32 %v1381_v29, %v1380_v8  ;;  %v1389_v38 = vsel %vm790_vm4, %v4401_v12, 0.0  ;;  %v1448_v46 = vmul.f32 %v4411_v61, %v4411_v61 }
 0x250   : > { %v4429_v19 = vadd.f32 %v4262_v57, %v1165_v45  ;;  %v1490_v28 = vsel %vm790_vm4, %v1447_v33, 0.0  ;;  %v1391_v29 = vsel %vm790_vm4, %v4411_v61, 0.0  ;;  %v1449_v17 = vmul.f32 %v4419_v51, %v4419_v51 }
 0x251   : > { %v1483_v59 = vadd.f32 %v1482_v20, %v1481_v13  ;;  %v1384_v27 = vadd.f32 %v1383_v24, %v1382_v49  ;;  %v1168_v9 = vadd.f32 %v4244_v21, %v4021_v31  ;;  %v1492_v57 = vsel %vm790_vm4, %v1448_v46, 0.0  ;;  %v6104_v46 = vld [vmem:[#allocation14_spill] sm:$0xff] }
 0x252   : > { %v1393_v24 = vsel %vm790_vm4, %v4419_v51, 0.0  ;;  %v1450_v44 = vmul.f32 %v4429_v19, %v4429_v19  ;;  %v1395_v41 = vsel %vm790_vm4, %v4429_v19, 0.0  ;;  %v1171_v21 = vadd.f32 %v4250_v3, %v4032_v43 }
 0x253   : > { %v1485_v0 = vadd.f32 %v1484_v18, %v1483_v59  ;;  %v1386_v23 = vadd.f32 %v1385_v26, %v1384_v27  ;;  %v4446_v49 = vadd.f32 %v4266_v4, %v1168_v9  ;;  %v1494_v18 = vsel %vm790_vm4, %v1449_v17, 0.0  ;;  %v6108_v17 = vld [vmem:[#allocation18_spill] sm:$0xff] }
 0x254   : > { %v1496_v6 = vsel %vm790_vm4, %v1450_v44, 0.0  ;;  %v1177_v43 = vadd.f32 %v4264_v55, %v4069_v5  ;;  %v6106_v5 = vld [vmem:[#allocation3_spill] sm:$0xff] }
 0x255   : > { %v1487_v34 = vadd.f32 %v1486_v52, %v1485_v0  ;;  %v1388_v42 = vadd.f32 %v1387_v62, %v1386_v23  ;;  %v4454_v45 = vpop.f32.mrf.mxu3  ;;  %v1451_v4 = vmul.f32 %v4446_v49, %v4446_v49  ;;  %v4459_v52 = vadd.f32 %v4270_v50, %v1171_v21  ;;  %v6107_v55 = vld [vmem:[#allocation15_spill] sm:$0xff] }
 0x256   : > { %v1174_v62 = vadd.f32 %v4258_v47, %v4054_v22  ;;  %v1397_v3 = vsel %vm790_vm4, %v4446_v49, 0.0  ;;  %v6105_v47 = vld [vmem:[#allocation16_spill] sm:$0xff] }
 0x257   : > { %v4365_v58 = vpop.f32.mrf.mxu2  ;;  %v1489_v30 = vadd.f32 %v1488_v7, %v1487_v34  ;;  %v1390_v8 = vadd.f32 %v1389_v38, %v1388_v42  ;;  %v6103_v38 = vld [vmem:[#allocation2_spill] sm:$0xff]  ;;  %v1498_v34 = vsel %vm790_vm4, %v1451_v4, 0.0  ;;  %v1452_v22 = vmul.f32 %v4459_v52, %v4459_v52 }
 0x258   : > { %v4470_v23 = vadd.f32 %v4274_v56, %v1174_v62  ;;  %v1180_v50 = vadd.f32 %v6104_v46, %v6103_v38  ;;  %v4478_v42 = vadd.f32 %v6105_v47, %v1177_v43  ;;  %v1399_v56 = vsel %vm790_vm4, %v4459_v52, 0.0 }
 0x259   : > { %v1491_v39 = vadd.f32 %v1490_v28, %v1489_v30  ;;  %v1392_v13 = vadd.f32 %v1391_v29, %v1390_v8  ;;  %v1183_v29 = vadd.f32 %v6107_v55, %v6106_v5 }
 0x25a   : > { %v4485_v30 = vadd.f32 %v6108_v17, %v1180_v50  ;;  %v1453_v9 = vmul.f32 %v4470_v23, %v4470_v23  ;;  %v1401_v4 = vsel %vm790_vm4, %v4470_v23, 0.0  ;;  %v1403_v62 = vsel %vm790_vm4, %v4478_v42, 0.0 }
 0x25b   : > { %v1493_v26 = vadd.f32 %v1492_v57, %v1491_v39  ;;  %v1394_v31 = vadd.f32 %v1393_v24, %v1392_v13  ;;  %v6109_v57 = vld [vmem:[#allocation4_spill] sm:$0xff]  ;;  %v6110_v24 = vld [vmem:[#allocation17_spill] sm:$0xff]  ;;  %v1500_v39 = vsel %vm790_vm4, %v1452_v22, 0.0  ;;  %v1454_v13 = vmul.f32 %v4478_v42, %v4478_v42 }
 0x25c   : > { %v1186_v44 = vadd.f32 %v6110_v24, %v6109_v57  ;;  %v1502_v46 = vsel %vm790_vm4, %v1453_v9, 0.0 }
 0x25d   : > { %v1495_v59 = vadd.f32 %v1494_v18, %v1493_v26  ;;  %v1396_v27 = vadd.f32 %v1395_v41, %v1394_v31  ;;  %v6111_v18 = vld [vmem:[#allocation20_spill] sm:$0xff]  ;;  %v6112_v26 = vld [vmem:[#allocation5_spill] sm:$0xff]  ;;  %v6113_v31 = vld [vmem:[#allocation19_spill] sm:$0xff]  ;;  %v1504_v50 = vsel %vm790_vm4, %v1454_v13, 0.0 }
 0x25e   : > { %v4495_v41 = vadd.f32 %v6111_v18, %v1183_v29  ;;  %v1189_v21 = vadd.f32 %v6113_v31, %v6112_v26  ;;  %v4506_v43 = vadd.f32 %v4299_v60, %v1186_v44  ;;  %v6117_v13 = vld [vmem:[#allocation9_spill] sm:$0xff] }
 0x25f   : > { %v4404_v10 = vpop.f32.mrf.mxu2  ;;  %v1497_v33 = vadd.f32 %v1496_v6, %v1495_v59  ;;  %v1398_v7 = vadd.f32 %v1397_v3, %v1396_v27  ;;  %v1206_v6 = vpop.f32.mrf.mxu3  ;;  %v6114_v3 = vld [vmem:[#allocation6_spill] sm:$0xff] }
 0x260   : > { %v1456_v22 = vmul.f32 %v4495_v41, %v4495_v41  ;;  %v4517_v47 = vadd.f32 %v4328_v11, %v1189_v21  ;;  %v1407_v29 = vsel %vm790_vm4, %v4495_v41, 0.0  ;;  %v1409_v24 = vsel %vm790_vm4, %v4506_v43, 0.0 }
 0x261   : > { %v1499_v28 = vadd.f32 %v1498_v34, %v1497_v33  ;;  %v1400_v8 = vadd.f32 %v1399_v56, %v1398_v7  ;;  %v1455_v33 = vmul.f32 %v4485_v30, %v4485_v30  ;;  %v1192_v7 = vadd.f32 %v4294_v36, %v6114_v3 }
 0x262   : > { %v1405_v34 = vsel %vm790_vm4, %v4485_v30, 0.0  ;;  %v1457_v56 = vmul.f32 %v4506_v43, %v4506_v43  ;;  %v1458_v44 = vmul.f32 %v4517_v47, %v4517_v47  ;;  %v1411_v21 = vsel %vm790_vm4, %v4517_v47, 0.0 }
 0x263   : > { %v1501_v59 = vadd.f32 %v1500_v39, %v1499_v28  ;;  %v1402_v38 = vadd.f32 %v1401_v4, %v1400_v8  ;;  %v6115_v28 = vld [vmem:[#allocation7_spill] sm:$0xff]  ;;  %v1506_v36 = vsel %vm790_vm4, %v1455_v33, 0.0  ;;  %v4527_v17 = vadd.f32 %v4365_v58, %v1192_v7  ;;  %v6116_v8 = vld [vmem:[#allocation8_spill] sm:$0xff] }
 0x264   : > { %v1195_v60 = vadd.f32 %v4326_v40, %v6115_v28  ;;  %v1198_v11 = vadd.f32 %v4376_v1, %v6116_v8  ;;  %v1508_v40 = vsel %vm790_vm4, %v1456_v22, 0.0  ;;  %v1201_v58 = vadd.f32 %v4421_v32, %v6117_v13 }
 0x265   : > { %v1503_v5 = vadd.f32 %v1502_v46, %v1501_v59  ;;  %v1404_v55 = vadd.f32 %v1403_v62, %v1402_v38  ;;  %v1510_v1 = vsel %vm790_vm4, %v1457_v56, 0.0  ;;  %v1459_v59 = vmul.f32 %v4527_v17, %v4527_v17  ;;  %v6118_v62 = vld [vmem:[#allocation10_spill] sm:$0xff] }
 0x266   : > { %v4537_v39 = vadd.f32 %v4404_v10, %v1195_v60  ;;  %v1204_v10 = vadd.f32 %v4454_v45, %v6118_v62  ;;  %v1512_v7 = vsel %vm790_vm4, %v1458_v44, 0.0  ;;  %v1413_v38 = vsel %vm790_vm4, %v4527_v17, 0.0 }
 0x267   : > { %v4436_v20 = vpop.f32.mrf.mxu2  ;;  %v1505_v9 = vadd.f32 %v1504_v50, %v1503_v5  ;;  %v1406_v57 = vadd.f32 %v1405_v34, %v1404_v55  ;;  %v1209_v33 = vpop.f32.mrf.mxu3  ;;  %v6119_v34 = vld [vmem:[#allocation11_spill] sm:$0xff]  ;;  %v1514_v45 = vsel %vm790_vm4, %v1459_v59, 0.0 }
 0x268   : > { %v4547_v4 = vadd.f32 %v4436_v20, %v1198_v11  ;;  %v1460_v46 = vmul.f32 %v4537_v39, %v4537_v39  ;;  %v1207_v20 = vadd.f32 %v1206_v6, %v6119_v34  ;;  %v1415_v60 = vsel %vm790_vm4, %v4537_v39, 0.0 }
 0x269   : > { %v1507_v18 = vadd.f32 %v1506_v36, %v1505_v9  ;;  %v1408_v26 = vadd.f32 %v1407_v29, %v1406_v57  ;;  %v6120_v36 = vld [vmem:[#allocation12_spill] sm:$0xff] }
 0x26a   : > { %v1461_v5 = vmul.f32 %v4547_v4, %v4547_v4  ;;  %v1210_v29 = vadd.f32 %v1209_v33, %v6120_v36  ;;  %v1417_v6 = vsel %vm790_vm4, %v4547_v4, 0.0 }
 0x26b   : > { %v1509_v3 = vadd.f32 %v1508_v40, %v1507_v18  ;;  %v1410_v32 = vadd.f32 %v1409_v24, %v1408_v26 }
 0x26d   : > { %v1511_v22 = vadd.f32 %v1510_v1, %v1509_v3  ;;  %v1412_v28 = vadd.f32 %v1411_v21, %v1410_v32 }
 0x26f   : > { %v4463_v0 = vpop.f32.mrf.mxu2  ;;  %v1513_v56 = vadd.f32 %v1512_v7, %v1511_v22  ;;  %v1414_v8 = vadd.f32 %v1413_v38, %v1412_v28  ;;  %v1212_v59 = vpop.f32.mrf.mxu3 }
 0x270   : > { %v4557_v50 = vadd.f32 %v4463_v0, %v1201_v58  ;;  %v1516_v0 = vsel %vm790_vm4, %v1460_v46, 0.0  ;;  %v6121_v46 = vld [vmem:[#allocation13_spill] sm:$0xff] }
 0x271   : > { %v1515_v57 = vadd.f32 %v1514_v45, %v1513_v56  ;;  %v1416_v40 = vadd.f32 %v1415_v60, %v1414_v8  ;;  %v1213_v34 = vadd.f32 %v1212_v59, %v6121_v46 }
 0x272   : > { %v1462_v11 = vmul.f32 %v4557_v50, %v4557_v50  ;;  %v1419_v44 = vsel %vm790_vm4, %v4557_v50, 0.0 }
 0x273   : > { %v1517_v18 = vadd.f32 %v1516_v0, %v1515_v57  ;;  %v1418_v26 = vadd.f32 %v1417_v6, %v1416_v40 }
 0x274   : > { %v1520_v1 = vsel %vm790_vm4, %v1462_v11, 0.0 }
 0x277   : > { %v1322_v27 = vpop.f32.mrf.mxu2 }
 0x278   : > { %v4565_v55 = vadd.f32 %v1322_v27, %v1204_v10  ;;  %v1518_v27 = vsel %vm790_vm4, %v1461_v5, 0.0  ;;  %v1420_v10 = vadd.f32 %v1419_v44, %v1418_v26 }
 0x279   : > { %v1519_v62 = vadd.f32 %v1518_v27, %v1517_v18 }
 0x27a   : > { %v1463_v13 = vmul.f32 %v4565_v55, %v4565_v55 }
 0x27b   : > { %v1521_v7 = vadd.f32 %v1520_v1, %v1519_v62 }
 0x27c   : > { %v1522_v33 = vsel %vm790_vm4, %v1463_v13, 0.0 }
 0x27d   : > { %v1523_v28 = vadd.f32 %v1522_v33, %v1521_v7 }
 0x27f   : > { %v1325_v31 = vpop.f32.mrf.mxu2 }
 0x280   : > { %v4573_v9 = vadd.f32 %v1325_v31, %v1207_v20  ;;  %v1421_v31 = vsel %vm790_vm4, %v4565_v55, 0.0 }
 0x281   : > { %v1422_v38 = vadd.f32 %v1421_v31, %v1420_v10 }
 0x282   : > { %v1464_v21 = vmul.f32 %v4573_v9, %v4573_v9  ;;  %v1423_v3 = vsel %vm790_vm4, %v4573_v9, 0.0 }
 0x283   : > { %v1424_v45 = vadd.f32 %v1423_v3, %v1422_v38 }
 0x284   : > { %v1524_v20 = vsel %vm790_vm4, %v1464_v21, 0.0 }
 0x287   : > { %v1328_v24 = vpop.f32.mrf.mxu2 }
 0x288   : > { %v4580_v58 = vadd.f32 %v1328_v24, %v1210_v29  ;;  %v1525_v29 = vadd.f32 %v1524_v20, %v1523_v28 }
 0x28a   : > { %v1465_v32 = vmul.f32 %v4580_v58, %v4580_v58  ;;  %v1425_v22 = vsel %vm790_vm4, %v4580_v58, 0.0 }
 0x28b   : > { %v1426_v56 = vadd.f32 %v1425_v22, %v1424_v45 }
 0x28c   : > { %v1526_v5 = vsel %vm790_vm4, %v1465_v32, 0.0 }
 0x28d   : > { %v1527_v6 = vadd.f32 %v1526_v5, %v1525_v29 }
 0x28f   : > { %v1331_v60 = vpop.f32.mrf.mxu2 }
 0x290   : > { %v1365_v36 = vadd.f32 %v1331_v60, %v1213_v34 }
 0x292   : > { %v1427_v8 = vsel %vm790_vm4, %v1365_v36, 0.0  ;;  %v1466_v0 = vmul.f32 %v1365_v36, %v1365_v36 }
 0x293   : > { %v1428_v11 = vadd.f32 %v1427_v8, %v1426_v56 }
 0x294   : > { %v1528_v57 = vsel %vm790_vm4, %v1466_v0, 0.0 }
 0x295   : > { %v1429_v40 = vrot.slane %v1428_v11, 4  ;;  %v1529_v24 = vadd.f32 %v1528_v57, %v1527_v6 }
 0x297   : > { %v1430_v27 = vadd.f32 %v1429_v40, %v1428_v11  ;;  %v1530_v44 = vrot.slane %v1529_v24, 4 }
 0x299   : > { %v1431_v13 = vrot.slane %v1430_v27, 2  ;;  %v1531_v18 = vadd.f32 %v1530_v44, %v1529_v24 }
 0x29b   : > { %v1432_v26 = vadd.f32 %v1431_v13, %v1430_v27  ;;  %v1532_v1 = vrot.slane %v1531_v18, 2 }
 0x29d   : > { %v1433_v31 = vrot.slane %v1432_v26, 1  ;;  %v1533_v21 = vadd.f32 %v1532_v1, %v1531_v18 }
 0x29f   : > { %v1434_v59 = vadd.f32 %v1433_v31, %v1432_v26  ;;  %v1534_v62 = vrot.slane %v1533_v21, 1 }
 0x2a1   : > { %v1535_v10 = vadd.f32 %v1534_v62, %v1533_v21  ;;  %v4599_v33 = vmul.f32 0.00390625, %v1434_v59 }
 0x2a3   : > { %v1537_v3 = vmul.f32 0.00390625, %v1535_v10  ;;  %v1538_v32 = vmul.f32 %v4599_v33, %v4599_v33  ;;  %v1572_v7 = vsub.f32 %v1365_v36, %v4599_v33  ;;  %v1568_v20 = vsub.f32 %v4557_v50, %v4599_v33  ;;  %v3286_v50 = vld [vmem:[%s6049_s2 + $0x18] sm:$0xf] }
 0x2a4   : > { %v1569_v22 = vsub.f32 %v4565_v55, %v4599_v33  ;;  %v1570_v28 = vsub.f32 %v4573_v9, %v4599_v33  ;;  %v1571_v45 = vsub.f32 %v4580_v58, %v4599_v33  ;;  %v2293_v55 = vld [vmem:[%s6049_s2 + $0x8] sm:$0xf]  ;;  %3287 = vmatpush.msk.msrb.mxu3 %vm982_vm3, %v3286_v50  ;;  %v1553_v6 = vsub.f32 %v4401_v12, %v4599_v33 }
 0x2a5   : > { %v1539_v38 = vsub.f32 %v1537_v3, %v1538_v32  ;;  %v3354_v9 = vld [vmem:[%s6049_s2 + $0x28] sm:$0xf]  ;;  %3320 = vmatpush.msk.msrb.mxu0 %vm982_vm3, %v2293_v55  ;;  %v1554_v11 = vsub.f32 %v4411_v61, %v4599_v33  ;;  %v1555_v57 = vsub.f32 %v4419_v51, %v4599_v33  ;;  %v1556_v40 = vsub.f32 %v4429_v19, %v4599_v33 }
 0x2a6   : > { %3355 = vmatpush.msk.msrb.mxu1 %vm982_vm3, %v3354_v9  ;;  %v1557_v24 = vsub.f32 %v4446_v49, %v4599_v33  ;;  %v1558_v27 = vsub.f32 %v4459_v52, %v4599_v33  ;;  %v1559_v44 = vsub.f32 %v4470_v23, %v4599_v33  ;;  %v1560_v12 = vsub.f32 %v4478_v42, %v4599_v33 }
 0x2a7   : > { %v1540_v46 = vmax.f32 %v1539_v38, 0.0  ;;  %v1561_v61 = vsub.f32 %v4485_v30, %v4599_v33  ;;  %v1562_v51 = vsub.f32 %v4495_v41, %v4599_v33  ;;  %v1563_v19 = vsub.f32 %v4506_v43, %v4599_v33 }
 0x2a8   : > { %v1564_v49 = vsub.f32 %v4517_v47, %v4599_v33  ;;  %v1565_v52 = vsub.f32 %v4527_v17, %v4599_v33  ;;  %v1566_v30 = vsub.f32 %v4537_v39, %v4599_v33  ;;  %v1567_v41 = vsub.f32 %v4547_v4, %v4599_v33 }
 0x2a9   : > { %v1573_v34 = vadd.f32 1e-05, %v1540_v46  ;;  %v1543_v38 = vsub.f32 %v4307_v14, %v4599_v33  ;;  %v1544_v46 = vsub.f32 %v4312_v63, %v4599_v33 }
 0x2ab   : > { %3406 = vrsqrt.f32 %v1573_v34  ;;  %vm1580_vm8 = vweird.f32 %v1573_v34 }
 0x2b1   : > { %v3407_v60 = vpop.eup %3406 }
 0x2b2   : > { %v1575_v5 = vmul.f32 %v3407_v60, %v1573_v34  ;;  %vm1581_vm7 = vweird.f32 %v3407_v60  ;;  %v1541_v34 = vsub.f32 %v4302_v16, %v4599_v33  ;;  %v1545_v16 = vsub.f32 %v4321_v35, %v4599_v33 }
 0x2b3   : > { %vm1582_vm9 = vmor %vm1580_vm8, %vm1581_vm7 }
 0x2b4   : > { %v1576_v29 = vmul.f32 %v3407_v60, %v1575_v5 }
 0x2b6   : > { %v1577_v36 = vmul.f32 0.5, %v1576_v29 }
 0x2b8   : > { %v1578_v56 = vsub.f32 1.5, %v1577_v36 }
 0x2ba   : > { %v1579_v8 = vmul.f32 %v3407_v60, %v1578_v56 }
 0x2bc   : > { %v4623_v58 = vsel %vm1582_vm9, %v3407_v60, %v1579_v8 }
 0x2bd   : > { %v4627_v0 = vmul.f32 %v4623_v58, %v1572_v7  ;;  %v4656_v23 = vmul.f32 %v4623_v58, %v1553_v6  ;;  %v4659_v42 = vmul.f32 %v4623_v58, %v1554_v11  ;;  %v4666_v43 = vmul.f32 %v4623_v58, %v1555_v57 }
 0x2be   : > { %v4669_v47 = vmul.f32 %v4623_v58, %v1556_v40  ;;  %v4672_v17 = vmul.f32 %v4623_v58, %v1557_v24  ;;  %v4675_v13 = vmul.f32 %v4623_v58, %v1558_v27  ;;  %v4678_v18 = vmul.f32 %v4623_v58, %v1559_v44 }
 0x2bf   : > { %6122 = vst [vmem:[#allocation2_spill] sm:$0xff] %v4627_v0  ;;  %v4681_v39 = vmul.f32 %v4623_v58, %v1560_v12  ;;  %v4684_v4 = vmul.f32 %v4623_v58, %v1561_v61  ;;  %v4687_v26 = vmul.f32 %v4623_v58, %v1562_v51  ;;  %v4690_v1 = vmul.f32 %v4623_v58, %v1563_v19 }
 0x2c0   : > { %v4693_v31 = vmul.f32 %v4623_v58, %v1564_v49  ;;  %v4696_v21 = vmul.f32 %v4623_v58, %v1565_v52  ;;  %v4699_v59 = vmul.f32 %v4623_v58, %v1566_v30  ;;  %v4702_v62 = vmul.f32 %v4623_v58, %v1567_v41 }
 0x2c1   : > { %v4705_v10 = vmul.f32 %v4623_v58, %v1568_v20  ;;  %v4708_v3 = vmul.f32 %v4623_v58, %v1569_v22  ;;  %v4711_v32 = vmul.f32 %v4623_v58, %v1570_v28  ;;  %v4714_v7 = vmul.f32 %v4623_v58, %v1571_v45  ;;  %v6125_v20 = vld [vmem:[#allocation21_spill] sm:$0xff] }
 0x2c2   : > { %v1542_v60 = vsub.f32 %v6125_v20, %v4599_v33  ;;  %v1586_v22 = vmul.f32 %v4623_v58, %v1543_v38  ;;  %v1587_v28 = vmul.f32 %v4623_v58, %v1544_v46  ;;  %v1584_v5 = vmul.f32 %v4623_v58, %v1541_v34 }
 0x2c3   : > { %6123 = vst [vmem:[#allocation14_spill] sm:$0xff] %v4705_v10  ;;  %v1546_v11 = vsub.f32 %v4335_v2, %v4599_v33  ;;  %v1588_v57 = vmul.f32 %v4623_v58, %v1545_v16 }
 0x2c4   : > { %6124 = vst [vmem:[#allocation16_spill] sm:$0xff] %v4714_v7  ;;  %v1585_v45 = vmul.f32 %v4623_v58, %v1542_v60  ;;  %v1618_v29 = vmax.f32 %v1586_v22, 0.0  ;;  %v1619_v36 = vmax.f32 %v1587_v28, 0.0  ;;  %v1616_v14 = vmax.f32 %v1584_v5, 0.0 }
 0x2c5   : > { %v1589_v40 = vmul.f32 %v4623_v58, %v1546_v11  ;;  %v1620_v52 = vmax.f32 %v1588_v57, 0.0  ;;  %v6061_v57 = vmax.f32 %v4656_v23, 0.0 }
 0x2c6   : > { %v1617_v56 = vmax.f32 %v1585_v45, 0.0  ;;  %v1664_v8 = vrot.slane %v1618_v29, 1  ;;  %v1712_v63 = vrot.slane %v1618_v29, 7  ;;  %v1713_v50 = vrot.slane %v1619_v36, 7 }
 0x2c7   : > { %v1665_v55 = vrot.slane %v1616_v14, 1  ;;  %v1715_v9 = vrot.slane %v1616_v14, 7  ;;  %v1621_v38 = vmax.f32 %v1589_v40, 0.0  ;;  %v1666_v60 = vrot.slane %v1620_v52, 1 }
 0x2c8   : > { %v1716_v6 = vrot.slane %v1617_v56, 7  ;;  %v4735_v24 = vsel %vm267_vm0, %v1712_v63, %v1713_v50  ;;  %v4738_v27 = vsel %vm267_vm0, %v1664_v8, %v1712_v63  ;;  %v1809_v41 = vrot.slane %v1617_v56, 5 }
 0x2c9   : > { %6126 = vst [vmem:[#allocation3_spill] sm:$0xff] %v4735_v24  ;;  %v1902_v44 = vrot.slane %v4738_v27, 1  ;;  %v1903_v35 = vrot.slane %v4735_v24, 1  ;;  %v4746_v61 = vsel %vm267_vm0, %v1665_v55, %v1715_v9  ;;  %v1718_v22 = vrot.slane %v1620_v52, 7 }
 0x2ca   : > { %6127 = vst [vmem:[#allocation15_spill] sm:$0xff] %v4738_v27  ;;  %v4743_v12 = vsel %vm267_vm0, %v1715_v9, %v1716_v6  ;;  %v2072_v2 = vrot.slane %v4746_v61, 2  ;;  %v1907_v19 = vrot.slane %v4746_v61, 1  ;;  %v1857_v20 = vsel %vm267_vm0, %v1716_v6, %v1809_v41 }
 0x2cb   : > { %6128 = vst [vmem:[#allocation18_spill] sm:$0xff] %v4743_v12  ;;  %v2073_v51 = vrot.slane %v4743_v12, 2  ;;  %v1908_v49 = vrot.slane %v4743_v12, 1  ;;  %v1904_v30 = vsel %vm458_vm1, %v1902_v44, %v1903_v35  ;;  %v2075_v28 = vrot.slane %v1857_v20, 2 }
 0x2cc   : > { %1977 = vrot.lane.b32.xlu0 %v1904_v30, %s3450_s18  ;;  %v1719_v5 = vrot.slane %v1621_v38, 7  ;;  %v1910_v45 = vrot.slane %v1857_v20, 1  ;;  %v2067_v29 = vrot.slane %v4738_v27, 2  ;;  %v2068_v14 = vrot.slane %v4735_v24, 2 }
 0x2cd   : > { %v2074_v46 = vsel %vm624_vm2, %v2072_v2, %v2073_v51  ;;  %v1909_v34 = vsel %vm458_vm1, %v1907_v19, %v1908_v49  ;;  %v1808_v56 = vrot.slane %v1619_v36, 5  ;;  %v1547_v8 = vsub.f32 %v4344_v48, %v4599_v33 }
 0x2ce   : > { %2146 = vrot.lane.b32.xlu2 %v2074_v46, %s3451_s19  ;;  %1981 = vrot.lane.b32.xlu1 %v1909_v34, %s3450_s18  ;;  %v1548_v63 = vsub.f32 %v4352_v25, %v4599_v33  ;;  %v2076_v16 = vsel %vm624_vm2, %v2073_v51, %v2075_v28  ;;  %v1911_v55 = vsel %vm458_vm1, %v1908_v49, %v1910_v45  ;;  %v6062_v40 = vmax.f32 %v4659_v42, 0.0 }
 0x2cf   : > { %v2069_v9 = vsel %vm624_vm2, %v2067_v29, %v2068_v14  ;;  %v4772_v6 = vsel %vm267_vm0, %v1718_v22, %v1719_v5  ;;  %v4775_v11 = vsel %vm267_vm0, %v1666_v60, %v1718_v22  ;;  %v1856_v48 = vsel %vm267_vm0, %v1713_v50, %v1808_v56 }
 0x2d0   : > { %6129 = vst [vmem:[#allocation4_spill] sm:$0xff] %v4772_v6  ;;  %v1590_v25 = vmul.f32 %v4623_v58, %v1547_v8  ;;  %v1591_v36 = vmul.f32 %v4623_v58, %v1548_v63  ;;  %v6057_v44 = vmax.f32 %v4666_v43, 0.0  ;;  %v1912_v2 = vrot.slane %v4775_v11, 1 }
 0x2d1   : > { %6130 = vst [vmem:[#allocation17_spill] sm:$0xff] %v4775_v11  ;;  %v1913_v51 = vrot.slane %v4772_v6, 1  ;;  %v6053_v19 = vmax.f32 %v4669_v47, 0.0  ;;  %v2070_v49 = vrot.slane %v1856_v48, 2  ;;  %v1905_v52 = vrot.slane %v1856_v48, 1 }
 0x2d2   : > { %v1810_v30 = vrot.slane %v1621_v38, 5  ;;  %v1549_v50 = vsub.f32 %v4355_v53, %v4599_v33  ;;  %v1550_v41 = vsub.f32 %v4363_v37, %v4599_v33  ;;  %v1551_v46 = vsub.f32 %v4382_v15, %v4599_v33 }
 0x2d3   : > { %v1552_v34 = vsub.f32 %v4392_v54, %v4599_v33  ;;  %v1622_v20 = vmax.f32 %v1590_v25, 0.0  ;;  %v1623_v60 = vmax.f32 %v1591_v36, 0.0  ;;  %v6055_v22 = vmax.f32 %v4672_v17, 0.0 }
 0x2d4   : > { %2148 = vrot.lane.b32.xlu0 %v2076_v16, %s3451_s19  ;;  %v4799_v28 = vrot.slane %v6061_v57, 7  ;;  %v6052_v38 = vmax.f32 %v4675_v13, 0.0  ;;  %v4804_v53 = vrot.slane %v6057_v44, 7  ;;  %v1914_v37 = vsel %vm458_vm1, %v1912_v2, %v1913_v51 }
 0x2d5   : > { %v4809_v15 = vrot.slane %v6062_v40, 7  ;;  %v4813_v54 = vrot.slane %v6053_v19, 7  ;;  %v2071_v33 = vsel %vm624_vm2, %v2068_v14, %v2070_v49  ;;  %v1906_v45 = vsel %vm458_vm1, %v1903_v35, %v1905_v52  ;;  %v3285_v35 = vld [vmem:[%s6049_s2 + $0x10] sm:$0xff] }
 0x2d6   : > { %1983 = vrot.lane.b32.xlu2 %v1911_v55, %s3450_s18  ;;  %2142 = vrot.lane.b32.xlu1 %v2069_v9, %s3451_s19  ;;  %v1858_v29 = vsel %vm267_vm0, %v1719_v5, %v1810_v30  ;;  %v1592_v56 = vmul.f32 %v4623_v58, %v1549_v50  ;;  %v4823_v8 = vmul.f32 %v4623_v58, %v1550_v41  ;;  %v6054_v16 = vmax.f32 %v4678_v18, 0.0 }
 0x2d7   : > { %v4826_v63 = vmul.f32 %v4623_v58, %v1551_v46  ;;  %v6056_v5 = vmax.f32 %v4681_v39, 0.0  ;;  %v1721_v14 = vrot.slane %v1622_v20, 7  ;;  %v4837_v55 = vrot.slane %v6055_v22, 7  ;;  %2439 = vmatpush.msrb.mxu3 %v3285_v35 }
 0x2d8   : > { %v4842_v9 = vsel %vm267_vm0, %v4799_v28, %v4809_v15  ;;  %v4846_v48 = vrot.slane %v6052_v38, 7  ;;  %v2078_v25 = vrot.slane %v4772_v6, 2  ;;  %v2080_v36 = vrot.slane %v1858_v29, 2 }
 0x2d9   : > { %v2077_v2 = vrot.slane %v4775_v11, 2  ;;  %v1915_v49 = vrot.slane %v1858_v29, 1  ;;  %v1722_v52 = vrot.slane %v1623_v60, 7  ;;  %v1811_v30 = vrot.slane %v1623_v60, 5 }
 0x2da   : > { %v4853_v50 = vsel %vm267_vm0, %v4804_v53, %v4813_v54  ;;  %v4856_v41 = vmul.f32 %v4623_v58, %v1552_v34  ;;  %v6060_v46 = vmax.f32 %v4684_v4, 0.0  ;;  %v6064_v35 = vmax.f32 %v4823_v8, 0.0 }
 0x2db   : > { %v6059_v29 = vmax.f32 %v4690_v1, 0.0  ;;  %v6063_v60 = vmax.f32 %v4693_v31, 0.0  ;;  %v4865_v38 = vrot.slane %v6054_v16, 7  ;;  %v4869_v58 = vrot.slane %v6056_v5, 7 }
 0x2dc   : > { %1985 = vrot.lane.b32.xlu0 %v1914_v37, %s3450_s18  ;;  %v6058_v37 = vmax.f32 %v4687_v26, 0.0  ;;  %v2081_v34 = vsel %vm624_vm2, %v2078_v25, %v2080_v36  ;;  %v2079_v19 = vsel %vm624_vm2, %v2077_v2, %v2078_v25  ;;  %v4881_v16 = vsel %vm267_vm0, %v1721_v14, %v1722_v52  ;;  %v2292_v25 = vld [vmem:[%s6049_s2] sm:$0xff] }
 0x2dd   : > { %6131 = vst [vmem:[#allocation20_spill] sm:$0xff] %v4881_v16  ;;  %v4884_v22 = vsel %vm267_vm0, %v1722_v52, %v1811_v30  ;;  %v6068_v5 = vmax.f32 %v4696_v21, 0.0  ;;  %v4889_v36 = vrot.slane %v6060_v46, 7  ;;  %v3353_v2 = vld [vmem:[%s6049_s2 + $0x20] sm:$0xff]  ;;  %2555 = vmatpush.msrb.mxu0 %v2292_v25  ;;  %v1626_v46 = vmax.f32 %v4826_v63, 0.0 }
 0x2de   : > { %2144 = vrot.lane.b32.xlu2 %v2071_v33, %s3451_s19  ;;  %1979 = vrot.lane.b32.xlu1 %v1906_v45, %s3450_s18  ;;  %v1667_v33 = vrot.slane %v1622_v20, 1  ;;  %v1624_v45 = vmax.f32 %v1592_v56, 0.0  ;;  %v4875_v20 = vsel %vm267_vm0, %v4837_v55, %v4846_v48  ;;  %v1916_v56 = vsel %vm458_vm1, %v1913_v51, %v1915_v49 }
 0x2df   : > { %v4893_v44 = vrot.slane %v6058_v37, 7  ;;  %v6069_v49 = vmax.f32 %v4699_v59, 0.0  ;;  %2674 = vmatpush.msrb.mxu1 %v3353_v2  ;;  %v2083_v2 = vrot.slane %v4881_v16, 2  ;;  %v1627_v57 = vmax.f32 %v4856_v41, 0.0 }
 0x2e0   : > { %v4898_v51 = vsel %vm267_vm0, %v1667_v33, %v1721_v14  ;;  %v1668_v52 = vrot.slane %v1624_v45, 1  ;;  %v1724_v30 = vrot.slane %v1624_v45, 7  ;;  %v1918_v14 = vrot.slane %v4881_v16, 1 }
 0x2e1   : > { %6132 = vst [vmem:[#allocation5_spill] sm:$0xff] %v4898_v51  ;;  %v1920_v33 = vrot.slane %v4884_v22, 1  ;;  %v4922_v45 = vrot.slane %v6063_v60, 7  ;;  %v2082_v25 = vrot.slane %v4898_v51, 2  ;;  %v1917_v37 = vrot.slane %v4898_v51, 1 }
 0x2e2   : > { %v4942_v16 = vrot.slane %v6069_v49, 7  ;;  %v4952_v60 = vsel %vm267_vm0, %v1668_v52, %v1724_v30  ;;  %v1728_v40 = vrot.slane %v1627_v57, 7  ;;  %v6139_v27 = vmax.f32 %v4708_v3, 0.0 }
 0x2e3   : > { %v1921_v51 = vsel %vm458_vm1, %v1918_v14, %v1920_v33  ;;  %v2084_v63 = vsel %vm624_vm2, %v2082_v25, %v2083_v2  ;;  %v1919_v41 = vsel %vm458_vm1, %v1917_v37, %v1918_v14  ;;  %6134 = vst [vmem:[#allocation6_spill] sm:$0xff] %v4952_v60  ;;  %v1669_v33 = vrot.slane %v1626_v46, 1 }
 0x2e4   : > { %2152 = vrot.lane.b32.xlu0 %v2081_v34, %s3451_s19  ;;  %v1725_v34 = vrot.slane %v6064_v35, 7  ;;  %v4938_v35 = vrot.slane %v6068_v5, 7  ;;  %v1727_v25 = vrot.slane %v1626_v46, 7  ;;  %v6135_v37 = vmax.f32 %v4702_v62, 0.0 }
 0x2e5   : > { %v2087_v11 = vrot.slane %v4952_v60, 2  ;;  %v4987_v12 = vrot.slane %v6139_v27, 7 }
 0x2e6   : > { %1987 = vrot.lane.b32.xlu2 %v1916_v56, %s3450_s18  ;;  %2150 = vrot.lane.b32.xlu1 %v2079_v19, %s3451_s19  ;;  %v4911_v19 = vrot.slane %v6059_v29, 7  ;;  %v4918_v56 = vsel %vm267_vm0, %v4865_v38, %v4869_v58  ;;  %v4930_v29 = vsel %vm267_vm0, %v4889_v36, %v4893_v44  ;;  %v4946_v6 = vsel %vm267_vm0, %v1724_v30, %v1725_v34 }
 0x2e7   : > { %6133 = vst [vmem:[#allocation19_spill] sm:$0xff] %v4946_v6  ;;  %v4965_v52 = vrot.slane %v6135_v37, 7  ;;  %v6136_v30 = vmax.f32 %v4705_v10, 0.0  ;;  %v2088_v49 = vrot.slane %v4946_v6, 2  ;;  %v4979_v46 = vsel %vm267_vm0, %v4938_v35, %v4942_v16 }
 0x2e8   : > { %v4957_v5 = vsel %vm267_vm0, %v4911_v19, %v4922_v45  ;;  %6137 = vst [vmem:[#allocation7_spill] sm:$0xff] %v4979_v46  ;;  %v6138_v37 = vmax.f32 %v4823_v8, 0.0  ;;  %v5003_v27 = vsel %vm267_vm0, %v1727_v25, %v1728_v40  ;;  %v5006_v24 = vsel %vm267_vm0, %v1669_v33, %v1727_v25 }
 0x2e9   : > { %v4969_v14 = vrot.slane %v6136_v30, 7  ;;  %v6078_v30 = vmax.f32 %v4627_v0, 0.0  ;;  %v1928_v33 = vrot.slane %v5003_v27, 1 }
 0x2ea   : > { %v1812_v10 = vrot.slane %v6138_v37, 5 }
 0x2eb   : > { %v4997_v46 = vsel %vm267_vm0, %v4965_v52, %v4969_v14 }
 0x2ec   : > { %1991 = vrot.lane.b32.xlu0 %v1921_v51, %s3450_s18  ;;  %v2085_v51 = vrot.slane %v4884_v22, 2  ;;  %v2089_v22 = vsel %vm624_vm2, %v2087_v11, %v2088_v49  ;;  %v5013_v11 = vrot.slane %v6078_v30, 7 }
 0x2ee   : > { %2154 = vrot.lane.b32.xlu2 %v2084_v63, %s3451_s19  ;;  %1989 = vrot.lane.b32.xlu1 %v1919_v41, %s3450_s18  ;;  %v1922_v63 = vrot.slane %v4952_v60, 1  ;;  %v1923_v41 = vrot.slane %v4946_v6, 1  ;;  %v6140_v6 = vmax.f32 %v4711_v32, 0.0  ;;  %v2086_v37 = vsel %vm624_vm2, %v2083_v2, %v2085_v51 }
 0x2ef   : > { %v1927_v51 = vrot.slane %v5006_v24, 1 }
 0x2f0   : > { %v4991_v60 = vrot.slane %v6140_v6, 7  ;;  %v1924_v8 = vsel %vm458_vm1, %v1922_v63, %v1923_v41  ;;  %v1860_v6 = vsel %vm267_vm0, %v1725_v34, %v1812_v10  ;;  %v6141_v63 = vmax.f32 %v4714_v7, 0.0 }
 0x2f1   : > { %v2090_v25 = vrot.slane %v1860_v6, 2  ;;  %v1813_v10 = vrot.slane %v1627_v57, 5  ;;  %v2093_v57 = vrot.slane %v5003_v27, 2 }
 0x2f2   : > { %v5022_v2 = vsel %vm267_vm0, %v4987_v12, %v4991_v60 }
 0x2f3   : > { %v1861_v7 = vsel %vm267_vm0, %v1728_v40, %v1813_v10 }
 0x2f4   : > { %2158 = vrot.lane.b32.xlu0 %v2089_v22, %s3451_s19  ;;  %v5017_v22 = vrot.slane %v6141_v63, 7  ;;  %v2091_v63 = vsel %vm624_vm2, %v2088_v49, %v2090_v25  ;;  %v1930_v0 = vrot.slane %v1861_v7, 1 }
 0x2f6   : > { %1993 = vrot.lane.b32.xlu2 %v1924_v8, %s3450_s18  ;;  %2156 = vrot.lane.b32.xlu1 %v2086_v37, %s3451_s19  ;;  %6142 = vst [vmem:[#allocation8_spill] sm:$0xff] %v5017_v22  ;;  %v1925_v8 = vrot.slane %v1860_v6, 1  ;;  %v5029_v34 = vsel %vm267_vm0, %v5017_v22, %v5013_v11  ;;  %v1929_v37 = vsel %vm458_vm1, %v1927_v51, %v1928_v33  ;;  %v2095_v6 = vrot.slane %v1861_v7, 2 }
 0x2f7   : > { %6143 = vst [vmem:[#allocation9_spill] sm:$0xff] %v5029_v34  ;;  %v2092_v34 = vrot.slane %v5006_v24, 2  ;;  %v6144_v51 = vmax.f32 %v4659_v42, 0.0  ;;  %v1931_v40 = vsel %vm458_vm1, %v1928_v33, %v1930_v0  ;;  %v2098_v33 = vrot.slane %v4842_v9, 2 }
 0x2f8   : > { %v1926_v30 = vsel %vm458_vm1, %v1923_v41, %v1925_v8  ;;  %v2096_v41 = vsel %vm624_vm2, %v2093_v57, %v2095_v6  ;;  %v6146_v8 = vmax.f32 %v4666_v43, 0.0  ;;  %v6147_v6 = vmax.f32 %v4672_v17, 0.0 }
 0x2f9   : > { %v1814_v22 = vrot.slane %v6144_v51, 5 }
 0x2fa   : > { %v1671_v10 = vrot.slane %v6146_v8, 1  ;;  %v1672_v51 = vrot.slane %v6147_v6, 1  ;;  %v1943_v8 = vrot.slane %v4875_v20, 1 }
 0x2fb   : > { %v1862_v25 = vsel %vm267_vm0, %v4809_v15, %v1814_v22 }
 0x2fc   : > { %1997 = vrot.lane.b32.xlu0 %v1929_v37, %s3450_s18  ;;  %v6145_v37 = vmax.f32 %v4656_v23, 0.0  ;;  %v1933_v23 = vrot.slane %v4842_v9, 1  ;;  %v1935_v7 = vrot.slane %v1862_v25, 1  ;;  %v5086_v17 = vsel %vm267_vm0, %v1672_v51, %v4837_v55 }
 0x2fe   : > { %2160 = vrot.lane.b32.xlu2 %v2091_v63, %s3451_s19  ;;  %1995 = vrot.lane.b32.xlu1 %v1926_v30, %s3450_s18  ;;  %v1670_v49 = vrot.slane %v6145_v37, 1  ;;  %v2094_v30 = vsel %vm624_vm2, %v2092_v34, %v2093_v57  ;;  %v1936_v22 = vsel %vm458_vm1, %v1933_v23, %v1935_v7  ;;  %v5068_v63 = vsel %vm267_vm0, %v1671_v10, %v4804_v53 }
 0x2ff   : > { %v2102_v43 = vrot.slane %v5068_v63, 2  ;;  %v2103_v57 = vrot.slane %v4853_v50, 2  ;;  %v1937_v37 = vrot.slane %v5068_v63, 1  ;;  %v6149_v10 = vmax.f32 %v4675_v13, 0.0 }
 0x300   : > { %v5054_v42 = vsel %vm267_vm0, %v1670_v49, %v4799_v28  ;;  %v1938_v49 = vrot.slane %v4853_v50, 1  ;;  %v2108_v13 = vrot.slane %v4875_v20, 2 }
 0x301   : > { %v2097_v0 = vrot.slane %v5054_v42, 2  ;;  %v1932_v15 = vrot.slane %v5054_v42, 1 }
 0x303   : > { %v2099_v34 = vsel %vm624_vm2, %v2097_v0, %v2098_v33  ;;  %v1934_v28 = vsel %vm458_vm1, %v1932_v15, %v1933_v23  ;;  %v1939_v23 = vsel %vm458_vm1, %v1937_v37, %v1938_v49  ;;  %v1816_v0 = vrot.slane %v6149_v10, 5 }
 0x304   : > { %2164 = vrot.lane.b32.xlu0 %v2096_v41, %s3451_s19  ;;  %v2100_v41 = vrot.slane %v1862_v25, 2  ;;  %v1942_v25 = vrot.slane %v5086_v17, 1  ;;  %v2107_v37 = vrot.slane %v5086_v17, 2 }
 0x306   : > { %1999 = vrot.lane.b32.xlu2 %v1931_v40, %s3450_s18  ;;  %2162 = vrot.lane.b32.xlu1 %v2094_v30, %s3451_s19  ;;  %v6148_v40 = vmax.f32 %v4669_v47, 0.0  ;;  %v2104_v30 = vsel %vm624_vm2, %v2102_v43, %v2103_v57  ;;  %v2101_v7 = vsel %vm624_vm2, %v2098_v33, %v2100_v41  ;;  %v6150_v43 = vmax.f32 %v4681_v39, 0.0 }
 0x308   : > { %v1815_v53 = vrot.slane %v6148_v40, 5  ;;  %v1817_v6 = vrot.slane %v6150_v43, 5  ;;  %v2109_v40 = vsel %vm624_vm2, %v2107_v37, %v2108_v13  ;;  %v1958_v37 = vrot.slane %v4957_v5, 1 }
 0x30a   : > { %v1863_v47 = vsel %vm267_vm0, %v4813_v54, %v1815_v53  ;;  %v1864_v54 = vsel %vm267_vm0, %v4846_v48, %v1816_v0  ;;  %v1865_v53 = vsel %vm267_vm0, %v4869_v58, %v1817_v6 }
 0x30b   : > { %v2105_v15 = vrot.slane %v1863_v47, 2  ;;  %v1940_v33 = vrot.slane %v1863_v47, 1  ;;  %v1945_v51 = vrot.slane %v1864_v54, 1 }
 0x30c   : > { %2003 = vrot.lane.b32.xlu0 %v1936_v22, %s3450_s18  ;;  %v1944_v22 = vsel %vm458_vm1, %v1942_v25, %v1943_v8  ;;  %v2113_v25 = vrot.slane %v4918_v56, 2 }
 0x30d   : > { %v2106_v55 = vsel %vm624_vm2, %v2103_v57, %v2105_v15  ;;  %v6151_v57 = vmax.f32 %v4678_v18, 0.0  ;;  %v1946_v48 = vsel %vm458_vm1, %v1943_v8, %v1945_v51  ;;  %v1948_v18 = vrot.slane %v4918_v56, 1 }
 0x30e   : > { %2166 = vrot.lane.b32.xlu2 %v2099_v34, %s3451_s19  ;;  %2001 = vrot.lane.b32.xlu1 %v1934_v28, %s3450_s18  ;;  %v1941_v34 = vsel %vm458_vm1, %v1938_v49, %v1940_v33  ;;  %v2110_v28 = vrot.slane %v1864_v54, 2  ;;  %v2118_v15 = vrot.slane %v4930_v29, 2  ;;  %v6153_v33 = vmax.f32 %v4690_v1, 0.0 }
 0x30f   : > { %v1673_v41 = vrot.slane %v6151_v57, 1  ;;  %v2115_v54 = vrot.slane %v1865_v53, 2  ;;  %v6155_v57 = vmax.f32 %v4693_v31, 0.0 }
 0x310   : > { %v2111_v49 = vsel %vm624_vm2, %v2108_v13, %v2110_v28  ;;  %v6154_v13 = vmax.f32 %v4687_v26, 0.0 }
 0x311   : > { %v5120_v39 = vsel %vm267_vm0, %v1673_v41, %v4865_v38  ;;  %v2116_v6 = vsel %vm624_vm2, %v2113_v25, %v2115_v54  ;;  %v1819_v41 = vrot.slane %v6155_v57, 5  ;;  %v6159_v54 = vld [vmem:[#allocation18_spill] sm:$0xff] }
 0x312   : > { %v2112_v47 = vrot.slane %v5120_v39, 2  ;;  %v1947_v58 = vrot.slane %v5120_v39, 1 }
 0x314   : > { %2170 = vrot.lane.b32.xlu0 %v2104_v30, %s3451_s19  ;;  %v1950_v30 = vrot.slane %v1865_v53, 1  ;;  %v2114_v10 = vsel %vm624_vm2, %v2112_v47, %v2113_v25  ;;  %v1949_v38 = vsel %vm458_vm1, %v1947_v58, %v1948_v18  ;;  %v6156_v47 = vmax.f32 %v4699_v59, 0.0 }
 0x316   : > { %2005 = vrot.lane.b32.xlu2 %v1939_v23, %s3450_s18  ;;  %2168 = vrot.lane.b32.xlu1 %v2101_v7, %s3451_s19  ;;  %v6152_v23 = vmax.f32 %v4684_v4, 0.0  ;;  %v1951_v8 = vsel %vm458_vm1, %v1948_v18, %v1950_v30  ;;  %v1820_v25 = vrot.slane %v6156_v47, 5 }
 0x318   : > { %v1674_v7 = vrot.slane %v6152_v23, 1  ;;  %v2123_v23 = vrot.slane %v4957_v5, 2 }
 0x31a   : > { %v5134_v0 = vsel %vm267_vm0, %v1674_v7, %v4889_v36  ;;  %v1818_v36 = vrot.slane %v6154_v13, 5 }
 0x31b   : > { %v2117_v4 = vrot.slane %v5134_v0, 2 }
 0x31c   : > { %2009 = vrot.lane.b32.xlu0 %v1944_v22, %s3450_s18  ;;  %v1675_v22 = vrot.slane %v6153_v33, 1  ;;  %v1866_v26 = vsel %vm267_vm0, %v4893_v44, %v1818_v36  ;;  %v1867_v44 = vsel %vm267_vm0, %v4922_v45, %v1819_v41  ;;  %v6157_v45 = vmax.f32 %v4696_v21, 0.0 }
 0x31d   : > { %v2119_v28 = vsel %vm624_vm2, %v2117_v4, %v2118_v15  ;;  %v2125_v7 = vrot.slane %v1867_v44, 2 }
 0x31e   : > { %2172 = vrot.lane.b32.xlu2 %v2106_v55, %s3451_s19  ;;  %2007 = vrot.lane.b32.xlu1 %v1941_v34, %s3450_s18  ;;  %v1952_v55 = vrot.slane %v5134_v0, 1  ;;  %v1953_v34 = vrot.slane %v4930_v29, 1  ;;  %v5152_v1 = vsel %vm267_vm0, %v1675_v22, %v4911_v19  ;;  %v1868_v22 = vsel %vm267_vm0, %v4942_v16, %v1820_v25 }
 0x31f   : > { %v1957_v51 = vrot.slane %v5152_v1, 1  ;;  %v2126_v33 = vsel %vm624_vm2, %v2123_v23, %v2125_v7  ;;  %v6163_v7 = vld [vmem:[#allocation3_spill] sm:$0xff] }
 0x320   : > { %v1954_v43 = vsel %vm458_vm1, %v1952_v55, %v1953_v34  ;;  %v6158_v55 = vmax.f32 %v4702_v62, 0.0 }
 0x321   : > { %v1959_v19 = vsel %vm458_vm1, %v1957_v51, %v1958_v37 }
 0x324   : > { %2176 = vrot.lane.b32.xlu0 %v2111_v49, %s3451_s19  ;;  %v2120_v49 = vrot.slane %v1866_v26, 2 }
 0x326   : > { %2011 = vrot.lane.b32.xlu2 %v1946_v48, %s3450_s18  ;;  %2174 = vrot.lane.b32.xlu1 %v2109_v40, %s3451_s19  ;;  %v1955_v48 = vrot.slane %v1866_v26, 1  ;;  %v2121_v53 = vsel %vm624_vm2, %v2118_v15, %v2120_v49  ;;  %v6161_v26 = vld [vmem:[#allocation7_spill] sm:$0xff] }
 0x327   : > { %v1963_v51 = vrot.slane %v6161_v26, 1  ;;  %v2128_v57 = vrot.slane %v6161_v26, 2 }
 0x328   : > { %v2147_v40 = vpop.permute.xlu2 %2146  ;;  %v1956_v18 = vsel %vm458_vm1, %v1953_v34, %v1955_v48  ;;  %v1677_v34 = vrot.slane %v6158_v55, 1  ;;  %v6166_v55 = vld [vmem:[#allocation17_spill] sm:$0xff] }
 0x32c   : > { %2015 = vrot.lane.b32.xlu0 %v1951_v8, %s3450_s18  ;;  %v1960_v8 = vrot.slane %v1867_v44, 1 }
 0x32e   : > { %2178 = vrot.lane.b32.xlu2 %v2114_v10, %s3451_s19  ;;  %2013 = vrot.lane.b32.xlu1 %v1949_v38, %s3450_s18  ;;  %v2122_v10 = vrot.slane %v5152_v1, 2  ;;  %v1676_v38 = vrot.slane %v6157_v45, 1  ;;  %v1961_v59 = vsel %vm458_vm1, %v1958_v37, %v1960_v8  ;;  %v1965_v37 = vrot.slane %v1868_v22, 1  ;;  %v6164_v8 = vld [vmem:[#allocation14_spill] sm:$0xff] }
 0x330   : > { %v1984_v15 = vpop.permute.xlu2 %1983  ;;  %v5193_v21 = vsel %vm267_vm0, %v1676_v38, %v4938_v35  ;;  %v1966_v49 = vsel %vm458_vm1, %v1963_v51, %v1965_v37 }
 0x331   : > { %v2235_v13 = vsel %vm790_vm4, %v6159_v54, %v1984_v15  ;;  %v2127_v62 = vrot.slane %v5193_v21, 2  ;;  %v1962_v41 = vrot.slane %v5193_v21, 1 }
 0x333   : > { %v2129_v48 = vsel %vm624_vm2, %v2127_v62, %v2128_v57 }
 0x334   : > { %2182 = vrot.lane.b32.xlu0 %v2119_v28, %s3451_s19  ;;  %v6160_v28 = vld [vmem:[#allocation15_spill] sm:$0xff] }
 0x336   : > { %2017 = vrot.lane.b32.xlu2 %v1954_v43, %s3450_s18  ;;  %2180 = vrot.lane.b32.xlu1 %v2116_v6, %s3451_s19 }
 0x33c   : > { %2021 = vrot.lane.b32.xlu0 %v1959_v19, %s3450_s18  ;;  %v5223_v19 = vsel %vm267_vm0, %v1677_v34, %v4965_v52  ;;  %v1968_v52 = vrot.slane %v4997_v46, 1 }
 0x33d   : > { %v1967_v25 = vrot.slane %v5223_v19, 1 }
 0x33e   : > { %2184 = vrot.lane.b32.xlu2 %v2121_v53, %s3451_s19  ;;  %2019 = vrot.lane.b32.xlu1 %v1956_v18, %s3450_s18  ;;  %v1978_v31 = vpop.permute.xlu0 %1977  ;;  %v6162_v53 = vmax.f32 %v4708_v3, 0.0 }
 0x33f   : > { %v2232_v43 = vsel %vm790_vm4, %v6160_v28, %v1978_v31  ;;  %v2132_v31 = vrot.slane %v5223_v19, 2  ;;  %v6167_v28 = vmax.f32 %v4711_v32, 0.0 }
 0x340   : > { %v1982_v30 = vpop.permute.xlu1 %1981  ;;  %v1678_v18 = vrot.slane %v6162_v53, 1 }
 0x341   : > { %v2234_v58 = vsel %vm790_vm4, %v4746_v61, %v1982_v30  ;;  %v2124_v61 = vsel %vm624_vm2, %v2122_v10, %v2123_v23  ;;  %v2133_v30 = vrot.slane %v4997_v46, 2  ;;  %v2145_v23 = vpop.permute.xlu2 %2144  ;;  %v6165_v10 = vmax.f32 %v6164_v8, 0.0 }
 0x342   : > { %v5179_v4 = vsel %vm821_vm5, %v2234_v58, %v2147_v40  ;;  %v1964_v40 = vsel %vm458_vm1, %v1962_v41, %v1963_v51  ;;  %v2130_v58 = vrot.slane %v1868_v22, 2  ;;  %v2138_v41 = vrot.slane %v5022_v2, 2 }
 0x343   : > { %3288 = vmatmul.msk.f32.vlgmr.msrb.gmra.mxu3 %vm885_vm6, %v5179_v4  ;;  %v1821_v45 = vrot.slane %v6165_v10, 5  ;;  %v2134_v38 = vsel %vm624_vm2, %v2132_v31, %v2133_v30  ;;  %v6170_v31 = vld [vmem:[#allocation16_spill] sm:$0xff] }
 0x344   : > { %2188 = vrot.lane.b32.xlu0 %v2126_v33, %s3451_s19  ;;  %v1969_v33 = vsel %vm458_vm1, %v1967_v25, %v1968_v52 }
 0x345   : > { %v1869_v22 = vsel %vm267_vm0, %v4969_v14, %v1821_v45 }
 0x346   : > { %2023 = vrot.lane.b32.xlu2 %v1961_v59, %s3450_s18  ;;  %2186 = vrot.lane.b32.xlu1 %v2124_v61, %s3451_s19  ;;  %v2149_v36 = vpop.permute.xlu0 %2148  ;;  %v2131_v59 = vsel %vm624_vm2, %v2128_v57, %v2130_v58  ;;  %v5252_v61 = vsel %vm267_vm0, %v1678_v18, %v4987_v12  ;;  %v1970_v51 = vrot.slane %v1869_v22, 1 }
 0x347   : > { %v5202_v16 = vsel %vm821_vm5, %v2235_v13, %v2149_v36  ;;  %v1972_v13 = vrot.slane %v5252_v61, 1  ;;  %v1973_v36 = vrot.slane %v5022_v2, 1 }
 0x348   : > { %v2143_v6 = vpop.permute.xlu1 %2142  ;;  %v1971_v37 = vsel %vm458_vm1, %v1968_v52, %v1970_v51 }
 0x349   : > { %v5206_v35 = vsel %vm821_vm5, %v2232_v43, %v2143_v6  ;;  %v1822_v43 = vrot.slane %v6167_v28, 5  ;;  %v2135_v6 = vrot.slane %v1869_v22, 2  ;;  %v1974_v14 = vsel %vm458_vm1, %v1972_v13, %v1973_v36  ;;  %v1988_v57 = vpop.permute.xlu2 %1987 }
 0x34a   : > { %3321 = vmatmul.msk.f32.vlgmr.msrb.gmra.mxu0 %vm885_vm6, %v5206_v35  ;;  %3356 = vmatmul.msk.f32.vlgmr.msrb.gmra.mxu1 %vm885_vm6, %v5206_v35 }
 0x34b   : > { %3289 = vmatmul.msk.f32.gmra.mxu3 %vm885_vm6, %v5202_v16  ;;  %v2136_v32 = vsel %vm624_vm2, %v2133_v30, %v2135_v6  ;;  %v1870_v62 = vsel %vm267_vm0, %v4991_v60, %v1822_v43  ;;  %v6171_v30 = vmax.f32 %v6170_v31, 0.0 }
 0x34c   : > { %2027 = vrot.lane.b32.xlu0 %v1966_v49, %s3450_s18  ;;  %v2140_v49 = vrot.slane %v1870_v62, 2  ;;  %v1975_v18 = vrot.slane %v1870_v62, 1 }
 0x34e   : > { %2190 = vrot.lane.b32.xlu2 %v2129_v48, %s3451_s19  ;;  %2025 = vrot.lane.b32.xlu1 %v1964_v40, %s3450_s18  ;;  %v1986_v15 = vpop.permute.xlu0 %1985  ;;  %v6168_v48 = vld [vmem:[#allocation2_spill] sm:$0xff]  ;;  %v2141_v25 = vsel %vm624_vm2, %v2138_v41, %v2140_v49  ;;  %v1976_v58 = vsel %vm458_vm1, %v1973_v36, %v1975_v18 }
 0x34f   : > { %v2236_v34 = vsel %vm790_vm4, %v6166_v55, %v1986_v15  ;;  %v6169_v40 = vmax.f32 %v6168_v48, 0.0 }
 0x350   : > { %v1980_v44 = vpop.permute.xlu1 %1979 }
 0x351   : > { %v2233_v47 = vsel %vm790_vm4, %v6163_v7, %v1980_v44  ;;  %v1823_v53 = vrot.slane %v6169_v40, 5  ;;  %v2137_v44 = vrot.slane %v5252_v61, 2  ;;  %v6172_v7 = vld [vmem:[#allocation4_spill] sm:$0xff]  ;;  %v6178_v40 = vld [vmem:[#allocation19_spill] sm:$0xff] }
 0x352   : > { %v5238_v3 = vsel %vm821_vm5, %v2233_v47, %v2145_v23  ;;  %v1679_v23 = vrot.slane %v6171_v30, 1  ;;  %v2237_v60 = vsel %vm790_vm4, %v6172_v7, %v1988_v57 }
 0x353   : > { %3290 = vmatmul.msk.f32.gmra.mxu3 %vm885_vm6, %v5206_v35  ;;  %3322 = vmatmul.msk.f32.gmra.mxu0 %vm885_vm6, %v5238_v3  ;;  %v2139_v8 = vsel %vm624_vm2, %v2137_v44, %v2138_v41  ;;  %v1871_v10 = vsel %vm267_vm0, %v5013_v11, %v1823_v53  ;;  %v6177_v41 = vld [vmem:[#allocation6_spill] sm:$0xff] }
 0x354   : > { %3357 = vmatmul.msk.f32.gmra.mxu1 %vm885_vm6, %v5238_v3  ;;  %2194 = vrot.lane.b32.xlu0 %v2134_v38, %s3451_s19  ;;  %v6174_v38 = vld [vmem:[#allocation5_spill] sm:$0xff]  ;;  %v2299_v22 = vrot.slane %v1871_v10, 1 }
 0x356   : > { %2029 = vrot.lane.b32.xlu2 %v1969_v33, %s3450_s18  ;;  %2192 = vrot.lane.b32.xlu1 %v2131_v59, %s3451_s19  ;;  %v6175_v33 = vld [vmem:[#allocation9_spill] sm:$0xff] }
 0x357   : > { %v2297_v59 = vrot.slane %v6175_v33, 1 }
 0x358   : > { %v2151_v54 = vpop.permute.xlu1 %2150 }
 0x359   : > { %v5265_v12 = vsel %vm821_vm5, %v2236_v34, %v2151_v54  ;;  %v2308_v34 = vrot.slane %v6175_v33, 2  ;;  %v2155_v54 = vpop.permute.xlu2 %2154  ;;  %v2300_v36 = vsel %vm458_vm1, %v2297_v59, %v2299_v22 }
 0x35b   : > { %3291 = vmatmul.msk.f32.gmra.mxu3 %vm885_vm6, %v5238_v3  ;;  %3323 = vmatmul.msk.f32.gmra.mxu0 %vm885_vm6, %v5179_v4  ;;  %v2153_v4 = vpop.permute.xlu0 %2152 }
 0x35c   : > { %3358 = vmatmul.msk.f32.gmra.mxu1 %vm885_vm6, %v5265_v12  ;;  %2033 = vrot.lane.b32.xlu0 %v1974_v14, %s3450_s18  ;;  %v2267_v47 = vsel %vm821_vm5, %v2237_v60, %v2153_v4  ;;  %v2310_v14 = vrot.slane %v1871_v10, 2 }
 0x35e   : > { %2196 = vrot.lane.b32.xlu2 %v2136_v32, %s3451_s19  ;;  %2031 = vrot.lane.b32.xlu1 %v1971_v37, %s3450_s18  ;;  %v2311_v62 = vsel %vm624_vm2, %v2308_v34, %v2310_v14 }
 0x360   : > { %v1990_v52 = vpop.permute.xlu1 %1989 }
 0x361   : > { %v2238_v15 = vsel %vm790_vm4, %v6174_v38, %v1990_v52  ;;  %v1994_v57 = vpop.permute.xlu2 %1993 }
 0x362   : > { %v2268_v13 = vsel %vm821_vm5, %v2238_v15, %v2155_v54  ;;  %v2240_v49 = vsel %vm790_vm4, %v6177_v41, %v1994_v57 }
 0x363   : > { %3292 = vmatmul.msk.f32.gmra.mxu3 %vm885_vm6, %v5265_v12  ;;  %3324 = vmatmul.msk.f32.gmra.mxu0 %vm885_vm6, %v5202_v16  ;;  %v6173_v16 = vld [vmem:[#allocation8_spill] sm:$0xff]  ;;  %v1992_v6 = vpop.permute.xlu0 %1991 }
 0x364   : > { %3359 = vmatmul.msk.f32.gmra.mxu1 %vm885_vm6, %v2267_v47  ;;  %2200 = vrot.lane.b32.xlu0 %v2141_v25, %s3451_s19  ;;  %v5305_v45 = vsel %vm267_vm0, %v1679_v23, %v6173_v16 }
 0x365   : > { %v2307_v55 = vrot.slane %v5305_v45, 2  ;;  %v2296_v11 = vrot.slane %v5305_v45, 1 }
 0x366   : > { %2035 = vrot.lane.b32.xlu2 %v1976_v58, %s3450_s18  ;;  %2198 = vrot.lane.b32.xlu1 %v2139_v8, %s3451_s19 }
 0x367   : > { %v2309_v28 = vsel %vm624_vm2, %v2307_v55, %v2308_v34  ;;  %v2298_v43 = vsel %vm458_vm1, %v2296_v11, %v2297_v59 }
 0x368   : > { %v2157_v51 = vpop.permute.xlu1 %2156 }
 0x369   : > { %v2161_v18 = vpop.permute.xlu2 %2160 }
 0x36b   : > { %3293 = vmatmul.msk.f32.gmra.mxu3 %vm885_vm6, %v2267_v47  ;;  %3325 = vmatmul.msk.f32.gmra.mxu0 %vm885_vm6, %v5206_v35  ;;  %v6176_v35 = vld [vmem:[#allocation20_spill] sm:$0xff]  ;;  %v2159_v4 = vpop.permute.xlu0 %2158 }
 0x36c   : > { %3360 = vmatmul.msk.f32.gmra.mxu1 %vm885_vm6, %v2268_v13  ;;  %2303 = vrot.lane.b32.xlu0 %v2300_v36, %s3450_s18  ;;  %v2239_v32 = vsel %vm790_vm4, %v6176_v35, %v1992_v6 }
 0x36d   : > { %v2269_v37 = vsel %vm821_vm5, %v2239_v32, %v2157_v51 }
 0x36e   : > { %2312 = vrot.lane.b32.xlu2 %v2309_v28, %s3451_s19  ;;  %2301 = vrot.lane.b32.xlu1 %v2298_v43, %s3450_s18 }
 0x370   : > { %v1996_v48 = vpop.permute.xlu1 %1995 }
 0x371   : > { %v2241_v53 = vsel %vm790_vm4, %v6178_v40, %v1996_v48  ;;  %v2000_v7 = vpop.permute.xlu2 %1999 }
 0x372   : > { %v2271_v44 = vsel %vm821_vm5, %v2241_v53, %v2161_v18 }
 0x373   : > { %3294 = vmatmul.msk.f32.gmra.mxu3 %vm885_vm6, %v2268_v13  ;;  %3326 = vmatmul.msk.f32.gmra.mxu0 %vm885_vm6, %v5238_v3  ;;  %v2270_v3 = vsel %vm821_vm5, %v2240_v49, %v2159_v4  ;;  %v1998_v31 = vpop.permute.xlu0 %1997 }
 0x374   : > { %3361 = vmatmul.msk.f32.gmra.mxu1 %vm885_vm6, %v2269_v37 }
 0x376   : > { %2314 = vrot.lane.b32.xlu1 %v2311_v62, %s3451_s19 }
 0x378   : > { %v2163_v30 = vpop.permute.xlu1 %2162 }
 0x379   : > { %v2167_v58 = vpop.permute.xlu2 %2166 }
 0x37b   : > { %3295 = vmatmul.msk.f32.gmra.mxu3 %vm885_vm6, %v2269_v37  ;;  %3327 = vmatmul.msk.f32.gmra.mxu0 %vm885_vm6, %v5265_v12  ;;  %v2242_v12 = vsel %vm790_vm4, %v5006_v24, %v1998_v31  ;;  %v2165_v60 = vpop.permute.xlu0 %2164 }
 0x37c   : > { %3362 = vmatmul.msk.f32.gmra.mxu1 %vm885_vm6, %v2270_v3  ;;  %v2272_v23 = vsel %vm821_vm5, %v2242_v12, %v2163_v30 }
 0x380   : > { %v2002_v24 = vpop.permute.xlu1 %2001 }
 0x381   : > { %v2244_v52 = vsel %vm790_vm4, %v5054_v42, %v2002_v24  ;;  %v2006_v42 = vpop.permute.xlu2 %2005 }
 0x382   : > { %v2274_v8 = vsel %vm821_vm5, %v2244_v52, %v2167_v58  ;;  %v2246_v59 = vsel %vm790_vm4, %v5068_v63, %v2006_v42 }
 0x383   : > { %3296 = vmatmul.msk.f32.gmra.mxu3 %vm885_vm6, %v2270_v3  ;;  %3328 = vmatmul.msk.f32.gmra.mxu0 %vm885_vm6, %v2267_v47  ;;  %v2243_v47 = vsel %vm790_vm4, %v5003_v27, %v2000_v7  ;;  %v2004_v27 = vpop.permute.xlu0 %2003 }
 0x384   : > { %3363 = vmatmul.msk.f32.gmra.mxu1 %vm885_vm6, %v2271_v44  ;;  %v2273_v25 = vsel %vm821_vm5, %v2243_v47, %v2165_v60  ;;  %v2245_v16 = vsel %vm790_vm4, %v4842_v9, %v2004_v27 }
 0x388   : > { %v2169_v10 = vpop.permute.xlu1 %2168 }
 0x389   : > { %v2275_v38 = vsel %vm821_vm5, %v2245_v16, %v2169_v10  ;;  %v2173_v34 = vpop.permute.xlu2 %2172 }
 0x38b   : > { %3297 = vmatmul.msk.f32.gmra.mxu3 %vm885_vm6, %v2271_v44  ;;  %3329 = vmatmul.msk.f32.gmra.mxu0 %vm885_vm6, %v2268_v13  ;;  %v2171_v15 = vpop.permute.xlu0 %2170 }
 0x38c   : > { %3364 = vmatmul.msk.f32.gmra.mxu1 %vm885_vm6, %v2272_v23  ;;  %v2276_v22 = vsel %vm821_vm5, %v2246_v59, %v2171_v15 }
 0x390   : > { %v2008_v9 = vpop.permute.xlu1 %2007 }
 0x391   : > { %v2247_v55 = vsel %vm790_vm4, %v4853_v50, %v2008_v9  ;;  %v2012_v50 = vpop.permute.xlu2 %2011 }
 0x392   : > { %v2277_v11 = vsel %vm821_vm5, %v2247_v55, %v2173_v34  ;;  %v2249_v43 = vsel %vm790_vm4, %v4875_v20, %v2012_v50 }
 0x393   : > { %3298 = vmatmul.msk.f32.gmra.mxu3 %vm885_vm6, %v2272_v23  ;;  %3330 = vmatmul.msk.f32.gmra.mxu0 %vm885_vm6, %v2269_v37  ;;  %v2010_v63 = vpop.permute.xlu0 %2009 }
 0x394   : > { %3365 = vmatmul.msk.f32.gmra.mxu1 %vm885_vm6, %v2273_v25  ;;  %v2248_v13 = vsel %vm790_vm4, %v5086_v17, %v2010_v63 }
 0x398   : > { %v2175_v54 = vpop.permute.xlu1 %2174 }
 0x399   : > { %v2278_v36 = vsel %vm821_vm5, %v2248_v13, %v2175_v54  ;;  %v2179_v37 = vpop.permute.xlu2 %2178 }
 0x39b   : > { %3299 = vmatmul.msk.f32.gmra.mxu3 %vm885_vm6, %v2273_v25  ;;  %3331 = vmatmul.msk.f32.gmra.mxu0 %vm885_vm6, %v2270_v3  ;;  %v2177_v28 = vpop.permute.xlu0 %2176 }
 0x39c   : > { %3366 = vmatmul.msk.f32.gmra.mxu1 %vm885_vm6, %v2274_v8  ;;  %v2279_v6 = vsel %vm821_vm5, %v2249_v43, %v2177_v28 }
 0x3a0   : > { %v2014_v17 = vpop.permute.xlu1 %2013 }
 0x3a1   : > { %v2250_v32 = vsel %vm790_vm4, %v5120_v39, %v2014_v17  ;;  %v2018_v40 = vpop.permute.xlu2 %2017 }
 0x3a2   : > { %v2280_v20 = vsel %vm821_vm5, %v2250_v32, %v2179_v37  ;;  %v2252_v31 = vsel %vm790_vm4, %v5134_v0, %v2018_v40 }
 0x3a3   : > { %3300 = vmatmul.msk.f32.gmra.mxu3 %vm885_vm6, %v2274_v8  ;;  %3332 = vmatmul.msk.f32.gmra.mxu0 %vm885_vm6, %v2271_v44  ;;  %v2016_v62 = vpop.permute.xlu0 %2015 }
 0x3a4   : > { %3367 = vmatmul.msk.f32.gmra.mxu1 %vm885_vm6, %v2275_v38  ;;  %v2251_v39 = vsel %vm790_vm4, %v4918_v56, %v2016_v62 }
 0x3a8   : > { %v2181_v4 = vpop.permute.xlu1 %2180 }
 0x3a9   : > { %v2281_v3 = vsel %vm821_vm5, %v2251_v39, %v2181_v4  ;;  %v2185_v47 = vpop.permute.xlu2 %2184 }
 0x3ab   : > { %3301 = vmatmul.msk.f32.gmra.mxu3 %vm885_vm6, %v2275_v38  ;;  %3333 = vmatmul.msk.f32.gmra.mxu0 %vm885_vm6, %v2272_v23  ;;  %v2183_v53 = vpop.permute.xlu0 %2182 }
 0x3ac   : > { %3368 = vmatmul.msk.f32.gmra.mxu1 %vm885_vm6, %v2276_v22  ;;  %v2282_v56 = vsel %vm821_vm5, %v2252_v31, %v2183_v53 }
 0x3b0   : > { %v2020_v30 = vpop.permute.xlu1 %2019 }
 0x3b1   : > { %v2253_v23 = vsel %vm790_vm4, %v4930_v29, %v2020_v30  ;;  %v2024_v16 = vpop.permute.xlu2 %2023 }
 0x3b2   : > { %v2283_v0 = vsel %vm821_vm5, %v2253_v23, %v2185_v47  ;;  %v2255_v59 = vsel %vm790_vm4, %v4957_v5, %v2024_v16 }
 0x3b3   : > { %3302 = vmatmul.msk.f32.gmra.mxu3 %vm885_vm6, %v2276_v22  ;;  %3334 = vmatmul.msk.f32.gmra.mxu0 %vm885_vm6, %v2273_v25  ;;  %v2022_v25 = vpop.permute.xlu0 %2021 }
 0x3b4   : > { %3369 = vmatmul.msk.f32.gmra.mxu1 %vm885_vm6, %v2277_v11 }
 0x3b8   : > { %v2187_v52 = vpop.permute.xlu1 %2186 }
 0x3b9   : > { %v2191_v63 = vpop.permute.xlu2 %2190 }
 0x3bb   : > { %3303 = vmatmul.msk.f32.gmra.mxu3 %vm885_vm6, %v2277_v11  ;;  %3335 = vmatmul.msk.f32.gmra.mxu0 %vm885_vm6, %v2274_v8  ;;  %v2254_v8 = vsel %vm790_vm4, %v5152_v1, %v2022_v25 }
 0x3bc   : > { %3370 = vmatmul.msk.f32.gmra.mxu1 %vm885_vm6, %v2278_v36  ;;  %v2284_v27 = vsel %vm821_vm5, %v2254_v8, %v2187_v52 }
 0x3c1   : > { %v2030_v17 = vpop.permute.xlu2 %2029 }
 0x3c2   : > { %v2258_v4 = vsel %vm790_vm4, %v5223_v19, %v2030_v17 }
 0x3c3   : > { %3304 = vmatmul.msk.f32.gmra.mxu3 %vm885_vm6, %v2278_v36  ;;  %3336 = vmatmul.msk.f32.gmra.mxu0 %vm885_vm6, %v2275_v38  ;;  %v2189_v38 = vpop.permute.xlu0 %2188 }
 0x3c4   : > { %3371 = vmatmul.msk.f32.gmra.mxu1 %vm885_vm6, %v2279_v6  ;;  %v2285_v1 = vsel %vm821_vm5, %v2255_v59, %v2189_v38 }
 0x3c6   : > { %v5394_v51 = vpop.f32.mrf.mxu3 }
 0x3c7   : > { %v5396_v14 = vpop.f32.mrf.mxu0  ;;  %v5398_v35 = vpop.f32.mrf.mxu1 }
 0x3c9   : > { %v2197_v23 = vpop.permute.xlu2 %2196 }
 0x3cb   : > { %3305 = vmatmul.msk.f32.gmra.mxu3 %vm885_vm6, %v2279_v6  ;;  %3337 = vmatmul.msk.f32.gmra.mxu0 %vm885_vm6, %v2276_v22  ;;  %v2026_v22 = vpop.permute.xlu1 %2025  ;;  %v2028_v54 = vpop.permute.xlu0 %2027 }
 0x3cc   : > { %3372 = vmatmul.msk.f32.gmra.mxu1 %vm885_vm6, %v2280_v20  ;;  %v2256_v55 = vsel %vm790_vm4, %v5193_v21, %v2026_v22  ;;  %v2257_v28 = vsel %vm790_vm4, %v6161_v26, %v2028_v54 }
 0x3cd   : > { %v2286_v5 = vsel %vm821_vm5, %v2256_v55, %v2191_v63 }
 0x3ce   : > { %v5406_v57 = vpop.f32.mrf.mxu3 }
 0x3d0   : > { %v5408_v41 = vpop.f32.mrf.mxu0 }
 0x3d1   : > { %v5410_v49 = vpop.f32.mrf.mxu1  ;;  %v2036_v22 = vpop.permute.xlu2 %2035 }
 0x3d3   : > { %3306 = vmatmul.msk.f32.gmra.mxu3 %vm885_vm6, %v2280_v20  ;;  %3338 = vmatmul.msk.f32.gmra.mxu0 %vm885_vm6, %v2277_v11  ;;  %v2195_v32 = vpop.permute.xlu0 %2194 }
 0x3d4   : > { %3373 = vmatmul.msk.f32.gmra.mxu1 %vm885_vm6, %v2281_v3  ;;  %v2288_v39 = vsel %vm821_vm5, %v2258_v4, %v2195_v32 }
 0x3d6   : > { %v5418_v48 = vpop.f32.mrf.mxu3 }
 0x3d8   : > { %v5420_v18 = vpop.f32.mrf.mxu0 }
 0x3d9   : > { %v5422_v44 = vpop.f32.mrf.mxu1  ;;  %v2313_v4 = vpop.permute.xlu2 %2312 }
 0x3db   : > { %3307 = vmatmul.msk.f32.gmra.mxu3 %vm885_vm6, %v2281_v3  ;;  %3339 = vmatmul.msk.f32.gmra.mxu0 %vm885_vm6, %v2278_v36  ;;  %v2193_v36 = vpop.permute.xlu1 %2192 }
 0x3dc   : > { %3374 = vmatmul.msk.f32.gmra.mxu1 %vm885_vm6, %v2282_v56  ;;  %v2287_v43 = vsel %vm821_vm5, %v2257_v28, %v2193_v36  ;;  %v2261_v28 = vsel %vm790_vm4, %v5022_v2, %v2036_v22 }
 0x3de   : > { %v5430_v12 = vpop.f32.mrf.mxu3 }
 0x3e0   : > { %v5434_v7 = vpop.f32.mrf.mxu0 }
 0x3e1   : > { %v5436_v60 = vpop.f32.mrf.mxu1 }
 0x3e3   : > { %3308 = vmatmul.msk.f32.gmra.mxu3 %vm885_vm6, %v2282_v56  ;;  %3340 = vmatmul.msk.f32.gmra.mxu0 %vm885_vm6, %v2279_v6 }
 0x3e4   : > { %3375 = vmatmul.msk.f32.gmra.mxu1 %vm885_vm6, %v2283_v0 }
 0x3e6   : > { %v5442_v24 = vpop.f32.mrf.mxu3 }
 0x3e8   : > { %v5444_v58 = vpop.f32.mrf.mxu0 }
 0x3e9   : > { %v5446_v29 = vpop.f32.mrf.mxu1 }
 0x3eb   : > { %3309 = vmatmul.msk.f32.gmra.mxu3 %vm885_vm6, %v2283_v0  ;;  %3341 = vmatmul.msk.f32.gmra.mxu0 %vm885_vm6, %v2280_v20 }
 0x3ec   : > { %3376 = vmatmul.msk.f32.gmra.mxu1 %vm885_vm6, %v2284_v27 }
 0x3ee   : > { %v5454_v10 = vpop.f32.mrf.mxu3 }
 0x3f0   : > { %v5456_v42 = vpop.f32.mrf.mxu0 }
 0x3f1   : > { %v5458_v15 = vpop.f32.mrf.mxu1 }
 0x3f3   : > { %3310 = vmatmul.msk.f32.gmra.mxu3 %vm885_vm6, %v2284_v27  ;;  %3342 = vmatmul.msk.f32.gmra.mxu0 %vm885_vm6, %v2281_v3  ;;  %v2032_v3 = vpop.permute.xlu1 %2031 }
 0x3f4   : > { %3377 = vmatmul.msk.f32.gmra.mxu1 %vm885_vm6, %v2285_v1  ;;  %v2259_v53 = vsel %vm790_vm4, %v4997_v46, %v2032_v3 }
 0x3f5   : > { %v2289_v47 = vsel %vm821_vm5, %v2259_v53, %v2197_v23 }
 0x3f6   : > { %v5466_v9 = vpop.f32.mrf.mxu3 }
 0x3f8   : > { %v5470_v34 = vpop.f32.mrf.mxu0 }
 0x3f9   : > { %v5472_v11 = vpop.f32.mrf.mxu1 }
 0x3fb   : > { %3311 = vmatmul.msk.f32.gmra.mxu3 %vm885_vm6, %v2285_v1  ;;  %3343 = vmatmul.msk.f32.gmra.mxu0 %vm885_vm6, %v2282_v56  ;;  %v2199_v52 = vpop.permute.xlu1 %2198 }
 0x3fc   : > { %3378 = vmatmul.msk.f32.gmra.mxu1 %vm885_vm6, %v2286_v5 }
 0x3fe   : > { %v5478_v13 = vpop.f32.mrf.mxu3 }
 0x400   : > { %v5480_v50 = vpop.f32.mrf.mxu0 }
 0x401   : > { %v5482_v21 = vpop.f32.mrf.mxu1 }
 0x403   : > { %3312 = vmatmul.msk.f32.gmra.mxu3 %vm885_vm6, %v2286_v5  ;;  %3344 = vmatmul.msk.f32.gmra.mxu0 %vm885_vm6, %v2283_v0  ;;  %v2034_v0 = vpop.permute.xlu0 %2033 }
 0x404   : > { %3379 = vmatmul.msk.f32.gmra.mxu1 %vm885_vm6, %v2287_v43  ;;  %v2260_v16 = vsel %vm790_vm4, %v5252_v61, %v2034_v0 }
 0x405   : > { %v2290_v38 = vsel %vm821_vm5, %v2260_v16, %v2199_v52 }
 0x406   : > { %v2465_v6 = vpop.f32.mrf.mxu3 }
 0x408   : > { %v2581_v37 = vpop.f32.mrf.mxu0 }
 0x409   : > { %v2582_v20 = vadd.f32 %v2581_v37, %v2465_v6  ;;  %v2700_v62 = vpop.f32.mrf.mxu1 }
 0x40b   : > { %v5493_v26 = vadd.f32 %v2700_v62, %v2582_v20  ;;  %3313 = vmatmul.msk.f32.gmra.mxu3 %vm885_vm6, %v2287_v43  ;;  %3345 = vmatmul.msk.f32.gmra.mxu0 %vm885_vm6, %v2284_v27  ;;  %v2201_v55 = vpop.permute.xlu0 %2200 }
 0x40c   : > { %3380 = vmatmul.msk.f32.gmra.mxu1 %vm885_vm6, %v2288_v39  ;;  %v2291_v61 = vsel %vm821_vm5, %v2261_v28, %v2201_v55 }
 0x40e   : > { %v2468_v40 = vpop.f32.mrf.mxu3 }
 0x410   : > { %v2584_v31 = vpop.f32.mrf.mxu0 }
 0x411   : > { %v2585_v56 = vadd.f32 %v2584_v31, %v2468_v40  ;;  %v2703_v30 = vpop.f32.mrf.mxu1 }
 0x413   : > { %v5500_v19 = vadd.f32 %v2703_v30, %v2585_v56  ;;  %3314 = vmatmul.msk.f32.gmra.mxu3 %vm885_vm6, %v2288_v39  ;;  %3346 = vmatmul.msk.f32.gmra.mxu0 %vm885_vm6, %v2285_v1  ;;  %v2304_v40 = vpop.permute.xlu0 %2303 }
 0x414   : > { %3381 = vmatmul.msk.f32.gmra.mxu1 %vm885_vm6, %v2289_v47  ;;  %v2319_v30 = vsel %vm790_vm4, %v6175_v33, %v2304_v40 }
 0x416   : > { %v2471_v25 = vpop.f32.mrf.mxu3 }
 0x418   : > { %v2587_v8 = vpop.f32.mrf.mxu0 }
 0x419   : > { %v2588_v27 = vadd.f32 %v2587_v8, %v2471_v25  ;;  %v2706_v46 = vpop.f32.mrf.mxu1 }
 0x41b   : > { %v5509_v59 = vadd.f32 %v2706_v46, %v2588_v27  ;;  %3315 = vmatmul.msk.f32.gmra.mxu3 %vm885_vm6, %v2289_v47  ;;  %3347 = vmatmul.msk.f32.gmra.mxu0 %vm885_vm6, %v2286_v5  ;;  %v2302_v5 = vpop.permute.xlu1 %2301 }
 0x41c   : > { %3382 = vmatmul.msk.f32.gmra.mxu1 %vm885_vm6, %v2290_v38  ;;  %v2318_v32 = vsel %vm790_vm4, %v5305_v45, %v2302_v5 }
 0x41d   : > { %v2320_v3 = vsel %vm821_vm5, %v2318_v32, %v2313_v4 }
 0x41e   : > { %v2474_v1 = vpop.f32.mrf.mxu3 }
 0x420   : > { %v2590_v63 = vpop.f32.mrf.mxu0 }
 0x421   : > { %v2591_v54 = vadd.f32 %v2590_v63, %v2474_v1  ;;  %v2709_v36 = vpop.f32.mrf.mxu1 }
 0x423   : > { %v5517_v6 = vadd.f32 %v2709_v36, %v2591_v54  ;;  %3316 = vmatmul.msk.f32.gmra.mxu3 %vm885_vm6, %v2290_v38  ;;  %3348 = vmatmul.msk.f32.gmra.mxu0 %vm885_vm6, %v2287_v43  ;;  %v2315_v53 = vpop.permute.xlu1 %2314 }
 0x424   : > { %3383 = vmatmul.msk.f32.gmra.mxu1 %vm885_vm6, %v2291_v61  ;;  %v2321_v23 = vsel %vm821_vm5, %v2319_v30, %v2315_v53 }
 0x426   : > { %v2477_v17 = vpop.f32.mrf.mxu3 }
 0x428   : > { %v2593_v37 = vpop.f32.mrf.mxu0 }
 0x429   : > { %v2594_v20 = vadd.f32 %v2593_v37, %v2477_v17  ;;  %v2712_v62 = vpop.f32.mrf.mxu1 }
 0x42b   : > { %v5524_v2 = vadd.f32 %v2712_v62, %v2594_v20  ;;  %3317 = vmatmul.msk.f32.gmra.mxu3 %vm885_vm6, %v2291_v61  ;;  %3349 = vmatmul.msk.f32.gmra.mxu0 %vm885_vm6, %v2288_v39 }
 0x42c   : > { %3384 = vmatmul.msk.f32.gmra.mxu1 %vm885_vm6, %v2320_v3 }
 0x42e   : > { %v2480_v43 = vpop.f32.mrf.mxu3 }
 0x430   : > { %v2596_v31 = vpop.f32.mrf.mxu0 }
 0x431   : > { %v2597_v56 = vadd.f32 %v2596_v31, %v2480_v43  ;;  %v2715_v45 = vpop.f32.mrf.mxu1 }
 0x433   : > { %v5533_v0 = vadd.f32 %v2715_v45, %v2597_v56  ;;  %3318 = vmatmul.msk.f32.gmra.mxu3 %vm885_vm6, %v2320_v3  ;;  %3350 = vmatmul.msk.f32.gmra.mxu0 %vm885_vm6, %v2289_v47 }
 0x434   : > { %3385 = vmatmul.msk.f32.gmra.mxu1 %vm885_vm6, %v2321_v23 }
 0x436   : > { %v2483_v39 = vpop.f32.mrf.mxu3 }
 0x438   : > { %v2599_v25 = vpop.f32.mrf.mxu0 }
 0x439   : > { %v2600_v52 = vadd.f32 %v2599_v25, %v2483_v39  ;;  %v2718_v8 = vpop.f32.mrf.mxu1 }
 0x43b   : > { %v5538_v27 = vadd.f32 %v2718_v8, %v2600_v52  ;;  %3319 = vmatmul.msk.f32.gmra.mxu3 %vm885_vm6, %v2321_v23  ;;  %3351 = vmatmul.msk.f32.gmra.mxu0 %vm885_vm6, %v2290_v38 }
 0x43c   : > { %3386 = vmatmul.msk.f32.gmra.mxu1 %vm885_vm6, %v2290_v38 }
 0x43e   : > { %v2486_v33 = vpop.f32.mrf.mxu3 }
 0x440   : > { %v2602_v46 = vpop.f32.mrf.mxu0 }
 0x441   : > { %v2603_v16 = vadd.f32 %v2602_v46, %v2486_v33  ;;  %v2721_v1 = vpop.f32.mrf.mxu1 }
 0x443   : > { %v5543_v22 = vadd.f32 %v2721_v1, %v2603_v16  ;;  %3352 = vmatmul.msk.f32.gmra.mxu0 %vm885_vm6, %v2291_v61  ;;  %v2561_v1 = vadd.f32 %v5408_v41, %v5406_v57 }
 0x444   : > { %3387 = vmatmul.msk.f32.gmra.mxu1 %vm885_vm6, %v2291_v61 }
 0x446   : > { %v2489_v47 = vpop.f32.mrf.mxu3 }
 0x448   : > { %v2605_v55 = vpop.f32.mrf.mxu0 }
 0x449   : > { %v2606_v63 = vadd.f32 %v2605_v55, %v2489_v47  ;;  %v2724_v54 = vpop.f32.mrf.mxu1  ;;  %v2558_v47 = vadd.f32 %v5396_v14, %v5394_v51  ;;  %v2570_v14 = vadd.f32 %v5444_v58, %v5442_v24 }
 0x44b   : > { %v5547_v36 = vadd.f32 %v2724_v54, %v2606_v63  ;;  %v2564_v63 = vadd.f32 %v5420_v18, %v5418_v48  ;;  %v5578_v54 = vadd.f32 %v5410_v49, %v2561_v1  ;;  %v5587_v57 = vadd.f32 %v5398_v35, %v2558_v47 }
 0x44c   : > { %v2573_v48 = vadd.f32 %v5456_v42, %v5454_v10 }
 0x44d   : > { %v5590_v51 = vadd.f32 %v5422_v44, %v2564_v63  ;;  %v2874_v41 = vmul.f32 %v5578_v54, %v5578_v54  ;;  %v2873_v18 = vmul.f32 %v5587_v57, %v5587_v57  ;;  %v2805_v44 = vsel %vm790_vm4, %v5578_v54, 0.0 }
 0x44e   : > { %v2492_v28 = vpop.f32.mrf.mxu3  ;;  %v2804_v24 = vsel %vm790_vm4, %v5587_v57, 0.0 }
 0x44f   : > { %v2906_v58 = vsel %vm790_vm4, %v2874_v41, 0.0  ;;  %v2807_v42 = vsel %vm790_vm4, %v5590_v51, 0.0 }
 0x450   : > { %v2608_v5 = vpop.f32.mrf.mxu0 }
 0x451   : > { %v2609_v17 = vadd.f32 %v2608_v5, %v2492_v28  ;;  %v2727_v38 = vpop.f32.mrf.mxu1  ;;  %v2567_v5 = vadd.f32 %v5434_v7, %v5430_v12  ;;  %v2875_v12 = vmul.f32 %v5590_v51, %v5590_v51  ;;  %v5610_v7 = vadd.f32 %v5446_v29, %v2570_v14 }
 0x452   : > { %v2579_v29 = vadd.f32 %v5480_v50, %v5478_v13 }
 0x453   : > { %v5549_v32 = vadd.f32 %v2727_v38, %v2609_v17  ;;  %v5597_v49 = vadd.f32 %v5436_v60, %v2567_v5  ;;  %v2576_v60 = vadd.f32 %v5470_v34, %v5466_v9  ;;  %v2905_v34 = vsel %vm790_vm4, %v2873_v18, 0.0 }
 0x454   : > { %v2811_v50 = vsel %vm790_vm4, %v5610_v7, 0.0 }
 0x455   : > { %v2876_v38 = vmul.f32 %v5597_v49, %v5597_v49 }
 0x456   : > { %v2495_v37 = vpop.f32.mrf.mxu3 }
 0x457   : > { %v2910_v13 = vsel %vm790_vm4, %v2876_v38, 0.0 }
 0x458   : > { %v2611_v20 = vpop.f32.mrf.mxu0 }
 0x459   : > { %v2612_v62 = vadd.f32 %v2611_v20, %v2495_v37  ;;  %v2730_v4 = vpop.f32.mrf.mxu1  ;;  %v5624_v37 = vadd.f32 %v5458_v15, %v2573_v48  ;;  %v2806_v20 = vadd.f32 %v2805_v44, %v2804_v24  ;;  %v2907_v15 = vadd.f32 %v2906_v58, %v2905_v34 }
 0x45a   : > { %v2881_v58 = vmul.f32 %v5493_v26, %v5493_v26  ;;  %v2819_v34 = vsel %vm790_vm4, %v5493_v26, 0.0 }
 0x45b   : > { %v5551_v3 = vadd.f32 %v2730_v4, %v2612_v62  ;;  %v2908_v62 = vsel %vm790_vm4, %v2875_v12, 0.0  ;;  %v2809_v4 = vsel %vm790_vm4, %v5597_v49, 0.0  ;;  %v2813_v1 = vsel %vm790_vm4, %v5624_v37, 0.0 }
 0x45e   : > { %v2498_v43 = vpop.f32.mrf.mxu3 }
 0x460   : > { %v2614_v61 = vpop.f32.mrf.mxu0 }
 0x461   : > { %v2615_v40 = vadd.f32 %v2614_v61, %v2498_v43  ;;  %v2733_v53 = vpop.f32.mrf.mxu1  ;;  %v2877_v43 = vmul.f32 %v5610_v7, %v5610_v7  ;;  %v5637_v61 = vadd.f32 %v5472_v11, %v2576_v60 }
 0x463   : > { %v5553_v31 = vadd.f32 %v2733_v53, %v2615_v40  ;;  %v2808_v40 = vadd.f32 %v2807_v42, %v2806_v20  ;;  %v2878_v53 = vmul.f32 %v5624_v37, %v5624_v37  ;;  %v2912_v11 = vsel %vm790_vm4, %v2877_v43, 0.0 }
 0x464   : > { %v2879_v47 = vmul.f32 %v5637_v61, %v5637_v61  ;;  %v2882_v20 = vmul.f32 %v5500_v19, %v5500_v19 }
 0x465   : > { %v2914_v41 = vsel %vm790_vm4, %v2878_v53, 0.0 }
 0x466   : > { %v2501_v56 = vpop.f32.mrf.mxu3  ;;  %v2916_v60 = vsel %vm790_vm4, %v2879_v47, 0.0 }
 0x468   : > { %v2617_v45 = vpop.f32.mrf.mxu0 }
 0x469   : > { %v2618_v30 = vadd.f32 %v2617_v45, %v2501_v56  ;;  %v2736_v23 = vpop.f32.mrf.mxu1  ;;  %v5645_v56 = vadd.f32 %v5482_v21, %v2579_v29  ;;  %v2909_v45 = vadd.f32 %v2908_v62, %v2907_v15  ;;  %v2815_v21 = vsel %vm790_vm4, %v5637_v61, 0.0 }
 0x46a   : > { %v2920_v15 = vsel %vm790_vm4, %v2881_v58, 0.0  ;;  %v2886_v58 = vmul.f32 %v5533_v0, %v5533_v0 }
 0x46b   : > { %v5555_v39 = vadd.f32 %v2736_v23, %v2618_v30  ;;  %v2810_v30 = vadd.f32 %v2809_v4, %v2808_v40  ;;  %v2911_v63 = vadd.f32 %v2910_v13, %v2909_v45  ;;  %v2880_v48 = vmul.f32 %v5645_v56, %v5645_v56 }
 0x46c   : > { %v2817_v24 = vsel %vm790_vm4, %v5645_v56, 0.0  ;;  %v2821_v40 = vsel %vm790_vm4, %v5500_v19, 0.0  ;;  %v2883_v13 = vmul.f32 %v5509_v59, %v5509_v59 }
 0x46d   : > { %v2812_v5 = vadd.f32 %v2811_v50, %v2810_v30  ;;  %v2913_v44 = vadd.f32 %v2912_v11, %v2911_v63  ;;  %v2918_v29 = vsel %vm790_vm4, %v2880_v48, 0.0  ;;  %v2922_v30 = vsel %vm790_vm4, %v2882_v20, 0.0 }
 0x46e   : > { %v5557_v25 = vpop.f32.mrf.mxu3  ;;  %v2823_v11 = vsel %vm790_vm4, %v5509_v59, 0.0  ;;  %v2885_v48 = vmul.f32 %v5524_v2, %v5524_v2  ;;  %v2829_v20 = vsel %vm790_vm4, %v5533_v0, 0.0 }
 0x46f   : > { %v2814_v12 = vadd.f32 %v2813_v1, %v2812_v5  ;;  %v2915_v42 = vadd.f32 %v2914_v41, %v2913_v44  ;;  %v2884_v1 = vmul.f32 %v5517_v6, %v5517_v6  ;;  %v2924_v41 = vsel %vm790_vm4, %v2883_v13, 0.0 }
 0x470   : > { %v5559_v52 = vpop.f32.mrf.mxu0  ;;  %v2930_v13 = vsel %vm790_vm4, %v2886_v58, 0.0 }
 0x471   : > { %v5561_v8 = vpop.f32.mrf.mxu1  ;;  %v2816_v38 = vadd.f32 %v2815_v21, %v2814_v12  ;;  %v2917_v62 = vadd.f32 %v2916_v60, %v2915_v42  ;;  %v2825_v21 = vsel %vm790_vm4, %v5517_v6, 0.0  ;;  %v2926_v60 = vsel %vm790_vm4, %v2884_v1, 0.0 }
 0x473   : > { %v2818_v4 = vadd.f32 %v2817_v24, %v2816_v38  ;;  %v2919_v50 = vadd.f32 %v2918_v29, %v2917_v62  ;;  %v2827_v24 = vsel %vm790_vm4, %v5524_v2, 0.0  ;;  %v2887_v62 = vmul.f32 %v5538_v27, %v5538_v27 }
 0x475   : > { %v2820_v53 = vadd.f32 %v2819_v34, %v2818_v4  ;;  %v2921_v63 = vadd.f32 %v2920_v15, %v2919_v50  ;;  %v2928_v34 = vsel %vm790_vm4, %v2885_v48, 0.0  ;;  %v2831_v50 = vsel %vm790_vm4, %v5538_v27, 0.0 }
 0x476   : > { %v5563_v33 = vpop.f32.mrf.mxu3 }
 0x477   : > { %v2822_v5 = vadd.f32 %v2821_v40, %v2820_v53  ;;  %v2923_v44 = vadd.f32 %v2922_v30, %v2921_v63  ;;  %v2888_v53 = vmul.f32 %v5543_v22, %v5543_v22  ;;  %v2932_v63 = vsel %vm790_vm4, %v2887_v62, 0.0 }
 0x478   : > { %v5565_v46 = vpop.f32.mrf.mxu0  ;;  %v2837_v62 = vsel %vm790_vm4, %v5549_v32, 0.0 }
 0x479   : > { %v5567_v16 = vpop.f32.mrf.mxu1  ;;  %v2824_v12 = vadd.f32 %v2823_v11, %v2822_v5  ;;  %v2925_v42 = vadd.f32 %v2924_v41, %v2923_v44  ;;  %v2833_v5 = vsel %vm790_vm4, %v5543_v22, 0.0  ;;  %v2889_v41 = vmul.f32 %v5547_v36, %v5547_v36 }
 0x47a   : > { %v2890_v44 = vmul.f32 %v5549_v32, %v5549_v32 }
 0x47b   : > { %v2826_v38 = vadd.f32 %v2825_v21, %v2824_v12  ;;  %v2927_v4 = vadd.f32 %v2926_v60, %v2925_v42  ;;  %v2934_v12 = vsel %vm790_vm4, %v2888_v53, 0.0  ;;  %v2835_v60 = vsel %vm790_vm4, %v5547_v36, 0.0 }
 0x47d   : > { %v2828_v15 = vadd.f32 %v2827_v24, %v2826_v38  ;;  %v2929_v11 = vadd.f32 %v2928_v34, %v2927_v4  ;;  %v2621_v24 = vadd.f32 %v5559_v52, %v5557_v25  ;;  %v2624_v38 = vadd.f32 %v5565_v46, %v5563_v33 }
 0x47e   : > { %v5573_v55 = vpop.f32.mrf.mxu3  ;;  %v2891_v4 = vmul.f32 %v5551_v3, %v5551_v3  ;;  %v2839_v25 = vsel %vm790_vm4, %v5551_v3, 0.0  ;;  %v2892_v52 = vmul.f32 %v5553_v31, %v5553_v31 }
 0x47f   : > { %v2830_v1 = vadd.f32 %v2829_v20, %v2828_v15  ;;  %v2931_v21 = vadd.f32 %v2930_v13, %v2929_v11  ;;  %v2936_v20 = vsel %vm790_vm4, %v2889_v41, 0.0  ;;  %v5738_v33 = vadd.f32 %v5561_v8, %v2621_v24 }
 0x480   : > { %v5580_v28 = vpop.f32.mrf.mxu0  ;;  %v2940_v41 = vsel %vm790_vm4, %v2891_v4, 0.0 }
 0x481   : > { %v5584_v17 = vpop.f32.mrf.mxu1  ;;  %v2832_v48 = vadd.f32 %v2831_v50, %v2830_v1  ;;  %v2933_v58 = vadd.f32 %v2932_v63, %v2931_v21  ;;  %v2938_v50 = vsel %vm790_vm4, %v2890_v44, 0.0  ;;  %v2627_v46 = vadd.f32 %v5580_v28, %v5573_v55 }
 0x482   : > { %v2841_v21 = vsel %vm790_vm4, %v5553_v31, 0.0  ;;  %v2942_v28 = vsel %vm790_vm4, %v2892_v52, 0.0 }
 0x483   : > { %v2834_v42 = vadd.f32 %v2833_v5, %v2832_v48  ;;  %v2935_v15 = vadd.f32 %v2934_v12, %v2933_v58  ;;  %v5743_v5 = vadd.f32 %v5567_v16, %v2624_v38  ;;  %v2893_v48 = vmul.f32 %v5555_v39, %v5555_v39 }
 0x484   : > { %v2843_v16 = vsel %vm790_vm4, %v5555_v39, 0.0  ;;  %v5760_v24 = vadd.f32 %v5584_v17, %v2627_v46 }
 0x485   : > { %v2836_v13 = vadd.f32 %v2835_v60, %v2834_v42  ;;  %v2937_v1 = vadd.f32 %v2936_v20, %v2935_v15  ;;  %v2894_v60 = vmul.f32 %v5738_v33, %v5738_v33  ;;  %v2944_v38 = vsel %vm790_vm4, %v2893_v48, 0.0 }
 0x486   : > { %v5603_v35 = vpop.f32.mrf.mxu3 }
 0x487   : > { %v2838_v63 = vadd.f32 %v2837_v62, %v2836_v13  ;;  %v2939_v44 = vadd.f32 %v2938_v50, %v2937_v1  ;;  %v2946_v13 = vsel %vm790_vm4, %v2894_v60, 0.0  ;;  %v2847_v50 = vsel %vm790_vm4, %v5743_v5, 0.0 }
 0x488   : > { %v5617_v10 = vpop.f32.mrf.mxu0 }
 0x489   : > { %v5628_v9 = vpop.f32.mrf.mxu1  ;;  %v2630_v8 = vadd.f32 %v5617_v10, %v5603_v35  ;;  %v2840_v12 = vadd.f32 %v2839_v25, %v2838_v63  ;;  %v2941_v58 = vadd.f32 %v2940_v41, %v2939_v44  ;;  %v2895_v35 = vmul.f32 %v5743_v5, %v5743_v5 }
 0x48a   : > { %v2896_v25 = vmul.f32 %v5760_v24, %v5760_v24 }
 0x48b   : > { %v2842_v42 = vadd.f32 %v2841_v21, %v2840_v12  ;;  %v2943_v62 = vadd.f32 %v2942_v28, %v2941_v58 }
 0x48d   : > { %v2844_v17 = vadd.f32 %v2843_v16, %v2842_v42  ;;  %v2945_v46 = vadd.f32 %v2944_v38, %v2943_v62 }
 0x48e   : > { %v5647_v23 = vpop.f32.mrf.mxu3 }
 0x48f   : > { %v2947_v21 = vadd.f32 %v2946_v13, %v2945_v46 }
 0x490   : > { %v5654_v14 = vpop.f32.mrf.mxu0 }
 0x491   : > { %v5661_v18 = vpop.f32.mrf.mxu1  ;;  %v2633_v55 = vadd.f32 %v5654_v14, %v5647_v23  ;;  %v2845_v23 = vsel %vm790_vm4, %v5738_v33, 0.0  ;;  %v5768_v14 = vadd.f32 %v5628_v9, %v2630_v8 }
 0x492   : > { %v2846_v1 = vadd.f32 %v2845_v23, %v2844_v17 }
 0x493   : > { %v5773_v4 = vadd.f32 %v5661_v18, %v2633_v55  ;;  %v2849_v18 = vsel %vm790_vm4, %v5760_v24, 0.0  ;;  %v2851_v8 = vsel %vm790_vm4, %v5768_v14, 0.0 }
 0x494   : > { %v2848_v48 = vadd.f32 %v2847_v50, %v2846_v1 }
 0x496   : > { %v5673_v43 = vpop.f32.mrf.mxu3  ;;  %v2850_v28 = vadd.f32 %v2849_v18, %v2848_v48 }
 0x498   : > { %v5680_v45 = vpop.f32.mrf.mxu0  ;;  %v2852_v42 = vadd.f32 %v2851_v8, %v2850_v28 }
 0x499   : > { %v5687_v47 = vpop.f32.mrf.mxu1  ;;  %v2636_v20 = vadd.f32 %v5680_v45, %v5673_v43  ;;  %v2948_v43 = vsel %vm790_vm4, %v2895_v35, 0.0  ;;  %v2897_v45 = vmul.f32 %v5768_v14, %v5768_v14 }
 0x49a   : > { %v2949_v55 = vadd.f32 %v2948_v43, %v2947_v21 }
 0x49b   : > { %v5787_v63 = vadd.f32 %v5687_v47, %v2636_v20  ;;  %v2952_v47 = vsel %vm790_vm4, %v2897_v45, 0.0 }
 0x49e   : > { %v5699_v29 = vpop.f32.mrf.mxu3 }
 0x4a0   : > { %v2638_v40 = vpop.f32.mrf.mxu0 }
 0x4a1   : > { %v5711_v30 = vpop.f32.mrf.mxu1  ;;  %v2639_v9 = vadd.f32 %v2638_v40, %v5699_v29  ;;  %v2898_v29 = vmul.f32 %v5773_v4, %v5773_v4  ;;  %v2950_v40 = vsel %vm790_vm4, %v2896_v25, 0.0 }
 0x4a2   : > { %v2951_v58 = vadd.f32 %v2950_v40, %v2949_v55 }
 0x4a3   : > { %v5795_v44 = vadd.f32 %v5711_v30, %v2639_v9  ;;  %v2954_v35 = vsel %vm790_vm4, %v2898_v29, 0.0 }
 0x4a4   : > { %v2953_v17 = vadd.f32 %v2952_v47, %v2951_v58 }
 0x4a5   : > { %v2900_v38 = vmul.f32 %v5795_v44, %v5795_v44  ;;  %v2857_v13 = vsel %vm790_vm4, %v5795_v44, 0.0 }
 0x4a6   : > { %v2525_v34 = vpop.f32.mrf.mxu3  ;;  %v2955_v9 = vadd.f32 %v2954_v35, %v2953_v17 }
 0x4a7   : > { %v2958_v1 = vsel %vm790_vm4, %v2900_v38, 0.0 }
 0x4a8   : > { %v2641_v53 = vpop.f32.mrf.mxu0 }
 0x4a9   : > { %v2760_v11 = vpop.f32.mrf.mxu1  ;;  %v2642_v41 = vadd.f32 %v2641_v53, %v2525_v34  ;;  %v2853_v34 = vsel %vm790_vm4, %v5773_v4, 0.0  ;;  %v2899_v53 = vmul.f32 %v5787_v63, %v5787_v63 }
 0x4ab   : > { %v5802_v60 = vadd.f32 %v2760_v11, %v2642_v41  ;;  %v2956_v11 = vsel %vm790_vm4, %v2899_v53, 0.0 }
 0x4ac   : > { %v2957_v18 = vadd.f32 %v2956_v11, %v2955_v9 }
 0x4ad   : > { %v2901_v50 = vmul.f32 %v5802_v60, %v5802_v60 }
 0x4ae   : > { %v2528_v10 = vpop.f32.mrf.mxu3  ;;  %v2959_v29 = vadd.f32 %v2958_v1, %v2957_v18 }
 0x4af   : > { %v2960_v41 = vsel %vm790_vm4, %v2901_v50, 0.0 }
 0x4b0   : > { %v2644_v15 = vpop.f32.mrf.mxu0  ;;  %v2961_v47 = vadd.f32 %v2960_v41, %v2959_v29 }
 0x4b1   : > { %v2763_v52 = vpop.f32.mrf.mxu1  ;;  %v2645_v12 = vadd.f32 %v2644_v15, %v2528_v10  ;;  %v2855_v10 = vsel %vm790_vm4, %v5787_v63, 0.0  ;;  %v2854_v15 = vadd.f32 %v2853_v34, %v2852_v42 }
 0x4b3   : > { %v5809_v23 = vadd.f32 %v2763_v52, %v2645_v12  ;;  %v2856_v46 = vadd.f32 %v2855_v10, %v2854_v15  ;;  %v2859_v52 = vsel %vm790_vm4, %v5802_v60, 0.0 }
 0x4b5   : > { %v2902_v43 = vmul.f32 %v5809_v23, %v5809_v23  ;;  %v2858_v45 = vadd.f32 %v2857_v13, %v2856_v46  ;;  %v2861_v21 = vsel %vm790_vm4, %v5809_v23, 0.0 }
 0x4b6   : > { %v2531_v16 = vpop.f32.mrf.mxu3 }
 0x4b7   : > { %v2860_v40 = vadd.f32 %v2859_v52, %v2858_v45  ;;  %v2962_v55 = vsel %vm790_vm4, %v2902_v43, 0.0 }
 0x4b8   : > { %v2647_v30 = vpop.f32.mrf.mxu0  ;;  %v2963_v35 = vadd.f32 %v2962_v55, %v2961_v47 }
 0x4b9   : > { %v2648_v20 = vadd.f32 %v2647_v30, %v2531_v16  ;;  %v2766_v62 = vpop.f32.mrf.mxu1  ;;  %v2862_v34 = vadd.f32 %v2861_v21, %v2860_v40 }
 0x4bb   : > { %v5816_v25 = vadd.f32 %v2766_v62, %v2648_v20 }
 0x4bd   : > { %v2903_v48 = vmul.f32 %v5816_v25, %v5816_v25  ;;  %v2863_v28 = vsel %vm790_vm4, %v5816_v25, 0.0 }
 0x4be   : > { %v2534_v8 = vpop.f32.mrf.mxu3  ;;  %v2864_v30 = vadd.f32 %v2863_v28, %v2862_v34 }
 0x4bf   : > { %v2964_v58 = vsel %vm790_vm4, %v2903_v48, 0.0 }
 0x4c0   : > { %v2650_v12 = vpop.f32.mrf.mxu0  ;;  %v2965_v20 = vadd.f32 %v2964_v58, %v2963_v35 }
 0x4c1   : > { %v2651_v16 = vadd.f32 %v2650_v12, %v2534_v8  ;;  %v2769_v53 = vpop.f32.mrf.mxu1 }
 0x4c3   : > { %v5832_v42 = vadd.f32 %v2769_v53, %v2651_v16 }
 0x4c5   : > { %v2865_v10 = vsel %vm790_vm4, %v5832_v42, 0.0  ;;  %v2904_v38 = vmul.f32 %v5832_v42, %v5832_v42 }
 0x4c6   : > { %v2866_v62 = vadd.f32 %v2865_v10, %v2864_v30 }
 0x4c7   : > { %v2966_v17 = vsel %vm790_vm4, %v2904_v38, 0.0 }
 0x4c8   : > { %v2867_v15 = vrot.slane %v2866_v62, 4  ;;  %v2967_v11 = vadd.f32 %v2966_v17, %v2965_v20 }
 0x4ca   : > { %v2868_v13 = vadd.f32 %v2867_v15, %v2866_v62  ;;  %v2968_v50 = vrot.slane %v2967_v11, 4 }
 0x4cc   : > { %v2869_v9 = vrot.slane %v2868_v13, 2  ;;  %v2969_v46 = vadd.f32 %v2968_v50, %v2967_v11  ;;  %v3410_v50 = vld [vmem:[%s3488_s17] sm:$0xff] }
 0x4ce   : > { %v2870_v1 = vadd.f32 %v2869_v9, %v2868_v13  ;;  %v2970_v52 = vrot.slane %v2969_v46, 2 }
 0x4d0   : > { %v2871_v43 = vrot.slane %v2870_v1, 1  ;;  %v2971_v18 = vadd.f32 %v2970_v52, %v2969_v46  ;;  %v3411_v46 = vld [vmem:[%s3488_s17 + $0x8] sm:$0xff]  ;;  %v3412_v52 = vld [vmem:[%s3488_s17 + $0x10] sm:$0xff] }
 0x4d2   : > { %v2872_v45 = vadd.f32 %v2871_v43, %v2870_v1  ;;  %v2972_v41 = vrot.slane %v2971_v18, 1 }
 0x4d4   : > { %v2973_v21 = vadd.f32 %v2972_v41, %v2971_v18  ;;  %v5839_v48 = vmul.f32 0.00390625, %v2872_v45 }
 0x4d6   : > { %v2975_v29 = vmul.f32 0.00390625, %v2973_v21  ;;  %v2976_v40 = vmul.f32 %v5839_v48, %v5839_v48  ;;  %v2979_v30 = vsub.f32 %v5587_v57, %v5839_v48  ;;  %v2980_v10 = vsub.f32 %v5578_v54, %v5839_v48 }
 0x4d7   : > { %v2981_v38 = vsub.f32 %v5590_v51, %v5839_v48  ;;  %v2982_v20 = vsub.f32 %v5597_v49, %v5839_v48  ;;  %v2983_v62 = vsub.f32 %v5610_v7, %v5839_v48  ;;  %v2984_v54 = vsub.f32 %v5624_v37, %v5839_v48 }
 0x4d8   : > { %v2977_v8 = vsub.f32 %v2975_v29, %v2976_v40  ;;  %v2985_v51 = vsub.f32 %v5637_v61, %v5839_v48  ;;  %v2986_v7 = vsub.f32 %v5645_v56, %v5839_v48  ;;  %v2987_v37 = vsub.f32 %v5493_v26, %v5839_v48  ;;  %v3413_v26 = vld [vmem:[%s3488_s17 + $0x18] sm:$0xff]  ;;  %v3414_v29 = vld [vmem:[%s3488_s17 + $0x20] sm:$0xff] }
 0x4d9   : > { %v2988_v56 = vsub.f32 %v5500_v19, %v5839_v48  ;;  %v2989_v41 = vsub.f32 %v5509_v59, %v5839_v48  ;;  %v2990_v19 = vsub.f32 %v5517_v6, %v5839_v48  ;;  %v2991_v59 = vsub.f32 %v5524_v2, %v5839_v48 }
 0x4da   : > { %v2978_v12 = vmax.f32 %v2977_v8, 0.0  ;;  %v2992_v6 = vsub.f32 %v5533_v0, %v5839_v48  ;;  %v2993_v2 = vsub.f32 %v5538_v27, %v5839_v48  ;;  %v2994_v0 = vsub.f32 %v5543_v22, %v5839_v48 }
 0x4db   : > { %v2995_v27 = vsub.f32 %v5547_v36, %v5839_v48  ;;  %v2996_v22 = vsub.f32 %v5549_v32, %v5839_v48  ;;  %v2997_v36 = vsub.f32 %v5551_v3, %v5839_v48  ;;  %v2998_v32 = vsub.f32 %v5553_v31, %v5839_v48 }
 0x4dc   : > { %v3011_v55 = vadd.f32 1e-05, %v2978_v12  ;;  %v3415_v12 = vld [vmem:[%s3488_s17 + $0x28] sm:$0xff]  ;;  %v2999_v3 = vsub.f32 %v5555_v39, %v5839_v48  ;;  %v3000_v31 = vsub.f32 %v5738_v33, %v5839_v48  ;;  %v3001_v39 = vsub.f32 %v5743_v5, %v5839_v48 }
 0x4dd   : > { %v3002_v33 = vsub.f32 %v5760_v24, %v5839_v48  ;;  %v3003_v5 = vsub.f32 %v5768_v14, %v5839_v48  ;;  %v3004_v24 = vsub.f32 %v5773_v4, %v5839_v48  ;;  %v3005_v14 = vsub.f32 %v5787_v63, %v5839_v48 }
 0x4de   : > { %3408 = vrsqrt.f32 %v3011_v55  ;;  %vm3018_vm11 = vweird.f32 %v3011_v55  ;;  %v3006_v4 = vsub.f32 %v5795_v44, %v5839_v48  ;;  %v3007_v63 = vsub.f32 %v5802_v60, %v5839_v48 }
 0x4df   : > { %v3008_v44 = vsub.f32 %v5809_v23, %v5839_v48  ;;  %v3009_v60 = vsub.f32 %v5816_v25, %v5839_v48  ;;  %v3010_v23 = vsub.f32 %v5832_v42, %v5839_v48  ;;  %v3437_v48 = vld [vmem:[%s3488_s17 + $0xd8] sm:$0xff] }
 0x4e4   : > { %v3409_v28 = vpop.eup %3408 }
 0x4e5   : > { %v3013_v16 = vmul.f32 %v3409_v28, %v3011_v55  ;;  %vm3019_vm10 = vweird.f32 %v3409_v28 }
 0x4e6   : > { %vm3020_vm12 = vmor %vm3018_vm11, %vm3019_vm10 }
 0x4e7   : > { %v3014_v47 = vmul.f32 %v3409_v28, %v3013_v16  ;;  %v3416_v16 = vld [vmem:[%s3488_s17 + $0x30] sm:$0xff] }
 0x4e9   : > { %v3015_v34 = vmul.f32 0.5, %v3014_v47 }
 0x4eb   : > { %v3016_v53 = vsub.f32 1.5, %v3015_v34 }
 0x4ed   : > { %v3017_v58 = vmul.f32 %v3409_v28, %v3016_v53  ;;  %v3417_v53 = vld [vmem:[%s3488_s17 + $0x38] sm:$0xff] }
 0x4ef   : > { %v5843_v35 = vsel %vm3020_vm12, %v3409_v28, %v3017_v58 }
 0x4f0   : > { %v3022_v17 = vmul.f32 %v5843_v35, %v2979_v30  ;;  %v3023_v15 = vmul.f32 %v5843_v35, %v2980_v10  ;;  %v3024_v57 = vmul.f32 %v5843_v35, %v2981_v38  ;;  %v3025_v11 = vmul.f32 %v5843_v35, %v2982_v20  ;;  %v3418_v10 = vld [vmem:[%s3488_s17 + $0x40] sm:$0xff] }
 0x4f1   : > { %v3026_v49 = vmul.f32 %v5843_v35, %v2983_v62  ;;  %v3027_v13 = vmul.f32 %v5843_v35, %v2984_v54  ;;  %v3028_v61 = vmul.f32 %v5843_v35, %v2985_v51  ;;  %v3029_v18 = vmul.f32 %v5843_v35, %v2986_v7  ;;  %v3419_v62 = vld [vmem:[%s3488_s17 + $0x48] sm:$0xff]  ;;  %v3421_v51 = vld [vmem:[%s3488_s17 + $0x58] sm:$0xff] }
 0x4f2   : > { %v3054_v9 = vadd.f32 %v3410_v50, %v3022_v17  ;;  %v3055_v1 = vadd.f32 %v3411_v46, %v3023_v15  ;;  %v3056_v43 = vadd.f32 %v3412_v52, %v3024_v57  ;;  %v3057_v45 = vadd.f32 %v3413_v26, %v3025_v11  ;;  %v3420_v57 = vld [vmem:[%s3488_s17 + $0x50] sm:$0xff]  ;;  %v3423_v50 = vld [vmem:[%s3488_s17 + $0x68] sm:$0xff] }
 0x4f3   : > { %v3030_v21 = vmul.f32 %v5843_v35, %v2987_v37  ;;  %v3058_v40 = vadd.f32 %v3414_v29, %v3026_v49  ;;  %v3031_v8 = vmul.f32 %v5843_v35, %v2988_v56  ;;  %v3059_v55 = vadd.f32 %v3415_v12, %v3027_v13  ;;  %v3422_v37 = vld [vmem:[%s3488_s17 + $0x60] sm:$0xff]  ;;  %v3425_v56 = vld [vmem:[%s3488_s17 + $0x78] sm:$0xff]  ;;  %v3427_v29 = vld [vmem:[%s3488_s17 + $0x88] sm:$0xff] }
 0x4f4   : > { %3086 = vst.msk [vmem:[%s5869_s23] sm:$0xff] %vm790_vm4, %v3054_v9  ;;  %v3032_v28 = vmul.f32 %v5843_v35, %v2989_v41  ;;  %v3060_v47 = vadd.f32 %v3416_v16, %v3028_v61  ;;  %v3033_v34 = vmul.f32 %v5843_v35, %v2990_v19  ;;  %v3061_v58 = vadd.f32 %v3417_v53, %v3029_v18  ;;  %v3431_v53 = vld [vmem:[%s3488_s17 + $0xa8] sm:$0xff] }
 0x4f5   : > { %3087 = vst.msk [vmem:[%s5869_s23 + $0x8] sm:$0xff] %vm790_vm4, %v3055_v1  ;;  %v3034_v30 = vmul.f32 %v5843_v35, %v2991_v59  ;;  %v3062_v38 = vadd.f32 %v3418_v10, %v3030_v21  ;;  %v3035_v20 = vmul.f32 %v5843_v35, %v2992_v6  ;;  %v3063_v17 = vadd.f32 %v3419_v62, %v3031_v8  ;;  %v3424_v1 = vld [vmem:[%s3488_s17 + $0x70] sm:$0xff]  ;;  %v3429_v59 = vld [vmem:[%s3488_s17 + $0x98] sm:$0xff] }
 0x4f6   : > { %3088 = vst.msk [vmem:[%s5869_s23 + $0x10] sm:$0xff] %vm790_vm4, %v3056_v43  ;;  %v3036_v15 = vmul.f32 %v5843_v35, %v2993_v2  ;;  %v3064_v54 = vadd.f32 %v3420_v57, %v3032_v28  ;;  %v3037_v11 = vmul.f32 %v5843_v35, %v2994_v0  ;;  %v3065_v49 = vadd.f32 %v3421_v51, %v3033_v34  ;;  %v3428_v8 = vld [vmem:[%s3488_s17 + $0x90] sm:$0xff]  ;;  %v3433_v0 = vld [vmem:[%s3488_s17 + $0xb8] sm:$0xff]  ;;  %v3435_v57 = vld [vmem:[%s3488_s17 + $0xc8] sm:$0xff] }
 0x4f7   : > { %3089 = vst.msk [vmem:[%s5869_s23 + $0x18] sm:$0xff] %vm790_vm4, %v3057_v45  ;;  %v3038_v7 = vmul.f32 %v5843_v35, %v2995_v27  ;;  %v3066_v13 = vadd.f32 %v3422_v37, %v3034_v30  ;;  %v3039_v61 = vmul.f32 %v5843_v35, %v2996_v22  ;;  %v3067_v9 = vadd.f32 %v3423_v50, %v3035_v20  ;;  %v3426_v45 = vld [vmem:[%s3488_s17 + $0x80] sm:$0xff]  ;;  %v3432_v30 = vld [vmem:[%s3488_s17 + $0xb0] sm:$0xff] }
 0x4f8   : > { %3090 = vst.msk [vmem:[%s5869_s23 + $0x20] sm:$0xff] %vm790_vm4, %v3058_v40  ;;  %v3040_v46 = vmul.f32 %v5843_v35, %v2997_v36  ;;  %v3068_v52 = vadd.f32 %v3424_v1, %v3036_v15  ;;  %v3041_v43 = vmul.f32 %v5843_v35, %v2998_v32  ;;  %v3069_v18 = vadd.f32 %v3425_v56, %v3037_v11  ;;  %v3436_v22 = vld [vmem:[%s3488_s17 + $0xd0] sm:$0xff] }
 0x4f9   : > { %3091 = vst.msk [vmem:[%s5869_s23 + $0x28] sm:$0xff] %vm790_vm4, %v3059_v55  ;;  %v3042_v26 = vmul.f32 %v5843_v35, %v2999_v3  ;;  %v3070_v41 = vadd.f32 %v3426_v45, %v3038_v7  ;;  %v3043_v21 = vmul.f32 %v5843_v35, %v3000_v31  ;;  %v3071_v40 = vadd.f32 %v3427_v29, %v3039_v61  ;;  %v3439_v7 = vld [vmem:[%s3488_s17 + $0xe8] sm:$0xff] }
 0x4fa   : > { %3092 = vst.msk [vmem:[%s5869_s23 + $0x30] sm:$0xff] %vm790_vm4, %v3060_v47  ;;  %v3044_v19 = vmul.f32 %v5843_v35, %v3001_v39  ;;  %v3072_v12 = vadd.f32 %v3428_v8, %v3040_v46  ;;  %v3045_v55 = vmul.f32 %v5843_v35, %v3002_v33  ;;  %v3073_v28 = vadd.f32 %v3429_v59, %v3041_v43  ;;  %v3430_v47 = vld [vmem:[%s3488_s17 + $0xa0] sm:$0xff] }
 0x4fb   : > { %3093 = vst.msk [vmem:[%s5869_s23 + $0x38] sm:$0xff] %vm790_vm4, %v3061_v58  ;;  %v3046_v16 = vmul.f32 %v5843_v35, %v3003_v5  ;;  %v3074_v6 = vadd.f32 %v3430_v47, %v3042_v26  ;;  %v3047_v34 = vmul.f32 %v5843_v35, %v3004_v24  ;;  %v3075_v58 = vadd.f32 %v3431_v53, %v3043_v21 }
 0x4fc   : > { %3094 = vst.msk [vmem:[%s5869_s23 + $0x40] sm:$0xff] %vm790_vm4, %v3062_v38  ;;  %v3048_v2 = vmul.f32 %v5843_v35, %v3005_v14  ;;  %v3076_v10 = vadd.f32 %v3432_v30, %v3044_v19  ;;  %v3049_v38 = vmul.f32 %v5843_v35, %v3006_v4  ;;  %v3077_v20 = vadd.f32 %v3433_v0, %v3045_v55 }
 0x4fd   : > { %3095 = vst.msk [vmem:[%s5869_s23 + $0x48] sm:$0xff] %vm790_vm4, %v3063_v17  ;;  %v3050_v62 = vmul.f32 %v5843_v35, %v3007_v63  ;;  %v3434_v17 = vld [vmem:[%s3488_s17 + $0xc0] sm:$0xff]  ;;  %v3051_v15 = vmul.f32 %v5843_v35, %v3008_v44  ;;  %v3052_v25 = vmul.f32 %v5843_v35, %v3009_v60  ;;  %v3053_v42 = vmul.f32 %v5843_v35, %v3010_v23  ;;  %v3441_v35 = vld [vmem:[%s3488_s17 + $0xf8] sm:$0xff] }
 0x4fe   : > { %3096 = vst.msk [vmem:[%s5869_s23 + $0x50] sm:$0xff] %vm790_vm4, %v3064_v54  ;;  %v3078_v27 = vadd.f32 %v3434_v17, %v3046_v16  ;;  %v3079_v54 = vadd.f32 %v3435_v57, %v3047_v34  ;;  %v3080_v11 = vadd.f32 %v3436_v22, %v3048_v2  ;;  %v3081_v51 = vadd.f32 %v3437_v48, %v3049_v38 }
 0x4ff   : > { %3097 = vst.msk [vmem:[%s5869_s23 + $0x58] sm:$0xff] %vm790_vm4, %v3065_v49  ;;  %v3438_v49 = vld [vmem:[%s3488_s17 + $0xe0] sm:$0xff]  ;;  %v3083_v37 = vadd.f32 %v3439_v7, %v3051_v15  ;;  %v3085_v61 = vadd.f32 %v3441_v35, %v3053_v42 }
 0x500   : > { %3098 = vst.msk [vmem:[%s5869_s23 + $0x60] sm:$0xff] %vm790_vm4, %v3066_v13  ;;  %v3082_v36 = vadd.f32 %v3438_v49, %v3050_v62  ;;  %v3440_v13 = vld [vmem:[%s3488_s17 + $0xf0] sm:$0xff] }
 0x501   : > { %3099 = vst.msk [vmem:[%s5869_s23 + $0x68] sm:$0xff] %vm790_vm4, %v3067_v9  ;;  %v3084_v32 = vadd.f32 %v3440_v13, %v3052_v25 }
 0x502   : > { %3100 = vst.msk [vmem:[%s5869_s23 + $0x70] sm:$0xff] %vm790_vm4, %v3068_v52 }
 0x503   : > { %3101 = vst.msk [vmem:[%s5869_s23 + $0x78] sm:$0xff] %vm790_vm4, %v3069_v18 }
 0x504   : > { %3102 = vst.msk [vmem:[%s5869_s23 + $0x80] sm:$0xff] %vm790_vm4, %v3070_v41 }
 0x505   : > { %3103 = vst.msk [vmem:[%s5869_s23 + $0x88] sm:$0xff] %vm790_vm4, %v3071_v40 }
 0x506   : > { %3104 = vst.msk [vmem:[%s5869_s23 + $0x90] sm:$0xff] %vm790_vm4, %v3072_v12 }
 0x507   : > { %3105 = vst.msk [vmem:[%s5869_s23 + $0x98] sm:$0xff] %vm790_vm4, %v3073_v28 }
 0x508   : > { %3106 = vst.msk [vmem:[%s5869_s23 + $0xa0] sm:$0xff] %vm790_vm4, %v3074_v6 }
 0x509   : > { %3107 = vst.msk [vmem:[%s5869_s23 + $0xa8] sm:$0xff] %vm790_vm4, %v3075_v58 }
 0x50a   : > { %3108 = vst.msk [vmem:[%s5869_s23 + $0xb0] sm:$0xff] %vm790_vm4, %v3076_v10 }
 0x50b   : > { %3109 = vst.msk [vmem:[%s5869_s23 + $0xb8] sm:$0xff] %vm790_vm4, %v3077_v20 }
 0x50c   : > { %3110 = vst.msk [vmem:[%s5869_s23 + $0xc0] sm:$0xff] %vm790_vm4, %v3078_v27 }
 0x50d   : > { %3111 = vst.msk [vmem:[%s5869_s23 + $0xc8] sm:$0xff] %vm790_vm4, %v3079_v54 }
 0x50e   : > { %3112 = vst.msk [vmem:[%s5869_s23 + $0xd0] sm:$0xff] %vm790_vm4, %v3080_v11 }
 0x50f   : > { %3113 = vst.msk [vmem:[%s5869_s23 + $0xd8] sm:$0xff] %vm790_vm4, %v3081_v51 }
 0x510   : > { %3114 = vst.msk [vmem:[%s5869_s23 + $0xe0] sm:$0xff] %vm790_vm4, %v3082_v36 }
 0x511   : > { %3115 = vst.msk [vmem:[%s5869_s23 + $0xe8] sm:$0xff] %vm790_vm4, %v3083_v37 }
 0x512   : > { %3116 = vst.msk [vmem:[%s5869_s23 + $0xf0] sm:$0xff] %vm790_vm4, %v3084_v32 }
 0x513   : > { %3117 = vst.msk [vmem:[%s5869_s23 + $0xf8] sm:$0xff] %vm790_vm4, %v3085_v61 }
 0x514 PF: > { %s13_s12 = sadd.s32 1, %s3448_s12  }
 0x515   : > { %p10_p4 = scmp.ge.s32.totalorder %s13_s12, 4  }
 0x517   :  { %12 = sbr.rel (!%p10_p4) target bundleno = 1 (0x1), region = 66 }

// kernel: tpu_custom_call.1
= control target key start
LH: loop header
LB: loop body
LE: loop exit
PB: predicated region body
PF: predicated region fallthrough
CT: control target
= control target key end

     0   :  { %s3472_s12 = smov 0   ;;  %s6047_s0 = inlined_call_operand.vmem [shape: f32[2,16,16,4], index: 0, kind: input, shape index: {}]   ;;  %s6048_s1 = inlined_call_operand.vmem [shape: f32[3,12,4], index: 1, kind: input, shape index: {}]   ;;  %s6049_s2 = inlined_call_operand.vmem [shape: f32[3,12,4], index: 2, kind: input, shape index: {}]   ;;  %s6050_s3 = inlined_call_operand.vmem [shape: f32[2,16,16,4], index: 3, kind: output, shape index: {}]  }
   0x1 LB: > { %s3173_s13 = sadd.s32 4294967295, %s3448_s12   ;;  %p3177_p0 = scmp.ge.s32.totalorder %s3448_s12, 1  ;;  %s3448_s12 = sphi %s3472_s12, %s13_s12  }
   0x2   : > { %p137_p1 = scmp.lt.s32.totalorder %s3448_s12, 3 }
   0x4   : > { %p138_p2 = pnand %p3177_p0, %p137_p1 }
   0x6   : > { %141 = sbr.rel (%p138_p2) target bundleno = 1300 (0x514), region = 32 }
   0xb   : > { %p161_p3 = scmp.lt.s32.totalorder %s3173_s13, 1  ;;  %vm267_vm0 = vcmask 1040384   ;;  %vm458_vm1 = vcmask 1046528   ;;  %s3450_s18 = smov 4   ;;  %vm624_vm2 = vcmask 1045504   ;;  %vm982_vm3 = vcmask 1043456  }
   0xc   : > { %s3451_s19 = smov 8   ;;  %vm790_vm4 = vcmask 31744   ;;  %vm821_vm5 = vcmask 64512   ;;  %vm885_vm6 = vcmask 97280  }
   0xd   : > { %s6180_s13 = smov (!%p161_p3, %s3173_s13), 1 }
   0xe   : > { %s3390_s14 = sshll.u32 %s6180_s13, 8 }
   0xf   : > { %s3488_s17 = scalar_lea.vmem %s6047_s0, %s3390_s14  ;;  %s5869_s23 = scalar_lea.vmem %s6050_s3, %s3390_s14 }
  0x10   : > { %v187_v0 = vld [vmem:[%s3488_s17 + $0x80] sm:$0xff]  ;;  %v188_v1 = vld [vmem:[%s3488_s17 + $0x88] sm:$0xff]  ;;  %v189_v6 = vld [vmem:[%s3488_s17 + $0x90] sm:$0xff] }
  0x11   : > { %v292_v2 = vrot.slane %v187_v0, 7  ;;  %v293_v3 = vrot.slane %v188_v1, 7  ;;  %v372_v4 = vrot.slane %v188_v1, 5  ;;  %v227_v5 = vrot.slane %v187_v0, 1  ;;  %v190_v7 = vld [vmem:[%s3488_s17 + $0x98] sm:$0xff]  ;;  %v191_v30 = vld [vmem:[%s3488_s17 + $0xa0] sm:$0xff] }
  0x12   : > { %v295_v14 = vrot.slane %v189_v6, 7  ;;  %v296_v15 = vrot.slane %v190_v7, 7  ;;  %v373_v22 = vrot.slane %v190_v7, 5  ;;  %v228_v23 = vrot.slane %v189_v6, 1  ;;  %v192_v31 = vld [vmem:[%s3488_s17 + $0xa8] sm:$0xff]  ;;  %v193_v47 = vld [vmem:[%s3488_s17 + $0xb0] sm:$0xff] }
  0x13   : > { %v3495_v8 = vsel %vm267_vm0, %v292_v2, %v293_v3  ;;  %v420_v9 = vsel %vm267_vm0, %v293_v3, %v372_v4  ;;  %v3499_v10 = vsel %vm267_vm0, %v227_v5, %v292_v2  ;;  %v298_v36 = vrot.slane %v191_v30, 7  ;;  %v194_v48 = vld [vmem:[%s3488_s17 + $0xb8] sm:$0xff]  ;;  %v195_v59 = vld [vmem:[%s3488_s17 + $0xc0] sm:$0xff]  ;;  %v196_v63 = vld [vmem:[%s3488_s17 + $0xc8] sm:$0xff] }
  0x14   : > { %v500_v11 = vrot.slane %v3495_v8, 1  ;;  %v502_v12 = vrot.slane %v420_v9, 1  ;;  %v499_v13 = vrot.slane %v3499_v10, 1  ;;  %v666_v18 = vrot.slane %v3495_v8, 2 }
  0x15   : > { %v668_v19 = vrot.slane %v420_v9, 2  ;;  %v665_v20 = vrot.slane %v3499_v10, 2  ;;  %v3510_v21 = vsel %vm267_vm0, %v295_v14, %v296_v15  ;;  %v3513_v24 = vsel %vm267_vm0, %v228_v23, %v295_v14 }
  0x16   : > { %v503_v16 = vsel %vm458_vm1, %v500_v11, %v502_v12  ;;  %v501_v17 = vsel %vm458_vm1, %v499_v13, %v500_v11  ;;  %v505_v27 = vrot.slane %v3510_v21, 1  ;;  %v504_v28 = vrot.slane %v3513_v24, 1 }
  0x17   : > { %568 = vrot.lane.b32.xlu1 %v503_v16, %s3450_s18  ;;  %566 = vrot.lane.b32.xlu0 %v501_v17, %s3450_s18  ;;  %v669_v25 = vsel %vm624_vm2, %v666_v18, %v668_v19  ;;  %v667_v26 = vsel %vm624_vm2, %v665_v20, %v666_v18  ;;  %v421_v29 = vsel %vm267_vm0, %v296_v15, %v373_v22  ;;  %v671_v33 = vrot.slane %v3510_v21, 2 }
  0x18   : > { %v506_v32 = vsel %vm458_vm1, %v504_v28, %v505_v27  ;;  %v673_v34 = vrot.slane %v421_v29, 2  ;;  %v507_v35 = vrot.slane %v421_v29, 1  ;;  %v299_v37 = vrot.slane %v192_v31, 7  ;;  %v198_v28 = vld [vmem:[%s3488_s17 + $0xd8] sm:$0xff] }
  0x19   : > { %570 = vrot.lane.b32.xlu2 %v506_v32, %s3450_s18  ;;  %v374_v38 = vrot.slane %v192_v31, 5  ;;  %v229_v39 = vrot.slane %v191_v30, 1  ;;  %v670_v40 = vrot.slane %v3513_v24, 2  ;;  %v230_v53 = vrot.slane %v193_v47, 1 }
  0x1a   : > { %v674_v41 = vsel %vm624_vm2, %v671_v33, %v673_v34  ;;  %v508_v42 = vsel %vm458_vm1, %v505_v27, %v507_v35  ;;  %v3531_v43 = vsel %vm267_vm0, %v298_v36, %v299_v37  ;;  %v301_v54 = vrot.slane %v193_v47, 7  ;;  %v197_v27 = vld [vmem:[%s3488_s17 + $0xd0] sm:$0xff]  ;;  %v200_v47 = vld [vmem:[%s3488_s17 + $0xe8] sm:$0xff] }
  0x1b   : > { %v422_v44 = vsel %vm267_vm0, %v299_v37, %v374_v38  ;;  %v3535_v45 = vsel %vm267_vm0, %v229_v39, %v298_v36  ;;  %v672_v46 = vsel %vm624_vm2, %v670_v40, %v671_v33  ;;  %v510_v49 = vrot.slane %v3531_v43, 1 }
  0x1c   : > { %v512_v50 = vrot.slane %v422_v44, 1  ;;  %v675_v51 = vrot.slane %v3535_v45, 2  ;;  %v676_v52 = vrot.slane %v3531_v43, 2  ;;  %v302_v55 = vrot.slane %v194_v48, 7 }
  0x1d   : > { %v509_v56 = vrot.slane %v3535_v45, 1  ;;  %v3554_v61 = vsel %vm267_vm0, %v230_v53, %v301_v54  ;;  %v231_v0 = vrot.slane %v195_v59, 1  ;;  %v304_v5 = vrot.slane %v195_v59, 7 }
  0x1e   : > { %v513_v57 = vsel %vm458_vm1, %v510_v49, %v512_v50  ;;  %v677_v58 = vsel %vm624_vm2, %v675_v51, %v676_v52  ;;  %v3551_v60 = vsel %vm267_vm0, %v301_v54, %v302_v55  ;;  %v680_v1 = vrot.slane %v3554_v61, 2 }
  0x1f   : > { %734 = vrot.lane.b32.xlu1 %v669_v25, %s3451_s19  ;;  %732 = vrot.lane.b32.xlu0 %v667_v26, %s3451_s19  ;;  %v511_v62 = vsel %vm458_vm1, %v509_v56, %v510_v49  ;;  %v681_v2 = vrot.slane %v3551_v60, 2  ;;  %v514_v3 = vrot.slane %v3554_v61, 1  ;;  %v515_v4 = vrot.slane %v3551_v60, 1 }
  0x20   : > { %v305_v6 = vrot.slane %v196_v63, 7  ;;  %v375_v7 = vrot.slane %v194_v48, 5  ;;  %v678_v9 = vrot.slane %v422_v44, 2  ;;  %v3571_v14 = vsel %vm267_vm0, %v231_v0, %v304_v5  ;;  %v199_v44 = vld [vmem:[%s3488_s17 + $0xe0] sm:$0xff]  ;;  %v202_v0 = vld [vmem:[%s3488_s17 + $0xf8] sm:$0xff] }
  0x21   : > { %736 = vrot.lane.b32.xlu2 %v672_v46, %s3451_s19  ;;  %v682_v11 = vsel %vm624_vm2, %v680_v1, %v681_v2  ;;  %v516_v12 = vsel %vm458_vm1, %v514_v3, %v515_v4  ;;  %v519_v17 = vrot.slane %v3571_v14, 1  ;;  %v376_v20 = vrot.slane %v196_v63, 5 }
  0x22   : > { %v3568_v13 = vsel %vm267_vm0, %v304_v5, %v305_v6  ;;  %v423_v15 = vsel %vm267_vm0, %v302_v55, %v375_v7  ;;  %v679_v16 = vsel %vm624_vm2, %v676_v52, %v678_v9  ;;  %v307_v33 = vrot.slane %v197_v27, 7 }
  0x23   : > { %v520_v18 = vrot.slane %v3568_v13, 1  ;;  %v683_v19 = vrot.slane %v423_v15, 2  ;;  %v517_v22 = vrot.slane %v423_v15, 1  ;;  %v424_v26 = vsel %vm267_vm0, %v305_v6, %v376_v20 }
  0x24   : > { %v686_v30 = vrot.slane %v3568_v13, 2  ;;  %v688_v31 = vrot.slane %v424_v26, 2  ;;  %v522_v32 = vrot.slane %v424_v26, 1  ;;  %v308_v34 = vrot.slane %v198_v28, 7 }
  0x25   : > { %v521_v23 = vsel %vm458_vm1, %v519_v17, %v520_v18  ;;  %v684_v25 = vsel %vm624_vm2, %v681_v2, %v683_v19  ;;  %v518_v29 = vsel %vm458_vm1, %v515_v4, %v517_v22  ;;  %v377_v35 = vrot.slane %v198_v28, 5 }
  0x26   : > { %v232_v36 = vrot.slane %v197_v27, 1  ;;  %v685_v37 = vrot.slane %v3571_v14, 2  ;;  %v689_v38 = vsel %vm624_vm2, %v686_v30, %v688_v31  ;;  %v523_v39 = vsel %vm458_vm1, %v520_v18, %v522_v32  ;;  %v174_v31 = vld [vmem:[%s3488_s17 + $0x18] sm:$0xff] }
  0x27   : > { %738 = vrot.lane.b32.xlu1 %v674_v41, %s3451_s19  ;;  %572 = vrot.lane.b32.xlu0 %v508_v42, %s3450_s18  ;;  %v3594_v40 = vsel %vm267_vm0, %v307_v33, %v308_v34  ;;  %v425_v41 = vsel %vm267_vm0, %v308_v34, %v377_v35  ;;  %v233_v52 = vrot.slane %v199_v44, 1  ;;  %v310_v53 = vrot.slane %v199_v44, 7 }
  0x28   : > { %v3598_v42 = vsel %vm267_vm0, %v232_v36, %v307_v33  ;;  %v687_v46 = vsel %vm624_vm2, %v685_v37, %v686_v30  ;;  %v525_v48 = vrot.slane %v3594_v40, 1  ;;  %v527_v49 = vrot.slane %v425_v41, 1  ;;  %v173_v30 = vld [vmem:[%s3488_s17 + $0x10] sm:$0xff] }
  0x29   : > { %574 = vrot.lane.b32.xlu2 %v511_v62, %s3450_s18  ;;  %v690_v50 = vrot.slane %v3598_v42, 2  ;;  %v691_v51 = vrot.slane %v3594_v40, 2  ;;  %v311_v54 = vrot.slane %v200_v47, 7  ;;  %v524_v55 = vrot.slane %v3598_v42, 1  ;;  %v201_v62 = vld [vmem:[%s3488_s17 + $0xf0] sm:$0xff] }
  0x2a   : > { %v528_v56 = vsel %vm458_vm1, %v525_v48, %v527_v49  ;;  %v234_v5 = vrot.slane %v201_v62, 1  ;;  %v313_v6 = vrot.slane %v201_v62, 7  ;;  %v314_v7 = vrot.slane %v202_v0, 7 }
  0x2b   : > { %v3616_v59 = vsel %vm267_vm0, %v310_v53, %v311_v54  ;;  %v526_v63 = vsel %vm458_vm1, %v524_v55, %v525_v48  ;;  %v378_v9 = vrot.slane %v200_v47, 5  ;;  %v268_v36 = vrot.slane %v173_v30, 7 }
  0x2c   : > { %v696_v2 = vrot.slane %v3616_v59, 2  ;;  %v530_v4 = vrot.slane %v3616_v59, 1  ;;  %v3634_v17 = vsel %vm267_vm0, %v234_v5, %v313_v6  ;;  %v269_v37 = vrot.slane %v174_v31, 7  ;;  %v177_v5 = vld [vmem:[%s3488_s17 + $0x30] sm:$0xff] }
  0x2d   : > { %v426_v18 = vsel %vm267_vm0, %v311_v54, %v378_v9  ;;  %v856_v20 = vrot.slane %v3634_v17, 1 }
  0x2e   : > { %v532_v26 = vrot.slane %v426_v18, 1  ;;  %v3657_v47 = vsel %vm267_vm0, %v268_v36, %v269_v37 }
  0x2f   : > { %576 = vrot.lane.b32.xlu1 %v513_v57, %s3450_s18  ;;  %740 = vrot.lane.b32.xlu0 %v677_v58, %s3451_s19  ;;  %v692_v57 = vsel %vm624_vm2, %v690_v50, %v691_v51  ;;  %v3613_v58 = vsel %vm267_vm0, %v233_v52, %v310_v53  ;;  %v175_v50 = vld [vmem:[%s3488_s17 + $0x20] sm:$0xff]  ;;  %v176_v52 = vld [vmem:[%s3488_s17 + $0x28] sm:$0xff]  ;;  %v460_v53 = vrot.slane %v3657_v47, 1 }
  0x30   : > { %v695_v1 = vrot.slane %v3613_v58, 2  ;;  %v529_v3 = vrot.slane %v3613_v58, 1  ;;  %v533_v32 = vsel %vm458_vm1, %v530_v4, %v532_v26  ;;  %v274_v62 = vrot.slane %v175_v50, 7  ;;  %v3182_v26 = vld [vmem:[%s6048_s1 + $0x10] sm:$0xff] }
  0x31   : > { %742 = vrot.lane.b32.xlu2 %v679_v16, %s3451_s19  ;;  %v3631_v16 = vsel %vm267_vm0, %v313_v6, %v314_v7 }
  0x32   : > { %v531_v15 = vsel %vm458_vm1, %v529_v3, %v530_v4  ;;  %v857_v22 = vrot.slane %v3631_v16, 1  ;;  %v868_v33 = vrot.slane %v3631_v16, 2 }
  0x34   : > { %v858_v27 = vsel %vm458_vm1, %v856_v20, %v857_v22  ;;  %v277_v20 = vrot.slane %v177_v5, 7 }
  0x37   : > { %744 = vrot.lane.b32.xlu1 %v682_v11, %s3451_s19  ;;  %578 = vrot.lane.b32.xlu0 %v516_v12, %s3450_s18  ;;  %v693_v11 = vrot.slane %v425_v41, 2  ;;  %v697_v12 = vsel %vm624_vm2, %v695_v1, %v696_v2  ;;  %v867_v41 = vrot.slane %v3634_v17, 2 }
  0x39   : > { %580 = vrot.lane.b32.xlu2 %v518_v29, %s3450_s18  ;;  %v694_v19 = vsel %vm624_vm2, %v691_v51, %v693_v11  ;;  %v869_v51 = vsel %vm624_vm2, %v867_v41, %v868_v33  ;;  %v3183_v11 = vld [vmem:[%s6048_s1 + $0x18] sm:$0xf] }
  0x3a   : > { %3392 = vmatpush.msk.msra.mxu2 %vm982_vm3, %v3183_v11  ;;  %3184 = vmatpush.msk.msra.mxu0 %vm982_vm3, %v3183_v11  ;;  %v182_v11 = vld [vmem:[%s3488_s17 + $0x58] sm:$0xff] }
  0x3c   : > { %3393 = vmatpush.msra.mxu2 %v3182_v26  ;;  %1001 = vmatpush.msra.mxu0 %v3182_v26 }
  0x3f   : > { %582 = vrot.lane.b32.xlu1 %v521_v23, %s3450_s18  ;;  %746 = vrot.lane.b32.xlu0 %v684_v25, %s3451_s19  ;;  %v698_v23 = vrot.slane %v426_v18, 2  ;;  %v379_v25 = vrot.slane %v202_v0, 5 }
  0x41   : > { %748 = vrot.lane.b32.xlu2 %v687_v46, %s3451_s19  ;;  %v699_v28 = vsel %vm624_vm2, %v696_v2, %v698_v23  ;;  %v427_v29 = vsel %vm267_vm0, %v314_v7, %v379_v25  ;;  %v178_v7 = vld [vmem:[%s3488_s17 + $0x38] sm:$0xff]  ;;  %v366_v23 = vrot.slane %v176_v52, 5 }
  0x42   : > { %v870_v34 = vrot.slane %v427_v29, 2  ;;  %v859_v35 = vrot.slane %v427_v29, 1 }
  0x44   : > { %v871_v44 = vsel %vm624_vm2, %v868_v33, %v870_v34  ;;  %v860_v46 = vsel %vm458_vm1, %v857_v22, %v859_v35  ;;  %v278_v22 = vrot.slane %v178_v7, 7 }
  0x47   : > { %750 = vrot.lane.b32.xlu1 %v689_v38, %s3451_s19  ;;  %584 = vrot.lane.b32.xlu0 %v523_v39, %s3450_s18  ;;  %v364_v38 = vrot.slane %v174_v31, 5  ;;  %v219_v39 = vrot.slane %v173_v30, 1  ;;  %v3706_v30 = vsel %vm267_vm0, %v277_v20, %v278_v22 }
  0x48   : > { %v475_v35 = vrot.slane %v3706_v30, 1 }
  0x49   : > { %586 = vrot.lane.b32.xlu2 %v526_v63, %s3450_s18  ;;  %v412_v48 = vsel %vm267_vm0, %v269_v37, %v364_v38  ;;  %v3661_v49 = vsel %vm267_vm0, %v219_v39, %v268_v36  ;;  %v275_v63 = vrot.slane %v176_v52, 7  ;;  %v367_v37 = vrot.slane %v178_v7, 5 }
  0x4a   : > { %v462_v54 = vrot.slane %v412_v48, 1  ;;  %v625_v55 = vrot.slane %v3661_v49, 2  ;;  %v459_v0 = vrot.slane %v3661_v49, 1  ;;  %v628_v25 = vrot.slane %v412_v48, 2  ;;  %v179_v48 = vld [vmem:[%s3488_s17 + $0x40] sm:$0xff] }
  0x4b   : > { %v3679_v4 = vsel %vm267_vm0, %v274_v62, %v275_v63  ;;  %v641_v52 = vrot.slane %v3706_v30, 2 }
  0x4c   : > { %v463_v1 = vsel %vm458_vm1, %v460_v53, %v462_v54  ;;  %v461_v6 = vsel %vm458_vm1, %v459_v0, %v460_v53  ;;  %v470_v18 = vrot.slane %v3679_v4, 1 }
  0x4f   : > { %588 = vrot.lane.b32.xlu1 %v528_v56, %s3450_s18  ;;  %752 = vrot.lane.b32.xlu0 %v692_v57, %s3451_s19  ;;  %v626_v56 = vrot.slane %v3657_v47, 2  ;;  %v221_v57 = vrot.slane %v175_v50, 1  ;;  %v180_v50 = vld [vmem:[%s3488_s17 + $0x48] sm:$0xff] }
  0x51   : > { %754 = vrot.lane.b32.xlu2 %v694_v19, %s3451_s19  ;;  %v627_v2 = vsel %vm624_vm2, %v625_v55, %v626_v56  ;;  %v3676_v3 = vsel %vm267_vm0, %v221_v57, %v274_v62  ;;  %v222_v19 = vrot.slane %v177_v5, 1  ;;  %v629_v33 = vsel %vm624_vm2, %v626_v56, %v628_v25 }
  0x52   : > { %v635_v9 = vrot.slane %v3676_v3, 2  ;;  %v280_v55 = vrot.slane %v179_v48, 7  ;;  %v281_v56 = vrot.slane %v180_v50, 7  ;;  %v368_v57 = vrot.slane %v180_v50, 5 }
  0x53   : > { %v3709_v31 = vsel %vm267_vm0, %v222_v19, %v277_v20  ;;  %v223_v62 = vrot.slane %v179_v48, 1  ;;  %v284_v25 = vrot.slane %v182_v11, 7 }
  0x54   : > { %v474_v34 = vrot.slane %v3709_v31, 1  ;;  %v3736_v5 = vsel %vm267_vm0, %v280_v55, %v281_v56 }
  0x55   : > { %v3740_v7 = vsel %vm267_vm0, %v223_v62, %v280_v55  ;;  %v646_v20 = vrot.slane %v3736_v5, 2 }
  0x56   : > { %v476_v41 = vsel %vm458_vm1, %v474_v34, %v475_v35  ;;  %v645_v19 = vrot.slane %v3740_v7, 2 }
  0x57   : > { %756 = vrot.lane.b32.xlu1 %v697_v12, %s3451_s19  ;;  %590 = vrot.lane.b32.xlu0 %v531_v15, %s3450_s18  ;;  %v636_v12 = vrot.slane %v3679_v4, 2  ;;  %v469_v15 = vrot.slane %v3676_v3, 1 }
  0x59   : > { %592 = vrot.lane.b32.xlu2 %v533_v32, %s3450_s18  ;;  %v471_v29 = vsel %vm458_vm1, %v469_v15, %v470_v18  ;;  %v414_v32 = vsel %vm267_vm0, %v275_v63, %v366_v23  ;;  %v640_v63 = vrot.slane %v3709_v31, 2  ;;  %v480_v15 = vrot.slane %v3736_v5, 1 }
  0x5a   : > { %v638_v36 = vrot.slane %v414_v32, 2  ;;  %v472_v38 = vrot.slane %v414_v32, 1 }
  0x5f   : > { %861 = vrot.lane.b32.xlu1 %v858_v27, %s3450_s18  ;;  %758 = vrot.lane.b32.xlu0 %v699_v28, %s3451_s19  ;;  %v3251_v27 = vld [vmem:[%s6048_s1 + $0x28] sm:$0xf]  ;;  %v637_v28 = vsel %vm624_vm2, %v635_v9, %v636_v12  ;;  %v181_v9 = vld [vmem:[%s3488_s17 + $0x50] sm:$0xff] }
  0x60   : > { %3252 = vmatpush.msk.msrb.mxu2 %vm982_vm3, %v3251_v27  ;;  %v283_v23 = vrot.slane %v181_v9, 7 }
  0x61   : > { %872 = vrot.lane.b32.xlu2 %v869_v51, %s3451_s19  ;;  %v473_v51 = vsel %vm458_vm1, %v470_v18, %v472_v38  ;;  %v184_v38 = vld [vmem:[%s3488_s17 + $0x68] sm:$0xff] }
  0x62   : > { %v3757_v34 = vsel %vm267_vm0, %v283_v23, %v284_v25  ;;  %v287_v55 = vrot.slane %v184_v38, 7 }
  0x63   : > { %v485_v48 = vrot.slane %v3757_v34, 1 }
  0x67   : > { %874 = vrot.lane.b32.xlu1 %v871_v44, %s3451_s19  ;;  %863 = vrot.lane.b32.xlu0 %v860_v46, %s3450_s18  ;;  %v639_v44 = vsel %vm624_vm2, %v636_v12, %v638_v36  ;;  %v415_v46 = vsel %vm267_vm0, %v278_v22, %v367_v37  ;;  %v642_v12 = vsel %vm624_vm2, %v640_v63, %v641_v52  ;;  %v224_v22 = vrot.slane %v181_v9, 1  ;;  %v183_v36 = vld [vmem:[%s3488_s17 + $0x60] sm:$0xff] }
  0x68   : > { %v643_v53 = vrot.slane %v415_v46, 2  ;;  %v477_v54 = vrot.slane %v415_v46, 1  ;;  %v225_v50 = vrot.slane %v183_v36, 1 }
  0x69   : > { %534 = vrot.lane.b32.xlu2 %v461_v6, %s3450_s18  ;;  %v416_v6 = vsel %vm267_vm0, %v281_v56, %v368_v57  ;;  %v369_v56 = vrot.slane %v182_v11, 5 }
  0x6a   : > { %v482_v18 = vrot.slane %v416_v6, 1  ;;  %v648_v57 = vrot.slane %v416_v6, 2 }
  0x6b   : > { %v417_v6 = vsel %vm267_vm0, %v284_v25, %v369_v56 }
  0x6c   : > { %v483_v32 = vsel %vm458_vm1, %v480_v15, %v482_v18  ;;  %v649_v11 = vsel %vm624_vm2, %v646_v20, %v648_v57  ;;  %v487_v25 = vrot.slane %v417_v6, 1 }
  0x6f   : > { %536 = vrot.lane.b32.xlu1 %v463_v1, %s3450_s18  ;;  %700 = vrot.lane.b32.xlu0 %v627_v2, %s3451_s19  ;;  %v644_v1 = vsel %vm624_vm2, %v641_v52, %v643_v53  ;;  %v478_v2 = vsel %vm458_vm1, %v475_v35, %v477_v54  ;;  %v3760_v35 = vsel %vm267_vm0, %v224_v22, %v283_v23  ;;  %v370_v22 = vrot.slane %v184_v38, 5  ;;  %v171_v38 = vld [vmem:[%s3488_s17] sm:$0xff] }
  0x70   : > { %v484_v46 = vrot.slane %v3760_v35, 1  ;;  %v220_v56 = vrot.slane %v171_v38, 1  ;;  %v271_v57 = vrot.slane %v171_v38, 7 }
  0x71   : > { %702 = vrot.lane.b32.xlu2 %v629_v33, %s3451_s19  ;;  %v647_v33 = vsel %vm624_vm2, %v645_v19, %v646_v20  ;;  %v653_v19 = vrot.slane %v417_v6, 2 }
  0x73   : > { %v3718_v39 = vpop.permute.xlu2 %570 }
  0x77   : > { %708 = vrot.lane.b32.xlu1 %v637_v28, %s3451_s19  ;;  %542 = vrot.lane.b32.xlu0 %v471_v29, %s3450_s18  ;;  %v479_v28 = vrot.slane %v3740_v7, 1 }
  0x79   : > { %544 = vrot.lane.b32.xlu2 %v473_v51, %s3450_s18  ;;  %v481_v37 = vsel %vm458_vm1, %v479_v28, %v480_v15  ;;  %v286_v51 = vrot.slane %v183_v36, 7  ;;  %v186_v36 = vld [vmem:[%s3488_s17 + $0x78] sm:$0xff] }
  0x7b   : > { %v3731_v0 = vpop.permute.xlu2 %736  ;;  %v3784_v9 = vsel %vm267_vm0, %v286_v51, %v287_v55 }
  0x7c   : > { %v490_v18 = vrot.slane %v3784_v9, 1 }
  0x7f   : > { %546 = vrot.lane.b32.xlu1 %v476_v41, %s3450_s18  ;;  %710 = vrot.lane.b32.xlu0 %v639_v44, %s3451_s19  ;;  %v650_v41 = vrot.slane %v3760_v35, 2  ;;  %v651_v44 = vrot.slane %v3757_v34, 2 }
  0x81   : > { %712 = vrot.lane.b32.xlu2 %v642_v12, %s3451_s19  ;;  %v654_v28 = vsel %vm624_vm2, %v651_v44, %v653_v19 }
  0x83   : > { %v3752_v29 = vpop.permute.xlu2 %574 }
  0x87   : > { %714 = vrot.lane.b32.xlu1 %v644_v1, %s3451_s19  ;;  %548 = vrot.lane.b32.xlu0 %v478_v2, %s3450_s18  ;;  %v652_v1 = vsel %vm624_vm2, %v650_v41, %v651_v44  ;;  %v486_v2 = vsel %vm458_vm1, %v484_v46, %v485_v48  ;;  %v3813_v41 = vld [vmem:[%s3488_s17 + $0x8] sm:$0xff]  ;;  %v809_v46 = vsel %vm790_vm4, %v3513_v24, %v3718_v39 }
  0x88   : > { %v3826_v39 = vsel %vm821_vm5, %v809_v46, %v3731_v0 }
  0x89   : > { %v569_v26 = vpop.permute.xlu1 %568  ;;  %v567_v27 = vpop.permute.xlu0 %566  ;;  %550 = vrot.lane.b32.xlu2 %v481_v37, %s3450_s18  ;;  %v488_v37 = vsel %vm458_vm1, %v485_v48, %v487_v25 }
  0x8a   : > { %v807_v52 = vsel %vm790_vm4, %v3499_v10, %v567_v27  ;;  %v3787_v10 = vsel %vm267_vm0, %v225_v50, %v286_v51  ;;  %v808_v12 = vsel %vm790_vm4, %v3495_v8, %v569_v26  ;;  %v656_v50 = vrot.slane %v3784_v9, 2 }
  0x8b   : > { %v3777_v63 = vpop.permute.xlu2 %742  ;;  %v489_v15 = vrot.slane %v3787_v10, 1  ;;  %v655_v24 = vrot.slane %v3787_v10, 2 }
  0x8d   : > { %v491_v27 = vsel %vm458_vm1, %v489_v15, %v490_v18  ;;  %v657_v25 = vsel %vm624_vm2, %v655_v24, %v656_v50 }
  0x8f   : > { %552 = vrot.lane.b32.xlu1 %v483_v32, %s3450_s18  ;;  %716 = vrot.lane.b32.xlu0 %v647_v33, %s3451_s19  ;;  %v418_v32 = vsel %vm267_vm0, %v287_v55, %v370_v22  ;;  %v185_v33 = vld [vmem:[%s3488_s17 + $0x70] sm:$0xff]  ;;  %v3846_v22 = vsel %vm267_vm0, %v220_v56, %v271_v57 }
  0x90   : > { %v658_v44 = vrot.slane %v418_v32, 2  ;;  %v492_v51 = vrot.slane %v418_v32, 1 }
  0x91   : > { %v735_v53 = vpop.permute.xlu1 %734  ;;  %v733_v54 = vpop.permute.xlu0 %732  ;;  %718 = vrot.lane.b32.xlu2 %v649_v11, %s3451_s19 }
  0x92   : > { %v3775_v62 = vsel %vm821_vm5, %v807_v52, %v733_v54  ;;  %v3799_v8 = vsel %vm821_vm5, %v808_v12, %v735_v53  ;;  %v226_v52 = vrot.slane %v185_v33, 1  ;;  %v289_v53 = vrot.slane %v185_v33, 7 }
  0x93   : > { %3201 = vmatmul.msk.f32.vlgmr.msra.gmra.mxu2 %vm885_vm6, %v3775_v62  ;;  %v3801_v26 = vpop.permute.xlu2 %580  ;;  %v290_v54 = vrot.slane %v186_v36, 7  ;;  %v659_v6 = vsel %vm624_vm2, %v656_v50, %v658_v44  ;;  %v493_v11 = vsel %vm458_vm1, %v490_v18, %v492_v51  ;;  %v811_v51 = vsel %vm790_vm4, %v3535_v45, %v3752_v29 }
  0x94   : > { %v3838_v15 = vsel %vm267_vm0, %v226_v52, %v289_v53  ;;  %v630_v45 = vrot.slane %v3846_v22, 2 }
  0x95   : > { %v3835_v12 = vsel %vm267_vm0, %v289_v53, %v290_v54  ;;  %v660_v18 = vrot.slane %v3838_v15, 2  ;;  %v494_v38 = vrot.slane %v3838_v15, 1 }
  0x97   : > { %720 = vrot.lane.b32.xlu1 %v652_v1, %s3451_s19  ;;  %554 = vrot.lane.b32.xlu0 %v486_v2, %s3450_s18  ;;  %v272_v1 = vrot.slane %v3813_v41, 7 }
  0x99   : > { %v739_v20 = vpop.permute.xlu1 %738  ;;  %v573_v23 = vpop.permute.xlu0 %572  ;;  %556 = vrot.lane.b32.xlu2 %v488_v37, %s3450_s18  ;;  %v3843_v0 = vsel %vm267_vm0, %v271_v57, %v272_v1  ;;  %v371_v37 = vrot.slane %v186_v36, 5 }
  0x9a   : > { %v810_v19 = vsel %vm790_vm4, %v3510_v21, %v573_v23  ;;  %v464_v21 = vrot.slane %v3846_v22, 1  ;;  %v465_v23 = vrot.slane %v3843_v0, 1 }
  0x9b   : > { %3202 = vmatmul.msk.f32.gmra.mxu2 %vm885_vm6, %v3799_v8  ;;  %v3828_v2 = vpop.permute.xlu2 %748  ;;  %v419_v52 = vsel %vm267_vm0, %v290_v54, %v371_v37  ;;  %v631_v54 = vrot.slane %v3843_v0, 2 }
  0x9c   : > { %v466_v44 = vsel %vm458_vm1, %v464_v21, %v465_v23  ;;  %v497_v56 = vrot.slane %v419_v52, 1  ;;  %v663_v57 = vrot.slane %v419_v52, 2 }
  0x9d   : > { %v632_v21 = vsel %vm624_vm2, %v630_v45, %v631_v54 }
  0x9f   : > { %558 = vrot.lane.b32.xlu1 %v491_v27, %s3450_s18  ;;  %722 = vrot.lane.b32.xlu0 %v654_v28, %s3451_s19  ;;  %v3853_v27 = vsel %vm821_vm5, %v810_v19, %v739_v20  ;;  %v661_v28 = vrot.slane %v3835_v12, 2  ;;  %v495_v20 = vrot.slane %v3835_v12, 1 }
  0xa1   : > { %v577_v48 = vpop.permute.xlu1 %576  ;;  %v741_v55 = vpop.permute.xlu0 %740  ;;  %724 = vrot.lane.b32.xlu2 %v657_v25, %s3451_s19  ;;  %v662_v50 = vsel %vm624_vm2, %v660_v18, %v661_v28  ;;  %v496_v36 = vsel %vm458_vm1, %v494_v38, %v495_v20  ;;  %v498_v19 = vsel %vm458_vm1, %v495_v20, %v497_v56  ;;  %v664_v25 = vsel %vm624_vm2, %v661_v28, %v663_v57 }
  0xa2   : > { %v3875_v53 = vsel %vm821_vm5, %v811_v51, %v741_v55  ;;  %v3250_v55 = vld [vmem:[%s6048_s1 + $0x20] sm:$0xff]  ;;  %v814_v56 = vsel %vm790_vm4, %v3551_v60, %v3801_v26 }
  0xa3   : > { %3203 = vmatmul.msk.f32.gmra.mxu2 %vm885_vm6, %v3826_v39  ;;  %v3860_v46 = vpop.permute.xlu2 %586 }
  0xa4   : > { %1236 = vmatpush.msrb.mxu2 %v3250_v55 }
  0xa7   : > { %726 = vrot.lane.b32.xlu1 %v659_v6, %s3451_s19  ;;  %560 = vrot.lane.b32.xlu0 %v493_v11, %s3450_s18  ;;  %v365_v11 = vrot.slane %v3813_v41, 5  ;;  %v812_v41 = vsel %vm790_vm4, %v3531_v43, %v577_v48 }
  0xa8   : > { %v3896_v37 = vsel %vm821_vm5, %v812_v41, %v3777_v63 }
  0xa9   : > { %v745_v32 = vpop.permute.xlu1 %744  ;;  %v579_v33 = vpop.permute.xlu0 %578  ;;  %562 = vrot.lane.b32.xlu2 %v496_v36, %s3450_s18  ;;  %v413_v18 = vsel %vm267_vm0, %v272_v1, %v365_v11 }
  0xaa   : > { %v633_v38 = vrot.slane %v413_v18, 2  ;;  %v813_v48 = vsel %vm790_vm4, %v3554_v61, %v579_v33 }
  0xab   : > { %3204 = vmatmul.msk.f32.gmra.mxu2 %vm885_vm6, %v3853_v27  ;;  %v755_v29 = vpop.permute.xlu2 %754  ;;  %v3907_v63 = vsel %vm821_vm5, %v813_v48, %v745_v32 }
  0xac   : > { %v634_v43 = vsel %vm624_vm2, %v631_v54, %v633_v38 }
  0xaf   : > { %728 = vrot.lane.b32.xlu0 %v662_v50, %s3451_s19  ;;  %538 = vrot.lane.b32.xlu1 %v466_v44, %s3450_s18  ;;  %v467_v50 = vrot.slane %v413_v18, 1 }
  0xb1   : > { %v583_v24 = vpop.permute.xlu1 %582  ;;  %v747_v6 = vpop.permute.xlu0 %746  ;;  %704 = vrot.lane.b32.xlu2 %v632_v21, %s3451_s19  ;;  %v468_v1 = vsel %vm458_vm1, %v465_v23, %v467_v50 }
  0xb2   : > { %v3916_v61 = vsel %vm821_vm5, %v814_v56, %v747_v6  ;;  %v815_v32 = vsel %vm790_vm4, %v3571_v14, %v583_v24  ;;  %v817_v14 = vsel %vm790_vm4, %v3598_v42, %v3860_v46  ;;  %v853_v42 = vld [vmem:[%s6048_s1 + $0x8] sm:$0xf] }
  0xb3   : > { %3205 = vmatmul.msk.f32.gmra.mxu2 %vm885_vm6, %v3875_v53  ;;  %v593_v44 = vpop.permute.xlu2 %592  ;;  %v3924_v11 = vsel %vm821_vm5, %v815_v32, %v3828_v2  ;;  %3217 = vmatpush.msk.msra.mxu1 %vm982_vm3, %v853_v42 }
  0xb4   : > { %3394 = vmatpush.msk.msra.mxu3 %vm982_vm3, %v853_v42 }
  0xb7   : > { %564 = vrot.lane.b32.xlu0 %v498_v19, %s3450_s18  ;;  %730 = vrot.lane.b32.xlu1 %v664_v25, %s3451_s19 }
  0xb9   : > { %v751_v28 = vpop.permute.xlu1 %750  ;;  %v585_v20 = vpop.permute.xlu0 %584  ;;  %540 = vrot.lane.b32.xlu2 %v468_v1, %s3450_s18  ;;  %v852_v1 = vld [vmem:[%s6048_s1] sm:$0xff] }
  0xba   : > { %v816_v60 = vsel %vm790_vm4, %v3568_v13, %v585_v20  ;;  %1117 = vmatpush.msra.mxu1 %v852_v1  ;;  %3395 = vmatpush.msra.mxu3 %v852_v1 }
  0xbb   : > { %3206 = vmatmul.msk.f32.gmra.mxu2 %vm885_vm6, %v3896_v37  ;;  %v873_v36 = vpop.permute.xlu2 %872  ;;  %v3931_v26 = vsel %vm821_vm5, %v816_v60, %v751_v28 }
  0xbf   : > { %706 = vrot.lane.b32.xlu0 %v634_v43, %s3451_s19 }
  0xc1   : > { %v589_v51 = vpop.permute.xlu1 %588  ;;  %v753_v52 = vpop.permute.xlu0 %752 }
  0xc2   : > { %v3941_v2 = vsel %vm821_vm5, %v817_v14, %v753_v52  ;;  %v818_v18 = vsel %vm790_vm4, %v3594_v40, %v589_v51 }
  0xc3   : > { %3207 = vmatmul.msk.f32.gmra.mxu2 %vm885_vm6, %v3907_v63  ;;  %v535_v57 = vpop.permute.xlu2 %534  ;;  %v3948_v21 = vsel %vm821_vm5, %v818_v18, %v755_v29 }
  0xc4   : > { %v791_v40 = vsel %vm790_vm4, %v3661_v49, %v535_v57 }
  0xc9   : > { %v757_v23 = vpop.permute.xlu1 %756  ;;  %v591_v33 = vpop.permute.xlu0 %590 }
  0xca   : > { %v819_v46 = vsel %vm790_vm4, %v3613_v58, %v591_v33  ;;  %v820_v58 = vsel %vm790_vm4, %v3616_v59, %v593_v44 }
  0xcb   : > { %3208 = vmatmul.msk.f32.gmra.mxu2 %vm885_vm6, %v3916_v61  ;;  %v703_v55 = vpop.permute.xlu2 %702  ;;  %v3965_v50 = vsel %vm821_vm5, %v819_v46, %v757_v23 }
  0xd1   : > { %v862_v45 = vpop.permute.xlu1 %861  ;;  %v759_v54 = vpop.permute.xlu0 %758 }
  0xd2   : > { %v3981_v51 = vsel %vm821_vm5, %v820_v58, %v759_v54  ;;  %v878_v59 = vsel %vm790_vm4, %v3634_v17, %v862_v45 }
  0xd3   : > { %3209 = vmatmul.msk.f32.gmra.mxu2 %vm885_vm6, %v3924_v11  ;;  %v3933_v25 = vpop.permute.xlu2 %544 }
  0xd9   : > { %v875_v6 = vpop.permute.xlu1 %874  ;;  %v864_v19 = vpop.permute.xlu0 %863 }
  0xda   : > { %v879_v54 = vsel %vm790_vm4, %v3631_v16, %v864_v19 }
  0xdb   : > { %3210 = vmatmul.msk.f32.gmra.mxu2 %vm885_vm6, %v3931_v26  ;;  %v713_v13 = vpop.permute.xlu2 %712 }
  0xe1   : > { %v537_v24 = vpop.permute.xlu1 %536  ;;  %v701_v41 = vpop.permute.xlu0 %700 }
  0xe2   : > { %v3962_v20 = vsel %vm821_vm5, %v791_v40, %v701_v41  ;;  %v792_v49 = vsel %vm790_vm4, %v3657_v47, %v537_v24  ;;  %v3993_v47 = vsel %vm821_vm5, %v878_v59, %v873_v36 }
  0xe3   : > { %3211 = vmatmul.msk.f32.gmra.mxu2 %vm885_vm6, %v3941_v2  ;;  %v551_v29 = vpop.permute.xlu2 %550  ;;  %3218 = vmatmul.msk.f32.vlgmr.msra.gmra.mxu1 %vm885_vm6, %v3962_v20  ;;  %v3984_v52 = vsel %vm821_vm5, %v792_v49, %v703_v55  ;;  %v4000_v55 = vsel %vm821_vm5, %v879_v54, %v875_v6 }
  0xe4   : > { %v799_v58 = vsel %vm790_vm4, %v3740_v7, %v551_v29 }
  0xe9   : > { %v709_v38 = vpop.permute.xlu1 %708  ;;  %v543_v28 = vpop.permute.xlu0 %542 }
  0xea   : > { %v795_v40 = vsel %vm790_vm4, %v3676_v3, %v543_v28 }
  0xeb   : > { %3212 = vmatmul.msk.f32.gmra.mxu2 %vm885_vm6, %v3948_v21  ;;  %v719_v56 = vpop.permute.xlu2 %718  ;;  %3219 = vmatmul.msk.f32.gmra.mxu1 %vm885_vm6, %v3984_v52  ;;  %v826_v49 = vsel %vm821_vm5, %v795_v40, %v709_v38 }
  0xf1   : > { %v547_v43 = vpop.permute.xlu1 %546  ;;  %v3967_v48 = vpop.permute.xlu0 %710 }
  0xf2   : > { %v797_v36 = vsel %vm790_vm4, %v3709_v31, %v547_v43 }
  0xf3   : > { %3213 = vmatmul.msk.f32.gmra.mxu2 %vm885_vm6, %v3965_v50  ;;  %v557_v32 = vpop.permute.xlu2 %556  ;;  %v4014_v19 = vsel %vm821_vm5, %v797_v36, %v713_v13 }
  0xf4   : > { %v802_v45 = vsel %vm790_vm4, %v3757_v34, %v557_v32 }
  0xf9   : > { %v715_v23 = vpop.permute.xlu1 %714  ;;  %v549_v33 = vpop.permute.xlu0 %548 }
  0xfa   : > { %v798_v42 = vsel %vm790_vm4, %v3706_v30, %v549_v33 }
  0xfb   : > { %3214 = vmatmul.msk.f32.gmra.mxu2 %vm885_vm6, %v3981_v51  ;;  %v725_v17 = vpop.permute.xlu2 %724  ;;  %v4028_v13 = vsel %vm821_vm5, %v798_v42, %v715_v23 }
 0x101   : > { %v553_v44 = vpop.permute.xlu1 %552  ;;  %v717_v57 = vpop.permute.xlu0 %716 }
 0x102   : > { %v830_v7 = vsel %vm821_vm5, %v799_v58, %v717_v57  ;;  %v800_v38 = vsel %vm790_vm4, %v3736_v5, %v553_v44 }
 0x103   : > { %3215 = vmatmul.msk.f32.gmra.mxu2 %vm885_vm6, %v3993_v47  ;;  %v563_v34 = vpop.permute.xlu2 %562 }
 0x104   : > { %v805_v1 = vsel %vm790_vm4, %v3838_v15, %v563_v34  ;;  %v796_v15 = vsel %vm790_vm4, %v3679_v4, %v3933_v25  ;;  %v831_v4 = vsel %vm821_vm5, %v800_v38, %v719_v56 }
 0x105   : > { %v827_v28 = vsel %vm821_vm5, %v796_v15, %v3967_v48 }
 0x109   : > { %v721_v60 = vpop.permute.xlu1 %720  ;;  %v555_v14 = vpop.permute.xlu0 %554 }
 0x10a   : > { %v801_v44 = vsel %vm790_vm4, %v3760_v35, %v555_v14 }
 0x10b   : > { %3216 = vmatmul.msk.f32.gmra.mxu2 %vm885_vm6, %v4000_v55  ;;  %v705_v30 = vpop.permute.xlu2 %704  ;;  %v832_v56 = vsel %vm821_vm5, %v801_v44, %v721_v60 }
 0x111   : > { %v559_v24 = vpop.permute.xlu1 %558  ;;  %v723_v41 = vpop.permute.xlu0 %722 }
 0x112   : > { %v803_v16 = vsel %vm790_vm4, %v3787_v10, %v559_v24  ;;  %v4011_v6 = vsel %vm821_vm5, %v802_v45, %v723_v41 }
 0x113   : > { %v4017_v18 = vsel %vm821_vm5, %v803_v16, %v725_v17  ;;  %3253 = vmatmul.msk.f32.vlgmr.msrb.gmra.mxu2 %vm885_vm6, %v3962_v20  ;;  %v541_v25 = vpop.permute.xlu2 %540 }
 0x114   : > { %v794_v48 = vsel %vm790_vm4, %v3843_v0, %v541_v25 }
 0x116   : > { %v4021_v31 = vpop.f32.mrf.mxu2 }
 0x119   : > { %v727_v46 = vpop.permute.xlu1 %726  ;;  %v561_v10 = vpop.permute.xlu0 %560 }
 0x11a   : > { %v804_v0 = vsel %vm790_vm4, %v3784_v9, %v561_v10 }
 0x11b   : > { %3254 = vmatmul.msk.f32.gmra.mxu2 %vm885_vm6, %v3984_v52  ;;  %v835_v60 = vsel %vm821_vm5, %v804_v0, %v727_v46 }
 0x11e   : > { %v4032_v43 = vpop.f32.mrf.mxu2 }
 0x121   : > { %v729_v33 = vpop.permute.xlu0 %728  ;;  %v539_v59 = vpop.permute.xlu1 %538 }
 0x122   : > { %v793_v23 = vsel %vm790_vm4, %v3846_v22, %v539_v59  ;;  %v4042_v32 = vsel %vm821_vm5, %v805_v1, %v729_v33 }
 0x123   : > { %3234 = vmatmul.msk.f32.vlgmr.msra.gmra.mxu3 %vm885_vm6, %v4042_v32  ;;  %3255 = vmatmul.msk.f32.gmra.mxu2 %vm885_vm6, %v826_v49  ;;  %v824_v3 = vsel %vm821_vm5, %v793_v23, %v705_v30 }
 0x124   : > { %3185 = vmatmul.msk.f32.vlgmr.msra.gmra.mxu0 %vm885_vm6, %v824_v3  ;;  %3220 = vmatmul.msk.f32.gmra.mxu1 %vm885_vm6, %v824_v3 }
 0x126   : > { %v4054_v22 = vpop.f32.mrf.mxu2 }
 0x129   : > { %v565_v29 = vpop.permute.xlu0 %564  ;;  %v731_v54 = vpop.permute.xlu1 %730 }
 0x12a   : > { %v806_v57 = vsel %vm790_vm4, %v3835_v12, %v565_v29 }
 0x12b   : > { %3256 = vmatmul.msk.f32.gmra.mxu2 %vm885_vm6, %v827_v28  ;;  %v4064_v17 = vsel %vm821_vm5, %v806_v57, %v731_v54 }
 0x12c   : > { %3235 = vmatmul.msk.f32.gmra.mxu3 %vm885_vm6, %v4064_v17 }
 0x12e   : > { %v4069_v5 = vpop.f32.mrf.mxu2 }
 0x131   : > { %v707_v12 = vpop.permute.xlu0 %706 }
 0x132   : > { %v825_v36 = vsel %vm821_vm5, %v794_v48, %v707_v12 }
 0x133   : > { %3186 = vmatmul.msk.f32.gmra.mxu0 %vm885_vm6, %v825_v36  ;;  %3221 = vmatmul.msk.f32.gmra.mxu1 %vm885_vm6, %v825_v36 }
 0x134   : > { %3257 = vmatmul.msk.f32.gmra.mxu2 %vm885_vm6, %v4014_v19  ;;  %3236 = vmatmul.msk.f32.gmra.mxu3 %vm885_vm6, %v3775_v62 }
 0x136   : > { %v4083_v45 = vpop.f32.mrf.mxu2 }
 0x137   : > { %6083 = vst [vmem:[#allocation2_spill] sm:$0xff] %v4083_v45 }
 0x13b   : > { %3187 = vmatmul.msk.f32.gmra.mxu0 %vm885_vm6, %v3962_v20  ;;  %3222 = vmatmul.msk.f32.gmra.mxu1 %vm885_vm6, %v3962_v20 }
 0x13c   : > { %3258 = vmatmul.msk.f32.gmra.mxu2 %vm885_vm6, %v4028_v13  ;;  %3237 = vmatmul.msk.f32.gmra.mxu3 %vm885_vm6, %v3799_v8 }
 0x13e   : > { %v4093_v35 = vpop.f32.mrf.mxu2 }
 0x13f   : > { %6084 = vst [vmem:[#allocation3_spill] sm:$0xff] %v4093_v35 }
 0x143   : > { %3188 = vmatmul.msk.f32.gmra.mxu0 %vm885_vm6, %v3984_v52  ;;  %3223 = vmatmul.msk.f32.gmra.mxu1 %vm885_vm6, %v3984_v52 }
 0x144   : > { %3259 = vmatmul.msk.f32.gmra.mxu2 %vm885_vm6, %v830_v7  ;;  %3238 = vmatmul.msk.f32.gmra.mxu3 %vm885_vm6, %v3826_v39 }
 0x146   : > { %v4104_v20 = vpop.f32.mrf.mxu2 }
 0x147   : > { %6085 = vst [vmem:[#allocation4_spill] sm:$0xff] %v4104_v20 }
 0x14b   : > { %3189 = vmatmul.msk.f32.gmra.mxu0 %vm885_vm6, %v826_v49  ;;  %3224 = vmatmul.msk.f32.gmra.mxu1 %vm885_vm6, %v826_v49 }
 0x14c   : > { %3260 = vmatmul.msk.f32.gmra.mxu2 %vm885_vm6, %v831_v4  ;;  %3239 = vmatmul.msk.f32.gmra.mxu3 %vm885_vm6, %v3853_v27 }
 0x14e   : > { %v4112_v52 = vpop.f32.mrf.mxu2 }
 0x14f   : > { %6086 = vst [vmem:[#allocation5_spill] sm:$0xff] %v4112_v52 }
 0x153   : > { %3190 = vmatmul.msk.f32.gmra.mxu0 %vm885_vm6, %v827_v28  ;;  %3225 = vmatmul.msk.f32.gmra.mxu1 %vm885_vm6, %v827_v28 }
 0x154   : > { %3261 = vmatmul.msk.f32.gmra.mxu2 %vm885_vm6, %v832_v56  ;;  %3240 = vmatmul.msk.f32.gmra.mxu3 %vm885_vm6, %v3875_v53 }
 0x156   : > { %v4119_v9 = vpop.f32.mrf.mxu2 }
 0x157   : > { %6087 = vst [vmem:[#allocation6_spill] sm:$0xff] %v4119_v9 }
 0x15b   : > { %3191 = vmatmul.msk.f32.gmra.mxu0 %vm885_vm6, %v4014_v19  ;;  %3226 = vmatmul.msk.f32.gmra.mxu1 %vm885_vm6, %v4014_v19 }
 0x15c   : > { %3262 = vmatmul.msk.f32.gmra.mxu2 %vm885_vm6, %v4011_v6  ;;  %3241 = vmatmul.msk.f32.gmra.mxu3 %vm885_vm6, %v3896_v37 }
 0x15e   : > { %v4129_v14 = vpop.f32.mrf.mxu2 }
 0x15f   : > { %6088 = vst [vmem:[#allocation7_spill] sm:$0xff] %v4129_v14 }
 0x160   : > { %v1119_v10 = vpop.f32.mrf.mxu1 }
 0x163   : > { %3192 = vmatmul.msk.f32.gmra.mxu0 %vm885_vm6, %v4028_v13  ;;  %3227 = vmatmul.msk.f32.gmra.mxu1 %vm885_vm6, %v4028_v13 }
 0x164   : > { %3263 = vmatmul.msk.f32.gmra.mxu2 %vm885_vm6, %v4017_v18  ;;  %3242 = vmatmul.msk.f32.gmra.mxu3 %vm885_vm6, %v3907_v63 }
 0x166   : > { %v4139_v24 = vpop.f32.mrf.mxu2 }
 0x167   : > { %6089 = vst [vmem:[#allocation8_spill] sm:$0xff] %v4139_v24 }
 0x168   : > { %v1122_v13 = vpop.f32.mrf.mxu1 }
 0x16b   : > { %3193 = vmatmul.msk.f32.gmra.mxu0 %vm885_vm6, %v830_v7  ;;  %3228 = vmatmul.msk.f32.gmra.mxu1 %vm885_vm6, %v830_v7 }
 0x16c   : > { %3264 = vmatmul.msk.f32.gmra.mxu2 %vm885_vm6, %v835_v60  ;;  %3243 = vmatmul.msk.f32.gmra.mxu3 %vm885_vm6, %v3916_v61 }
 0x16e   : > { %v4146_v41 = vpop.f32.mrf.mxu2 }
 0x16f   : > { %6090 = vst [vmem:[#allocation9_spill] sm:$0xff] %v4146_v41 }
 0x173   : > { %3194 = vmatmul.msk.f32.gmra.mxu0 %vm885_vm6, %v831_v4  ;;  %3229 = vmatmul.msk.f32.gmra.mxu1 %vm885_vm6, %v831_v4 }
 0x174   : > { %3265 = vmatmul.msk.f32.gmra.mxu2 %vm885_vm6, %v4042_v32  ;;  %3244 = vmatmul.msk.f32.gmra.mxu3 %vm885_vm6, %v3924_v11 }
 0x176   : > { %v4154_v16 = vpop.f32.mrf.mxu2 }
 0x177   : > { %6091 = vst [vmem:[#allocation10_spill] sm:$0xff] %v4154_v16 }
 0x17b   : > { %3195 = vmatmul.msk.f32.gmra.mxu0 %vm885_vm6, %v832_v56  ;;  %3230 = vmatmul.msk.f32.gmra.mxu1 %vm885_vm6, %v832_v56 }
 0x17c   : > { %3266 = vmatmul.msk.f32.gmra.mxu2 %vm885_vm6, %v4064_v17  ;;  %3245 = vmatmul.msk.f32.gmra.mxu3 %vm885_vm6, %v3931_v26 }
 0x17e   : > { %v4162_v19 = vpop.f32.mrf.mxu2 }
 0x17f   : > { %6092 = vst [vmem:[#allocation11_spill] sm:$0xff] %v4162_v19 }
 0x183   : > { %3196 = vmatmul.msk.f32.gmra.mxu0 %vm885_vm6, %v4011_v6  ;;  %3231 = vmatmul.msk.f32.gmra.mxu1 %vm885_vm6, %v4011_v6 }
 0x184   : > { %3267 = vmatmul.msk.f32.gmra.mxu2 %vm885_vm6, %v3775_v62  ;;  %3246 = vmatmul.msk.f32.gmra.mxu3 %vm885_vm6, %v3941_v2 }
 0x186   : > { %v4172_v34 = vpop.f32.mrf.mxu2 }
 0x187   : > { %6093 = vst [vmem:[#allocation12_spill] sm:$0xff] %v4172_v34 }
 0x18b   : > { %3197 = vmatmul.msk.f32.gmra.mxu0 %vm885_vm6, %v4017_v18  ;;  %3232 = vmatmul.msk.f32.gmra.mxu1 %vm885_vm6, %v4017_v18 }
 0x18c   : > { %3268 = vmatmul.msk.f32.gmra.mxu2 %vm885_vm6, %v3799_v8  ;;  %3247 = vmatmul.msk.f32.gmra.mxu3 %vm885_vm6, %v3948_v21 }
 0x18e   : > { %v4182_v6 = vpop.f32.mrf.mxu2 }
 0x18f   : > { %6094 = vst [vmem:[#allocation13_spill] sm:$0xff] %v4182_v6 }
 0x193   : > { %3198 = vmatmul.msk.f32.gmra.mxu0 %vm885_vm6, %v835_v60  ;;  %3233 = vmatmul.msk.f32.gmra.mxu1 %vm885_vm6, %v835_v60 }
 0x194   : > { %3269 = vmatmul.msk.f32.gmra.mxu2 %vm885_vm6, %v3826_v39  ;;  %3248 = vmatmul.msk.f32.gmra.mxu3 %vm885_vm6, %v3965_v50 }
 0x196   : > { %v4190_v62 = vpop.f32.mrf.mxu2 }
 0x19b   : > { %3199 = vmatmul.msk.f32.gmra.mxu0 %vm885_vm6, %v4042_v32 }
 0x19c   : > { %3270 = vmatmul.msk.f32.gmra.mxu2 %vm885_vm6, %v3853_v27  ;;  %3249 = vmatmul.msk.f32.gmra.mxu3 %vm885_vm6, %v3981_v51 }
 0x19e   : > { %v4198_v8 = vpop.f32.mrf.mxu2 }
 0x1a1   : > { %v1003_v46 = vpop.f32.mrf.mxu0 }
 0x1a2   : > { %v1120_v20 = vadd.f32 %v1119_v10, %v1003_v46 }
 0x1a3   : > { %3200 = vmatmul.msk.f32.gmra.mxu0 %vm885_vm6, %v4064_v17 }
 0x1a4   : > { %3271 = vmatmul.msk.f32.gmra.mxu2 %vm885_vm6, %v3875_v53 }
 0x1a6   : > { %v4204_v39 = vpop.f32.mrf.mxu2 }
 0x1ac   : > { %3272 = vmatmul.msk.f32.gmra.mxu2 %vm885_vm6, %v3896_v37 }
 0x1ae   : > { %v4208_v18 = vpop.f32.mrf.mxu2 }
 0x1b4   : > { %3273 = vmatmul.msk.f32.gmra.mxu2 %vm885_vm6, %v3907_v63  ;;  %v1006_v63 = vpop.f32.mrf.mxu0 }
 0x1b5   : > { %v1123_v52 = vadd.f32 %v1122_v13, %v1006_v63 }
 0x1b7   : > { %v4212_v27 = vpop.f32.mrf.mxu2 }
 0x1bc   : > { %3274 = vmatmul.msk.f32.gmra.mxu2 %vm885_vm6, %v3916_v61  ;;  %v1009_v40 = vpop.f32.mrf.mxu0 }
 0x1bf   : > { %v4216_v42 = vpop.f32.mrf.mxu2 }
 0x1c4   : > { %3275 = vmatmul.msk.f32.gmra.mxu2 %vm885_vm6, %v3924_v11  ;;  %v1125_v11 = vpop.f32.mrf.mxu1 }
 0x1c5   : > { %v1126_v35 = vadd.f32 %v1125_v11, %v1009_v40 }
 0x1c7   : > { %v4220_v53 = vpop.f32.mrf.mxu2 }
 0x1cc   : > { %3276 = vmatmul.msk.f32.gmra.mxu2 %vm885_vm6, %v3931_v26  ;;  %v1012_v26 = vpop.f32.mrf.mxu0  ;;  %v1128_v58 = vpop.f32.mrf.mxu1 }
 0x1cf   : > { %v4224_v37 = vpop.f32.mrf.mxu2 }
 0x1d4   : > { %3277 = vmatmul.msk.f32.gmra.mxu2 %vm885_vm6, %v3941_v2  ;;  %v1015_v2 = vpop.f32.mrf.mxu0  ;;  %v1131_v33 = vpop.f32.mrf.mxu1 }
 0x1d5   : > { %v1132_v45 = vadd.f32 %v1131_v33, %v1015_v2 }
 0x1d7   : > { %v4228_v61 = vpop.f32.mrf.mxu2 }
 0x1dc   : > { %3278 = vmatmul.msk.f32.gmra.mxu2 %vm885_vm6, %v3948_v21  ;;  %v4244_v21 = vpop.f32.mrf.mxu3  ;;  %v1018_v23 = vpop.f32.mrf.mxu0 }
 0x1dd   : > { %v1134_v32 = vpop.f32.mrf.mxu1 }
 0x1df   : > { %v4232_v1 = vpop.f32.mrf.mxu2 }
 0x1e4   : > { %3279 = vmatmul.msk.f32.gmra.mxu2 %vm885_vm6, %v3965_v50  ;;  %v4250_v3 = vpop.f32.mrf.mxu3  ;;  %v1021_v15 = vpop.f32.mrf.mxu0 }
 0x1e5   : > { %v1137_v38 = vpop.f32.mrf.mxu1 }
 0x1e7   : > { %v4236_v30 = vpop.f32.mrf.mxu2 }
 0x1ec   : > { %3280 = vmatmul.msk.f32.gmra.mxu2 %vm885_vm6, %v3981_v51  ;;  %v1024_v29 = vpop.f32.mrf.mxu0 }
 0x1ed   : > { %v1140_v54 = vpop.f32.mrf.mxu1 }
 0x1ef   : > { %v4240_v49 = vpop.f32.mrf.mxu2 }
 0x1f4   : > { %3281 = vmatmul.msk.f32.gmra.mxu2 %vm885_vm6, %v3993_v47  ;;  %v4258_v47 = vpop.f32.mrf.mxu3  ;;  %v1027_v17 = vpop.f32.mrf.mxu0 }
 0x1f5   : > { %v1143_v25 = vpop.f32.mrf.mxu1 }
 0x1f7   : > { %v4246_v59 = vpop.f32.mrf.mxu2 }
 0x1fc   : > { %3282 = vmatmul.msk.f32.gmra.mxu2 %vm885_vm6, %v4000_v55  ;;  %v4264_v55 = vpop.f32.mrf.mxu3  ;;  %v1030_v44 = vpop.f32.mrf.mxu0 }
 0x1fd   : > { %v1146_v12 = vpop.f32.mrf.mxu1 }
 0x1ff   : > { %v4252_v7 = vpop.f32.mrf.mxu2 }
 0x204   : > { %3283 = vmatmul.msk.f32.gmra.mxu2 %vm885_vm6, %v3965_v50  ;;  %v4268_v48 = vpop.f32.mrf.mxu3 }
 0x205   : > { %6095 = vst [vmem:[#allocation14_spill] sm:$0xff] %v4268_v48  ;;  %v1149_v0 = vpop.f32.mrf.mxu1  ;;  %v1129_v48 = vadd.f32 %v1128_v58, %v1012_v26 }
 0x207   : > { %v4256_v28 = vpop.f32.mrf.mxu2  ;;  %v4312_v63 = vadd.f32 %v4208_v18, %v1129_v48 }
 0x209   : > { %v1438_v58 = vmul.f32 %v4312_v63, %v4312_v63 }
 0x20c   : > { %3284 = vmatmul.msk.f32.gmra.mxu2 %vm885_vm6, %v3981_v51  ;;  %v4272_v36 = vpop.f32.mrf.mxu3  ;;  %v1033_v51 = vpop.f32.mrf.mxu0 }
 0x20d   : > { %6096 = vst [vmem:[#allocation15_spill] sm:$0xff] %v4272_v36  ;;  %v4282_v19 = vpop.f32.mrf.mxu1 }
 0x20f   : > { %v4262_v57 = vpop.f32.mrf.mxu2 }
 0x214   : > { %v4278_v6 = vpop.f32.mrf.mxu3  ;;  %v4280_v34 = vpop.f32.mrf.mxu0 }
 0x215   : > { %6098 = vst [vmem:[#allocation17_spill] sm:$0xff] %v4278_v6  ;;  %v4292_v9 = vpop.f32.mrf.mxu1  ;;  %v4297_v6 = vadd.f32 %v4198_v8, %v1123_v52  ;;  %v1135_v52 = vadd.f32 %v1134_v32, %v1018_v23  ;;  %v1144_v23 = vadd.f32 %v1143_v25, %v1027_v17 }
 0x217   : > { %v4266_v4 = vpop.f32.mrf.mxu2  ;;  %6102 = vst [vmem:[#allocation21_spill] sm:$0xff] %v4297_v6  ;;  %v1436_v46 = vmul.f32 %v4297_v6, %v4297_v6  ;;  %v4335_v2 = vadd.f32 %v4216_v42, %v1135_v52  ;;  %v1147_v42 = vadd.f32 %v1146_v12, %v1030_v44 }
 0x219   : > { %v1468_v18 = vsel %vm790_vm4, %v1436_v46, 0.0  ;;  %v1440_v17 = vmul.f32 %v4335_v2, %v4335_v2  ;;  %v1375_v12 = vsel %vm790_vm4, %v4335_v2, 0.0 }
 0x21c   : > { %v4286_v41 = vpop.f32.mrf.mxu3  ;;  %v4288_v24 = vpop.f32.mrf.mxu0 }
 0x21d   : > { %6100 = vst [vmem:[#allocation19_spill] sm:$0xff] %v4286_v41  ;;  %v1158_v10 = vpop.f32.mrf.mxu1 }
 0x21f   : > { %v4270_v50 = vpop.f32.mrf.mxu2 }
 0x224   : > { %v4294_v36 = vpop.f32.mrf.mxu3  ;;  %v4304_v41 = vpop.f32.mrf.mxu0 }
 0x227   : > { %v4274_v56 = vpop.f32.mrf.mxu2 }
 0x22c   : > { %v4326_v40 = vpop.f32.mrf.mxu3  ;;  %v1045_v52 = vpop.f32.mrf.mxu0 }
 0x22f   : > { %v4276_v60 = vpop.f32.mrf.mxu2 }
 0x230   : > { %6097 = vst [vmem:[#allocation16_spill] sm:$0xff] %v4276_v60 }
 0x237   : > { %v4284_v16 = vpop.f32.mrf.mxu2 }
 0x238   : > { %6099 = vst [vmem:[#allocation18_spill] sm:$0xff] %v4284_v16  ;;  %v4302_v16 = vadd.f32 %v4190_v62, %v1120_v20  ;;  %v1367_v20 = vsel %vm790_vm4, %v4297_v6, 0.0 }
 0x23a   : > { %v1435_v8 = vmul.f32 %v4302_v16, %v4302_v16  ;;  %v1366_v13 = vsel %vm790_vm4, %v4302_v16, 0.0 }
 0x23b   : > { %v1368_v33 = vadd.f32 %v1367_v20, %v1366_v13  ;;  %v1150_v13 = vadd.f32 %v1149_v0, %v1033_v51 }
 0x23f   : > { %v4290_v14 = vpop.f32.mrf.mxu2 }
 0x240   : > { %6101 = vst [vmem:[#allocation20_spill] sm:$0xff] %v4290_v14  ;;  %v4307_v14 = vadd.f32 %v4204_v39, %v1126_v35  ;;  %v4321_v35 = vadd.f32 %v4212_v27, %v1132_v45  ;;  %v1138_v39 = vadd.f32 %v1137_v38, %v1021_v15  ;;  %v1141_v45 = vadd.f32 %v1140_v54, %v1024_v29 }
 0x241   : > { %v1467_v27 = vsel %vm790_vm4, %v1435_v8, 0.0  ;;  %v1371_v15 = vsel %vm790_vm4, %v4312_v63, 0.0  ;;  %v1472_v29 = vsel %vm790_vm4, %v1438_v58, 0.0 }
 0x242   : > { %v1437_v62 = vmul.f32 %v4307_v14, %v4307_v14  ;;  %v1369_v26 = vsel %vm790_vm4, %v4307_v14, 0.0  ;;  %v1439_v38 = vmul.f32 %v4321_v35, %v4321_v35  ;;  %v4344_v48 = vadd.f32 %v4220_v53, %v1138_v39 }
 0x243   : > { %v1469_v46 = vadd.f32 %v1468_v18, %v1467_v27  ;;  %v1370_v6 = vadd.f32 %v1369_v26, %v1368_v33  ;;  %v1373_v54 = vsel %vm790_vm4, %v4321_v35, 0.0  ;;  %v4352_v25 = vadd.f32 %v4224_v37, %v1141_v45 }
 0x244   : > { %v1470_v32 = vsel %vm790_vm4, %v1437_v62, 0.0  ;;  %v4355_v53 = vadd.f32 %v4228_v61, %v1144_v23  ;;  %v1161_v62 = vpop.f32.mrf.mxu1  ;;  %v1474_v44 = vsel %vm790_vm4, %v1439_v38, 0.0  ;;  %v1441_v39 = vmul.f32 %v4344_v48, %v4344_v48 }
 0x245   : > { %v1471_v8 = vadd.f32 %v1470_v32, %v1469_v46  ;;  %v1372_v20 = vadd.f32 %v1371_v15, %v1370_v6  ;;  %v4363_v37 = vadd.f32 %v4232_v1, %v1147_v42  ;;  %v1476_v6 = vsel %vm790_vm4, %v1440_v17, 0.0  ;;  %v4376_v1 = vpop.f32.mrf.mxu3 }
 0x246   : > { %v1377_v61 = vsel %vm790_vm4, %v4344_v48, 0.0  ;;  %v1442_v45 = vmul.f32 %v4352_v25, %v4352_v25  ;;  %v1153_v27 = vadd.f32 %v4282_v19, %v4280_v34  ;;  %v1443_v0 = vmul.f32 %v4355_v53, %v4355_v53 }
 0x247   : > { %v4299_v60 = vpop.f32.mrf.mxu2  ;;  %v1473_v18 = vadd.f32 %v1472_v29, %v1471_v8  ;;  %v1374_v26 = vadd.f32 %v1373_v54, %v1372_v20  ;;  %v1478_v23 = vsel %vm790_vm4, %v1441_v39, 0.0  ;;  %v1379_v32 = vsel %vm790_vm4, %v4352_v25, 0.0 }
 0x248   : > { %v4382_v15 = vadd.f32 %v4236_v30, %v1150_v13  ;;  %v1156_v38 = vadd.f32 %v4292_v9, %v4288_v24  ;;  %v1444_v34 = vmul.f32 %v4363_v37, %v4363_v37  ;;  %v1480_v42 = vsel %vm790_vm4, %v1442_v45, 0.0  ;;  %v1048_v9 = vpop.f32.mrf.mxu0 }
 0x249   : > { %v1475_v33 = vadd.f32 %v1474_v44, %v1473_v18  ;;  %v1376_v51 = vadd.f32 %v1375_v12, %v1374_v26  ;;  %v1381_v29 = vsel %vm790_vm4, %v4355_v53, 0.0  ;;  %v4392_v54 = vadd.f32 %v4240_v49, %v1153_v27 }
 0x24a   : > { %v1159_v17 = vadd.f32 %v1158_v10, %v4304_v41  ;;  %v1482_v20 = vsel %vm790_vm4, %v1443_v0, 0.0  ;;  %v1383_v24 = vsel %vm790_vm4, %v4363_v37, 0.0  ;;  %v1445_v44 = vmul.f32 %v4382_v15, %v4382_v15 }
 0x24b   : > { %v1477_v46 = vadd.f32 %v1476_v6, %v1475_v33  ;;  %v1378_v19 = vadd.f32 %v1377_v61, %v1376_v51  ;;  %v4401_v12 = vadd.f32 %v4246_v59, %v1156_v38  ;;  %v1162_v39 = vadd.f32 %v1161_v62, %v1045_v52 }
 0x24c   : > { %v1484_v18 = vsel %vm790_vm4, %v1444_v34, 0.0  ;;  %v1164_v41 = vpop.f32.mrf.mxu1  ;;  %v1385_v26 = vsel %vm790_vm4, %v4382_v15, 0.0  ;;  %v1446_v6 = vmul.f32 %v4392_v54, %v4392_v54  ;;  %v4411_v61 = vadd.f32 %v4252_v7, %v1159_v17 }
 0x24d   : > { %v1479_v30 = vadd.f32 %v1478_v23, %v1477_v46  ;;  %v1380_v8 = vadd.f32 %v1379_v32, %v1378_v19  ;;  %v1165_v45 = vadd.f32 %v1164_v41, %v1048_v9  ;;  %v1486_v52 = vsel %vm790_vm4, %v1445_v44, 0.0  ;;  %v4421_v32 = vpop.f32.mrf.mxu3 }
 0x24e   : > { %v1387_v62 = vsel %vm790_vm4, %v4392_v54, 0.0  ;;  %v1447_v33 = vmul.f32 %v4401_v12, %v4401_v12  ;;  %v4419_v51 = vadd.f32 %v4256_v28, %v1162_v39  ;;  %v1488_v7 = vsel %vm790_vm4, %v1446_v6, 0.0 }
 0x24f   : > { %v4328_v11 = vpop.f32.mrf.mxu2  ;;  %v1481_v13 = vadd.f32 %v1480_v42, %v1479_v30  ;;  %v1382_v49 = vadd.f32 %v1381_v29, %v1380_v8  ;;  %v1389_v38 = vsel %vm790_vm4, %v4401_v12, 0.0  ;;  %v1448_v46 = vmul.f32 %v4411_v61, %v4411_v61 }
 0x250   : > { %v4429_v19 = vadd.f32 %v4262_v57, %v1165_v45  ;;  %v1490_v28 = vsel %vm790_vm4, %v1447_v33, 0.0  ;;  %v1391_v29 = vsel %vm790_vm4, %v4411_v61, 0.0  ;;  %v1449_v17 = vmul.f32 %v4419_v51, %v4419_v51 }
 0x251   : > { %v1483_v59 = vadd.f32 %v1482_v20, %v1481_v13  ;;  %v1384_v27 = vadd.f32 %v1383_v24, %v1382_v49  ;;  %v1168_v9 = vadd.f32 %v4244_v21, %v4021_v31  ;;  %v1492_v57 = vsel %vm790_vm4, %v1448_v46, 0.0  ;;  %v6104_v46 = vld [vmem:[#allocation14_spill] sm:$0xff] }
 0x252   : > { %v1393_v24 = vsel %vm790_vm4, %v4419_v51, 0.0  ;;  %v1450_v44 = vmul.f32 %v4429_v19, %v4429_v19  ;;  %v1395_v41 = vsel %vm790_vm4, %v4429_v19, 0.0  ;;  %v1171_v21 = vadd.f32 %v4250_v3, %v4032_v43 }
 0x253   : > { %v1485_v0 = vadd.f32 %v1484_v18, %v1483_v59  ;;  %v1386_v23 = vadd.f32 %v1385_v26, %v1384_v27  ;;  %v4446_v49 = vadd.f32 %v4266_v4, %v1168_v9  ;;  %v1494_v18 = vsel %vm790_vm4, %v1449_v17, 0.0  ;;  %v6108_v17 = vld [vmem:[#allocation18_spill] sm:$0xff] }
 0x254   : > { %v1496_v6 = vsel %vm790_vm4, %v1450_v44, 0.0  ;;  %v1177_v43 = vadd.f32 %v4264_v55, %v4069_v5  ;;  %v6106_v5 = vld [vmem:[#allocation3_spill] sm:$0xff] }
 0x255   : > { %v1487_v34 = vadd.f32 %v1486_v52, %v1485_v0  ;;  %v1388_v42 = vadd.f32 %v1387_v62, %v1386_v23  ;;  %v4454_v45 = vpop.f32.mrf.mxu3  ;;  %v1451_v4 = vmul.f32 %v4446_v49, %v4446_v49  ;;  %v4459_v52 = vadd.f32 %v4270_v50, %v1171_v21  ;;  %v6107_v55 = vld [vmem:[#allocation15_spill] sm:$0xff] }
 0x256   : > { %v1174_v62 = vadd.f32 %v4258_v47, %v4054_v22  ;;  %v1397_v3 = vsel %vm790_vm4, %v4446_v49, 0.0  ;;  %v6105_v47 = vld [vmem:[#allocation16_spill] sm:$0xff] }
 0x257   : > { %v4365_v58 = vpop.f32.mrf.mxu2  ;;  %v1489_v30 = vadd.f32 %v1488_v7, %v1487_v34  ;;  %v1390_v8 = vadd.f32 %v1389_v38, %v1388_v42  ;;  %v6103_v38 = vld [vmem:[#allocation2_spill] sm:$0xff]  ;;  %v1498_v34 = vsel %vm790_vm4, %v1451_v4, 0.0  ;;  %v1452_v22 = vmul.f32 %v4459_v52, %v4459_v52 }
 0x258   : > { %v4470_v23 = vadd.f32 %v4274_v56, %v1174_v62  ;;  %v1180_v50 = vadd.f32 %v6104_v46, %v6103_v38  ;;  %v4478_v42 = vadd.f32 %v6105_v47, %v1177_v43  ;;  %v1399_v56 = vsel %vm790_vm4, %v4459_v52, 0.0 }
 0x259   : > { %v1491_v39 = vadd.f32 %v1490_v28, %v1489_v30  ;;  %v1392_v13 = vadd.f32 %v1391_v29, %v1390_v8  ;;  %v1183_v29 = vadd.f32 %v6107_v55, %v6106_v5 }
 0x25a   : > { %v4485_v30 = vadd.f32 %v6108_v17, %v1180_v50  ;;  %v1453_v9 = vmul.f32 %v4470_v23, %v4470_v23  ;;  %v1401_v4 = vsel %vm790_vm4, %v4470_v23, 0.0  ;;  %v1403_v62 = vsel %vm790_vm4, %v4478_v42, 0.0 }
 0x25b   : > { %v1493_v26 = vadd.f32 %v1492_v57, %v1491_v39  ;;  %v1394_v31 = vadd.f32 %v1393_v24, %v1392_v13  ;;  %v6109_v57 = vld [vmem:[#allocation4_spill] sm:$0xff]  ;;  %v6110_v24 = vld [vmem:[#allocation17_spill] sm:$0xff]  ;;  %v1500_v39 = vsel %vm790_vm4, %v1452_v22, 0.0  ;;  %v1454_v13 = vmul.f32 %v4478_v42, %v4478_v42 }
 0x25c   : > { %v1186_v44 = vadd.f32 %v6110_v24, %v6109_v57  ;;  %v1502_v46 = vsel %vm790_vm4, %v1453_v9, 0.0 }
 0x25d   : > { %v1495_v59 = vadd.f32 %v1494_v18, %v1493_v26  ;;  %v1396_v27 = vadd.f32 %v1395_v41, %v1394_v31  ;;  %v6111_v18 = vld [vmem:[#allocation20_spill] sm:$0xff]  ;;  %v6112_v26 = vld [vmem:[#allocation5_spill] sm:$0xff]  ;;  %v6113_v31 = vld [vmem:[#allocation19_spill] sm:$0xff]  ;;  %v1504_v50 = vsel %vm790_vm4, %v1454_v13, 0.0 }
 0x25e   : > { %v4495_v41 = vadd.f32 %v6111_v18, %v1183_v29  ;;  %v1189_v21 = vadd.f32 %v6113_v31, %v6112_v26  ;;  %v4506_v43 = vadd.f32 %v4299_v60, %v1186_v44  ;;  %v6117_v13 = vld [vmem:[#allocation9_spill] sm:$0xff] }
 0x25f   : > { %v4404_v10 = vpop.f32.mrf.mxu2  ;;  %v1497_v33 = vadd.f32 %v1496_v6, %v1495_v59  ;;  %v1398_v7 = vadd.f32 %v1397_v3, %v1396_v27  ;;  %v1206_v6 = vpop.f32.mrf.mxu3  ;;  %v6114_v3 = vld [vmem:[#allocation6_spill] sm:$0xff] }
 0x260   : > { %v1456_v22 = vmul.f32 %v4495_v41, %v4495_v41  ;;  %v4517_v47 = vadd.f32 %v4328_v11, %v1189_v21  ;;  %v1407_v29 = vsel %vm790_vm4, %v4495_v41, 0.0  ;;  %v1409_v24 = vsel %vm790_vm4, %v4506_v43, 0.0 }
 0x261   : > { %v1499_v28 = vadd.f32 %v1498_v34, %v1497_v33  ;;  %v1400_v8 = vadd.f32 %v1399_v56, %v1398_v7  ;;  %v1455_v33 = vmul.f32 %v4485_v30, %v4485_v30  ;;  %v1192_v7 = vadd.f32 %v4294_v36, %v6114_v3 }
 0x262   : > { %v1405_v34 = vsel %vm790_vm4, %v4485_v30, 0.0  ;;  %v1457_v56 = vmul.f32 %v4506_v43, %v4506_v43  ;;  %v1458_v44 = vmul.f32 %v4517_v47, %v4517_v47  ;;  %v1411_v21 = vsel %vm790_vm4, %v4517_v47, 0.0 }
 0x263   : > { %v1501_v59 = vadd.f32 %v1500_v39, %v1499_v28  ;;  %v1402_v38 = vadd.f32 %v1401_v4, %v1400_v8  ;;  %v6115_v28 = vld [vmem:[#allocation7_spill] sm:$0xff]  ;;  %v1506_v36 = vsel %vm790_vm4, %v1455_v33, 0.0  ;;  %v4527_v17 = vadd.f32 %v4365_v58, %v1192_v7  ;;  %v6116_v8 = vld [vmem:[#allocation8_spill] sm:$0xff] }
 0x264   : > { %v1195_v60 = vadd.f32 %v4326_v40, %v6115_v28  ;;  %v1198_v11 = vadd.f32 %v4376_v1, %v6116_v8  ;;  %v1508_v40 = vsel %vm790_vm4, %v1456_v22, 0.0  ;;  %v1201_v58 = vadd.f32 %v4421_v32, %v6117_v13 }
 0x265   : > { %v1503_v5 = vadd.f32 %v1502_v46, %v1501_v59  ;;  %v1404_v55 = vadd.f32 %v1403_v62, %v1402_v38  ;;  %v1510_v1 = vsel %vm790_vm4, %v1457_v56, 0.0  ;;  %v1459_v59 = vmul.f32 %v4527_v17, %v4527_v17  ;;  %v6118_v62 = vld [vmem:[#allocation10_spill] sm:$0xff] }
 0x266   : > { %v4537_v39 = vadd.f32 %v4404_v10, %v1195_v60  ;;  %v1204_v10 = vadd.f32 %v4454_v45, %v6118_v62  ;;  %v1512_v7 = vsel %vm790_vm4, %v1458_v44, 0.0  ;;  %v1413_v38 = vsel %vm790_vm4, %v4527_v17, 0.0 }
 0x267   : > { %v4436_v20 = vpop.f32.mrf.mxu2  ;;  %v1505_v9 = vadd.f32 %v1504_v50, %v1503_v5  ;;  %v1406_v57 = vadd.f32 %v1405_v34, %v1404_v55  ;;  %v1209_v33 = vpop.f32.mrf.mxu3  ;;  %v6119_v34 = vld [vmem:[#allocation11_spill] sm:$0xff]  ;;  %v1514_v45 = vsel %vm790_vm4, %v1459_v59, 0.0 }
 0x268   : > { %v4547_v4 = vadd.f32 %v4436_v20, %v1198_v11  ;;  %v1460_v46 = vmul.f32 %v4537_v39, %v4537_v39  ;;  %v1207_v20 = vadd.f32 %v1206_v6, %v6119_v34  ;;  %v1415_v60 = vsel %vm790_vm4, %v4537_v39, 0.0 }
 0x269   : > { %v1507_v18 = vadd.f32 %v1506_v36, %v1505_v9  ;;  %v1408_v26 = vadd.f32 %v1407_v29, %v1406_v57  ;;  %v6120_v36 = vld [vmem:[#allocation12_spill] sm:$0xff] }
 0x26a   : > { %v1461_v5 = vmul.f32 %v4547_v4, %v4547_v4  ;;  %v1210_v29 = vadd.f32 %v1209_v33, %v6120_v36  ;;  %v1417_v6 = vsel %vm790_vm4, %v4547_v4, 0.0 }
 0x26b   : > { %v1509_v3 = vadd.f32 %v1508_v40, %v1507_v18  ;;  %v1410_v32 = vadd.f32 %v1409_v24, %v1408_v26 }
 0x26d   : > { %v1511_v22 = vadd.f32 %v1510_v1, %v1509_v3  ;;  %v1412_v28 = vadd.f32 %v1411_v21, %v1410_v32 }
 0x26f   : > { %v4463_v0 = vpop.f32.mrf.mxu2  ;;  %v1513_v56 = vadd.f32 %v1512_v7, %v1511_v22  ;;  %v1414_v8 = vadd.f32 %v1413_v38, %v1412_v28  ;;  %v1212_v59 = vpop.f32.mrf.mxu3 }
 0x270   : > { %v4557_v50 = vadd.f32 %v4463_v0, %v1201_v58  ;;  %v1516_v0 = vsel %vm790_vm4, %v1460_v46, 0.0  ;;  %v6121_v46 = vld [vmem:[#allocation13_spill] sm:$0xff] }
 0x271   : > { %v1515_v57 = vadd.f32 %v1514_v45, %v1513_v56  ;;  %v1416_v40 = vadd.f32 %v1415_v60, %v1414_v8  ;;  %v1213_v34 = vadd.f32 %v1212_v59, %v6121_v46 }
 0x272   : > { %v1462_v11 = vmul.f32 %v4557_v50, %v4557_v50  ;;  %v1419_v44 = vsel %vm790_vm4, %v4557_v50, 0.0 }
 0x273   : > { %v1517_v18 = vadd.f32 %v1516_v0, %v1515_v57  ;;  %v1418_v26 = vadd.f32 %v1417_v6, %v1416_v40 }
 0x274   : > { %v1520_v1 = vsel %vm790_vm4, %v1462_v11, 0.0 }
 0x277   : > { %v1322_v27 = vpop.f32.mrf.mxu2 }
 0x278   : > { %v4565_v55 = vadd.f32 %v1322_v27, %v1204_v10  ;;  %v1518_v27 = vsel %vm790_vm4, %v1461_v5, 0.0  ;;  %v1420_v10 = vadd.f32 %v1419_v44, %v1418_v26 }
 0x279   : > { %v1519_v62 = vadd.f32 %v1518_v27, %v1517_v18 }
 0x27a   : > { %v1463_v13 = vmul.f32 %v4565_v55, %v4565_v55 }
 0x27b   : > { %v1521_v7 = vadd.f32 %v1520_v1, %v1519_v62 }
 0x27c   : > { %v1522_v33 = vsel %vm790_vm4, %v1463_v13, 0.0 }
 0x27d   : > { %v1523_v28 = vadd.f32 %v1522_v33, %v1521_v7 }
 0x27f   : > { %v1325_v31 = vpop.f32.mrf.mxu2 }
 0x280   : > { %v4573_v9 = vadd.f32 %v1325_v31, %v1207_v20  ;;  %v1421_v31 = vsel %vm790_vm4, %v4565_v55, 0.0 }
 0x281   : > { %v1422_v38 = vadd.f32 %v1421_v31, %v1420_v10 }
 0x282   : > { %v1464_v21 = vmul.f32 %v4573_v9, %v4573_v9  ;;  %v1423_v3 = vsel %vm790_vm4, %v4573_v9, 0.0 }
 0x283   : > { %v1424_v45 = vadd.f32 %v1423_v3, %v1422_v38 }
 0x284   : > { %v1524_v20 = vsel %vm790_vm4, %v1464_v21, 0.0 }
 0x287   : > { %v1328_v24 = vpop.f32.mrf.mxu2 }
 0x288   : > { %v4580_v58 = vadd.f32 %v1328_v24, %v1210_v29  ;;  %v1525_v29 = vadd.f32 %v1524_v20, %v1523_v28 }
 0x28a   : > { %v1465_v32 = vmul.f32 %v4580_v58, %v4580_v58  ;;  %v1425_v22 = vsel %vm790_vm4, %v4580_v58, 0.0 }
 0x28b   : > { %v1426_v56 = vadd.f32 %v1425_v22, %v1424_v45 }
 0x28c   : > { %v1526_v5 = vsel %vm790_vm4, %v1465_v32, 0.0 }
 0x28d   : > { %v1527_v6 = vadd.f32 %v1526_v5, %v1525_v29 }
 0x28f   : > { %v1331_v60 = vpop.f32.mrf.mxu2 }
 0x290   : > { %v1365_v36 = vadd.f32 %v1331_v60, %v1213_v34 }
 0x292   : > { %v1427_v8 = vsel %vm790_vm4, %v1365_v36, 0.0  ;;  %v1466_v0 = vmul.f32 %v1365_v36, %v1365_v36 }
 0x293   : > { %v1428_v11 = vadd.f32 %v1427_v8, %v1426_v56 }
 0x294   : > { %v1528_v57 = vsel %vm790_vm4, %v1466_v0, 0.0 }
 0x295   : > { %v1429_v40 = vrot.slane %v1428_v11, 4  ;;  %v1529_v24 = vadd.f32 %v1528_v57, %v1527_v6 }
 0x297   : > { %v1430_v27 = vadd.f32 %v1429_v40, %v1428_v11  ;;  %v1530_v44 = vrot.slane %v1529_v24, 4 }
 0x299   : > { %v1431_v13 = vrot.slane %v1430_v27, 2  ;;  %v1531_v18 = vadd.f32 %v1530_v44, %v1529_v24 }
 0x29b   : > { %v1432_v26 = vadd.f32 %v1431_v13, %v1430_v27  ;;  %v1532_v1 = vrot.slane %v1531_v18, 2 }
 0x29d   : > { %v1433_v31 = vrot.slane %v1432_v26, 1  ;;  %v1533_v21 = vadd.f32 %v1532_v1, %v1531_v18 }
 0x29f   : > { %v1434_v59 = vadd.f32 %v1433_v31, %v1432_v26  ;;  %v1534_v62 = vrot.slane %v1533_v21, 1 }
 0x2a1   : > { %v1535_v10 = vadd.f32 %v1534_v62, %v1533_v21  ;;  %v4599_v33 = vmul.f32 0.00390625, %v1434_v59 }
 0x2a3   : > { %v1537_v3 = vmul.f32 0.00390625, %v1535_v10  ;;  %v1538_v32 = vmul.f32 %v4599_v33, %v4599_v33  ;;  %v1572_v7 = vsub.f32 %v1365_v36, %v4599_v33  ;;  %v1568_v20 = vsub.f32 %v4557_v50, %v4599_v33  ;;  %v3286_v50 = vld [vmem:[%s6049_s2 + $0x18] sm:$0xf] }
 0x2a4   : > { %v1569_v22 = vsub.f32 %v4565_v55, %v4599_v33  ;;  %v1570_v28 = vsub.f32 %v4573_v9, %v4599_v33  ;;  %v1571_v45 = vsub.f32 %v4580_v58, %v4599_v33  ;;  %v2293_v55 = vld [vmem:[%s6049_s2 + $0x8] sm:$0xf]  ;;  %3287 = vmatpush.msk.msrb.mxu3 %vm982_vm3, %v3286_v50  ;;  %v1553_v6 = vsub.f32 %v4401_v12, %v4599_v33 }
 0x2a5   : > { %v1539_v38 = vsub.f32 %v1537_v3, %v1538_v32  ;;  %v3354_v9 = vld [vmem:[%s6049_s2 + $0x28] sm:$0xf]  ;;  %3320 = vmatpush.msk.msrb.mxu0 %vm982_vm3, %v2293_v55  ;;  %v1554_v11 = vsub.f32 %v4411_v61, %v4599_v33  ;;  %v1555_v57 = vsub.f32 %v4419_v51, %v4599_v33  ;;  %v1556_v40 = vsub.f32 %v4429_v19, %v4599_v33 }
 0x2a6   : > { %3355 = vmatpush.msk.msrb.mxu1 %vm982_vm3, %v3354_v9  ;;  %v1557_v24 = vsub.f32 %v4446_v49, %v4599_v33  ;;  %v1558_v27 = vsub.f32 %v4459_v52, %v4599_v33  ;;  %v1559_v44 = vsub.f32 %v4470_v23, %v4599_v33  ;;  %v1560_v12 = vsub.f32 %v4478_v42, %v4599_v33 }
 0x2a7   : > { %v1540_v46 = vmax.f32 %v1539_v38, 0.0  ;;  %v1561_v61 = vsub.f32 %v4485_v30, %v4599_v33  ;;  %v1562_v51 = vsub.f32 %v4495_v41, %v4599_v33  ;;  %v1563_v19 = vsub.f32 %v4506_v43, %v4599_v33 }
 0x2a8   : > { %v1564_v49 = vsub.f32 %v4517_v47, %v4599_v33  ;;  %v1565_v52 = vsub.f32 %v4527_v17, %v4599_v33  ;;  %v1566_v30 = vsub.f32 %v4537_v39, %v4599_v33  ;;  %v1567_v41 = vsub.f32 %v4547_v4, %v4599_v33 }
 0x2a9   : > { %v1573_v34 = vadd.f32 1e-05, %v1540_v46  ;;  %v1543_v38 = vsub.f32 %v4307_v14, %v4599_v33  ;;  %v1544_v46 = vsub.f32 %v4312_v63, %v4599_v33 }
 0x2ab   : > { %3406 = vrsqrt.f32 %v1573_v34  ;;  %vm1580_vm8 = vweird.f32 %v1573_v34 }
 0x2b1   : > { %v3407_v60 = vpop.eup %3406 }
 0x2b2   : > { %v1575_v5 = vmul.f32 %v3407_v60, %v1573_v34  ;;  %vm1581_vm7 = vweird.f32 %v3407_v60  ;;  %v1541_v34 = vsub.f32 %v4302_v16, %v4599_v33  ;;  %v1545_v16 = vsub.f32 %v4321_v35, %v4599_v33 }
 0x2b3   : > { %vm1582_vm9 = vmor %vm1580_vm8, %vm1581_vm7 }
 0x2b4   : > { %v1576_v29 = vmul.f32 %v3407_v60, %v1575_v5 }
 0x2b6   : > { %v1577_v36 = vmul.f32 0.5, %v1576_v29 }
 0x2b8   : > { %v1578_v56 = vsub.f32 1.5, %v1577_v36 }
 0x2ba   : > { %v1579_v8 = vmul.f32 %v3407_v60, %v1578_v56 }
 0x2bc   : > { %v4623_v58 = vsel %vm1582_vm9, %v3407_v60, %v1579_v8 }
 0x2bd   : > { %v4627_v0 = vmul.f32 %v4623_v58, %v1572_v7  ;;  %v4656_v23 = vmul.f32 %v4623_v58, %v1553_v6  ;;  %v4659_v42 = vmul.f32 %v4623_v58, %v1554_v11  ;;  %v4666_v43 = vmul.f32 %v4623_v58, %v1555_v57 }
 0x2be   : > { %v4669_v47 = vmul.f32 %v4623_v58, %v1556_v40  ;;  %v4672_v17 = vmul.f32 %v4623_v58, %v1557_v24  ;;  %v4675_v13 = vmul.f32 %v4623_v58, %v1558_v27  ;;  %v4678_v18 = vmul.f32 %v4623_v58, %v1559_v44 }
 0x2bf   : > { %6122 = vst [vmem:[#allocation2_spill] sm:$0xff] %v4627_v0  ;;  %v4681_v39 = vmul.f32 %v4623_v58, %v1560_v12  ;;  %v4684_v4 = vmul.f32 %v4623_v58, %v1561_v61  ;;  %v4687_v26 = vmul.f32 %v4623_v58, %v1562_v51  ;;  %v4690_v1 = vmul.f32 %v4623_v58, %v1563_v19 }
 0x2c0   : > { %v4693_v31 = vmul.f32 %v4623_v58, %v1564_v49  ;;  %v4696_v21 = vmul.f32 %v4623_v58, %v1565_v52  ;;  %v4699_v59 = vmul.f32 %v4623_v58, %v1566_v30  ;;  %v4702_v62 = vmul.f32 %v4623_v58, %v1567_v41 }
 0x2c1   : > { %v4705_v10 = vmul.f32 %v4623_v58, %v1568_v20  ;;  %v4708_v3 = vmul.f32 %v4623_v58, %v1569_v22  ;;  %v4711_v32 = vmul.f32 %v4623_v58, %v1570_v28  ;;  %v4714_v7 = vmul.f32 %v4623_v58, %v1571_v45  ;;  %v6125_v20 = vld [vmem:[#allocation21_spill] sm:$0xff] }
 0x2c2   : > { %v1542_v60 = vsub.f32 %v6125_v20, %v4599_v33  ;;  %v1586_v22 = vmul.f32 %v4623_v58, %v1543_v38  ;;  %v1587_v28 = vmul.f32 %v4623_v58, %v1544_v46  ;;  %v1584_v5 = vmul.f32 %v4623_v58, %v1541_v34 }
 0x2c3   : > { %6123 = vst [vmem:[#allocation14_spill] sm:$0xff] %v4705_v10  ;;  %v1546_v11 = vsub.f32 %v4335_v2, %v4599_v33  ;;  %v1588_v57 = vmul.f32 %v4623_v58, %v1545_v16 }
 0x2c4   : > { %6124 = vst [vmem:[#allocation16_spill] sm:$0xff] %v4714_v7  ;;  %v1585_v45 = vmul.f32 %v4623_v58, %v1542_v60  ;;  %v1618_v29 = vmax.f32 %v1586_v22, 0.0  ;;  %v1619_v36 = vmax.f32 %v1587_v28, 0.0  ;;  %v1616_v14 = vmax.f32 %v1584_v5, 0.0 }
 0x2c5   : > { %v1589_v40 = vmul.f32 %v4623_v58, %v1546_v11  ;;  %v1620_v52 = vmax.f32 %v1588_v57, 0.0  ;;  %v6061_v57 = vmax.f32 %v4656_v23, 0.0 }
 0x2c6   : > { %v1617_v56 = vmax.f32 %v1585_v45, 0.0  ;;  %v1664_v8 = vrot.slane %v1618_v29, 1  ;;  %v1712_v63 = vrot.slane %v1618_v29, 7  ;;  %v1713_v50 = vrot.slane %v1619_v36, 7 }
 0x2c7   : > { %v1665_v55 = vrot.slane %v1616_v14, 1  ;;  %v1715_v9 = vrot.slane %v1616_v14, 7  ;;  %v1621_v38 = vmax.f32 %v1589_v40, 0.0  ;;  %v1666_v60 = vrot.slane %v1620_v52, 1 }
 0x2c8   : > { %v1716_v6 = vrot.slane %v1617_v56, 7  ;;  %v4735_v24 = vsel %vm267_vm0, %v1712_v63, %v1713_v50  ;;  %v4738_v27 = vsel %vm267_vm0, %v1664_v8, %v1712_v63  ;;  %v1809_v41 = vrot.slane %v1617_v56, 5 }
 0x2c9   : > { %6126 = vst [vmem:[#allocation3_spill] sm:$0xff] %v4735_v24  ;;  %v1902_v44 = vrot.slane %v4738_v27, 1  ;;  %v1903_v35 = vrot.slane %v4735_v24, 1  ;;  %v4746_v61 = vsel %vm267_vm0, %v1665_v55, %v1715_v9  ;;  %v1718_v22 = vrot.slane %v1620_v52, 7 }
 0x2ca   : > { %6127 = vst [vmem:[#allocation15_spill] sm:$0xff] %v4738_v27  ;;  %v4743_v12 = vsel %vm267_vm0, %v1715_v9, %v1716_v6  ;;  %v2072_v2 = vrot.slane %v4746_v61, 2  ;;  %v1907_v19 = vrot.slane %v4746_v61, 1  ;;  %v1857_v20 = vsel %vm267_vm0, %v1716_v6, %v1809_v41 }
 0x2cb   : > { %6128 = vst [vmem:[#allocation18_spill] sm:$0xff] %v4743_v12  ;;  %v2073_v51 = vrot.slane %v4743_v12, 2  ;;  %v1908_v49 = vrot.slane %v4743_v12, 1  ;;  %v1904_v30 = vsel %vm458_vm1, %v1902_v44, %v1903_v35  ;;  %v2075_v28 = vrot.slane %v1857_v20, 2 }
 0x2cc   : > { %1977 = vrot.lane.b32.xlu0 %v1904_v30, %s3450_s18  ;;  %v1719_v5 = vrot.slane %v1621_v38, 7  ;;  %v1910_v45 = vrot.slane %v1857_v20, 1  ;;  %v2067_v29 = vrot.slane %v4738_v27, 2  ;;  %v2068_v14 = vrot.slane %v4735_v24, 2 }
 0x2cd   : > { %v2074_v46 = vsel %vm624_vm2, %v2072_v2, %v2073_v51  ;;  %v1909_v34 = vsel %vm458_vm1, %v1907_v19, %v1908_v49  ;;  %v1808_v56 = vrot.slane %v1619_v36, 5  ;;  %v1547_v8 = vsub.f32 %v4344_v48, %v4599_v33 }
 0x2ce   : > { %2146 = vrot.lane.b32.xlu2 %v2074_v46, %s3451_s19  ;;  %1981 = vrot.lane.b32.xlu1 %v1909_v34, %s3450_s18  ;;  %v1548_v63 = vsub.f32 %v4352_v25, %v4599_v33  ;;  %v2076_v16 = vsel %vm624_vm2, %v2073_v51, %v2075_v28  ;;  %v1911_v55 = vsel %vm458_vm1, %v1908_v49, %v1910_v45  ;;  %v6062_v40 = vmax.f32 %v4659_v42, 0.0 }
 0x2cf   : > { %v2069_v9 = vsel %vm624_vm2, %v2067_v29, %v2068_v14  ;;  %v4772_v6 = vsel %vm267_vm0, %v1718_v22, %v1719_v5  ;;  %v4775_v11 = vsel %vm267_vm0, %v1666_v60, %v1718_v22  ;;  %v1856_v48 = vsel %vm267_vm0, %v1713_v50, %v1808_v56 }
 0x2d0   : > { %6129 = vst [vmem:[#allocation4_spill] sm:$0xff] %v4772_v6  ;;  %v1590_v25 = vmul.f32 %v4623_v58, %v1547_v8  ;;  %v1591_v36 = vmul.f32 %v4623_v58, %v1548_v63  ;;  %v6057_v44 = vmax.f32 %v4666_v43, 0.0  ;;  %v1912_v2 = vrot.slane %v4775_v11, 1 }
 0x2d1   : > { %6130 = vst [vmem:[#allocation17_spill] sm:$0xff] %v4775_v11  ;;  %v1913_v51 = vrot.slane %v4772_v6, 1  ;;  %v6053_v19 = vmax.f32 %v4669_v47, 0.0  ;;  %v2070_v49 = vrot.slane %v1856_v48, 2  ;;  %v1905_v52 = vrot.slane %v1856_v48, 1 }
 0x2d2   : > { %v1810_v30 = vrot.slane %v1621_v38, 5  ;;  %v1549_v50 = vsub.f32 %v4355_v53, %v4599_v33  ;;  %v1550_v41 = vsub.f32 %v4363_v37, %v4599_v33  ;;  %v1551_v46 = vsub.f32 %v4382_v15, %v4599_v33 }
 0x2d3   : > { %v1552_v34 = vsub.f32 %v4392_v54, %v4599_v33  ;;  %v1622_v20 = vmax.f32 %v1590_v25, 0.0  ;;  %v1623_v60 = vmax.f32 %v1591_v36, 0.0  ;;  %v6055_v22 = vmax.f32 %v4672_v17, 0.0 }
 0x2d4   : > { %2148 = vrot.lane.b32.xlu0 %v2076_v16, %s3451_s19  ;;  %v4799_v28 = vrot.slane %v6061_v57, 7  ;;  %v6052_v38 = vmax.f32 %v4675_v13, 0.0  ;;  %v4804_v53 = vrot.slane %v6057_v44, 7  ;;  %v1914_v37 = vsel %vm458_vm1, %v1912_v2, %v1913_v51 }
 0x2d5   : > { %v4809_v15 = vrot.slane %v6062_v40, 7  ;;  %v4813_v54 = vrot.slane %v6053_v19, 7  ;;  %v2071_v33 = vsel %vm624_vm2, %v2068_v14, %v2070_v49  ;;  %v1906_v45 = vsel %vm458_vm1, %v1903_v35, %v1905_v52  ;;  %v3285_v35 = vld [vmem:[%s6049_s2 + $0x10] sm:$0xff] }
 0x2d6   : > { %1983 = vrot.lane.b32.xlu2 %v1911_v55, %s3450_s18  ;;  %2142 = vrot.lane.b32.xlu1 %v2069_v9, %s3451_s19  ;;  %v1858_v29 = vsel %vm267_vm0, %v1719_v5, %v1810_v30  ;;  %v1592_v56 = vmul.f32 %v4623_v58, %v1549_v50  ;;  %v4823_v8 = vmul.f32 %v4623_v58, %v1550_v41  ;;  %v6054_v16 = vmax.f32 %v4678_v18, 0.0 }
 0x2d7   : > { %v4826_v63 = vmul.f32 %v4623_v58, %v1551_v46  ;;  %v6056_v5 = vmax.f32 %v4681_v39, 0.0  ;;  %v1721_v14 = vrot.slane %v1622_v20, 7  ;;  %v4837_v55 = vrot.slane %v6055_v22, 7  ;;  %2439 = vmatpush.msrb.mxu3 %v3285_v35 }
 0x2d8   : > { %v4842_v9 = vsel %vm267_vm0, %v4799_v28, %v4809_v15  ;;  %v4846_v48 = vrot.slane %v6052_v38, 7  ;;  %v2078_v25 = vrot.slane %v4772_v6, 2  ;;  %v2080_v36 = vrot.slane %v1858_v29, 2 }
 0x2d9   : > { %v2077_v2 = vrot.slane %v4775_v11, 2  ;;  %v1915_v49 = vrot.slane %v1858_v29, 1  ;;  %v1722_v52 = vrot.slane %v1623_v60, 7  ;;  %v1811_v30 = vrot.slane %v1623_v60, 5 }
 0x2da   : > { %v4853_v50 = vsel %vm267_vm0, %v4804_v53, %v4813_v54  ;;  %v4856_v41 = vmul.f32 %v4623_v58, %v1552_v34  ;;  %v6060_v46 = vmax.f32 %v4684_v4, 0.0  ;;  %v6064_v35 = vmax.f32 %v4823_v8, 0.0 }
 0x2db   : > { %v6059_v29 = vmax.f32 %v4690_v1, 0.0  ;;  %v6063_v60 = vmax.f32 %v4693_v31, 0.0  ;;  %v4865_v38 = vrot.slane %v6054_v16, 7  ;;  %v4869_v58 = vrot.slane %v6056_v5, 7 }
 0x2dc   : > { %1985 = vrot.lane.b32.xlu0 %v1914_v37, %s3450_s18  ;;  %v6058_v37 = vmax.f32 %v4687_v26, 0.0  ;;  %v2081_v34 = vsel %vm624_vm2, %v2078_v25, %v2080_v36  ;;  %v2079_v19 = vsel %vm624_vm2, %v2077_v2, %v2078_v25  ;;  %v4881_v16 = vsel %vm267_vm0, %v1721_v14, %v1722_v52  ;;  %v2292_v25 = vld [vmem:[%s6049_s2] sm:$0xff] }
 0x2dd   : > { %6131 = vst [vmem:[#allocation20_spill] sm:$0xff] %v4881_v16  ;;  %v4884_v22 = vsel %vm267_vm0, %v1722_v52, %v1811_v30  ;;  %v6068_v5 = vmax.f32 %v4696_v21, 0.0  ;;  %v4889_v36 = vrot.slane %v6060_v46, 7  ;;  %v3353_v2 = vld [vmem:[%s6049_s2 + $0x20] sm:$0xff]  ;;  %2555 = vmatpush.msrb.mxu0 %v2292_v25  ;;  %v1626_v46 = vmax.f32 %v4826_v63, 0.0 }
 0x2de   : > { %2144 = vrot.lane.b32.xlu2 %v2071_v33, %s3451_s19  ;;  %1979 = vrot.lane.b32.xlu1 %v1906_v45, %s3450_s18  ;;  %v1667_v33 = vrot.slane %v1622_v20, 1  ;;  %v1624_v45 = vmax.f32 %v1592_v56, 0.0  ;;  %v4875_v20 = vsel %vm267_vm0, %v4837_v55, %v4846_v48  ;;  %v1916_v56 = vsel %vm458_vm1, %v1913_v51, %v1915_v49 }
 0x2df   : > { %v4893_v44 = vrot.slane %v6058_v37, 7  ;;  %v6069_v49 = vmax.f32 %v4699_v59, 0.0  ;;  %2674 = vmatpush.msrb.mxu1 %v3353_v2  ;;  %v2083_v2 = vrot.slane %v4881_v16, 2  ;;  %v1627_v57 = vmax.f32 %v4856_v41, 0.0 }
 0x2e0   : > { %v4898_v51 = vsel %vm267_vm0, %v1667_v33, %v1721_v14  ;;  %v1668_v52 = vrot.slane %v1624_v45, 1  ;;  %v1724_v30 = vrot.slane %v1624_v45, 7  ;;  %v1918_v14 = vrot.slane %v4881_v16, 1 }
 0x2e1   : > { %6132 = vst [vmem:[#allocation5_spill] sm:$0xff] %v4898_v51  ;;  %v1920_v33 = vrot.slane %v4884_v22, 1  ;;  %v4922_v45 = vrot.slane %v6063_v60, 7  ;;  %v2082_v25 = vrot.slane %v4898_v51, 2  ;;  %v1917_v37 = vrot.slane %v4898_v51, 1 }
 0x2e2   : > { %v4942_v16 = vrot.slane %v6069_v49, 7  ;;  %v4952_v60 = vsel %vm267_vm0, %v1668_v52, %v1724_v30  ;;  %v1728_v40 = vrot.slane %v1627_v57, 7  ;;  %v6139_v27 = vmax.f32 %v4708_v3, 0.0 }
 0x2e3   : > { %v1921_v51 = vsel %vm458_vm1, %v1918_v14, %v1920_v33  ;;  %v2084_v63 = vsel %vm624_vm2, %v2082_v25, %v2083_v2  ;;  %v1919_v41 = vsel %vm458_vm1, %v1917_v37, %v1918_v14  ;;  %6134 = vst [vmem:[#allocation6_spill] sm:$0xff] %v4952_v60  ;;  %v1669_v33 = vrot.slane %v1626_v46, 1 }
 0x2e4   : > { %2152 = vrot.lane.b32.xlu0 %v2081_v34, %s3451_s19  ;;  %v1725_v34 = vrot.slane %v6064_v35, 7  ;;  %v4938_v35 = vrot.slane %v6068_v5, 7  ;;  %v1727_v25 = vrot.slane %v1626_v46, 7  ;;  %v6135_v37 = vmax.f32 %v4702_v62, 0.0 }
 0x2e5   : > { %v2087_v11 = vrot.slane %v4952_v60, 2  ;;  %v4987_v12 = vrot.slane %v6139_v27, 7 }
 0x2e6   : > { %1987 = vrot.lane.b32.xlu2 %v1916_v56, %s3450_s18  ;;  %2150 = vrot.lane.b32.xlu1 %v2079_v19, %s3451_s19  ;;  %v4911_v19 = vrot.slane %v6059_v29, 7  ;;  %v4918_v56 = vsel %vm267_vm0, %v4865_v38, %v4869_v58  ;;  %v4930_v29 = vsel %vm267_vm0, %v4889_v36, %v4893_v44  ;;  %v4946_v6 = vsel %vm267_vm0, %v1724_v30, %v1725_v34 }
 0x2e7   : > { %6133 = vst [vmem:[#allocation19_spill] sm:$0xff] %v4946_v6  ;;  %v4965_v52 = vrot.slane %v6135_v37, 7  ;;  %v6136_v30 = vmax.f32 %v4705_v10, 0.0  ;;  %v2088_v49 = vrot.slane %v4946_v6, 2  ;;  %v4979_v46 = vsel %vm267_vm0, %v4938_v35, %v4942_v16 }
 0x2e8   : > { %v4957_v5 = vsel %vm267_vm0, %v4911_v19, %v4922_v45  ;;  %6137 = vst [vmem:[#allocation7_spill] sm:$0xff] %v4979_v46  ;;  %v6138_v37 = vmax.f32 %v4823_v8, 0.0  ;;  %v5003_v27 = vsel %vm267_vm0, %v1727_v25, %v1728_v40  ;;  %v5006_v24 = vsel %vm267_vm0, %v1669_v33, %v1727_v25 }
 0x2e9   : > { %v4969_v14 = vrot.slane %v6136_v30, 7  ;;  %v6078_v30 = vmax.f32 %v4627_v0, 0.0  ;;  %v1928_v33 = vrot.slane %v5003_v27, 1 }
 0x2ea   : > { %v1812_v10 = vrot.slane %v6138_v37, 5 }
 0x2eb   : > { %v4997_v46 = vsel %vm267_vm0, %v4965_v52, %v4969_v14 }
 0x2ec   : > { %1991 = vrot.lane.b32.xlu0 %v1921_v51, %s3450_s18  ;;  %v2085_v51 = vrot.slane %v4884_v22, 2  ;;  %v2089_v22 = vsel %vm624_vm2, %v2087_v11, %v2088_v49  ;;  %v5013_v11 = vrot.slane %v6078_v30, 7 }
 0x2ee   : > { %2154 = vrot.lane.b32.xlu2 %v2084_v63, %s3451_s19  ;;  %1989 = vrot.lane.b32.xlu1 %v1919_v41, %s3450_s18  ;;  %v1922_v63 = vrot.slane %v4952_v60, 1  ;;  %v1923_v41 = vrot.slane %v4946_v6, 1  ;;  %v6140_v6 = vmax.f32 %v4711_v32, 0.0  ;;  %v2086_v37 = vsel %vm624_vm2, %v2083_v2, %v2085_v51 }
 0x2ef   : > { %v1927_v51 = vrot.slane %v5006_v24, 1 }
 0x2f0   : > { %v4991_v60 = vrot.slane %v6140_v6, 7  ;;  %v1924_v8 = vsel %vm458_vm1, %v1922_v63, %v1923_v41  ;;  %v1860_v6 = vsel %vm267_vm0, %v1725_v34, %v1812_v10  ;;  %v6141_v63 = vmax.f32 %v4714_v7, 0.0 }
 0x2f1   : > { %v2090_v25 = vrot.slane %v1860_v6, 2  ;;  %v1813_v10 = vrot.slane %v1627_v57, 5  ;;  %v2093_v57 = vrot.slane %v5003_v27, 2 }
 0x2f2   : > { %v5022_v2 = vsel %vm267_vm0, %v4987_v12, %v4991_v60 }
 0x2f3   : > { %v1861_v7 = vsel %vm267_vm0, %v1728_v40, %v1813_v10 }
 0x2f4   : > { %2158 = vrot.lane.b32.xlu0 %v2089_v22, %s3451_s19  ;;  %v5017_v22 = vrot.slane %v6141_v63, 7  ;;  %v2091_v63 = vsel %vm624_vm2, %v2088_v49, %v2090_v25  ;;  %v1930_v0 = vrot.slane %v1861_v7, 1 }
 0x2f6   : > { %1993 = vrot.lane.b32.xlu2 %v1924_v8, %s3450_s18  ;;  %2156 = vrot.lane.b32.xlu1 %v2086_v37, %s3451_s19  ;;  %6142 = vst [vmem:[#allocation8_spill] sm:$0xff] %v5017_v22  ;;  %v1925_v8 = vrot.slane %v1860_v6, 1  ;;  %v5029_v34 = vsel %vm267_vm0, %v5017_v22, %v5013_v11  ;;  %v1929_v37 = vsel %vm458_vm1, %v1927_v51, %v1928_v33  ;;  %v2095_v6 = vrot.slane %v1861_v7, 2 }
 0x2f7   : > { %6143 = vst [vmem:[#allocation9_spill] sm:$0xff] %v5029_v34  ;;  %v2092_v34 = vrot.slane %v5006_v24, 2  ;;  %v6144_v51 = vmax.f32 %v4659_v42, 0.0  ;;  %v1931_v40 = vsel %vm458_vm1, %v1928_v33, %v1930_v0  ;;  %v2098_v33 = vrot.slane %v4842_v9, 2 }
 0x2f8   : > { %v1926_v30 = vsel %vm458_vm1, %v1923_v41, %v1925_v8  ;;  %v2096_v41 = vsel %vm624_vm2, %v2093_v57, %v2095_v6  ;;  %v6146_v8 = vmax.f32 %v4666_v43, 0.0  ;;  %v6147_v6 = vmax.f32 %v4672_v17, 0.0 }
 0x2f9   : > { %v1814_v22 = vrot.slane %v6144_v51, 5 }
 0x2fa   : > { %v1671_v10 = vrot.slane %v6146_v8, 1  ;;  %v1672_v51 = vrot.slane %v6147_v6, 1  ;;  %v1943_v8 = vrot.slane %v4875_v20, 1 }
 0x2fb   : > { %v1862_v25 = vsel %vm267_vm0, %v4809_v15, %v1814_v22 }
 0x2fc   : > { %1997 = vrot.lane.b32.xlu0 %v1929_v37, %s3450_s18  ;;  %v6145_v37 = vmax.f32 %v4656_v23, 0.0  ;;  %v1933_v23 = vrot.slane %v4842_v9, 1  ;;  %v1935_v7 = vrot.slane %v1862_v25, 1  ;;  %v5086_v17 = vsel %vm267_vm0, %v1672_v51, %v4837_v55 }
 0x2fe   : > { %2160 = vrot.lane.b32.xlu2 %v2091_v63, %s3451_s19  ;;  %1995 = vrot.lane.b32.xlu1 %v1926_v30, %s3450_s18  ;;  %v1670_v49 = vrot.slane %v6145_v37, 1  ;;  %v2094_v30 = vsel %vm624_vm2, %v2092_v34, %v2093_v57  ;;  %v1936_v22 = vsel %vm458_vm1, %v1933_v23, %v1935_v7  ;;  %v5068_v63 = vsel %vm267_vm0, %v1671_v10, %v4804_v53 }
 0x2ff   : > { %v2102_v43 = vrot.slane %v5068_v63, 2  ;;  %v2103_v57 = vrot.slane %v4853_v50, 2  ;;  %v1937_v37 = vrot.slane %v5068_v63, 1  ;;  %v6149_v10 = vmax.f32 %v4675_v13, 0.0 }
 0x300   : > { %v5054_v42 = vsel %vm267_vm0, %v1670_v49, %v4799_v28  ;;  %v1938_v49 = vrot.slane %v4853_v50, 1  ;;  %v2108_v13 = vrot.slane %v4875_v20, 2 }
 0x301   : > { %v2097_v0 = vrot.slane %v5054_v42, 2  ;;  %v1932_v15 = vrot.slane %v5054_v42, 1 }
 0x303   : > { %v2099_v34 = vsel %vm624_vm2, %v2097_v0, %v2098_v33  ;;  %v1934_v28 = vsel %vm458_vm1, %v1932_v15, %v1933_v23  ;;  %v1939_v23 = vsel %vm458_vm1, %v1937_v37, %v1938_v49  ;;  %v1816_v0 = vrot.slane %v6149_v10, 5 }
 0x304   : > { %2164 = vrot.lane.b32.xlu0 %v2096_v41, %s3451_s19  ;;  %v2100_v41 = vrot.slane %v1862_v25, 2  ;;  %v1942_v25 = vrot.slane %v5086_v17, 1  ;;  %v2107_v37 = vrot.slane %v5086_v17, 2 }
 0x306   : > { %1999 = vrot.lane.b32.xlu2 %v1931_v40, %s3450_s18  ;;  %2162 = vrot.lane.b32.xlu1 %v2094_v30, %s3451_s19  ;;  %v6148_v40 = vmax.f32 %v4669_v47, 0.0  ;;  %v2104_v30 = vsel %vm624_vm2, %v2102_v43, %v2103_v57  ;;  %v2101_v7 = vsel %vm624_vm2, %v2098_v33, %v2100_v41  ;;  %v6150_v43 = vmax.f32 %v4681_v39, 0.0 }
 0x308   : > { %v1815_v53 = vrot.slane %v6148_v40, 5  ;;  %v1817_v6 = vrot.slane %v6150_v43, 5  ;;  %v2109_v40 = vsel %vm624_vm2, %v2107_v37, %v2108_v13  ;;  %v1958_v37 = vrot.slane %v4957_v5, 1 }
 0x30a   : > { %v1863_v47 = vsel %vm267_vm0, %v4813_v54, %v1815_v53  ;;  %v1864_v54 = vsel %vm267_vm0, %v4846_v48, %v1816_v0  ;;  %v1865_v53 = vsel %vm267_vm0, %v4869_v58, %v1817_v6 }
 0x30b   : > { %v2105_v15 = vrot.slane %v1863_v47, 2  ;;  %v1940_v33 = vrot.slane %v1863_v47, 1  ;;  %v1945_v51 = vrot.slane %v1864_v54, 1 }
 0x30c   : > { %2003 = vrot.lane.b32.xlu0 %v1936_v22, %s3450_s18  ;;  %v1944_v22 = vsel %vm458_vm1, %v1942_v25, %v1943_v8  ;;  %v2113_v25 = vrot.slane %v4918_v56, 2 }
 0x30d   : > { %v2106_v55 = vsel %vm624_vm2, %v2103_v57, %v2105_v15  ;;  %v6151_v57 = vmax.f32 %v4678_v18, 0.0  ;;  %v1946_v48 = vsel %vm458_vm1, %v1943_v8, %v1945_v51  ;;  %v1948_v18 = vrot.slane %v4918_v56, 1 }
 0x30e   : > { %2166 = vrot.lane.b32.xlu2 %v2099_v34, %s3451_s19  ;;  %2001 = vrot.lane.b32.xlu1 %v1934_v28, %s3450_s18  ;;  %v1941_v34 = vsel %vm458_vm1, %v1938_v49, %v1940_v33  ;;  %v2110_v28 = vrot.slane %v1864_v54, 2  ;;  %v2118_v15 = vrot.slane %v4930_v29, 2  ;;  %v6153_v33 = vmax.f32 %v4690_v1, 0.0 }
 0x30f   : > { %v1673_v41 = vrot.slane %v6151_v57, 1  ;;  %v2115_v54 = vrot.slane %v1865_v53, 2  ;;  %v6155_v57 = vmax.f32 %v4693_v31, 0.0 }
 0x310   : > { %v2111_v49 = vsel %vm624_vm2, %v2108_v13, %v2110_v28  ;;  %v6154_v13 = vmax.f32 %v4687_v26, 0.0 }
 0x311   : > { %v5120_v39 = vsel %vm267_vm0, %v1673_v41, %v4865_v38  ;;  %v2116_v6 = vsel %vm624_vm2, %v2113_v25, %v2115_v54  ;;  %v1819_v41 = vrot.slane %v6155_v57, 5  ;;  %v6159_v54 = vld [vmem:[#allocation18_spill] sm:$0xff] }
 0x312   : > { %v2112_v47 = vrot.slane %v5120_v39, 2  ;;  %v1947_v58 = vrot.slane %v5120_v39, 1 }
 0x314   : > { %2170 = vrot.lane.b32.xlu0 %v2104_v30, %s3451_s19  ;;  %v1950_v30 = vrot.slane %v1865_v53, 1  ;;  %v2114_v10 = vsel %vm624_vm2, %v2112_v47, %v2113_v25  ;;  %v1949_v38 = vsel %vm458_vm1, %v1947_v58, %v1948_v18  ;;  %v6156_v47 = vmax.f32 %v4699_v59, 0.0 }
 0x316   : > { %2005 = vrot.lane.b32.xlu2 %v1939_v23, %s3450_s18  ;;  %2168 = vrot.lane.b32.xlu1 %v2101_v7, %s3451_s19  ;;  %v6152_v23 = vmax.f32 %v4684_v4, 0.0  ;;  %v1951_v8 = vsel %vm458_vm1, %v1948_v18, %v1950_v30  ;;  %v1820_v25 = vrot.slane %v6156_v47, 5 }
 0x318   : > { %v1674_v7 = vrot.slane %v6152_v23, 1  ;;  %v2123_v23 = vrot.slane %v4957_v5, 2 }
 0x31a   : > { %v5134_v0 = vsel %vm267_vm0, %v1674_v7, %v4889_v36  ;;  %v1818_v36 = vrot.slane %v6154_v13, 5 }
 0x31b   : > { %v2117_v4 = vrot.slane %v5134_v0, 2 }
 0x31c   : > { %2009 = vrot.lane.b32.xlu0 %v1944_v22, %s3450_s18  ;;  %v1675_v22 = vrot.slane %v6153_v33, 1  ;;  %v1866_v26 = vsel %vm267_vm0, %v4893_v44, %v1818_v36  ;;  %v1867_v44 = vsel %vm267_vm0, %v4922_v45, %v1819_v41  ;;  %v6157_v45 = vmax.f32 %v4696_v21, 0.0 }
 0x31d   : > { %v2119_v28 = vsel %vm624_vm2, %v2117_v4, %v2118_v15  ;;  %v2125_v7 = vrot.slane %v1867_v44, 2 }
 0x31e   : > { %2172 = vrot.lane.b32.xlu2 %v2106_v55, %s3451_s19  ;;  %2007 = vrot.lane.b32.xlu1 %v1941_v34, %s3450_s18  ;;  %v1952_v55 = vrot.slane %v5134_v0, 1  ;;  %v1953_v34 = vrot.slane %v4930_v29, 1  ;;  %v5152_v1 = vsel %vm267_vm0, %v1675_v22, %v4911_v19  ;;  %v1868_v22 = vsel %vm267_vm0, %v4942_v16, %v1820_v25 }
 0x31f   : > { %v1957_v51 = vrot.slane %v5152_v1, 1  ;;  %v2126_v33 = vsel %vm624_vm2, %v2123_v23, %v2125_v7  ;;  %v6163_v7 = vld [vmem:[#allocation3_spill] sm:$0xff] }
 0x320   : > { %v1954_v43 = vsel %vm458_vm1, %v1952_v55, %v1953_v34  ;;  %v6158_v55 = vmax.f32 %v4702_v62, 0.0 }
 0x321   : > { %v1959_v19 = vsel %vm458_vm1, %v1957_v51, %v1958_v37 }
 0x324   : > { %2176 = vrot.lane.b32.xlu0 %v2111_v49, %s3451_s19  ;;  %v2120_v49 = vrot.slane %v1866_v26, 2 }
 0x326   : > { %2011 = vrot.lane.b32.xlu2 %v1946_v48, %s3450_s18  ;;  %2174 = vrot.lane.b32.xlu1 %v2109_v40, %s3451_s19  ;;  %v1955_v48 = vrot.slane %v1866_v26, 1  ;;  %v2121_v53 = vsel %vm624_vm2, %v2118_v15, %v2120_v49  ;;  %v6161_v26 = vld [vmem:[#allocation7_spill] sm:$0xff] }
 0x327   : > { %v1963_v51 = vrot.slane %v6161_v26, 1  ;;  %v2128_v57 = vrot.slane %v6161_v26, 2 }
 0x328   : > { %v2147_v40 = vpop.permute.xlu2 %2146  ;;  %v1956_v18 = vsel %vm458_vm1, %v1953_v34, %v1955_v48  ;;  %v1677_v34 = vrot.slane %v6158_v55, 1  ;;  %v6166_v55 = vld [vmem:[#allocation17_spill] sm:$0xff] }
 0x32c   : > { %2015 = vrot.lane.b32.xlu0 %v1951_v8, %s3450_s18  ;;  %v1960_v8 = vrot.slane %v1867_v44, 1 }
 0x32e   : > { %2178 = vrot.lane.b32.xlu2 %v2114_v10, %s3451_s19  ;;  %2013 = vrot.lane.b32.xlu1 %v1949_v38, %s3450_s18  ;;  %v2122_v10 = vrot.slane %v5152_v1, 2  ;;  %v1676_v38 = vrot.slane %v6157_v45, 1  ;;  %v1961_v59 = vsel %vm458_vm1, %v1958_v37, %v1960_v8  ;;  %v1965_v37 = vrot.slane %v1868_v22, 1  ;;  %v6164_v8 = vld [vmem:[#allocation14_spill] sm:$0xff] }
 0x330   : > { %v1984_v15 = vpop.permute.xlu2 %1983  ;;  %v5193_v21 = vsel %vm267_vm0, %v1676_v38, %v4938_v35  ;;  %v1966_v49 = vsel %vm458_vm1, %v1963_v51, %v1965_v37 }
 0x331   : > { %v2235_v13 = vsel %vm790_vm4, %v6159_v54, %v1984_v15  ;;  %v2127_v62 = vrot.slane %v5193_v21, 2  ;;  %v1962_v41 = vrot.slane %v5193_v21, 1 }
 0x333   : > { %v2129_v48 = vsel %vm624_vm2, %v2127_v62, %v2128_v57 }
 0x334   : > { %2182 = vrot.lane.b32.xlu0 %v2119_v28, %s3451_s19  ;;  %v6160_v28 = vld [vmem:[#allocation15_spill] sm:$0xff] }
 0x336   : > { %2017 = vrot.lane.b32.xlu2 %v1954_v43, %s3450_s18  ;;  %2180 = vrot.lane.b32.xlu1 %v2116_v6, %s3451_s19 }
 0x33c   : > { %2021 = vrot.lane.b32.xlu0 %v1959_v19, %s3450_s18  ;;  %v5223_v19 = vsel %vm267_vm0, %v1677_v34, %v4965_v52  ;;  %v1968_v52 = vrot.slane %v4997_v46, 1 }
 0x33d   : > { %v1967_v25 = vrot.slane %v5223_v19, 1 }
 0x33e   : > { %2184 = vrot.lane.b32.xlu2 %v2121_v53, %s3451_s19  ;;  %2019 = vrot.lane.b32.xlu1 %v1956_v18, %s3450_s18  ;;  %v1978_v31 = vpop.permute.xlu0 %1977  ;;  %v6162_v53 = vmax.f32 %v4708_v3, 0.0 }
 0x33f   : > { %v2232_v43 = vsel %vm790_vm4, %v6160_v28, %v1978_v31  ;;  %v2132_v31 = vrot.slane %v5223_v19, 2  ;;  %v6167_v28 = vmax.f32 %v4711_v32, 0.0 }
 0x340   : > { %v1982_v30 = vpop.permute.xlu1 %1981  ;;  %v1678_v18 = vrot.slane %v6162_v53, 1 }
 0x341   : > { %v2234_v58 = vsel %vm790_vm4, %v4746_v61, %v1982_v30  ;;  %v2124_v61 = vsel %vm624_vm2, %v2122_v10, %v2123_v23  ;;  %v2133_v30 = vrot.slane %v4997_v46, 2  ;;  %v2145_v23 = vpop.permute.xlu2 %2144  ;;  %v6165_v10 = vmax.f32 %v6164_v8, 0.0 }
 0x342   : > { %v5179_v4 = vsel %vm821_vm5, %v2234_v58, %v2147_v40  ;;  %v1964_v40 = vsel %vm458_vm1, %v1962_v41, %v1963_v51  ;;  %v2130_v58 = vrot.slane %v1868_v22, 2  ;;  %v2138_v41 = vrot.slane %v5022_v2, 2 }
 0x343   : > { %3288 = vmatmul.msk.f32.vlgmr.msrb.gmra.mxu3 %vm885_vm6, %v5179_v4  ;;  %v1821_v45 = vrot.slane %v6165_v10, 5  ;;  %v2134_v38 = vsel %vm624_vm2, %v2132_v31, %v2133_v30  ;;  %v6170_v31 = vld [vmem:[#allocation16_spill] sm:$0xff] }
 0x344   : > { %2188 = vrot.lane.b32.xlu0 %v2126_v33, %s3451_s19  ;;  %v1969_v33 = vsel %vm458_vm1, %v1967_v25, %v1968_v52 }
 0x345   : > { %v1869_v22 = vsel %vm267_vm0, %v4969_v14, %v1821_v45 }
 0x346   : > { %2023 = vrot.lane.b32.xlu2 %v1961_v59, %s3450_s18  ;;  %2186 = vrot.lane.b32.xlu1 %v2124_v61, %s3451_s19  ;;  %v2149_v36 = vpop.permute.xlu0 %2148  ;;  %v2131_v59 = vsel %vm624_vm2, %v2128_v57, %v2130_v58  ;;  %v5252_v61 = vsel %vm267_vm0, %v1678_v18, %v4987_v12  ;;  %v1970_v51 = vrot.slane %v1869_v22, 1 }
 0x347   : > { %v5202_v16 = vsel %vm821_vm5, %v2235_v13, %v2149_v36  ;;  %v1972_v13 = vrot.slane %v5252_v61, 1  ;;  %v1973_v36 = vrot.slane %v5022_v2, 1 }
 0x348   : > { %v2143_v6 = vpop.permute.xlu1 %2142  ;;  %v1971_v37 = vsel %vm458_vm1, %v1968_v52, %v1970_v51 }
 0x349   : > { %v5206_v35 = vsel %vm821_vm5, %v2232_v43, %v2143_v6  ;;  %v1822_v43 = vrot.slane %v6167_v28, 5  ;;  %v2135_v6 = vrot.slane %v1869_v22, 2  ;;  %v1974_v14 = vsel %vm458_vm1, %v1972_v13, %v1973_v36  ;;  %v1988_v57 = vpop.permute.xlu2 %1987 }
 0x34a   : > { %3321 = vmatmul.msk.f32.vlgmr.msrb.gmra.mxu0 %vm885_vm6, %v5206_v35  ;;  %3356 = vmatmul.msk.f32.vlgmr.msrb.gmra.mxu1 %vm885_vm6, %v5206_v35 }
 0x34b   : > { %3289 = vmatmul.msk.f32.gmra.mxu3 %vm885_vm6, %v5202_v16  ;;  %v2136_v32 = vsel %vm624_vm2, %v2133_v30, %v2135_v6  ;;  %v1870_v62 = vsel %vm267_vm0, %v4991_v60, %v1822_v43  ;;  %v6171_v30 = vmax.f32 %v6170_v31, 0.0 }
 0x34c   : > { %2027 = vrot.lane.b32.xlu0 %v1966_v49, %s3450_s18  ;;  %v2140_v49 = vrot.slane %v1870_v62, 2  ;;  %v1975_v18 = vrot.slane %v1870_v62, 1 }
 0x34e   : > { %2190 = vrot.lane.b32.xlu2 %v2129_v48, %s3451_s19  ;;  %2025 = vrot.lane.b32.xlu1 %v1964_v40, %s3450_s18  ;;  %v1986_v15 = vpop.permute.xlu0 %1985  ;;  %v6168_v48 = vld [vmem:[#allocation2_spill] sm:$0xff]  ;;  %v2141_v25 = vsel %vm624_vm2, %v2138_v41, %v2140_v49  ;;  %v1976_v58 = vsel %vm458_vm1, %v1973_v36, %v1975_v18 }
 0x34f   : > { %v2236_v34 = vsel %vm790_vm4, %v6166_v55, %v1986_v15  ;;  %v6169_v40 = vmax.f32 %v6168_v48, 0.0 }
 0x350   : > { %v1980_v44 = vpop.permute.xlu1 %1979 }
 0x351   : > { %v2233_v47 = vsel %vm790_vm4, %v6163_v7, %v1980_v44  ;;  %v1823_v53 = vrot.slane %v6169_v40, 5  ;;  %v2137_v44 = vrot.slane %v5252_v61, 2  ;;  %v6172_v7 = vld [vmem:[#allocation4_spill] sm:$0xff]  ;;  %v6178_v40 = vld [vmem:[#allocation19_spill] sm:$0xff] }
 0x352   : > { %v5238_v3 = vsel %vm821_vm5, %v2233_v47, %v2145_v23  ;;  %v1679_v23 = vrot.slane %v6171_v30, 1  ;;  %v2237_v60 = vsel %vm790_vm4, %v6172_v7, %v1988_v57 }
 0x353   : > { %3290 = vmatmul.msk.f32.gmra.mxu3 %vm885_vm6, %v5206_v35  ;;  %3322 = vmatmul.msk.f32.gmra.mxu0 %vm885_vm6, %v5238_v3  ;;  %v2139_v8 = vsel %vm624_vm2, %v2137_v44, %v2138_v41  ;;  %v1871_v10 = vsel %vm267_vm0, %v5013_v11, %v1823_v53  ;;  %v6177_v41 = vld [vmem:[#allocation6_spill] sm:$0xff] }
 0x354   : > { %3357 = vmatmul.msk.f32.gmra.mxu1 %vm885_vm6, %v5238_v3  ;;  %2194 = vrot.lane.b32.xlu0 %v2134_v38, %s3451_s19  ;;  %v6174_v38 = vld [vmem:[#allocation5_spill] sm:$0xff]  ;;  %v2299_v22 = vrot.slane %v1871_v10, 1 }
 0x356   : > { %2029 = vrot.lane.b32.xlu2 %v1969_v33, %s3450_s18  ;;  %2192 = vrot.lane.b32.xlu1 %v2131_v59, %s3451_s19  ;;  %v6175_v33 = vld [vmem:[#allocation9_spill] sm:$0xff] }
 0x357   : > { %v2297_v59 = vrot.slane %v6175_v33, 1 }
 0x358   : > { %v2151_v54 = vpop.permute.xlu1 %2150 }
 0x359   : > { %v5265_v12 = vsel %vm821_vm5, %v2236_v34, %v2151_v54  ;;  %v2308_v34 = vrot.slane %v6175_v33, 2  ;;  %v2155_v54 = vpop.permute.xlu2 %2154  ;;  %v2300_v36 = vsel %vm458_vm1, %v2297_v59, %v2299_v22 }
 0x35b   : > { %3291 = vmatmul.msk.f32.gmra.mxu3 %vm885_vm6, %v5238_v3  ;;  %3323 = vmatmul.msk.f32.gmra.mxu0 %vm885_vm6, %v5179_v4  ;;  %v2153_v4 = vpop.permute.xlu0 %2152 }
 0x35c   : > { %3358 = vmatmul.msk.f32.gmra.mxu1 %vm885_vm6, %v5265_v12  ;;  %2033 = vrot.lane.b32.xlu0 %v1974_v14, %s3450_s18  ;;  %v2267_v47 = vsel %vm821_vm5, %v2237_v60, %v2153_v4  ;;  %v2310_v14 = vrot.slane %v1871_v10, 2 }
 0x35e   : > { %2196 = vrot.lane.b32.xlu2 %v2136_v32, %s3451_s19  ;;  %2031 = vrot.lane.b32.xlu1 %v1971_v37, %s3450_s18  ;;  %v2311_v62 = vsel %vm624_vm2, %v2308_v34, %v2310_v14 }
 0x360   : > { %v1990_v52 = vpop.permute.xlu1 %1989 }
 0x361   : > { %v2238_v15 = vsel %vm790_vm4, %v6174_v38, %v1990_v52  ;;  %v1994_v57 = vpop.permute.xlu2 %1993 }
 0x362   : > { %v2268_v13 = vsel %vm821_vm5, %v2238_v15, %v2155_v54  ;;  %v2240_v49 = vsel %vm790_vm4, %v6177_v41, %v1994_v57 }
 0x363   : > { %3292 = vmatmul.msk.f32.gmra.mxu3 %vm885_vm6, %v5265_v12  ;;  %3324 = vmatmul.msk.f32.gmra.mxu0 %vm885_vm6, %v5202_v16  ;;  %v6173_v16 = vld [vmem:[#allocation8_spill] sm:$0xff]  ;;  %v1992_v6 = vpop.permute.xlu0 %1991 }
 0x364   : > { %3359 = vmatmul.msk.f32.gmra.mxu1 %vm885_vm6, %v2267_v47  ;;  %2200 = vrot.lane.b32.xlu0 %v2141_v25, %s3451_s19  ;;  %v5305_v45 = vsel %vm267_vm0, %v1679_v23, %v6173_v16 }
 0x365   : > { %v2307_v55 = vrot.slane %v5305_v45, 2  ;;  %v2296_v11 = vrot.slane %v5305_v45, 1 }
 0x366   : > { %2035 = vrot.lane.b32.xlu2 %v1976_v58, %s3450_s18  ;;  %2198 = vrot.lane.b32.xlu1 %v2139_v8, %s3451_s19 }
 0x367   : > { %v2309_v28 = vsel %vm624_vm2, %v2307_v55, %v2308_v34  ;;  %v2298_v43 = vsel %vm458_vm1, %v2296_v11, %v2297_v59 }
 0x368   : > { %v2157_v51 = vpop.permute.xlu1 %2156 }
 0x369   : > { %v2161_v18 = vpop.permute.xlu2 %2160 }
 0x36b   : > { %3293 = vmatmul.msk.f32.gmra.mxu3 %vm885_vm6, %v2267_v47  ;;  %3325 = vmatmul.msk.f32.gmra.mxu0 %vm885_vm6, %v5206_v35  ;;  %v6176_v35 = vld [vmem:[#allocation20_spill] sm:$0xff]  ;;  %v2159_v4 = vpop.permute.xlu0 %2158 }
 0x36c   : > { %3360 = vmatmul.msk.f32.gmra.mxu1 %vm885_vm6, %v2268_v13  ;;  %2303 = vrot.lane.b32.xlu0 %v2300_v36, %s3450_s18  ;;  %v2239_v32 = vsel %vm790_vm4, %v6176_v35, %v1992_v6 }
 0x36d   : > { %v2269_v37 = vsel %vm821_vm5, %v2239_v32, %v2157_v51 }
 0x36e   : > { %2312 = vrot.lane.b32.xlu2 %v2309_v28, %s3451_s19  ;;  %2301 = vrot.lane.b32.xlu1 %v2298_v43, %s3450_s18 }
 0x370   : > { %v1996_v48 = vpop.permute.xlu1 %1995 }
 0x371   : > { %v2241_v53 = vsel %vm790_vm4, %v6178_v40, %v1996_v48  ;;  %v2000_v7 = vpop.permute.xlu2 %1999 }
 0x372   : > { %v2271_v44 = vsel %vm821_vm5, %v2241_v53, %v2161_v18 }
 0x373   : > { %3294 = vmatmul.msk.f32.gmra.mxu3 %vm885_vm6, %v2268_v13  ;;  %3326 = vmatmul.msk.f32.gmra.mxu0 %vm885_vm6, %v5238_v3  ;;  %v2270_v3 = vsel %vm821_vm5, %v2240_v49, %v2159_v4  ;;  %v1998_v31 = vpop.permute.xlu0 %1997 }
 0x374   : > { %3361 = vmatmul.msk.f32.gmra.mxu1 %vm885_vm6, %v2269_v37 }
 0x376   : > { %2314 = vrot.lane.b32.xlu1 %v2311_v62, %s3451_s19 }
 0x378   : > { %v2163_v30 = vpop.permute.xlu1 %2162 }
 0x379   : > { %v2167_v58 = vpop.permute.xlu2 %2166 }
 0x37b   : > { %3295 = vmatmul.msk.f32.gmra.mxu3 %vm885_vm6, %v2269_v37  ;;  %3327 = vmatmul.msk.f32.gmra.mxu0 %vm885_vm6, %v5265_v12  ;;  %v2242_v12 = vsel %vm790_vm4, %v5006_v24, %v1998_v31  ;;  %v2165_v60 = vpop.permute.xlu0 %2164 }
 0x37c   : > { %3362 = vmatmul.msk.f32.gmra.mxu1 %vm885_vm6, %v2270_v3  ;;  %v2272_v23 = vsel %vm821_vm5, %v2242_v12, %v2163_v30 }
 0x380   : > { %v2002_v24 = vpop.permute.xlu1 %2001 }
 0x381   : > { %v2244_v52 = vsel %vm790_vm4, %v5054_v42, %v2002_v24  ;;  %v2006_v42 = vpop.permute.xlu2 %2005 }
 0x382   : > { %v2274_v8 = vsel %vm821_vm5, %v2244_v52, %v2167_v58  ;;  %v2246_v59 = vsel %vm790_vm4, %v5068_v63, %v2006_v42 }
 0x383   : > { %3296 = vmatmul.msk.f32.gmra.mxu3 %vm885_vm6, %v2270_v3  ;;  %3328 = vmatmul.msk.f32.gmra.mxu0 %vm885_vm6, %v2267_v47  ;;  %v2243_v47 = vsel %vm790_vm4, %v5003_v27, %v2000_v7  ;;  %v2004_v27 = vpop.permute.xlu0 %2003 }
 0x384   : > { %3363 = vmatmul.msk.f32.gmra.mxu1 %vm885_vm6, %v2271_v44  ;;  %v2273_v25 = vsel %vm821_vm5, %v2243_v47, %v2165_v60  ;;  %v2245_v16 = vsel %vm790_vm4, %v4842_v9, %v2004_v27 }
 0x388   : > { %v2169_v10 = vpop.permute.xlu1 %2168 }
 0x389   : > { %v2275_v38 = vsel %vm821_vm5, %v2245_v16, %v2169_v10  ;;  %v2173_v34 = vpop.permute.xlu2 %2172 }
 0x38b   : > { %3297 = vmatmul.msk.f32.gmra.mxu3 %vm885_vm6, %v2271_v44  ;;  %3329 = vmatmul.msk.f32.gmra.mxu0 %vm885_vm6, %v2268_v13  ;;  %v2171_v15 = vpop.permute.xlu0 %2170 }
 0x38c   : > { %3364 = vmatmul.msk.f32.gmra.mxu1 %vm885_vm6, %v2272_v23  ;;  %v2276_v22 = vsel %vm821_vm5, %v2246_v59, %v2171_v15 }
 0x390   : > { %v2008_v9 = vpop.permute.xlu1 %2007 }
 0x391   : > { %v2247_v55 = vsel %vm790_vm4, %v4853_v50, %v2008_v9  ;;  %v2012_v50 = vpop.permute.xlu2 %2011 }
 0x392   : > { %v2277_v11 = vsel %vm821_vm5, %v2247_v55, %v2173_v34  ;;  %v2249_v43 = vsel %vm790_vm4, %v4875_v20, %v2012_v50 }
 0x393   : > { %3298 = vmatmul.msk.f32.gmra.mxu3 %vm885_vm6, %v2272_v23  ;;  %3330 = vmatmul.msk.f32.gmra.mxu0 %vm885_vm6, %v2269_v37  ;;  %v2010_v63 = vpop.permute.xlu0 %2009 }
 0x394   : > { %3365 = vmatmul.msk.f32.gmra.mxu1 %vm885_vm6, %v2273_v25  ;;  %v2248_v13 = vsel %vm790_vm4, %v5086_v17, %v2010_v63 }
 0x398   : > { %v2175_v54 = vpop.permute.xlu1 %2174 }
 0x399   : > { %v2278_v36 = vsel %vm821_vm5, %v2248_v13, %v2175_v54  ;;  %v2179_v37 = vpop.permute.xlu2 %2178 }
 0x39b   : > { %3299 = vmatmul.msk.f32.gmra.mxu3 %vm885_vm6, %v2273_v25  ;;  %3331 = vmatmul.msk.f32.gmra.mxu0 %vm885_vm6, %v2270_v3  ;;  %v2177_v28 = vpop.permute.xlu0 %2176 }
 0x39c   : > { %3366 = vmatmul.msk.f32.gmra.mxu1 %vm885_vm6, %v2274_v8  ;;  %v2279_v6 = vsel %vm821_vm5, %v2249_v43, %v2177_v28 }
 0x3a0   : > { %v2014_v17 = vpop.permute.xlu1 %2013 }
 0x3a1   : > { %v2250_v32 = vsel %vm790_vm4, %v5120_v39, %v2014_v17  ;;  %v2018_v40 = vpop.permute.xlu2 %2017 }
 0x3a2   : > { %v2280_v20 = vsel %vm821_vm5, %v2250_v32, %v2179_v37  ;;  %v2252_v31 = vsel %vm790_vm4, %v5134_v0, %v2018_v40 }
 0x3a3   : > { %3300 = vmatmul.msk.f32.gmra.mxu3 %vm885_vm6, %v2274_v8  ;;  %3332 = vmatmul.msk.f32.gmra.mxu0 %vm885_vm6, %v2271_v44  ;;  %v2016_v62 = vpop.permute.xlu0 %2015 }
 0x3a4   : > { %3367 = vmatmul.msk.f32.gmra.mxu1 %vm885_vm6, %v2275_v38  ;;  %v2251_v39 = vsel %vm790_vm4, %v4918_v56, %v2016_v62 }
 0x3a8   : > { %v2181_v4 = vpop.permute.xlu1 %2180 }
 0x3a9   : > { %v2281_v3 = vsel %vm821_vm5, %v2251_v39, %v2181_v4  ;;  %v2185_v47 = vpop.permute.xlu2 %2184 }
 0x3ab   : > { %3301 = vmatmul.msk.f32.gmra.mxu3 %vm885_vm6, %v2275_v38  ;;  %3333 = vmatmul.msk.f32.gmra.mxu0 %vm885_vm6, %v2272_v23  ;;  %v2183_v53 = vpop.permute.xlu0 %2182 }
 0x3ac   : > { %3368 = vmatmul.msk.f32.gmra.mxu1 %vm885_vm6, %v2276_v22  ;;  %v2282_v56 = vsel %vm821_vm5, %v2252_v31, %v2183_v53 }
 0x3b0   : > { %v2020_v30 = vpop.permute.xlu1 %2019 }
 0x3b1   : > { %v2253_v23 = vsel %vm790_vm4, %v4930_v29, %v2020_v30  ;;  %v2024_v16 = vpop.permute.xlu2 %2023 }
 0x3b2   : > { %v2283_v0 = vsel %vm821_vm5, %v2253_v23, %v2185_v47  ;;  %v2255_v59 = vsel %vm790_vm4, %v4957_v5, %v2024_v16 }
 0x3b3   : > { %3302 = vmatmul.msk.f32.gmra.mxu3 %vm885_vm6, %v2276_v22  ;;  %3334 = vmatmul.msk.f32.gmra.mxu0 %vm885_vm6, %v2273_v25  ;;  %v2022_v25 = vpop.permute.xlu0 %2021 }
 0x3b4   : > { %3369 = vmatmul.msk.f32.gmra.mxu1 %vm885_vm6, %v2277_v11 }
 0x3b8   : > { %v2187_v52 = vpop.permute.xlu1 %2186 }
 0x3b9   : > { %v2191_v63 = vpop.permute.xlu2 %2190 }
 0x3bb   : > { %3303 = vmatmul.msk.f32.gmra.mxu3 %vm885_vm6, %v2277_v11  ;;  %3335 = vmatmul.msk.f32.gmra.mxu0 %vm885_vm6, %v2274_v8  ;;  %v2254_v8 = vsel %vm790_vm4, %v5152_v1, %v2022_v25 }
 0x3bc   : > { %3370 = vmatmul.msk.f32.gmra.mxu1 %vm885_vm6, %v2278_v36  ;;  %v2284_v27 = vsel %vm821_vm5, %v2254_v8, %v2187_v52 }
 0x3c1   : > { %v2030_v17 = vpop.permute.xlu2 %2029 }
 0x3c2   : > { %v2258_v4 = vsel %vm790_vm4, %v5223_v19, %v2030_v17 }
 0x3c3   : > { %3304 = vmatmul.msk.f32.gmra.mxu3 %vm885_vm6, %v2278_v36  ;;  %3336 = vmatmul.msk.f32.gmra.mxu0 %vm885_vm6, %v2275_v38  ;;  %v2189_v38 = vpop.permute.xlu0 %2188 }
 0x3c4   : > { %3371 = vmatmul.msk.f32.gmra.mxu1 %vm885_vm6, %v2279_v6  ;;  %v2285_v1 = vsel %vm821_vm5, %v2255_v59, %v2189_v38 }
 0x3c6   : > { %v5394_v51 = vpop.f32.mrf.mxu3 }
 0x3c7   : > { %v5396_v14 = vpop.f32.mrf.mxu0  ;;  %v5398_v35 = vpop.f32.mrf.mxu1 }
 0x3c9   : > { %v2197_v23 = vpop.permute.xlu2 %2196 }
 0x3cb   : > { %3305 = vmatmul.msk.f32.gmra.mxu3 %vm885_vm6, %v2279_v6  ;;  %3337 = vmatmul.msk.f32.gmra.mxu0 %vm885_vm6, %v2276_v22  ;;  %v2026_v22 = vpop.permute.xlu1 %2025  ;;  %v2028_v54 = vpop.permute.xlu0 %2027 }
 0x3cc   : > { %3372 = vmatmul.msk.f32.gmra.mxu1 %vm885_vm6, %v2280_v20  ;;  %v2256_v55 = vsel %vm790_vm4, %v5193_v21, %v2026_v22  ;;  %v2257_v28 = vsel %vm790_vm4, %v6161_v26, %v2028_v54 }
 0x3cd   : > { %v2286_v5 = vsel %vm821_vm5, %v2256_v55, %v2191_v63 }
 0x3ce   : > { %v5406_v57 = vpop.f32.mrf.mxu3 }
 0x3d0   : > { %v5408_v41 = vpop.f32.mrf.mxu0 }
 0x3d1   : > { %v5410_v49 = vpop.f32.mrf.mxu1  ;;  %v2036_v22 = vpop.permute.xlu2 %2035 }
 0x3d3   : > { %3306 = vmatmul.msk.f32.gmra.mxu3 %vm885_vm6, %v2280_v20  ;;  %3338 = vmatmul.msk.f32.gmra.mxu0 %vm885_vm6, %v2277_v11  ;;  %v2195_v32 = vpop.permute.xlu0 %2194 }
 0x3d4   : > { %3373 = vmatmul.msk.f32.gmra.mxu1 %vm885_vm6, %v2281_v3  ;;  %v2288_v39 = vsel %vm821_vm5, %v2258_v4, %v2195_v32 }
 0x3d6   : > { %v5418_v48 = vpop.f32.mrf.mxu3 }
 0x3d8   : > { %v5420_v18 = vpop.f32.mrf.mxu0 }
 0x3d9   : > { %v5422_v44 = vpop.f32.mrf.mxu1  ;;  %v2313_v4 = vpop.permute.xlu2 %2312 }
 0x3db   : > { %3307 = vmatmul.msk.f32.gmra.mxu3 %vm885_vm6, %v2281_v3  ;;  %3339 = vmatmul.msk.f32.gmra.mxu0 %vm885_vm6, %v2278_v36  ;;  %v2193_v36 = vpop.permute.xlu1 %2192 }
 0x3dc   : > { %3374 = vmatmul.msk.f32.gmra.mxu1 %vm885_vm6, %v2282_v56  ;;  %v2287_v43 = vsel %vm821_vm5, %v2257_v28, %v2193_v36  ;;  %v2261_v28 = vsel %vm790_vm4, %v5022_v2, %v2036_v22 }
 0x3de   : > { %v5430_v12 = vpop.f32.mrf.mxu3 }
 0x3e0   : > { %v5434_v7 = vpop.f32.mrf.mxu0 }
 0x3e1   : > { %v5436_v60 = vpop.f32.mrf.mxu1 }
 0x3e3   : > { %3308 = vmatmul.msk.f32.gmra.mxu3 %vm885_vm6, %v2282_v56  ;;  %3340 = vmatmul.msk.f32.gmra.mxu0 %vm885_vm6, %v2279_v6 }
 0x3e4   : > { %3375 = vmatmul.msk.f32.gmra.mxu1 %vm885_vm6, %v2283_v0 }
 0x3e6   : > { %v5442_v24 = vpop.f32.mrf.mxu3 }
 0x3e8   : > { %v5444_v58 = vpop.f32.mrf.mxu0 }
 0x3e9   : > { %v5446_v29 = vpop.f32.mrf.mxu1 }
 0x3eb   : > { %3309 = vmatmul.msk.f32.gmra.mxu3 %vm885_vm6, %v2283_v0  ;;  %3341 = vmatmul.msk.f32.gmra.mxu0 %vm885_vm6, %v2280_v20 }
 0x3ec   : > { %3376 = vmatmul.msk.f32.gmra.mxu1 %vm885_vm6, %v2284_v27 }
 0x3ee   : > { %v5454_v10 = vpop.f32.mrf.mxu3 }
 0x3f0   : > { %v5456_v42 = vpop.f32.mrf.mxu0 }
 0x3f1   : > { %v5458_v15 = vpop.f32.mrf.mxu1 }
 0x3f3   : > { %3310 = vmatmul.msk.f32.gmra.mxu3 %vm885_vm6, %v2284_v27  ;;  %3342 = vmatmul.msk.f32.gmra.mxu0 %vm885_vm6, %v2281_v3  ;;  %v2032_v3 = vpop.permute.xlu1 %2031 }
 0x3f4   : > { %3377 = vmatmul.msk.f32.gmra.mxu1 %vm885_vm6, %v2285_v1  ;;  %v2259_v53 = vsel %vm790_vm4, %v4997_v46, %v2032_v3 }
 0x3f5   : > { %v2289_v47 = vsel %vm821_vm5, %v2259_v53, %v2197_v23 }
 0x3f6   : > { %v5466_v9 = vpop.f32.mrf.mxu3 }
 0x3f8   : > { %v5470_v34 = vpop.f32.mrf.mxu0 }
 0x3f9   : > { %v5472_v11 = vpop.f32.mrf.mxu1 }
 0x3fb   : > { %3311 = vmatmul.msk.f32.gmra.mxu3 %vm885_vm6, %v2285_v1  ;;  %3343 = vmatmul.msk.f32.gmra.mxu0 %vm885_vm6, %v2282_v56  ;;  %v2199_v52 = vpop.permute.xlu1 %2198 }
 0x3fc   : > { %3378 = vmatmul.msk.f32.gmra.mxu1 %vm885_vm6, %v2286_v5 }
 0x3fe   : > { %v5478_v13 = vpop.f32.mrf.mxu3 }
 0x400   : > { %v5480_v50 = vpop.f32.mrf.mxu0 }
 0x401   : > { %v5482_v21 = vpop.f32.mrf.mxu1 }
 0x403   : > { %3312 = vmatmul.msk.f32.gmra.mxu3 %vm885_vm6, %v2286_v5  ;;  %3344 = vmatmul.msk.f32.gmra.mxu0 %vm885_vm6, %v2283_v0  ;;  %v2034_v0 = vpop.permute.xlu0 %2033 }
 0x404   : > { %3379 = vmatmul.msk.f32.gmra.mxu1 %vm885_vm6, %v2287_v43  ;;  %v2260_v16 = vsel %vm790_vm4, %v5252_v61, %v2034_v0 }
 0x405   : > { %v2290_v38 = vsel %vm821_vm5, %v2260_v16, %v2199_v52 }
 0x406   : > { %v2465_v6 = vpop.f32.mrf.mxu3 }
 0x408   : > { %v2581_v37 = vpop.f32.mrf.mxu0 }
 0x409   : > { %v2582_v20 = vadd.f32 %v2581_v37, %v2465_v6  ;;  %v2700_v62 = vpop.f32.mrf.mxu1 }
 0x40b   : > { %v5493_v26 = vadd.f32 %v2700_v62, %v2582_v20  ;;  %3313 = vmatmul.msk.f32.gmra.mxu3 %vm885_vm6, %v2287_v43  ;;  %3345 = vmatmul.msk.f32.gmra.mxu0 %vm885_vm6, %v2284_v27  ;;  %v2201_v55 = vpop.permute.xlu0 %2200 }
 0x40c   : > { %3380 = vmatmul.msk.f32.gmra.mxu1 %vm885_vm6, %v2288_v39  ;;  %v2291_v61 = vsel %vm821_vm5, %v2261_v28, %v2201_v55 }
 0x40e   : > { %v2468_v40 = vpop.f32.mrf.mxu3 }
 0x410   : > { %v2584_v31 = vpop.f32.mrf.mxu0 }
 0x411   : > { %v2585_v56 = vadd.f32 %v2584_v31, %v2468_v40  ;;  %v2703_v30 = vpop.f32.mrf.mxu1 }
 0x413   : > { %v5500_v19 = vadd.f32 %v2703_v30, %v2585_v56  ;;  %3314 = vmatmul.msk.f32.gmra.mxu3 %vm885_vm6, %v2288_v39  ;;  %3346 = vmatmul.msk.f32.gmra.mxu0 %vm885_vm6, %v2285_v1  ;;  %v2304_v40 = vpop.permute.xlu0 %2303 }
 0x414   : > { %3381 = vmatmul.msk.f32.gmra.mxu1 %vm885_vm6, %v2289_v47  ;;  %v2319_v30 = vsel %vm790_vm4, %v6175_v33, %v2304_v40 }
 0x416   : > { %v2471_v25 = vpop.f32.mrf.mxu3 }
 0x418   : > { %v2587_v8 = vpop.f32.mrf.mxu0 }
 0x419   : > { %v2588_v27 = vadd.f32 %v2587_v8, %v2471_v25  ;;  %v2706_v46 = vpop.f32.mrf.mxu1 }
 0x41b   : > { %v5509_v59 = vadd.f32 %v2706_v46, %v2588_v27  ;;  %3315 = vmatmul.msk.f32.gmra.mxu3 %vm885_vm6, %v2289_v47  ;;  %3347 = vmatmul.msk.f32.gmra.mxu0 %vm885_vm6, %v2286_v5  ;;  %v2302_v5 = vpop.permute.xlu1 %2301 }
 0x41c   : > { %3382 = vmatmul.msk.f32.gmra.mxu1 %vm885_vm6, %v2290_v38  ;;  %v2318_v32 = vsel %vm790_vm4, %v5305_v45, %v2302_v5 }
 0x41d   : > { %v2320_v3 = vsel %vm821_vm5, %v2318_v32, %v2313_v4 }
 0x41e   : > { %v2474_v1 = vpop.f32.mrf.mxu3 }
 0x420   : > { %v2590_v63 = vpop.f32.mrf.mxu0 }
 0x421   : > { %v2591_v54 = vadd.f32 %v2590_v63, %v2474_v1  ;;  %v2709_v36 = vpop.f32.mrf.mxu1 }
 0x423   : > { %v5517_v6 = vadd.f32 %v2709_v36, %v2591_v54  ;;  %3316 = vmatmul.msk.f32.gmra.mxu3 %vm885_vm6, %v2290_v38  ;;  %3348 = vmatmul.msk.f32.gmra.mxu0 %vm885_vm6, %v2287_v43  ;;  %v2315_v53 = vpop.permute.xlu1 %2314 }
 0x424   : > { %3383 = vmatmul.msk.f32.gmra.mxu1 %vm885_vm6, %v2291_v61  ;;  %v2321_v23 = vsel %vm821_vm5, %v2319_v30, %v2315_v53 }
 0x426   : > { %v2477_v17 = vpop.f32.mrf.mxu3 }
 0x428   : > { %v2593_v37 = vpop.f32.mrf.mxu0 }
 0x429   : > { %v2594_v20 = vadd.f32 %v2593_v37, %v2477_v17  ;;  %v2712_v62 = vpop.f32.mrf.mxu1 }
 0x42b   : > { %v5524_v2 = vadd.f32 %v2712_v62, %v2594_v20  ;;  %3317 = vmatmul.msk.f32.gmra.mxu3 %vm885_vm6, %v2291_v61  ;;  %3349 = vmatmul.msk.f32.gmra.mxu0 %vm885_vm6, %v2288_v39 }
 0x42c   : > { %3384 = vmatmul.msk.f32.gmra.mxu1 %vm885_vm6, %v2320_v3 }
 0x42e   : > { %v2480_v43 = vpop.f32.mrf.mxu3 }
 0x430   : > { %v2596_v31 = vpop.f32.mrf.mxu0 }
 0x431   : > { %v2597_v56 = vadd.f32 %v2596_v31, %v2480_v43  ;;  %v2715_v45 = vpop.f32.mrf.mxu1 }
 0x433   : > { %v5533_v0 = vadd.f32 %v2715_v45, %v2597_v56  ;;  %3318 = vmatmul.msk.f32.gmra.mxu3 %vm885_vm6, %v2320_v3  ;;  %3350 = vmatmul.msk.f32.gmra.mxu0 %vm885_vm6, %v2289_v47 }
 0x434   : > { %3385 = vmatmul.msk.f32.gmra.mxu1 %vm885_vm6, %v2321_v23 }
 0x436   : > { %v2483_v39 = vpop.f32.mrf.mxu3 }
 0x438   : > { %v2599_v25 = vpop.f32.mrf.mxu0 }
 0x439   : > { %v2600_v52 = vadd.f32 %v2599_v25, %v2483_v39  ;;  %v2718_v8 = vpop.f32.mrf.mxu1 }
 0x43b   : > { %v5538_v27 = vadd.f32 %v2718_v8, %v2600_v52  ;;  %3319 = vmatmul.msk.f32.gmra.mxu3 %vm885_vm6, %v2321_v23  ;;  %3351 = vmatmul.msk.f32.gmra.mxu0 %vm885_vm6, %v2290_v38 }
 0x43c   : > { %3386 = vmatmul.msk.f32.gmra.mxu1 %vm885_vm6, %v2290_v38 }
 0x43e   : > { %v2486_v33 = vpop.f32.mrf.mxu3 }
 0x440   : > { %v2602_v46 = vpop.f32.mrf.mxu0 }
 0x441   : > { %v2603_v16 = vadd.f32 %v2602_v46, %v2486_v33  ;;  %v2721_v1 = vpop.f32.mrf.mxu1 }
 0x443   : > { %v5543_v22 = vadd.f32 %v2721_v1, %v2603_v16  ;;  %3352 = vmatmul.msk.f32.gmra.mxu0 %vm885_vm6, %v2291_v61  ;;  %v2561_v1 = vadd.f32 %v5408_v41, %v5406_v57 }
 0x444   : > { %3387 = vmatmul.msk.f32.gmra.mxu1 %vm885_vm6, %v2291_v61 }
 0x446   : > { %v2489_v47 = vpop.f32.mrf.mxu3 }
 0x448   : > { %v2605_v55 = vpop.f32.mrf.mxu0 }
 0x449   : > { %v2606_v63 = vadd.f32 %v2605_v55, %v2489_v47  ;;  %v2724_v54 = vpop.f32.mrf.mxu1  ;;  %v2558_v47 = vadd.f32 %v5396_v14, %v5394_v51  ;;  %v2570_v14 = vadd.f32 %v5444_v58, %v5442_v24 }
 0x44b   : > { %v5547_v36 = vadd.f32 %v2724_v54, %v2606_v63  ;;  %v2564_v63 = vadd.f32 %v5420_v18, %v5418_v48  ;;  %v5578_v54 = vadd.f32 %v5410_v49, %v2561_v1  ;;  %v5587_v57 = vadd.f32 %v5398_v35, %v2558_v47 }
 0x44c   : > { %v2573_v48 = vadd.f32 %v5456_v42, %v5454_v10 }
 0x44d   : > { %v5590_v51 = vadd.f32 %v5422_v44, %v2564_v63  ;;  %v2874_v41 = vmul.f32 %v5578_v54, %v5578_v54  ;;  %v2873_v18 = vmul.f32 %v5587_v57, %v5587_v57  ;;  %v2805_v44 = vsel %vm790_vm4, %v5578_v54, 0.0 }
 0x44e   : > { %v2492_v28 = vpop.f32.mrf.mxu3  ;;  %v2804_v24 = vsel %vm790_vm4, %v5587_v57, 0.0 }
 0x44f   : > { %v2906_v58 = vsel %vm790_vm4, %v2874_v41, 0.0  ;;  %v2807_v42 = vsel %vm790_vm4, %v5590_v51, 0.0 }
 0x450   : > { %v2608_v5 = vpop.f32.mrf.mxu0 }
 0x451   : > { %v2609_v17 = vadd.f32 %v2608_v5, %v2492_v28  ;;  %v2727_v38 = vpop.f32.mrf.mxu1  ;;  %v2567_v5 = vadd.f32 %v5434_v7, %v5430_v12  ;;  %v2875_v12 = vmul.f32 %v5590_v51, %v5590_v51  ;;  %v5610_v7 = vadd.f32 %v5446_v29, %v2570_v14 }
 0x452   : > { %v2579_v29 = vadd.f32 %v5480_v50, %v5478_v13 }
 0x453   : > { %v5549_v32 = vadd.f32 %v2727_v38, %v2609_v17  ;;  %v5597_v49 = vadd.f32 %v5436_v60, %v2567_v5  ;;  %v2576_v60 = vadd.f32 %v5470_v34, %v5466_v9  ;;  %v2905_v34 = vsel %vm790_vm4, %v2873_v18, 0.0 }
 0x454   : > { %v2811_v50 = vsel %vm790_vm4, %v5610_v7, 0.0 }
 0x455   : > { %v2876_v38 = vmul.f32 %v5597_v49, %v5597_v49 }
 0x456   : > { %v2495_v37 = vpop.f32.mrf.mxu3 }
 0x457   : > { %v2910_v13 = vsel %vm790_vm4, %v2876_v38, 0.0 }
 0x458   : > { %v2611_v20 = vpop.f32.mrf.mxu0 }
 0x459   : > { %v2612_v62 = vadd.f32 %v2611_v20, %v2495_v37  ;;  %v2730_v4 = vpop.f32.mrf.mxu1  ;;  %v5624_v37 = vadd.f32 %v5458_v15, %v2573_v48  ;;  %v2806_v20 = vadd.f32 %v2805_v44, %v2804_v24  ;;  %v2907_v15 = vadd.f32 %v2906_v58, %v2905_v34 }
 0x45a   : > { %v2881_v58 = vmul.f32 %v5493_v26, %v5493_v26  ;;  %v2819_v34 = vsel %vm790_vm4, %v5493_v26, 0.0 }
 0x45b   : > { %v5551_v3 = vadd.f32 %v2730_v4, %v2612_v62  ;;  %v2908_v62 = vsel %vm790_vm4, %v2875_v12, 0.0  ;;  %v2809_v4 = vsel %vm790_vm4, %v5597_v49, 0.0  ;;  %v2813_v1 = vsel %vm790_vm4, %v5624_v37, 0.0 }
 0x45e   : > { %v2498_v43 = vpop.f32.mrf.mxu3 }
 0x460   : > { %v2614_v61 = vpop.f32.mrf.mxu0 }
 0x461   : > { %v2615_v40 = vadd.f32 %v2614_v61, %v2498_v43  ;;  %v2733_v53 = vpop.f32.mrf.mxu1  ;;  %v2877_v43 = vmul.f32 %v5610_v7, %v5610_v7  ;;  %v5637_v61 = vadd.f32 %v5472_v11, %v2576_v60 }
 0x463   : > { %v5553_v31 = vadd.f32 %v2733_v53, %v2615_v40  ;;  %v2808_v40 = vadd.f32 %v2807_v42, %v2806_v20  ;;  %v2878_v53 = vmul.f32 %v5624_v37, %v5624_v37  ;;  %v2912_v11 = vsel %vm790_vm4, %v2877_v43, 0.0 }
 0x464   : > { %v2879_v47 = vmul.f32 %v5637_v61, %v5637_v61  ;;  %v2882_v20 = vmul.f32 %v5500_v19, %v5500_v19 }
 0x465   : > { %v2914_v41 = vsel %vm790_vm4, %v2878_v53, 0.0 }
 0x466   : > { %v2501_v56 = vpop.f32.mrf.mxu3  ;;  %v2916_v60 = vsel %vm790_vm4, %v2879_v47, 0.0 }
 0x468   : > { %v2617_v45 = vpop.f32.mrf.mxu0 }
 0x469   : > { %v2618_v30 = vadd.f32 %v2617_v45, %v2501_v56  ;;  %v2736_v23 = vpop.f32.mrf.mxu1  ;;  %v5645_v56 = vadd.f32 %v5482_v21, %v2579_v29  ;;  %v2909_v45 = vadd.f32 %v2908_v62, %v2907_v15  ;;  %v2815_v21 = vsel %vm790_vm4, %v5637_v61, 0.0 }
 0x46a   : > { %v2920_v15 = vsel %vm790_vm4, %v2881_v58, 0.0  ;;  %v2886_v58 = vmul.f32 %v5533_v0, %v5533_v0 }
 0x46b   : > { %v5555_v39 = vadd.f32 %v2736_v23, %v2618_v30  ;;  %v2810_v30 = vadd.f32 %v2809_v4, %v2808_v40  ;;  %v2911_v63 = vadd.f32 %v2910_v13, %v2909_v45  ;;  %v2880_v48 = vmul.f32 %v5645_v56, %v5645_v56 }
 0x46c   : > { %v2817_v24 = vsel %vm790_vm4, %v5645_v56, 0.0  ;;  %v2821_v40 = vsel %vm790_vm4, %v5500_v19, 0.0  ;;  %v2883_v13 = vmul.f32 %v5509_v59, %v5509_v59 }
 0x46d   : > { %v2812_v5 = vadd.f32 %v2811_v50, %v2810_v30  ;;  %v2913_v44 = vadd.f32 %v2912_v11, %v2911_v63  ;;  %v2918_v29 = vsel %vm790_vm4, %v2880_v48, 0.0  ;;  %v2922_v30 = vsel %vm790_vm4, %v2882_v20, 0.0 }
 0x46e   : > { %v5557_v25 = vpop.f32.mrf.mxu3  ;;  %v2823_v11 = vsel %vm790_vm4, %v5509_v59, 0.0  ;;  %v2885_v48 = vmul.f32 %v5524_v2, %v5524_v2  ;;  %v2829_v20 = vsel %vm790_vm4, %v5533_v0, 0.0 }
 0x46f   : > { %v2814_v12 = vadd.f32 %v2813_v1, %v2812_v5  ;;  %v2915_v42 = vadd.f32 %v2914_v41, %v2913_v44  ;;  %v2884_v1 = vmul.f32 %v5517_v6, %v5517_v6  ;;  %v2924_v41 = vsel %vm790_vm4, %v2883_v13, 0.0 }
 0x470   : > { %v5559_v52 = vpop.f32.mrf.mxu0  ;;  %v2930_v13 = vsel %vm790_vm4, %v2886_v58, 0.0 }
 0x471   : > { %v5561_v8 = vpop.f32.mrf.mxu1  ;;  %v2816_v38 = vadd.f32 %v2815_v21, %v2814_v12  ;;  %v2917_v62 = vadd.f32 %v2916_v60, %v2915_v42  ;;  %v2825_v21 = vsel %vm790_vm4, %v5517_v6, 0.0  ;;  %v2926_v60 = vsel %vm790_vm4, %v2884_v1, 0.0 }
 0x473   : > { %v2818_v4 = vadd.f32 %v2817_v24, %v2816_v38  ;;  %v2919_v50 = vadd.f32 %v2918_v29, %v2917_v62  ;;  %v2827_v24 = vsel %vm790_vm4, %v5524_v2, 0.0  ;;  %v2887_v62 = vmul.f32 %v5538_v27, %v5538_v27 }
 0x475   : > { %v2820_v53 = vadd.f32 %v2819_v34, %v2818_v4  ;;  %v2921_v63 = vadd.f32 %v2920_v15, %v2919_v50  ;;  %v2928_v34 = vsel %vm790_vm4, %v2885_v48, 0.0  ;;  %v2831_v50 = vsel %vm790_vm4, %v5538_v27, 0.0 }
 0x476   : > { %v5563_v33 = vpop.f32.mrf.mxu3 }
 0x477   : > { %v2822_v5 = vadd.f32 %v2821_v40, %v2820_v53  ;;  %v2923_v44 = vadd.f32 %v2922_v30, %v2921_v63  ;;  %v2888_v53 = vmul.f32 %v5543_v22, %v5543_v22  ;;  %v2932_v63 = vsel %vm790_vm4, %v2887_v62, 0.0 }
 0x478   : > { %v5565_v46 = vpop.f32.mrf.mxu0  ;;  %v2837_v62 = vsel %vm790_vm4, %v5549_v32, 0.0 }
 0x479   : > { %v5567_v16 = vpop.f32.mrf.mxu1  ;;  %v2824_v12 = vadd.f32 %v2823_v11, %v2822_v5  ;;  %v2925_v42 = vadd.f32 %v2924_v41, %v2923_v44  ;;  %v2833_v5 = vsel %vm790_vm4, %v5543_v22, 0.0  ;;  %v2889_v41 = vmul.f32 %v5547_v36, %v5547_v36 }
 0x47a   : > { %v2890_v44 = vmul.f32 %v5549_v32, %v5549_v32 }
 0x47b   : > { %v2826_v38 = vadd.f32 %v2825_v21, %v2824_v12  ;;  %v2927_v4 = vadd.f32 %v2926_v60, %v2925_v42  ;;  %v2934_v12 = vsel %vm790_vm4, %v2888_v53, 0.0  ;;  %v2835_v60 = vsel %vm790_vm4, %v5547_v36, 0.0 }
 0x47d   : > { %v2828_v15 = vadd.f32 %v2827_v24, %v2826_v38  ;;  %v2929_v11 = vadd.f32 %v2928_v34, %v2927_v4  ;;  %v2621_v24 = vadd.f32 %v5559_v52, %v5557_v25  ;;  %v2624_v38 = vadd.f32 %v5565_v46, %v5563_v33 }
 0x47e   : > { %v5573_v55 = vpop.f32.mrf.mxu3  ;;  %v2891_v4 = vmul.f32 %v5551_v3, %v5551_v3  ;;  %v2839_v25 = vsel %vm790_vm4, %v5551_v3, 0.0  ;;  %v2892_v52 = vmul.f32 %v5553_v31, %v5553_v31 }
 0x47f   : > { %v2830_v1 = vadd.f32 %v2829_v20, %v2828_v15  ;;  %v2931_v21 = vadd.f32 %v2930_v13, %v2929_v11  ;;  %v2936_v20 = vsel %vm790_vm4, %v2889_v41, 0.0  ;;  %v5738_v33 = vadd.f32 %v5561_v8, %v2621_v24 }
 0x480   : > { %v5580_v28 = vpop.f32.mrf.mxu0  ;;  %v2940_v41 = vsel %vm790_vm4, %v2891_v4, 0.0 }
 0x481   : > { %v5584_v17 = vpop.f32.mrf.mxu1  ;;  %v2832_v48 = vadd.f32 %v2831_v50, %v2830_v1  ;;  %v2933_v58 = vadd.f32 %v2932_v63, %v2931_v21  ;;  %v2938_v50 = vsel %vm790_vm4, %v2890_v44, 0.0  ;;  %v2627_v46 = vadd.f32 %v5580_v28, %v5573_v55 }
 0x482   : > { %v2841_v21 = vsel %vm790_vm4, %v5553_v31, 0.0  ;;  %v2942_v28 = vsel %vm790_vm4, %v2892_v52, 0.0 }
 0x483   : > { %v2834_v42 = vadd.f32 %v2833_v5, %v2832_v48  ;;  %v2935_v15 = vadd.f32 %v2934_v12, %v2933_v58  ;;  %v5743_v5 = vadd.f32 %v5567_v16, %v2624_v38  ;;  %v2893_v48 = vmul.f32 %v5555_v39, %v5555_v39 }
 0x484   : > { %v2843_v16 = vsel %vm790_vm4, %v5555_v39, 0.0  ;;  %v5760_v24 = vadd.f32 %v5584_v17, %v2627_v46 }
 0x485   : > { %v2836_v13 = vadd.f32 %v2835_v60, %v2834_v42  ;;  %v2937_v1 = vadd.f32 %v2936_v20, %v2935_v15  ;;  %v2894_v60 = vmul.f32 %v5738_v33, %v5738_v33  ;;  %v2944_v38 = vsel %vm790_vm4, %v2893_v48, 0.0 }
 0x486   : > { %v5603_v35 = vpop.f32.mrf.mxu3 }
 0x487   : > { %v2838_v63 = vadd.f32 %v2837_v62, %v2836_v13  ;;  %v2939_v44 = vadd.f32 %v2938_v50, %v2937_v1  ;;  %v2946_v13 = vsel %vm790_vm4, %v2894_v60, 0.0  ;;  %v2847_v50 = vsel %vm790_vm4, %v5743_v5, 0.0 }
 0x488   : > { %v5617_v10 = vpop.f32.mrf.mxu0 }
 0x489   : > { %v5628_v9 = vpop.f32.mrf.mxu1  ;;  %v2630_v8 = vadd.f32 %v5617_v10, %v5603_v35  ;;  %v2840_v12 = vadd.f32 %v2839_v25, %v2838_v63  ;;  %v2941_v58 = vadd.f32 %v2940_v41, %v2939_v44  ;;  %v2895_v35 = vmul.f32 %v5743_v5, %v5743_v5 }
 0x48a   : > { %v2896_v25 = vmul.f32 %v5760_v24, %v5760_v24 }
 0x48b   : > { %v2842_v42 = vadd.f32 %v2841_v21, %v2840_v12  ;;  %v2943_v62 = vadd.f32 %v2942_v28, %v2941_v58 }
 0x48d   : > { %v2844_v17 = vadd.f32 %v2843_v16, %v2842_v42  ;;  %v2945_v46 = vadd.f32 %v2944_v38, %v2943_v62 }
 0x48e   : > { %v5647_v23 = vpop.f32.mrf.mxu3 }
 0x48f   : > { %v2947_v21 = vadd.f32 %v2946_v13, %v2945_v46 }
 0x490   : > { %v5654_v14 = vpop.f32.mrf.mxu0 }
 0x491   : > { %v5661_v18 = vpop.f32.mrf.mxu1  ;;  %v2633_v55 = vadd.f32 %v5654_v14, %v5647_v23  ;;  %v2845_v23 = vsel %vm790_vm4, %v5738_v33, 0.0  ;;  %v5768_v14 = vadd.f32 %v5628_v9, %v2630_v8 }
 0x492   : > { %v2846_v1 = vadd.f32 %v2845_v23, %v2844_v17 }
 0x493   : > { %v5773_v4 = vadd.f32 %v5661_v18, %v2633_v55  ;;  %v2849_v18 = vsel %vm790_vm4, %v5760_v24, 0.0  ;;  %v2851_v8 = vsel %vm790_vm4, %v5768_v14, 0.0 }
 0x494   : > { %v2848_v48 = vadd.f32 %v2847_v50, %v2846_v1 }
 0x496   : > { %v5673_v43 = vpop.f32.mrf.mxu3  ;;  %v2850_v28 = vadd.f32 %v2849_v18, %v2848_v48 }
 0x498   : > { %v5680_v45 = vpop.f32.mrf.mxu0  ;;  %v2852_v42 = vadd.f32 %v2851_v8, %v2850_v28 }
 0x499   : > { %v5687_v47 = vpop.f32.mrf.mxu1  ;;  %v2636_v20 = vadd.f32 %v5680_v45, %v5673_v43  ;;  %v2948_v43 = vsel %vm790_vm4, %v2895_v35, 0.0  ;;  %v2897_v45 = vmul.f32 %v5768_v14, %v5768_v14 }
 0x49a   : > { %v2949_v55 = vadd.f32 %v2948_v43, %v2947_v21 }
 0x49b   : > { %v5787_v63 = vadd.f32 %v5687_v47, %v2636_v20  ;;  %v2952_v47 = vsel %vm790_vm4, %v2897_v45, 0.0 }
 0x49e   : > { %v5699_v29 = vpop.f32.mrf.mxu3 }
 0x4a0   : > { %v2638_v40 = vpop.f32.mrf.mxu0 }
 0x4a1   : > { %v5711_v30 = vpop.f32.mrf.mxu1  ;;  %v2639_v9 = vadd.f32 %v2638_v40, %v5699_v29  ;;  %v2898_v29 = vmul.f32 %v5773_v4, %v5773_v4  ;;  %v2950_v40 = vsel %vm790_vm4, %v2896_v25, 0.0 }
 0x4a2   : > { %v2951_v58 = vadd.f32 %v2950_v40, %v2949_v55 }
 0x4a3   : > { %v5795_v44 = vadd.f32 %v5711_v30, %v2639_v9  ;;  %v2954_v35 = vsel %vm790_vm4, %v2898_v29, 0.0 }
 0x4a4   : > { %v2953_v17 = vadd.f32 %v2952_v47, %v2951_v58 }
 0x4a5   : > { %v2900_v38 = vmul.f32 %v5795_v44, %v5795_v44  ;;  %v2857_v13 = vsel %vm790_vm4, %v5795_v44, 0.0 }
 0x4a6   : > { %v2525_v34 = vpop.f32.mrf.mxu3  ;;  %v2955_v9 = vadd.f32 %v2954_v35, %v2953_v17 }
 0x4a7   : > { %v2958_v1 = vsel %vm790_vm4, %v2900_v38, 0.0 }
 0x4a8   : > { %v2641_v53 = vpop.f32.mrf.mxu0 }
 0x4a9   : > { %v2760_v11 = vpop.f32.mrf.mxu1  ;;  %v2642_v41 = vadd.f32 %v2641_v53, %v2525_v34  ;;  %v2853_v34 = vsel %vm790_vm4, %v5773_v4, 0.0  ;;  %v2899_v53 = vmul.f32 %v5787_v63, %v5787_v63 }
 0x4ab   : > { %v5802_v60 = vadd.f32 %v2760_v11, %v2642_v41  ;;  %v2956_v11 = vsel %vm790_vm4, %v2899_v53, 0.0 }
 0x4ac   : > { %v2957_v18 = vadd.f32 %v2956_v11, %v2955_v9 }
 0x4ad   : > { %v2901_v50 = vmul.f32 %v5802_v60, %v5802_v60 }
 0x4ae   : > { %v2528_v10 = vpop.f32.mrf.mxu3  ;;  %v2959_v29 = vadd.f32 %v2958_v1, %v2957_v18 }
 0x4af   : > { %v2960_v41 = vsel %vm790_vm4, %v2901_v50, 0.0 }
 0x4b0   : > { %v2644_v15 = vpop.f32.mrf.mxu0  ;;  %v2961_v47 = vadd.f32 %v2960_v41, %v2959_v29 }
 0x4b1   : > { %v2763_v52 = vpop.f32.mrf.mxu1  ;;  %v2645_v12 = vadd.f32 %v2644_v15, %v2528_v10  ;;  %v2855_v10 = vsel %vm790_vm4, %v5787_v63, 0.0  ;;  %v2854_v15 = vadd.f32 %v2853_v34, %v2852_v42 }
 0x4b3   : > { %v5809_v23 = vadd.f32 %v2763_v52, %v2645_v12  ;;  %v2856_v46 = vadd.f32 %v2855_v10, %v2854_v15  ;;  %v2859_v52 = vsel %vm790_vm4, %v5802_v60, 0.0 }
 0x4b5   : > { %v2902_v43 = vmul.f32 %v5809_v23, %v5809_v23  ;;  %v2858_v45 = vadd.f32 %v2857_v13, %v2856_v46  ;;  %v2861_v21 = vsel %vm790_vm4, %v5809_v23, 0.0 }
 0x4b6   : > { %v2531_v16 = vpop.f32.mrf.mxu3 }
 0x4b7   : > { %v2860_v40 = vadd.f32 %v2859_v52, %v2858_v45  ;;  %v2962_v55 = vsel %vm790_vm4, %v2902_v43, 0.0 }
 0x4b8   : > { %v2647_v30 = vpop.f32.mrf.mxu0  ;;  %v2963_v35 = vadd.f32 %v2962_v55, %v2961_v47 }
 0x4b9   : > { %v2648_v20 = vadd.f32 %v2647_v30, %v2531_v16  ;;  %v2766_v62 = vpop.f32.mrf.mxu1  ;;  %v2862_v34 = vadd.f32 %v2861_v21, %v2860_v40 }
 0x4bb   : > { %v5816_v25 = vadd.f32 %v2766_v62, %v2648_v20 }
 0x4bd   : > { %v2903_v48 = vmul.f32 %v5816_v25, %v5816_v25  ;;  %v2863_v28 = vsel %vm790_vm4, %v5816_v25, 0.0 }
 0x4be   : > { %v2534_v8 = vpop.f32.mrf.mxu3  ;;  %v2864_v30 = vadd.f32 %v2863_v28, %v2862_v34 }
 0x4bf   : > { %v2964_v58 = vsel %vm790_vm4, %v2903_v48, 0.0 }
 0x4c0   : > { %v2650_v12 = vpop.f32.mrf.mxu0  ;;  %v2965_v20 = vadd.f32 %v2964_v58, %v2963_v35 }
 0x4c1   : > { %v2651_v16 = vadd.f32 %v2650_v12, %v2534_v8  ;;  %v2769_v53 = vpop.f32.mrf.mxu1 }
 0x4c3   : > { %v5832_v42 = vadd.f32 %v2769_v53, %v2651_v16 }
 0x4c5   : > { %v2865_v10 = vsel %vm790_vm4, %v5832_v42, 0.0  ;;  %v2904_v38 = vmul.f32 %v5832_v42, %v5832_v42 }
 0x4c6   : > { %v2866_v62 = vadd.f32 %v2865_v10, %v2864_v30 }
 0x4c7   : > { %v2966_v17 = vsel %vm790_vm4, %v2904_v38, 0.0 }
 0x4c8   : > { %v2867_v15 = vrot.slane %v2866_v62, 4  ;;  %v2967_v11 = vadd.f32 %v2966_v17, %v2965_v20 }
 0x4ca   : > { %v2868_v13 = vadd.f32 %v2867_v15, %v2866_v62  ;;  %v2968_v50 = vrot.slane %v2967_v11, 4 }
 0x4cc   : > { %v2869_v9 = vrot.slane %v2868_v13, 2  ;;  %v2969_v46 = vadd.f32 %v2968_v50, %v2967_v11  ;;  %v3410_v50 = vld [vmem:[%s3488_s17] sm:$0xff] }
 0x4ce   : > { %v2870_v1 = vadd.f32 %v2869_v9, %v2868_v13  ;;  %v2970_v52 = vrot.slane %v2969_v46, 2 }
 0x4d0   : > { %v2871_v43 = vrot.slane %v2870_v1, 1  ;;  %v2971_v18 = vadd.f32 %v2970_v52, %v2969_v46  ;;  %v3411_v46 = vld [vmem:[%s3488_s17 + $0x8] sm:$0xff]  ;;  %v3412_v52 = vld [vmem:[%s3488_s17 + $0x10] sm:$0xff] }
 0x4d2   : > { %v2872_v45 = vadd.f32 %v2871_v43, %v2870_v1  ;;  %v2972_v41 = vrot.slane %v2971_v18, 1 }
 0x4d4   : > { %v2973_v21 = vadd.f32 %v2972_v41, %v2971_v18  ;;  %v5839_v48 = vmul.f32 0.00390625, %v2872_v45 }
 0x4d6   : > { %v2975_v29 = vmul.f32 0.00390625, %v2973_v21  ;;  %v2976_v40 = vmul.f32 %v5839_v48, %v5839_v48  ;;  %v2979_v30 = vsub.f32 %v5587_v57, %v5839_v48  ;;  %v2980_v10 = vsub.f32 %v5578_v54, %v5839_v48 }
 0x4d7   : > { %v2981_v38 = vsub.f32 %v5590_v51, %v5839_v48  ;;  %v2982_v20 = vsub.f32 %v5597_v49, %v5839_v48  ;;  %v2983_v62 = vsub.f32 %v5610_v7, %v5839_v48  ;;  %v2984_v54 = vsub.f32 %v5624_v37, %v5839_v48 }
 0x4d8   : > { %v2977_v8 = vsub.f32 %v2975_v29, %v2976_v40  ;;  %v2985_v51 = vsub.f32 %v5637_v61, %v5839_v48  ;;  %v2986_v7 = vsub.f32 %v5645_v56, %v5839_v48  ;;  %v2987_v37 = vsub.f32 %v5493_v26, %v5839_v48  ;;  %v3413_v26 = vld [vmem:[%s3488_s17 + $0x18] sm:$0xff]  ;;  %v3414_v29 = vld [vmem:[%s3488_s17 + $0x20] sm:$0xff] }
 0x4d9   : > { %v2988_v56 = vsub.f32 %v5500_v19, %v5839_v48  ;;  %v2989_v41 = vsub.f32 %v5509_v59, %v5839_v48  ;;  %v2990_v19 = vsub.f32 %v5517_v6, %v5839_v48  ;;  %v2991_v59 = vsub.f32 %v5524_v2, %v5839_v48 }
 0x4da   : > { %v2978_v12 = vmax.f32 %v2977_v8, 0.0  ;;  %v2992_v6 = vsub.f32 %v5533_v0, %v5839_v48  ;;  %v2993_v2 = vsub.f32 %v5538_v27, %v5839_v48  ;;  %v2994_v0 = vsub.f32 %v5543_v22, %v5839_v48 }
 0x4db   : > { %v2995_v27 = vsub.f32 %v5547_v36, %v5839_v48  ;;  %v2996_v22 = vsub.f32 %v5549_v32, %v5839_v48  ;;  %v2997_v36 = vsub.f32 %v5551_v3, %v5839_v48  ;;  %v2998_v32 = vsub.f32 %v5553_v31, %v5839_v48 }
 0x4dc   : > { %v3011_v55 = vadd.f32 1e-05, %v2978_v12  ;;  %v3415_v12 = vld [vmem:[%s3488_s17 + $0x28] sm:$0xff]  ;;  %v2999_v3 = vsub.f32 %v5555_v39, %v5839_v48  ;;  %v3000_v31 = vsub.f32 %v5738_v33, %v5839_v48  ;;  %v3001_v39 = vsub.f32 %v5743_v5, %v5839_v48 }
 0x4dd   : > { %v3002_v33 = vsub.f32 %v5760_v24, %v5839_v48  ;;  %v3003_v5 = vsub.f32 %v5768_v14, %v5839_v48  ;;  %v3004_v24 = vsub.f32 %v5773_v4, %v5839_v48  ;;  %v3005_v14 = vsub.f32 %v5787_v63, %v5839_v48 }
 0x4de   : > { %3408 = vrsqrt.f32 %v3011_v55  ;;  %vm3018_vm11 = vweird.f32 %v3011_v55  ;;  %v3006_v4 = vsub.f32 %v5795_v44, %v5839_v48  ;;  %v3007_v63 = vsub.f32 %v5802_v60, %v5839_v48 }
 0x4df   : > { %v3008_v44 = vsub.f32 %v5809_v23, %v5839_v48  ;;  %v3009_v60 = vsub.f32 %v5816_v25, %v5839_v48  ;;  %v3010_v23 = vsub.f32 %v5832_v42, %v5839_v48  ;;  %v3437_v48 = vld [vmem:[%s3488_s17 + $0xd8] sm:$0xff] }
 0x4e4   : > { %v3409_v28 = vpop.eup %3408 }
 0x4e5   : > { %v3013_v16 = vmul.f32 %v3409_v28, %v3011_v55  ;;  %vm3019_vm10 = vweird.f32 %v3409_v28 }
 0x4e6   : > { %vm3020_vm12 = vmor %vm3018_vm11, %vm3019_vm10 }
 0x4e7   : > { %v3014_v47 = vmul.f32 %v3409_v28, %v3013_v16  ;;  %v3416_v16 = vld [vmem:[%s3488_s17 + $0x30] sm:$0xff] }
 0x4e9   : > { %v3015_v34 = vmul.f32 0.5, %v3014_v47 }
 0x4eb   : > { %v3016_v53 = vsub.f32 1.5, %v3015_v34 }
 0x4ed   : > { %v3017_v58 = vmul.f32 %v3409_v28, %v3016_v53  ;;  %v3417_v53 = vld [vmem:[%s3488_s17 + $0x38] sm:$0xff] }
 0x4ef   : > { %v5843_v35 = vsel %vm3020_vm12, %v3409_v28, %v3017_v58 }
 0x4f0   : > { %v3022_v17 = vmul.f32 %v5843_v35, %v2979_v30  ;;  %v3023_v15 = vmul.f32 %v5843_v35, %v2980_v10  ;;  %v3024_v57 = vmul.f32 %v5843_v35, %v2981_v38  ;;  %v3025_v11 = vmul.f32 %v5843_v35, %v2982_v20  ;;  %v3418_v10 = vld [vmem:[%s3488_s17 + $0x40] sm:$0xff] }
 0x4f1   : > { %v3026_v49 = vmul.f32 %v5843_v35, %v2983_v62  ;;  %v3027_v13 = vmul.f32 %v5843_v35, %v2984_v54  ;;  %v3028_v61 = vmul.f32 %v5843_v35, %v2985_v51  ;;  %v3029_v18 = vmul.f32 %v5843_v35, %v2986_v7  ;;  %v3419_v62 = vld [vmem:[%s3488_s17 + $0x48] sm:$0xff]  ;;  %v3421_v51 = vld [vmem:[%s3488_s17 + $0x58] sm:$0xff] }
 0x4f2   : > { %v3054_v9 = vadd.f32 %v3410_v50, %v3022_v17  ;;  %v3055_v1 = vadd.f32 %v3411_v46, %v3023_v15  ;;  %v3056_v43 = vadd.f32 %v3412_v52, %v3024_v57  ;;  %v3057_v45 = vadd.f32 %v3413_v26, %v3025_v11  ;;  %v3420_v57 = vld [vmem:[%s3488_s17 + $0x50] sm:$0xff]  ;;  %v3423_v50 = vld [vmem:[%s3488_s17 + $0x68] sm:$0xff] }
 0x4f3   : > { %v3030_v21 = vmul.f32 %v5843_v35, %v2987_v37  ;;  %v3058_v40 = vadd.f32 %v3414_v29, %v3026_v49  ;;  %v3031_v8 = vmul.f32 %v5843_v35, %v2988_v56  ;;  %v3059_v55 = vadd.f32 %v3415_v12, %v3027_v13  ;;  %v3422_v37 = vld [vmem:[%s3488_s17 + $0x60] sm:$0xff]  ;;  %v3425_v56 = vld [vmem:[%s3488_s17 + $0x78] sm:$0xff]  ;;  %v3427_v29 = vld [vmem:[%s3488_s17 + $0x88] sm:$0xff] }
 0x4f4   : > { %3086 = vst.msk [vmem:[%s5869_s23] sm:$0xff] %vm790_vm4, %v3054_v9  ;;  %v3032_v28 = vmul.f32 %v5843_v35, %v2989_v41  ;;  %v3060_v47 = vadd.f32 %v3416_v16, %v3028_v61  ;;  %v3033_v34 = vmul.f32 %v5843_v35, %v2990_v19  ;;  %v3061_v58 = vadd.f32 %v3417_v53, %v3029_v18  ;;  %v3431_v53 = vld [vmem:[%s3488_s17 + $0xa8] sm:$0xff] }
 0x4f5   : > { %3087 = vst.msk [vmem:[%s5869_s23 + $0x8] sm:$0xff] %vm790_vm4, %v3055_v1  ;;  %v3034_v30 = vmul.f32 %v5843_v35, %v2991_v59  ;;  %v3062_v38 = vadd.f32 %v3418_v10, %v3030_v21  ;;  %v3035_v20 = vmul.f32 %v5843_v35, %v2992_v6  ;;  %v3063_v17 = vadd.f32 %v3419_v62, %v3031_v8  ;;  %v3424_v1 = vld [vmem:[%s3488_s17 + $0x70] sm:$0xff]  ;;  %v3429_v59 = vld [vmem:[%s3488_s17 + $0x98] sm:$0xff] }
 0x4f6   : > { %3088 = vst.msk [vmem:[%s5869_s23 + $0x10] sm:$0xff] %vm790_vm4, %v3056_v43  ;;  %v3036_v15 = vmul.f32 %v5843_v35, %v2993_v2  ;;  %v3064_v54 = vadd.f32 %v3420_v57, %v3032_v28  ;;  %v3037_v11 = vmul.f32 %v5843_v35, %v2994_v0  ;;  %v3065_v49 = vadd.f32 %v3421_v51, %v3033_v34  ;;  %v3428_v8 = vld [vmem:[%s3488_s17 + $0x90] sm:$0xff]  ;;  %v3433_v0 = vld [vmem:[%s3488_s17 + $0xb8] sm:$0xff]  ;;  %v3435_v57 = vld [vmem:[%s3488_s17 + $0xc8] sm:$0xff] }
 0x4f7   : > { %3089 = vst.msk [vmem:[%s5869_s23 + $0x18] sm:$0xff] %vm790_vm4, %v3057_v45  ;;  %v3038_v7 = vmul.f32 %v5843_v35, %v2995_v27  ;;  %v3066_v13 = vadd.f32 %v3422_v37, %v3034_v30  ;;  %v3039_v61 = vmul.f32 %v5843_v35, %v2996_v22  ;;  %v3067_v9 = vadd.f32 %v3423_v50, %v3035_v20  ;;  %v3426_v45 = vld [vmem:[%s3488_s17 + $0x80] sm:$0xff]  ;;  %v3432_v30 = vld [vmem:[%s3488_s17 + $0xb0] sm:$0xff] }
 0x4f8   : > { %3090 = vst.msk [vmem:[%s5869_s23 + $0x20] sm:$0xff] %vm790_vm4, %v3058_v40  ;;  %v3040_v46 = vmul.f32 %v5843_v35, %v2997_v36  ;;  %v3068_v52 = vadd.f32 %v3424_v1, %v3036_v15  ;;  %v3041_v43 = vmul.f32 %v5843_v35, %v2998_v32  ;;  %v3069_v18 = vadd.f32 %v3425_v56, %v3037_v11  ;;  %v3436_v22 = vld [vmem:[%s3488_s17 + $0xd0] sm:$0xff] }
 0x4f9   : > { %3091 = vst.msk [vmem:[%s5869_s23 + $0x28] sm:$0xff] %vm790_vm4, %v3059_v55  ;;  %v3042_v26 = vmul.f32 %v5843_v35, %v2999_v3  ;;  %v3070_v41 = vadd.f32 %v3426_v45, %v3038_v7  ;;  %v3043_v21 = vmul.f32 %v5843_v35, %v3000_v31  ;;  %v3071_v40 = vadd.f32 %v3427_v29, %v3039_v61  ;;  %v3439_v7 = vld [vmem:[%s3488_s17 + $0xe8] sm:$0xff] }
 0x4fa   : > { %3092 = vst.msk [vmem:[%s5869_s23 + $0x30] sm:$0xff] %vm790_vm4, %v3060_v47  ;;  %v3044_v19 = vmul.f32 %v5843_v35, %v3001_v39  ;;  %v3072_v12 = vadd.f32 %v3428_v8, %v3040_v46  ;;  %v3045_v55 = vmul.f32 %v5843_v35, %v3002_v33  ;;  %v3073_v28 = vadd.f32 %v3429_v59, %v3041_v43  ;;  %v3430_v47 = vld [vmem:[%s3488_s17 + $0xa0] sm:$0xff] }
 0x4fb   : > { %3093 = vst.msk [vmem:[%s5869_s23 + $0x38] sm:$0xff] %vm790_vm4, %v3061_v58  ;;  %v3046_v16 = vmul.f32 %v5843_v35, %v3003_v5  ;;  %v3074_v6 = vadd.f32 %v3430_v47, %v3042_v26  ;;  %v3047_v34 = vmul.f32 %v5843_v35, %v3004_v24  ;;  %v3075_v58 = vadd.f32 %v3431_v53, %v3043_v21 }
 0x4fc   : > { %3094 = vst.msk [vmem:[%s5869_s23 + $0x40] sm:$0xff] %vm790_vm4, %v3062_v38  ;;  %v3048_v2 = vmul.f32 %v5843_v35, %v3005_v14  ;;  %v3076_v10 = vadd.f32 %v3432_v30, %v3044_v19  ;;  %v3049_v38 = vmul.f32 %v5843_v35, %v3006_v4  ;;  %v3077_v20 = vadd.f32 %v3433_v0, %v3045_v55 }
 0x4fd   : > { %3095 = vst.msk [vmem:[%s5869_s23 + $0x48] sm:$0xff] %vm790_vm4, %v3063_v17  ;;  %v3050_v62 = vmul.f32 %v5843_v35, %v3007_v63  ;;  %v3434_v17 = vld [vmem:[%s3488_s17 + $0xc0] sm:$0xff]  ;;  %v3051_v15 = vmul.f32 %v5843_v35, %v3008_v44  ;;  %v3052_v25 = vmul.f32 %v5843_v35, %v3009_v60  ;;  %v3053_v42 = vmul.f32 %v5843_v35, %v3010_v23  ;;  %v3441_v35 = vld [vmem:[%s3488_s17 + $0xf8] sm:$0xff] }
 0x4fe   : > { %3096 = vst.msk [vmem:[%s5869_s23 + $0x50] sm:$0xff] %vm790_vm4, %v3064_v54  ;;  %v3078_v27 = vadd.f32 %v3434_v17, %v3046_v16  ;;  %v3079_v54 = vadd.f32 %v3435_v57, %v3047_v34  ;;  %v3080_v11 = vadd.f32 %v3436_v22, %v3048_v2  ;;  %v3081_v51 = vadd.f32 %v3437_v48, %v3049_v38 }
 0x4ff   : > { %3097 = vst.msk [vmem:[%s5869_s23 + $0x58] sm:$0xff] %vm790_vm4, %v3065_v49  ;;  %v3438_v49 = vld [vmem:[%s3488_s17 + $0xe0] sm:$0xff]  ;;  %v3083_v37 = vadd.f32 %v3439_v7, %v3051_v15  ;;  %v3085_v61 = vadd.f32 %v3441_v35, %v3053_v42 }
 0x500   : > { %3098 = vst.msk [vmem:[%s5869_s23 + $0x60] sm:$0xff] %vm790_vm4, %v3066_v13  ;;  %v3082_v36 = vadd.f32 %v3438_v49, %v3050_v62  ;;  %v3440_v13 = vld [vmem:[%s3488_s17 + $0xf0] sm:$0xff] }
 0x501   : > { %3099 = vst.msk [vmem:[%s5869_s23 + $0x68] sm:$0xff] %vm790_vm4, %v3067_v9  ;;  %v3084_v32 = vadd.f32 %v3440_v13, %v3052_v25 }
 0x502   : > { %3100 = vst.msk [vmem:[%s5869_s23 + $0x70] sm:$0xff] %vm790_vm4, %v3068_v52 }
 0x503   : > { %3101 = vst.msk [vmem:[%s5869_s23 + $0x78] sm:$0xff] %vm790_vm4, %v3069_v18 }
 0x504   : > { %3102 = vst.msk [vmem:[%s5869_s23 + $0x80] sm:$0xff] %vm790_vm4, %v3070_v41 }
 0x505   : > { %3103 = vst.msk [vmem:[%s5869_s23 + $0x88] sm:$0xff] %vm790_vm4, %v3071_v40 }
 0x506   : > { %3104 = vst.msk [vmem:[%s5869_s23 + $0x90] sm:$0xff] %vm790_vm4, %v3072_v12 }
 0x507   : > { %3105 = vst.msk [vmem:[%s5869_s23 + $0x98] sm:$0xff] %vm790_vm4, %v3073_v28 }
 0x508   : > { %3106 = vst.msk [vmem:[%s5869_s23 + $0xa0] sm:$0xff] %vm790_vm4, %v3074_v6 }
 0x509   : > { %3107 = vst.msk [vmem:[%s5869_s23 + $0xa8] sm:$0xff] %vm790_vm4, %v3075_v58 }
 0x50a   : > { %3108 = vst.msk [vmem:[%s5869_s23 + $0xb0] sm:$0xff] %vm790_vm4, %v3076_v10 }
 0x50b   : > { %3109 = vst.msk [vmem:[%s5869_s23 + $0xb8] sm:$0xff] %vm790_vm4, %v3077_v20 }
 0x50c   : > { %3110 = vst.msk [vmem:[%s5869_s23 + $0xc0] sm:$0xff] %vm790_vm4, %v3078_v27 }
 0x50d   : > { %3111 = vst.msk [vmem:[%s5869_s23 + $0xc8] sm:$0xff] %vm790_vm4, %v3079_v54 }
 0x50e   : > { %3112 = vst.msk [vmem:[%s5869_s23 + $0xd0] sm:$0xff] %vm790_vm4, %v3080_v11 }
 0x50f   : > { %3113 = vst.msk [vmem:[%s5869_s23 + $0xd8] sm:$0xff] %vm790_vm4, %v3081_v51 }
 0x510   : > { %3114 = vst.msk [vmem:[%s5869_s23 + $0xe0] sm:$0xff] %vm790_vm4, %v3082_v36 }
 0x511   : > { %3115 = vst.msk [vmem:[%s5869_s23 + $0xe8] sm:$0xff] %vm790_vm4, %v3083_v37 }
 0x512   : > { %3116 = vst.msk [vmem:[%s5869_s23 + $0xf0] sm:$0xff] %vm790_vm4, %v3084_v32 }
 0x513   : > { %3117 = vst.msk [vmem:[%s5869_s23 + $0xf8] sm:$0xff] %vm790_vm4, %v3085_v61 }
 0x514 PF: > { %s13_s12 = sadd.s32 1, %s3448_s12  }
 0x515   : > { %p10_p4 = scmp.ge.s32.totalorder %s13_s12, 4  }
 0x517   :  { %12 = sbr.rel (!%p10_p4) target bundleno = 1 (0x1), region = 66 }

</bundles_post_ra>
